<compile_context>
chip_gen: v7x
topology: tpu7x:2x2x1
jax: 0.10.0
libtpu: 0.0.40
codegen_flags: <defaults>
</compile_context>

<pallas_src>
import math

import jax
import jax.numpy as jnp
import numpy as np
from jax.experimental import pallas as pl
from jax.experimental.pallas import tpu as pltpu

EPS = 1e-5
_VMEM_LIMIT = 32 * 1024 * 1024     # safe scoped-VMEM budget on v5e/v6e/v7x
_SA_K = 7
_SA_PAD = 3


# ----------------------------------------------------------------------------
# Fused Pallas kernel (one batch element per grid step)
# ----------------------------------------------------------------------------
def _make_fused_kernel(cin, h0, w0, h1, w1):
    def kernel(x_ref, w0_ref, b0_ref, w1_ref, b1_ref, wsa_ref, o_ref,
               f0_ref, st_ref):
        # x_ref : (1, 4, Hh, Wh, Cin) parity-decomposed NHWC input (one batch
        #         element); plane p = 2*(row parity) + (col parity).
        # w0_ref: (9*Cin, 32), b0_ref: (1, 32)   conv0 with BN scale folded
        # w1_ref: (9*32, 64),  b1_ref: (1, 64)   conv1 with BN scale folded
        # wsa_ref: (2*7*7,) scalar taps in SMEM, (cin, kh, kw) order
        # o_ref : (1, H1, W1, 1) sigmoid attention map
        # f0_ref: (H0, W0, 32) VMEM scratch (conv0 activation)
        # st_ref: (H1+6, W1+6, 2) VMEM scratch (zero-padded [mean,max] map)
        b0 = b0_ref[...]
        b1 = b1_ref[...]

        # ---- conv0: 3x3 stride-2 + folded BN + ReLU, one output row at a time
        for i in range(h0):
            acc = jnp.zeros((w0, 32), jnp.float32)
            for di in range(3):
                pi, oi = di % 2, di // 2
                for dj in range(3):
                    pj, oj = dj % 2, dj // 2
                    t = di * 3 + dj
                    xs = x_ref[0, pi * 2 + pj, oi + i, oj:oj + w0, :]   # (W0, Cin)
                    acc += jnp.dot(xs, w0_ref[t * cin:(t + 1) * cin, :],
                                   preferred_element_type=jnp.float32)
            f0_ref[i, :, :] = jnp.maximum(acc + b0, 0.0)

        # zero-padded stats map: padding ring must be 0 on every grid step
        st_ref[...] = jnp.zeros_like(st_ref)

        # ---- conv1: 3x3 + folded BN + ReLU + channel mean/max, fused per row
        for h in range(h1):
            acc = jnp.zeros((w1, 64), jnp.float32)
            for di in range(3):
                for dj in range(3):
                    t = di * 3 + dj
                    fs = f0_ref[h + di, dj:dj + w1, :]                  # (W1, 32)
                    acc += jnp.dot(fs, w1_ref[t * 32:(t + 1) * 32, :],
                                   preferred_element_type=jnp.float32)
            f1 = jnp.maximum(acc + b1, 0.0)                             # (W1, 64)
            st_ref[_SA_PAD + h, _SA_PAD:_SA_PAD + w1, :] = jnp.concatenate(
                [jnp.mean(f1, axis=-1, keepdims=True),
                 jnp.max(f1, axis=-1, keepdims=True)], axis=-1)         # (W1, 2)

        # ---- SpatialAttention: 7x7 conv (pad 3, bias-free) + sigmoid ----
        acc0 = jnp.zeros((h1, w1, 1), jnp.float32)
        acc1 = jnp.zeros((h1, w1, 1), jnp.float32)
        for di in range(_SA_K):
            for dj in range(_SA_K):
                acc0 = acc0 + wsa_ref[di * _SA_K + dj] * \
                    st_ref[di:di + h1, dj:dj + w1, 0:1]
                acc1 = acc1 + wsa_ref[_SA_K * _SA_K + di * _SA_K + dj] * \
                    st_ref[di:di + h1, dj:dj + w1, 1:2]
        o_ref[0] = jax.nn.sigmoid(acc0 + acc1)

    return kernel


def _fused_forward(x_pp, prep, n, cin, hh, wh, h0, w0, h1, w1):
    kernel = _make_fused_kernel(cin, h0, w0, h1, w1)
    return pl.pallas_call(
        kernel,
        out_shape=jax.ShapeDtypeStruct((n, h1, w1, 1), jnp.float32),
        grid_spec=pltpu.PrefetchScalarGridSpec(
            num_scalar_prefetch=0,
            grid=(n,),
            in_specs=[
                pl.BlockSpec((1, 4, hh, wh, cin), lambda b: (b, 0, 0, 0, 0)),
                pl.BlockSpec((9 * cin, 32), lambda b: (0, 0)),
                pl.BlockSpec((1, 32), lambda b: (0, 0)),
                pl.BlockSpec((9 * 32, 64), lambda b: (0, 0)),
                pl.BlockSpec((1, 64), lambda b: (0, 0)),
                pl.BlockSpec(memory_space=pltpu.MemorySpace.SMEM),
            ],
            out_specs=pl.BlockSpec((1, h1, w1, 1), lambda b: (b, 0, 0, 0)),
            scratch_shapes=[
                pltpu.VMEM((h0, w0, 32), jnp.float32),
                pltpu.VMEM((h1 + 2 * _SA_PAD, w1 + 2 * _SA_PAD, 2), jnp.float32),
            ],
        ),
        compiler_params=pltpu.CompilerParams(
            dimension_semantics=("parallel",),
            vmem_limit_bytes=_VMEM_LIMIT,
        ),
    )(x_pp, prep["w0_mat"], prep["b0"], prep["w1_mat"], prep["b1"],
      prep["wsa_flat"])


# ----------------------------------------------------------------------------
# Host-side BN folding
# ----------------------------------------------------------------------------
def _fold_bn_into_conv(w_oihw, gamma, beta, mean, var):
    scale = gamma / jnp.sqrt(var + EPS)                 # (Cout,)
    w_f = w_oihw * scale[:, None, None, None]
    bias = beta - mean * scale
    # (Cout, Cin, kh, kw) -> (kh, kw, Cin, Cout): rows ordered (tap, cin).
    w_mat = jnp.transpose(w_f, (2, 3, 1, 0)).reshape(-1, w_oihw.shape[0])
    return w_mat, bias[None, :]


def prepare_inference_params(params):
    w0_mat, b0 = _fold_bn_into_conv(params["w0"], params["bn0_g"], params["bn0_b"],
                                    params["bn0_m"], params["bn0_v"])
    w1_mat, b1 = _fold_bn_into_conv(params["w1"], params["bn1_g"], params["bn1_b"],
                                    params["bn1_m"], params["bn1_v"])
    return {"w0_mat": w0_mat, "b0": b0,
            "w1_mat": w1_mat, "b1": b1,
            "wsa_flat": params["wsa"].reshape(-1)}      # (2*7*7,), (cin, kh, kw)


# ----------------------------------------------------------------------------
# SRMPixelAttention forward (Pallas-backed)
# ----------------------------------------------------------------------------
@jax.jit
def srm_pixel_attention(x_nchw, prep):
    n, cin, h, w = x_nchw.shape
    x = jnp.transpose(x_nchw, (0, 2, 3, 1))             # NHWC (only big transpose)
    # Pad H/W to even; the padded row/col is never read by a valid stride-2
    # window, so outputs are bit-identical.
    if h % 2 or w % 2:
        x = jnp.pad(x, ((0, 0), (0, h % 2), (0, w % 2), (0, 0)))
    hh, wh = x.shape[1] // 2, x.shape[2] // 2
    h0, w0 = (h - 3) // 2 + 1, (w - 3) // 2 + 1         # conv0 output (stride 2)
    h1, w1 = h0 - 2, w0 - 2                             # conv1 / SA output
    # Parity decomposition: plane (pi,pj) holds x[2i+pi, 2j+pj, :], so the
    # stride-2 conv becomes plain static Ref slices inside the kernel.
    x_pp = x.reshape(n, hh, 2, wh, 2, cin).transpose(0, 2, 4, 1, 3, 5)
    x_pp = x_pp.reshape(n, 4, hh, wh, cin)
    att = _fused_forward(x_pp, prep, n, cin, hh, wh, h0, w0, h1, w1)
    return jnp.transpose(att, (0, 3, 1, 2))             # NCHW (N, 1, H1, W1)


# ----------------------------------------------------------------------------
# Deterministic parameter init (kaiming_normal_ with a=1 -> std = 1/sqrt(fan_in))
# ----------------------------------------------------------------------------
def make_params(in_channels, key):
    k0, k1, k2 = jax.random.split(key, 3)

    def kaiming(k, shape):  # shape = (Cout, Cin, kh, kw)
        fan_in = shape[1] * shape[2] * shape[3]
        std = math.sqrt(2.0 / (1.0 + 1.0 ** 2) / fan_in)
        return std * jax.random.normal(k, shape, dtype=jnp.float32)

    w0 = kaiming(k0, (32, in_channels, 3, 3))
    w1 = kaiming(k1, (64, 32, 3, 3))
    wsa = kaiming(k2, (1, 2, 7, 7))

    def bn(c, off):
        i = jnp.arange(c, dtype=jnp.float32)
        gamma = 1.0 + 0.05 * jnp.cos(i + off)
        beta = 0.02 * jnp.sin(i + off)
        mean = 0.01 * (i - c / 2.0) / c
        var = 1.0 + 0.1 * (i / c)
        return gamma, beta, mean, var

    bn0 = bn(32, 0.0)
    bn1 = bn(64, 1.0)
    return {
        "w0": w0, "w1": w1, "wsa": wsa,
        "bn0_g": bn0[0], "bn0_b": bn0[1], "bn0_m": bn0[2], "bn0_v": bn0[3],
        "bn1_g": bn1[0], "bn1_b": bn1[1], "bn1_m": bn1[2], "bn1_v": bn1[3],
    }


# ----------------------------------------------------------------------------
# Pure-JAX reference (same semantics) for a sanity check
# ----------------------------------------------------------------------------
def reference_forward(x, params):
    def conv(x, w, stride, pad):
        return jax.lax.conv_general_dilated(
            x, w, (stride, stride), [(pad, pad), (pad, pad)],
            dimension_numbers=("NCHW", "OIHW", "NCHW"))

    def bn_relu(x, g, b, m, v):
        y = (x - m[None, :, None, None]) / jnp.sqrt(v + EPS)[None, :, None, None]
        return jnp.maximum(y * g[None, :, None, None] + b[None, :, None, None], 0.0)

    f = bn_relu(conv(x, params["w0"], 2, 0),
                params["bn0_g"], params["bn0_b"], params["bn0_m"], params["bn0_v"])
    f = bn_relu(conv(f, params["w1"], 1, 0),
                params["bn1_g"], params["bn1_b"], params["bn1_m"], params["bn1_v"])
    avg = jnp.mean(f, axis=1, keepdims=True)
    mx = jnp.max(f, axis=1, keepdims=True)
    cat = jnp.concatenate([avg, mx], axis=1)
    out = conv(cat, params["wsa"], 1, 3)
    return jax.nn.sigmoid(out)


if __name__ == "__main__":
    key = jax.random.PRNGKey(0)
    kx, kp = jax.random.split(key)

    in_channels = 4
    x = jax.random.normal(kx, (2, in_channels, 16, 16), dtype=jnp.float32)
    params = make_params(in_channels, kp)
    prep = prepare_inference_params(params)

    att_map = jax.block_until_ready(srm_pixel_attention(x, prep))
    ref = jax.block_until_ready(reference_forward(x, params))

    assert att_map.shape == (2, 1, 5, 5), att_map.shape
    np.testing.assert_allclose(np.asarray(att_map), np.asarray(ref),
                               rtol=1e-3, atol=1e-4)
    print("KERNEL_OK")
</pallas_src>

<mosaic_0001>
module attributes {stable_mosaic.version = 11 : i64} {
  func.func @kernel(%arg0: i32, %arg1: memref<1x4x8x8x4xf32, #tpu.memory_space<vmem>>, %arg2: memref<36x32xf32, #tpu.memory_space<vmem>>, %arg3: memref<1x32xf32, #tpu.memory_space<vmem>>, %arg4: memref<288x64xf32, #tpu.memory_space<vmem>>, %arg5: memref<1x64xf32, #tpu.memory_space<vmem>>, %arg6: memref<98xf32, #tpu.memory_space<smem>>, %arg7: memref<1x5x5x1xf32, #tpu.memory_space<vmem>>, %arg8: memref<7x7x32xf32, #tpu.memory_space<vmem>>, %arg9: memref<11x11x2xf32, #tpu.memory_space<vmem>>) attributes {dimension_semantics = [#tpu.dimension_semantics<parallel>], iteration_bounds = array<i64: 2>, scalar_prefetch = 0 : i64, scratch_operands = 2 : i64, tpu.core_type = #tpu.core_type<tc>, window_params = [{transform_indices = @transform_0, window_bounds = array<i64: 1, 4, 8, 8, 4>}, {pipeline_mode = #tpu.pipeline_mode<synchronous>, transform_indices = @transform_1, window_bounds = array<i64: 36, 32>}, {pipeline_mode = #tpu.pipeline_mode<synchronous>, transform_indices = @transform_2, window_bounds = array<i64: 1, 32>}, {pipeline_mode = #tpu.pipeline_mode<synchronous>, transform_indices = @transform_3, window_bounds = array<i64: 288, 64>}, {pipeline_mode = #tpu.pipeline_mode<synchronous>, transform_indices = @transform_4, window_bounds = array<i64: 1, 64>}, {transform_indices = @transform_5, window_bounds = array<i64: 98>}, {transform_indices = @transform_6, window_bounds = array<i64: 1, 5, 5, 1>}]} {
    %c0 = arith.constant 0 : index
    %c0_0 = arith.constant 0 : index
    %0 = vector.load %arg3[%c0, %c0_0] : memref<1x32xf32, #tpu.memory_space<vmem>>, vector<1x32xf32>
    %c0_1 = arith.constant 0 : index
    %c0_2 = arith.constant 0 : index
    %1 = vector.load %arg5[%c0_1, %c0_2] : memref<1x64xf32, #tpu.memory_space<vmem>>, vector<1x64xf32>
    %cst = arith.constant 0.000000e+00 : f32
    %2 = vector.broadcast %cst : f32 to vector<7x32xf32>
    %c0_3 = arith.constant 0 : index
    %c0_4 = arith.constant 0 : index
    %c0_5 = arith.constant 0 : index
    %c0_6 = arith.constant 0 : index
    %c0_7 = arith.constant 0 : index
    %3 = vector.load %arg1[%c0_3, %c0_4, %c0_5, %c0_6, %c0_7] : memref<1x4x8x8x4xf32, #tpu.memory_space<vmem>>, vector<1x1x1x7x4xf32>
    %4 = vector.shape_cast %3 : vector<1x1x1x7x4xf32> to vector<7x4xf32>
    %c0_8 = arith.constant 0 : index
    %c0_9 = arith.constant 0 : index
    %5 = vector.load %arg2[%c0_8, %c0_9] : memref<36x32xf32, #tpu.memory_space<vmem>>, vector<4x32xf32>
    %cst_10 = arith.constant dense<0.000000e+00> : vector<7x32xf32>
    %6 = tpu.matmul %4, %5, %cst_10 {dimension_numbers = #tpu.dot_dimension_numbers<[1], [0], [0], [1], [0, 0, 1, 1], [], []>} : vector<7x4xf32>, vector<4x32xf32>, vector<7x32xf32> -> vector<7x32xf32>
    %7 = arith.addf %2, %6 : vector<7x32xf32>
    %c0_11 = arith.constant 0 : index
    %c1 = arith.constant 1 : index
    %c0_12 = arith.constant 0 : index
    %c0_13 = arith.constant 0 : index
    %c0_14 = arith.constant 0 : index
    %8 = vector.load %arg1[%c0_11, %c1, %c0_12, %c0_13, %c0_14] : memref<1x4x8x8x4xf32, #tpu.memory_space<vmem>>, vector<1x1x1x7x4xf32>
    %9 = vector.shape_cast %8 : vector<1x1x1x7x4xf32> to vector<7x4xf32>
    %c4 = arith.constant 4 : index
    %c0_15 = arith.constant 0 : index
    %10 = vector.load %arg2[%c4, %c0_15] : memref<36x32xf32, #tpu.memory_space<vmem>>, vector<4x32xf32>
    %cst_16 = arith.constant dense<0.000000e+00> : vector<7x32xf32>
    %11 = tpu.matmul %9, %10, %cst_16 {dimension_numbers = #tpu.dot_dimension_numbers<[1], [0], [0], [1], [0, 0, 1, 1], [], []>} : vector<7x4xf32>, vector<4x32xf32>, vector<7x32xf32> -> vector<7x32xf32>
    %12 = arith.addf %7, %11 : vector<7x32xf32>
    %c0_17 = arith.constant 0 : index
    %c0_18 = arith.constant 0 : index
    %c0_19 = arith.constant 0 : index
    %c1_20 = arith.constant 1 : index
    %c0_21 = arith.constant 0 : index
    %13 = vector.load %arg1[%c0_17, %c0_18, %c0_19, %c1_20, %c0_21] : memref<1x4x8x8x4xf32, #tpu.memory_space<vmem>>, vector<1x1x1x7x4xf32>
    %14 = vector.shape_cast %13 : vector<1x1x1x7x4xf32> to vector<7x4xf32>
    %c8 = arith.constant 8 : index
    %c0_22 = arith.constant 0 : index
    %15 = vector.load %arg2[%c8, %c0_22] : memref<36x32xf32, #tpu.memory_space<vmem>>, vector<4x32xf32>
    %cst_23 = arith.constant dense<0.000000e+00> : vector<7x32xf32>
    %16 = tpu.matmul %14, %15, %cst_23 {dimension_numbers = #tpu.dot_dimension_numbers<[1], [0], [0], [1], [0, 0, 1, 1], [], []>} : vector<7x4xf32>, vector<4x32xf32>, vector<7x32xf32> -> vector<7x32xf32>
    %17 = arith.addf %12, %16 : vector<7x32xf32>
    %c0_24 = arith.constant 0 : index
    %c2 = arith.constant 2 : index
    %c0_25 = arith.constant 0 : index
    %c0_26 = arith.constant 0 : index
    %c0_27 = arith.constant 0 : index
    %18 = vector.load %arg1[%c0_24, %c2, %c0_25, %c0_26, %c0_27] : memref<1x4x8x8x4xf32, #tpu.memory_space<vmem>>, vector<1x1x1x7x4xf32>
    %19 = vector.shape_cast %18 : vector<1x1x1x7x4xf32> to vector<7x4xf32>
    %c12 = arith.constant 12 : index
    %c0_28 = arith.constant 0 : index
    %20 = vector.load %arg2[%c12, %c0_28] : memref<36x32xf32, #tpu.memory_space<vmem>>, vector<4x32xf32>
    %cst_29 = arith.constant dense<0.000000e+00> : vector<7x32xf32>
    %21 = tpu.matmul %19, %20, %cst_29 {dimension_numbers = #tpu.dot_dimension_numbers<[1], [0], [0], [1], [0, 0, 1, 1], [], []>} : vector<7x4xf32>, vector<4x32xf32>, vector<7x32xf32> -> vector<7x32xf32>
    %22 = arith.addf %17, %21 : vector<7x32xf32>
    %c0_30 = arith.constant 0 : index
    %c3 = arith.constant 3 : index
    %c0_31 = arith.constant 0 : index
    %c0_32 = arith.constant 0 : index
    %c0_33 = arith.constant 0 : index
    %23 = vector.load %arg1[%c0_30, %c3, %c0_31, %c0_32, %c0_33] : memref<1x4x8x8x4xf32, #tpu.memory_space<vmem>>, vector<1x1x1x7x4xf32>
    %24 = vector.shape_cast %23 : vector<1x1x1x7x4xf32> to vector<7x4xf32>
    %c16 = arith.constant 16 : index
    %c0_34 = arith.constant 0 : index
    %25 = vector.load %arg2[%c16, %c0_34] : memref<36x32xf32, #tpu.memory_space<vmem>>, vector<4x32xf32>
    %cst_35 = arith.constant dense<0.000000e+00> : vector<7x32xf32>
    %26 = tpu.matmul %24, %25, %cst_35 {dimension_numbers = #tpu.dot_dimension_numbers<[1], [0], [0], [1], [0, 0, 1, 1], [], []>} : vector<7x4xf32>, vector<4x32xf32>, vector<7x32xf32> -> vector<7x32xf32>
    %27 = arith.addf %22, %26 : vector<7x32xf32>
    %c0_36 = arith.constant 0 : index
    %c2_37 = arith.constant 2 : index
    %c0_38 = arith.constant 0 : index
    %c1_39 = arith.constant 1 : index
    %c0_40 = arith.constant 0 : index
    %28 = vector.load %arg1[%c0_36, %c2_37, %c0_38, %c1_39, %c0_40] : memref<1x4x8x8x4xf32, #tpu.memory_space<vmem>>, vector<1x1x1x7x4xf32>
    %29 = vector.shape_cast %28 : vector<1x1x1x7x4xf32> to vector<7x4xf32>
    %c20 = arith.constant 20 : index
    %c0_41 = arith.constant 0 : index
    %30 = vector.load %arg2[%c20, %c0_41] : memref<36x32xf32, #tpu.memory_space<vmem>>, vector<4x32xf32>
    %cst_42 = arith.constant dense<0.000000e+00> : vector<7x32xf32>
    %31 = tpu.matmul %29, %30, %cst_42 {dimension_numbers = #tpu.dot_dimension_numbers<[1], [0], [0], [1], [0, 0, 1, 1], [], []>} : vector<7x4xf32>, vector<4x32xf32>, vector<7x32xf32> -> vector<7x32xf32>
    %32 = arith.addf %27, %31 : vector<7x32xf32>
    %c0_43 = arith.constant 0 : index
    %c0_44 = arith.constant 0 : index
    %c1_45 = arith.constant 1 : index
    %c0_46 = arith.constant 0 : index
    %c0_47 = arith.constant 0 : index
    %33 = vector.load %arg1[%c0_43, %c0_44, %c1_45, %c0_46, %c0_47] : memref<1x4x8x8x4xf32, #tpu.memory_space<vmem>>, vector<1x1x1x7x4xf32>
    %34 = vector.shape_cast %33 : vector<1x1x1x7x4xf32> to vector<7x4xf32>
    %c24 = arith.constant 24 : index
    %c0_48 = arith.constant 0 : index
    %35 = vector.load %arg2[%c24, %c0_48] : memref<36x32xf32, #tpu.memory_space<vmem>>, vector<4x32xf32>
    %cst_49 = arith.constant dense<0.000000e+00> : vector<7x32xf32>
    %36 = tpu.matmul %34, %35, %cst_49 {dimension_numbers = #tpu.dot_dimension_numbers<[1], [0], [0], [1], [0, 0, 1, 1], [], []>} : vector<7x4xf32>, vector<4x32xf32>, vector<7x32xf32> -> vector<7x32xf32>
    %37 = arith.addf %32, %36 : vector<7x32xf32>
    %c0_50 = arith.constant 0 : index
    %c1_51 = arith.constant 1 : index
    %c1_52 = arith.constant 1 : index
    %c0_53 = arith.constant 0 : index
    %c0_54 = arith.constant 0 : index
    %38 = vector.load %arg1[%c0_50, %c1_51, %c1_52, %c0_53, %c0_54] : memref<1x4x8x8x4xf32, #tpu.memory_space<vmem>>, vector<1x1x1x7x4xf32>
    %39 = vector.shape_cast %38 : vector<1x1x1x7x4xf32> to vector<7x4xf32>
    %c28 = arith.constant 28 : index
    %c0_55 = arith.constant 0 : index
    %40 = vector.load %arg2[%c28, %c0_55] : memref<36x32xf32, #tpu.memory_space<vmem>>, vector<4x32xf32>
    %cst_56 = arith.constant dense<0.000000e+00> : vector<7x32xf32>
    %41 = tpu.matmul %39, %40, %cst_56 {dimension_numbers = #tpu.dot_dimension_numbers<[1], [0], [0], [1], [0, 0, 1, 1], [], []>} : vector<7x4xf32>, vector<4x32xf32>, vector<7x32xf32> -> vector<7x32xf32>
    %42 = arith.addf %37, %41 : vector<7x32xf32>
    %c0_57 = arith.constant 0 : index
    %c0_58 = arith.constant 0 : index
    %c1_59 = arith.constant 1 : index
    %c1_60 = arith.constant 1 : index
    %c0_61 = arith.constant 0 : index
    %43 = vector.load %arg1[%c0_57, %c0_58, %c1_59, %c1_60, %c0_61] : memref<1x4x8x8x4xf32, #tpu.memory_space<vmem>>, vector<1x1x1x7x4xf32>
    %44 = vector.shape_cast %43 : vector<1x1x1x7x4xf32> to vector<7x4xf32>
    %c32 = arith.constant 32 : index
    %c0_62 = arith.constant 0 : index
    %45 = vector.load %arg2[%c32, %c0_62] : memref<36x32xf32, #tpu.memory_space<vmem>>, vector<4x32xf32>
    %cst_63 = arith.constant dense<0.000000e+00> : vector<7x32xf32>
    %46 = tpu.matmul %44, %45, %cst_63 {dimension_numbers = #tpu.dot_dimension_numbers<[1], [0], [0], [1], [0, 0, 1, 1], [], []>} : vector<7x4xf32>, vector<4x32xf32>, vector<7x32xf32> -> vector<7x32xf32>
    %47 = arith.addf %42, %46 : vector<7x32xf32>
    %48 = vector.broadcast %0 : vector<1x32xf32> to vector<7x32xf32>
    %49 = arith.addf %47, %48 : vector<7x32xf32>
    %cst_64 = arith.constant 0.000000e+00 : f32
    %50 = vector.broadcast %cst_64 : f32 to vector<7x32xf32>
    %51 = arith.maximumf %49, %50 : vector<7x32xf32>
    %c0_65 = arith.constant 0 : index
    %c0_66 = arith.constant 0 : index
    %c0_67 = arith.constant 0 : index
    %52 = vector.load %arg8[%c0_65, %c0_66, %c0_67] : memref<7x7x32xf32, #tpu.memory_space<vmem>>, vector<1x7x32xf32>
    %53 = vector.shape_cast %52 : vector<1x7x32xf32> to vector<7x32xf32>
    %54 = vector.shape_cast %51 : vector<7x32xf32> to vector<1x7x32xf32>
    tpu.vector_store %arg8[%c0_65, %c0_66, %c0_67], %54 {strides = array<i32>} : memref<7x7x32xf32, #tpu.memory_space<vmem>>, vector<1x7x32xf32>,
    %cst_68 = arith.constant 0.000000e+00 : f32
    %55 = vector.broadcast %cst_68 : f32 to vector<7x32xf32>
    %c0_69 = arith.constant 0 : index
    %c0_70 = arith.constant 0 : index
    %c1_71 = arith.constant 1 : index
    %c0_72 = arith.constant 0 : index
    %c0_73 = arith.constant 0 : index
    %56 = vector.load %arg1[%c0_69, %c0_70, %c1_71, %c0_72, %c0_73] : memref<1x4x8x8x4xf32, #tpu.memory_space<vmem>>, vector<1x1x1x7x4xf32>
    %57 = vector.shape_cast %56 : vector<1x1x1x7x4xf32> to vector<7x4xf32>
    %c0_74 = arith.constant 0 : index
    %c0_75 = arith.constant 0 : index
    %58 = vector.load %arg2[%c0_74, %c0_75] : memref<36x32xf32, #tpu.memory_space<vmem>>, vector<4x32xf32>
    %cst_76 = arith.constant dense<0.000000e+00> : vector<7x32xf32>
    %59 = tpu.matmul %57, %58, %cst_76 {dimension_numbers = #tpu.dot_dimension_numbers<[1], [0], [0], [1], [0, 0, 1, 1], [], []>} : vector<7x4xf32>, vector<4x32xf32>, vector<7x32xf32> -> vector<7x32xf32>
    %60 = arith.addf %55, %59 : vector<7x32xf32>
    %c0_77 = arith.constant 0 : index
    %c1_78 = arith.constant 1 : index
    %c1_79 = arith.constant 1 : index
    %c0_80 = arith.constant 0 : index
    %c0_81 = arith.constant 0 : index
    %61 = vector.load %arg1[%c0_77, %c1_78, %c1_79, %c0_80, %c0_81] : memref<1x4x8x8x4xf32, #tpu.memory_space<vmem>>, vector<1x1x1x7x4xf32>
    %62 = vector.shape_cast %61 : vector<1x1x1x7x4xf32> to vector<7x4xf32>
    %c4_82 = arith.constant 4 : index
    %c0_83 = arith.constant 0 : index
    %63 = vector.load %arg2[%c4_82, %c0_83] : memref<36x32xf32, #tpu.memory_space<vmem>>, vector<4x32xf32>
    %cst_84 = arith.constant dense<0.000000e+00> : vector<7x32xf32>
    %64 = tpu.matmul %62, %63, %cst_84 {dimension_numbers = #tpu.dot_dimension_numbers<[1], [0], [0], [1], [0, 0, 1, 1], [], []>} : vector<7x4xf32>, vector<4x32xf32>, vector<7x32xf32> -> vector<7x32xf32>
    %65 = arith.addf %60, %64 : vector<7x32xf32>
    %c0_85 = arith.constant 0 : index
    %c0_86 = arith.constant 0 : index
    %c1_87 = arith.constant 1 : index
    %c1_88 = arith.constant 1 : index
    %c0_89 = arith.constant 0 : index
    %66 = vector.load %arg1[%c0_85, %c0_86, %c1_87, %c1_88, %c0_89] : memref<1x4x8x8x4xf32, #tpu.memory_space<vmem>>, vector<1x1x1x7x4xf32>
    %67 = vector.shape_cast %66 : vector<1x1x1x7x4xf32> to vector<7x4xf32>
    %c8_90 = arith.constant 8 : index
    %c0_91 = arith.constant 0 : index
    %68 = vector.load %arg2[%c8_90, %c0_91] : memref<36x32xf32, #tpu.memory_space<vmem>>, vector<4x32xf32>
    %cst_92 = arith.constant dense<0.000000e+00> : vector<7x32xf32>
    %69 = tpu.matmul %67, %68, %cst_92 {dimension_numbers = #tpu.dot_dimension_numbers<[1], [0], [0], [1], [0, 0, 1, 1], [], []>} : vector<7x4xf32>, vector<4x32xf32>, vector<7x32xf32> -> vector<7x32xf32>
    %70 = arith.addf %65, %69 : vector<7x32xf32>
    %c0_93 = arith.constant 0 : index
    %c2_94 = arith.constant 2 : index
    %c1_95 = arith.constant 1 : index
    %c0_96 = arith.constant 0 : index
    %c0_97 = arith.constant 0 : index
    %71 = vector.load %arg1[%c0_93, %c2_94, %c1_95, %c0_96, %c0_97] : memref<1x4x8x8x4xf32, #tpu.memory_space<vmem>>, vector<1x1x1x7x4xf32>
    %72 = vector.shape_cast %71 : vector<1x1x1x7x4xf32> to vector<7x4xf32>
    %c12_98 = arith.constant 12 : index
    %c0_99 = arith.constant 0 : index
    %73 = vector.load %arg2[%c12_98, %c0_99] : memref<36x32xf32, #tpu.memory_space<vmem>>, vector<4x32xf32>
    %cst_100 = arith.constant dense<0.000000e+00> : vector<7x32xf32>
    %74 = tpu.matmul %72, %73, %cst_100 {dimension_numbers = #tpu.dot_dimension_numbers<[1], [0], [0], [1], [0, 0, 1, 1], [], []>} : vector<7x4xf32>, vector<4x32xf32>, vector<7x32xf32> -> vector<7x32xf32>
    %75 = arith.addf %70, %74 : vector<7x32xf32>
    %c0_101 = arith.constant 0 : index
    %c3_102 = arith.constant 3 : index
    %c1_103 = arith.constant 1 : index
    %c0_104 = arith.constant 0 : index
    %c0_105 = arith.constant 0 : index
    %76 = vector.load %arg1[%c0_101, %c3_102, %c1_103, %c0_104, %c0_105] : memref<1x4x8x8x4xf32, #tpu.memory_space<vmem>>, vector<1x1x1x7x4xf32>
    %77 = vector.shape_cast %76 : vector<1x1x1x7x4xf32> to vector<7x4xf32>
    %c16_106 = arith.constant 16 : index
    %c0_107 = arith.constant 0 : index
    %78 = vector.load %arg2[%c16_106, %c0_107] : memref<36x32xf32, #tpu.memory_space<vmem>>, vector<4x32xf32>
    %cst_108 = arith.constant dense<0.000000e+00> : vector<7x32xf32>
    %79 = tpu.matmul %77, %78, %cst_108 {dimension_numbers = #tpu.dot_dimension_numbers<[1], [0], [0], [1], [0, 0, 1, 1], [], []>} : vector<7x4xf32>, vector<4x32xf32>, vector<7x32xf32> -> vector<7x32xf32>
    %80 = arith.addf %75, %79 : vector<7x32xf32>
    %c0_109 = arith.constant 0 : index
    %c2_110 = arith.constant 2 : index
    %c1_111 = arith.constant 1 : index
    %c1_112 = arith.constant 1 : index
    %c0_113 = arith.constant 0 : index
    %81 = vector.load %arg1[%c0_109, %c2_110, %c1_111, %c1_112, %c0_113] : memref<1x4x8x8x4xf32, #tpu.memory_space<vmem>>, vector<1x1x1x7x4xf32>
    %82 = vector.shape_cast %81 : vector<1x1x1x7x4xf32> to vector<7x4xf32>
    %c20_114 = arith.constant 20 : index
    %c0_115 = arith.constant 0 : index
    %83 = vector.load %arg2[%c20_114, %c0_115] : memref<36x32xf32, #tpu.memory_space<vmem>>, vector<4x32xf32>
    %cst_116 = arith.constant dense<0.000000e+00> : vector<7x32xf32>
    %84 = tpu.matmul %82, %83, %cst_116 {dimension_numbers = #tpu.dot_dimension_numbers<[1], [0], [0], [1], [0, 0, 1, 1], [], []>} : vector<7x4xf32>, vector<4x32xf32>, vector<7x32xf32> -> vector<7x32xf32>
    %85 = arith.addf %80, %84 : vector<7x32xf32>
    %c0_117 = arith.constant 0 : index
    %c0_118 = arith.constant 0 : index
    %c2_119 = arith.constant 2 : index
    %c0_120 = arith.constant 0 : index
    %c0_121 = arith.constant 0 : index
    %86 = vector.load %arg1[%c0_117, %c0_118, %c2_119, %c0_120, %c0_121] : memref<1x4x8x8x4xf32, #tpu.memory_space<vmem>>, vector<1x1x1x7x4xf32>
    %87 = vector.shape_cast %86 : vector<1x1x1x7x4xf32> to vector<7x4xf32>
    %c24_122 = arith.constant 24 : index
    %c0_123 = arith.constant 0 : index
    %88 = vector.load %arg2[%c24_122, %c0_123] : memref<36x32xf32, #tpu.memory_space<vmem>>, vector<4x32xf32>
    %cst_124 = arith.constant dense<0.000000e+00> : vector<7x32xf32>
    %89 = tpu.matmul %87, %88, %cst_124 {dimension_numbers = #tpu.dot_dimension_numbers<[1], [0], [0], [1], [0, 0, 1, 1], [], []>} : vector<7x4xf32>, vector<4x32xf32>, vector<7x32xf32> -> vector<7x32xf32>
    %90 = arith.addf %85, %89 : vector<7x32xf32>
    %c0_125 = arith.constant 0 : index
    %c1_126 = arith.constant 1 : index
    %c2_127 = arith.constant 2 : index
    %c0_128 = arith.constant 0 : index
    %c0_129 = arith.constant 0 : index
    %91 = vector.load %arg1[%c0_125, %c1_126, %c2_127, %c0_128, %c0_129] : memref<1x4x8x8x4xf32, #tpu.memory_space<vmem>>, vector<1x1x1x7x4xf32>
    %92 = vector.shape_cast %91 : vector<1x1x1x7x4xf32> to vector<7x4xf32>
    %c28_130 = arith.constant 28 : index
    %c0_131 = arith.constant 0 : index
    %93 = vector.load %arg2[%c28_130, %c0_131] : memref<36x32xf32, #tpu.memory_space<vmem>>, vector<4x32xf32>
    %cst_132 = arith.constant dense<0.000000e+00> : vector<7x32xf32>
    %94 = tpu.matmul %92, %93, %cst_132 {dimension_numbers = #tpu.dot_dimension_numbers<[1], [0], [0], [1], [0, 0, 1, 1], [], []>} : vector<7x4xf32>, vector<4x32xf32>, vector<7x32xf32> -> vector<7x32xf32>
    %95 = arith.addf %90, %94 : vector<7x32xf32>
    %c0_133 = arith.constant 0 : index
    %c0_134 = arith.constant 0 : index
    %c2_135 = arith.constant 2 : index
    %c1_136 = arith.constant 1 : index
    %c0_137 = arith.constant 0 : index
    %96 = vector.load %arg1[%c0_133, %c0_134, %c2_135, %c1_136, %c0_137] : memref<1x4x8x8x4xf32, #tpu.memory_space<vmem>>, vector<1x1x1x7x4xf32>
    %97 = vector.shape_cast %96 : vector<1x1x1x7x4xf32> to vector<7x4xf32>
    %c32_138 = arith.constant 32 : index
    %c0_139 = arith.constant 0 : index
    %98 = vector.load %arg2[%c32_138, %c0_139] : memref<36x32xf32, #tpu.memory_space<vmem>>, vector<4x32xf32>
    %cst_140 = arith.constant dense<0.000000e+00> : vector<7x32xf32>
    %99 = tpu.matmul %97, %98, %cst_140 {dimension_numbers = #tpu.dot_dimension_numbers<[1], [0], [0], [1], [0, 0, 1, 1], [], []>} : vector<7x4xf32>, vector<4x32xf32>, vector<7x32xf32> -> vector<7x32xf32>
    %100 = arith.addf %95, %99 : vector<7x32xf32>
    %101 = vector.broadcast %0 : vector<1x32xf32> to vector<7x32xf32>
    %102 = arith.addf %100, %101 : vector<7x32xf32>
    %cst_141 = arith.constant 0.000000e+00 : f32
    %103 = vector.broadcast %cst_141 : f32 to vector<7x32xf32>
    %104 = arith.maximumf %102, %103 : vector<7x32xf32>
    %c1_142 = arith.constant 1 : index
    %c0_143 = arith.constant 0 : index
    %c0_144 = arith.constant 0 : index
    %105 = vector.load %arg8[%c1_142, %c0_143, %c0_144] : memref<7x7x32xf32, #tpu.memory_space<vmem>>, vector<1x7x32xf32>
    %106 = vector.shape_cast %105 : vector<1x7x32xf32> to vector<7x32xf32>
    %107 = vector.shape_cast %104 : vector<7x32xf32> to vector<1x7x32xf32>
    tpu.vector_store %arg8[%c1_142, %c0_143, %c0_144], %107 {strides = array<i32>} : memref<7x7x32xf32, #tpu.memory_space<vmem>>, vector<1x7x32xf32>,
    %cst_145 = arith.constant 0.000000e+00 : f32
    %108 = vector.broadcast %cst_145 : f32 to vector<7x32xf32>
    %c0_146 = arith.constant 0 : index
    %c0_147 = arith.constant 0 : index
    %c2_148 = arith.constant 2 : index
    %c0_149 = arith.constant 0 : index
    %c0_150 = arith.constant 0 : index
    %109 = vector.load %arg1[%c0_146, %c0_147, %c2_148, %c0_149, %c0_150] : memref<1x4x8x8x4xf32, #tpu.memory_space<vmem>>, vector<1x1x1x7x4xf32>
    %110 = vector.shape_cast %109 : vector<1x1x1x7x4xf32> to vector<7x4xf32>
    %c0_151 = arith.constant 0 : index
    %c0_152 = arith.constant 0 : index
    %111 = vector.load %arg2[%c0_151, %c0_152] : memref<36x32xf32, #tpu.memory_space<vmem>>, vector<4x32xf32>
    %cst_153 = arith.constant dense<0.000000e+00> : vector<7x32xf32>
    %112 = tpu.matmul %110, %111, %cst_153 {dimension_numbers = #tpu.dot_dimension_numbers<[1], [0], [0], [1], [0, 0, 1, 1], [], []>} : vector<7x4xf32>, vector<4x32xf32>, vector<7x32xf32> -> vector<7x32xf32>
    %113 = arith.addf %108, %112 : vector<7x32xf32>
    %c0_154 = arith.constant 0 : index
    %c1_155 = arith.constant 1 : index
    %c2_156 = arith.constant 2 : index
    %c0_157 = arith.constant 0 : index
    %c0_158 = arith.constant 0 : index
    %114 = vector.load %arg1[%c0_154, %c1_155, %c2_156, %c0_157, %c0_158] : memref<1x4x8x8x4xf32, #tpu.memory_space<vmem>>, vector<1x1x1x7x4xf32>
    %115 = vector.shape_cast %114 : vector<1x1x1x7x4xf32> to vector<7x4xf32>
    %c4_159 = arith.constant 4 : index
    %c0_160 = arith.constant 0 : index
    %116 = vector.load %arg2[%c4_159, %c0_160] : memref<36x32xf32, #tpu.memory_space<vmem>>, vector<4x32xf32>
    %cst_161 = arith.constant dense<0.000000e+00> : vector<7x32xf32>
    %117 = tpu.matmul %115, %116, %cst_161 {dimension_numbers = #tpu.dot_dimension_numbers<[1], [0], [0], [1], [0, 0, 1, 1], [], []>} : vector<7x4xf32>, vector<4x32xf32>, vector<7x32xf32> -> vector<7x32xf32>
    %118 = arith.addf %113, %117 : vector<7x32xf32>
    %c0_162 = arith.constant 0 : index
    %c0_163 = arith.constant 0 : index
    %c2_164 = arith.constant 2 : index
    %c1_165 = arith.constant 1 : index
    %c0_166 = arith.constant 0 : index
    %119 = vector.load %arg1[%c0_162, %c0_163, %c2_164, %c1_165, %c0_166] : memref<1x4x8x8x4xf32, #tpu.memory_space<vmem>>, vector<1x1x1x7x4xf32>
    %120 = vector.shape_cast %119 : vector<1x1x1x7x4xf32> to vector<7x4xf32>
    %c8_167 = arith.constant 8 : index
    %c0_168 = arith.constant 0 : index
    %121 = vector.load %arg2[%c8_167, %c0_168] : memref<36x32xf32, #tpu.memory_space<vmem>>, vector<4x32xf32>
    %cst_169 = arith.constant dense<0.000000e+00> : vector<7x32xf32>
    %122 = tpu.matmul %120, %121, %cst_169 {dimension_numbers = #tpu.dot_dimension_numbers<[1], [0], [0], [1], [0, 0, 1, 1], [], []>} : vector<7x4xf32>, vector<4x32xf32>, vector<7x32xf32> -> vector<7x32xf32>
    %123 = arith.addf %118, %122 : vector<7x32xf32>
    %c0_170 = arith.constant 0 : index
    %c2_171 = arith.constant 2 : index
    %c2_172 = arith.constant 2 : index
    %c0_173 = arith.constant 0 : index
    %c0_174 = arith.constant 0 : index
    %124 = vector.load %arg1[%c0_170, %c2_171, %c2_172, %c0_173, %c0_174] : memref<1x4x8x8x4xf32, #tpu.memory_space<vmem>>, vector<1x1x1x7x4xf32>
    %125 = vector.shape_cast %124 : vector<1x1x1x7x4xf32> to vector<7x4xf32>
    %c12_175 = arith.constant 12 : index
    %c0_176 = arith.constant 0 : index
    %126 = vector.load %arg2[%c12_175, %c0_176] : memref<36x32xf32, #tpu.memory_space<vmem>>, vector<4x32xf32>
    %cst_177 = arith.constant dense<0.000000e+00> : vector<7x32xf32>
    %127 = tpu.matmul %125, %126, %cst_177 {dimension_numbers = #tpu.dot_dimension_numbers<[1], [0], [0], [1], [0, 0, 1, 1], [], []>} : vector<7x4xf32>, vector<4x32xf32>, vector<7x32xf32> -> vector<7x32xf32>
    %128 = arith.addf %123, %127 : vector<7x32xf32>
    %c0_178 = arith.constant 0 : index
    %c3_179 = arith.constant 3 : index
    %c2_180 = arith.constant 2 : index
    %c0_181 = arith.constant 0 : index
    %c0_182 = arith.constant 0 : index
    %129 = vector.load %arg1[%c0_178, %c3_179, %c2_180, %c0_181, %c0_182] : memref<1x4x8x8x4xf32, #tpu.memory_space<vmem>>, vector<1x1x1x7x4xf32>
    %130 = vector.shape_cast %129 : vector<1x1x1x7x4xf32> to vector<7x4xf32>
    %c16_183 = arith.constant 16 : index
    %c0_184 = arith.constant 0 : index
    %131 = vector.load %arg2[%c16_183, %c0_184] : memref<36x32xf32, #tpu.memory_space<vmem>>, vector<4x32xf32>
    %cst_185 = arith.constant dense<0.000000e+00> : vector<7x32xf32>
    %132 = tpu.matmul %130, %131, %cst_185 {dimension_numbers = #tpu.dot_dimension_numbers<[1], [0], [0], [1], [0, 0, 1, 1], [], []>} : vector<7x4xf32>, vector<4x32xf32>, vector<7x32xf32> -> vector<7x32xf32>
    %133 = arith.addf %128, %132 : vector<7x32xf32>
    %c0_186 = arith.constant 0 : index
    %c2_187 = arith.constant 2 : index
    %c2_188 = arith.constant 2 : index
    %c1_189 = arith.constant 1 : index
    %c0_190 = arith.constant 0 : index
    %134 = vector.load %arg1[%c0_186, %c2_187, %c2_188, %c1_189, %c0_190] : memref<1x4x8x8x4xf32, #tpu.memory_space<vmem>>, vector<1x1x1x7x4xf32>
    %135 = vector.shape_cast %134 : vector<1x1x1x7x4xf32> to vector<7x4xf32>
    %c20_191 = arith.constant 20 : index
    %c0_192 = arith.constant 0 : index
    %136 = vector.load %arg2[%c20_191, %c0_192] : memref<36x32xf32, #tpu.memory_space<vmem>>, vector<4x32xf32>
    %cst_193 = arith.constant dense<0.000000e+00> : vector<7x32xf32>
    %137 = tpu.matmul %135, %136, %cst_193 {dimension_numbers = #tpu.dot_dimension_numbers<[1], [0], [0], [1], [0, 0, 1, 1], [], []>} : vector<7x4xf32>, vector<4x32xf32>, vector<7x32xf32> -> vector<7x32xf32>
    %138 = arith.addf %133, %137 : vector<7x32xf32>
    %c0_194 = arith.constant 0 : index
    %c0_195 = arith.constant 0 : index
    %c3_196 = arith.constant 3 : index
    %c0_197 = arith.constant 0 : index
    %c0_198 = arith.constant 0 : index
    %139 = vector.load %arg1[%c0_194, %c0_195, %c3_196, %c0_197, %c0_198] : memref<1x4x8x8x4xf32, #tpu.memory_space<vmem>>, vector<1x1x1x7x4xf32>
    %140 = vector.shape_cast %139 : vector<1x1x1x7x4xf32> to vector<7x4xf32>
    %c24_199 = arith.constant 24 : index
    %c0_200 = arith.constant 0 : index
    %141 = vector.load %arg2[%c24_199, %c0_200] : memref<36x32xf32, #tpu.memory_space<vmem>>, vector<4x32xf32>
    %cst_201 = arith.constant dense<0.000000e+00> : vector<7x32xf32>
    %142 = tpu.matmul %140, %141, %cst_201 {dimension_numbers = #tpu.dot_dimension_numbers<[1], [0], [0], [1], [0, 0, 1, 1], [], []>} : vector<7x4xf32>, vector<4x32xf32>, vector<7x32xf32> -> vector<7x32xf32>
    %143 = arith.addf %138, %142 : vector<7x32xf32>
    %c0_202 = arith.constant 0 : index
    %c1_203 = arith.constant 1 : index
    %c3_204 = arith.constant 3 : index
    %c0_205 = arith.constant 0 : index
    %c0_206 = arith.constant 0 : index
    %144 = vector.load %arg1[%c0_202, %c1_203, %c3_204, %c0_205, %c0_206] : memref<1x4x8x8x4xf32, #tpu.memory_space<vmem>>, vector<1x1x1x7x4xf32>
    %145 = vector.shape_cast %144 : vector<1x1x1x7x4xf32> to vector<7x4xf32>
    %c28_207 = arith.constant 28 : index
    %c0_208 = arith.constant 0 : index
    %146 = vector.load %arg2[%c28_207, %c0_208] : memref<36x32xf32, #tpu.memory_space<vmem>>, vector<4x32xf32>
    %cst_209 = arith.constant dense<0.000000e+00> : vector<7x32xf32>
    %147 = tpu.matmul %145, %146, %cst_209 {dimension_numbers = #tpu.dot_dimension_numbers<[1], [0], [0], [1], [0, 0, 1, 1], [], []>} : vector<7x4xf32>, vector<4x32xf32>, vector<7x32xf32> -> vector<7x32xf32>
    %148 = arith.addf %143, %147 : vector<7x32xf32>
    %c0_210 = arith.constant 0 : index
    %c0_211 = arith.constant 0 : index
    %c3_212 = arith.constant 3 : index
    %c1_213 = arith.constant 1 : index
    %c0_214 = arith.constant 0 : index
    %149 = vector.load %arg1[%c0_210, %c0_211, %c3_212, %c1_213, %c0_214] : memref<1x4x8x8x4xf32, #tpu.memory_space<vmem>>, vector<1x1x1x7x4xf32>
    %150 = vector.shape_cast %149 : vector<1x1x1x7x4xf32> to vector<7x4xf32>
    %c32_215 = arith.constant 32 : index
    %c0_216 = arith.constant 0 : index
    %151 = vector.load %arg2[%c32_215, %c0_216] : memref<36x32xf32, #tpu.memory_space<vmem>>, vector<4x32xf32>
    %cst_217 = arith.constant dense<0.000000e+00> : vector<7x32xf32>
    %152 = tpu.matmul %150, %151, %cst_217 {dimension_numbers = #tpu.dot_dimension_numbers<[1], [0], [0], [1], [0, 0, 1, 1], [], []>} : vector<7x4xf32>, vector<4x32xf32>, vector<7x32xf32> -> vector<7x32xf32>
    %153 = arith.addf %148, %152 : vector<7x32xf32>
    %154 = vector.broadcast %0 : vector<1x32xf32> to vector<7x32xf32>
    %155 = arith.addf %153, %154 : vector<7x32xf32>
    %cst_218 = arith.constant 0.000000e+00 : f32
    %156 = vector.broadcast %cst_218 : f32 to vector<7x32xf32>
    %157 = arith.maximumf %155, %156 : vector<7x32xf32>
    %c2_219 = arith.constant 2 : index
    %c0_220 = arith.constant 0 : index
    %c0_221 = arith.constant 0 : index
    %158 = vector.load %arg8[%c2_219, %c0_220, %c0_221] : memref<7x7x32xf32, #tpu.memory_space<vmem>>, vector<1x7x32xf32>
    %159 = vector.shape_cast %158 : vector<1x7x32xf32> to vector<7x32xf32>
    %160 = vector.shape_cast %157 : vector<7x32xf32> to vector<1x7x32xf32>
    tpu.vector_store %arg8[%c2_219, %c0_220, %c0_221], %160 {strides = array<i32>} : memref<7x7x32xf32, #tpu.memory_space<vmem>>, vector<1x7x32xf32>,
    %cst_222 = arith.constant 0.000000e+00 : f32
    %161 = vector.broadcast %cst_222 : f32 to vector<7x32xf32>
    %c0_223 = arith.constant 0 : index
    %c0_224 = arith.constant 0 : index
    %c3_225 = arith.constant 3 : index
    %c0_226 = arith.constant 0 : index
    %c0_227 = arith.constant 0 : index
    %162 = vector.load %arg1[%c0_223, %c0_224, %c3_225, %c0_226, %c0_227] : memref<1x4x8x8x4xf32, #tpu.memory_space<vmem>>, vector<1x1x1x7x4xf32>
    %163 = vector.shape_cast %162 : vector<1x1x1x7x4xf32> to vector<7x4xf32>
    %c0_228 = arith.constant 0 : index
    %c0_229 = arith.constant 0 : index
    %164 = vector.load %arg2[%c0_228, %c0_229] : memref<36x32xf32, #tpu.memory_space<vmem>>, vector<4x32xf32>
    %cst_230 = arith.constant dense<0.000000e+00> : vector<7x32xf32>
    %165 = tpu.matmul %163, %164, %cst_230 {dimension_numbers = #tpu.dot_dimension_numbers<[1], [0], [0], [1], [0, 0, 1, 1], [], []>} : vector<7x4xf32>, vector<4x32xf32>, vector<7x32xf32> -> vector<7x32xf32>
    %166 = arith.addf %161, %165 : vector<7x32xf32>
    %c0_231 = arith.constant 0 : index
    %c1_232 = arith.constant 1 : index
    %c3_233 = arith.constant 3 : index
    %c0_234 = arith.constant 0 : index
    %c0_235 = arith.constant 0 : index
    %167 = vector.load %arg1[%c0_231, %c1_232, %c3_233, %c0_234, %c0_235] : memref<1x4x8x8x4xf32, #tpu.memory_space<vmem>>, vector<1x1x1x7x4xf32>
    %168 = vector.shape_cast %167 : vector<1x1x1x7x4xf32> to vector<7x4xf32>
    %c4_236 = arith.constant 4 : index
    %c0_237 = arith.constant 0 : index
    %169 = vector.load %arg2[%c4_236, %c0_237] : memref<36x32xf32, #tpu.memory_space<vmem>>, vector<4x32xf32>
    %cst_238 = arith.constant dense<0.000000e+00> : vector<7x32xf32>
    %170 = tpu.matmul %168, %169, %cst_238 {dimension_numbers = #tpu.dot_dimension_numbers<[1], [0], [0], [1], [0, 0, 1, 1], [], []>} : vector<7x4xf32>, vector<4x32xf32>, vector<7x32xf32> -> vector<7x32xf32>
    %171 = arith.addf %166, %170 : vector<7x32xf32>
    %c0_239 = arith.constant 0 : index
    %c0_240 = arith.constant 0 : index
    %c3_241 = arith.constant 3 : index
    %c1_242 = arith.constant 1 : index
    %c0_243 = arith.constant 0 : index
    %172 = vector.load %arg1[%c0_239, %c0_240, %c3_241, %c1_242, %c0_243] : memref<1x4x8x8x4xf32, #tpu.memory_space<vmem>>, vector<1x1x1x7x4xf32>
    %173 = vector.shape_cast %172 : vector<1x1x1x7x4xf32> to vector<7x4xf32>
    %c8_244 = arith.constant 8 : index
    %c0_245 = arith.constant 0 : index
    %174 = vector.load %arg2[%c8_244, %c0_245] : memref<36x32xf32, #tpu.memory_space<vmem>>, vector<4x32xf32>
    %cst_246 = arith.constant dense<0.000000e+00> : vector<7x32xf32>
    %175 = tpu.matmul %173, %174, %cst_246 {dimension_numbers = #tpu.dot_dimension_numbers<[1], [0], [0], [1], [0, 0, 1, 1], [], []>} : vector<7x4xf32>, vector<4x32xf32>, vector<7x32xf32> -> vector<7x32xf32>
    %176 = arith.addf %171, %175 : vector<7x32xf32>
    %c0_247 = arith.constant 0 : index
    %c2_248 = arith.constant 2 : index
    %c3_249 = arith.constant 3 : index
    %c0_250 = arith.constant 0 : index
    %c0_251 = arith.constant 0 : index
    %177 = vector.load %arg1[%c0_247, %c2_248, %c3_249, %c0_250, %c0_251] : memref<1x4x8x8x4xf32, #tpu.memory_space<vmem>>, vector<1x1x1x7x4xf32>
    %178 = vector.shape_cast %177 : vector<1x1x1x7x4xf32> to vector<7x4xf32>
    %c12_252 = arith.constant 12 : index
    %c0_253 = arith.constant 0 : index
    %179 = vector.load %arg2[%c12_252, %c0_253] : memref<36x32xf32, #tpu.memory_space<vmem>>, vector<4x32xf32>
    %cst_254 = arith.constant dense<0.000000e+00> : vector<7x32xf32>
    %180 = tpu.matmul %178, %179, %cst_254 {dimension_numbers = #tpu.dot_dimension_numbers<[1], [0], [0], [1], [0, 0, 1, 1], [], []>} : vector<7x4xf32>, vector<4x32xf32>, vector<7x32xf32> -> vector<7x32xf32>
    %181 = arith.addf %176, %180 : vector<7x32xf32>
    %c0_255 = arith.constant 0 : index
    %c3_256 = arith.constant 3 : index
    %c3_257 = arith.constant 3 : index
    %c0_258 = arith.constant 0 : index
    %c0_259 = arith.constant 0 : index
    %182 = vector.load %arg1[%c0_255, %c3_256, %c3_257, %c0_258, %c0_259] : memref<1x4x8x8x4xf32, #tpu.memory_space<vmem>>, vector<1x1x1x7x4xf32>
    %183 = vector.shape_cast %182 : vector<1x1x1x7x4xf32> to vector<7x4xf32>
    %c16_260 = arith.constant 16 : index
    %c0_261 = arith.constant 0 : index
    %184 = vector.load %arg2[%c16_260, %c0_261] : memref<36x32xf32, #tpu.memory_space<vmem>>, vector<4x32xf32>
    %cst_262 = arith.constant dense<0.000000e+00> : vector<7x32xf32>
    %185 = tpu.matmul %183, %184, %cst_262 {dimension_numbers = #tpu.dot_dimension_numbers<[1], [0], [0], [1], [0, 0, 1, 1], [], []>} : vector<7x4xf32>, vector<4x32xf32>, vector<7x32xf32> -> vector<7x32xf32>
    %186 = arith.addf %181, %185 : vector<7x32xf32>
    %c0_263 = arith.constant 0 : index
    %c2_264 = arith.constant 2 : index
    %c3_265 = arith.constant 3 : index
    %c1_266 = arith.constant 1 : index
    %c0_267 = arith.constant 0 : index
    %187 = vector.load %arg1[%c0_263, %c2_264, %c3_265, %c1_266, %c0_267] : memref<1x4x8x8x4xf32, #tpu.memory_space<vmem>>, vector<1x1x1x7x4xf32>
    %188 = vector.shape_cast %187 : vector<1x1x1x7x4xf32> to vector<7x4xf32>
    %c20_268 = arith.constant 20 : index
    %c0_269 = arith.constant 0 : index
    %189 = vector.load %arg2[%c20_268, %c0_269] : memref<36x32xf32, #tpu.memory_space<vmem>>, vector<4x32xf32>
    %cst_270 = arith.constant dense<0.000000e+00> : vector<7x32xf32>
    %190 = tpu.matmul %188, %189, %cst_270 {dimension_numbers = #tpu.dot_dimension_numbers<[1], [0], [0], [1], [0, 0, 1, 1], [], []>} : vector<7x4xf32>, vector<4x32xf32>, vector<7x32xf32> -> vector<7x32xf32>
    %191 = arith.addf %186, %190 : vector<7x32xf32>
    %c0_271 = arith.constant 0 : index
    %c0_272 = arith.constant 0 : index
    %c4_273 = arith.constant 4 : index
    %c0_274 = arith.constant 0 : index
    %c0_275 = arith.constant 0 : index
    %192 = vector.load %arg1[%c0_271, %c0_272, %c4_273, %c0_274, %c0_275] : memref<1x4x8x8x4xf32, #tpu.memory_space<vmem>>, vector<1x1x1x7x4xf32>
    %193 = vector.shape_cast %192 : vector<1x1x1x7x4xf32> to vector<7x4xf32>
    %c24_276 = arith.constant 24 : index
    %c0_277 = arith.constant 0 : index
    %194 = vector.load %arg2[%c24_276, %c0_277] : memref<36x32xf32, #tpu.memory_space<vmem>>, vector<4x32xf32>
    %cst_278 = arith.constant dense<0.000000e+00> : vector<7x32xf32>
    %195 = tpu.matmul %193, %194, %cst_278 {dimension_numbers = #tpu.dot_dimension_numbers<[1], [0], [0], [1], [0, 0, 1, 1], [], []>} : vector<7x4xf32>, vector<4x32xf32>, vector<7x32xf32> -> vector<7x32xf32>
    %196 = arith.addf %191, %195 : vector<7x32xf32>
    %c0_279 = arith.constant 0 : index
    %c1_280 = arith.constant 1 : index
    %c4_281 = arith.constant 4 : index
    %c0_282 = arith.constant 0 : index
    %c0_283 = arith.constant 0 : index
    %197 = vector.load %arg1[%c0_279, %c1_280, %c4_281, %c0_282, %c0_283] : memref<1x4x8x8x4xf32, #tpu.memory_space<vmem>>, vector<1x1x1x7x4xf32>
    %198 = vector.shape_cast %197 : vector<1x1x1x7x4xf32> to vector<7x4xf32>
    %c28_284 = arith.constant 28 : index
    %c0_285 = arith.constant 0 : index
    %199 = vector.load %arg2[%c28_284, %c0_285] : memref<36x32xf32, #tpu.memory_space<vmem>>, vector<4x32xf32>
    %cst_286 = arith.constant dense<0.000000e+00> : vector<7x32xf32>
    %200 = tpu.matmul %198, %199, %cst_286 {dimension_numbers = #tpu.dot_dimension_numbers<[1], [0], [0], [1], [0, 0, 1, 1], [], []>} : vector<7x4xf32>, vector<4x32xf32>, vector<7x32xf32> -> vector<7x32xf32>
    %201 = arith.addf %196, %200 : vector<7x32xf32>
    %c0_287 = arith.constant 0 : index
    %c0_288 = arith.constant 0 : index
    %c4_289 = arith.constant 4 : index
    %c1_290 = arith.constant 1 : index
    %c0_291 = arith.constant 0 : index
    %202 = vector.load %arg1[%c0_287, %c0_288, %c4_289, %c1_290, %c0_291] : memref<1x4x8x8x4xf32, #tpu.memory_space<vmem>>, vector<1x1x1x7x4xf32>
    %203 = vector.shape_cast %202 : vector<1x1x1x7x4xf32> to vector<7x4xf32>
    %c32_292 = arith.constant 32 : index
    %c0_293 = arith.constant 0 : index
    %204 = vector.load %arg2[%c32_292, %c0_293] : memref<36x32xf32, #tpu.memory_space<vmem>>, vector<4x32xf32>
    %cst_294 = arith.constant dense<0.000000e+00> : vector<7x32xf32>
    %205 = tpu.matmul %203, %204, %cst_294 {dimension_numbers = #tpu.dot_dimension_numbers<[1], [0], [0], [1], [0, 0, 1, 1], [], []>} : vector<7x4xf32>, vector<4x32xf32>, vector<7x32xf32> -> vector<7x32xf32>
    %206 = arith.addf %201, %205 : vector<7x32xf32>
    %207 = vector.broadcast %0 : vector<1x32xf32> to vector<7x32xf32>
    %208 = arith.addf %206, %207 : vector<7x32xf32>
    %cst_295 = arith.constant 0.000000e+00 : f32
    %209 = vector.broadcast %cst_295 : f32 to vector<7x32xf32>
    %210 = arith.maximumf %208, %209 : vector<7x32xf32>
    %c3_296 = arith.constant 3 : index
    %c0_297 = arith.constant 0 : index
    %c0_298 = arith.constant 0 : index
    %211 = vector.load %arg8[%c3_296, %c0_297, %c0_298] : memref<7x7x32xf32, #tpu.memory_space<vmem>>, vector<1x7x32xf32>
    %212 = vector.shape_cast %211 : vector<1x7x32xf32> to vector<7x32xf32>
    %213 = vector.shape_cast %210 : vector<7x32xf32> to vector<1x7x32xf32>
    tpu.vector_store %arg8[%c3_296, %c0_297, %c0_298], %213 {strides = array<i32>} : memref<7x7x32xf32, #tpu.memory_space<vmem>>, vector<1x7x32xf32>,
    %cst_299 = arith.constant 0.000000e+00 : f32
    %214 = vector.broadcast %cst_299 : f32 to vector<7x32xf32>
    %c0_300 = arith.constant 0 : index
    %c0_301 = arith.constant 0 : index
    %c4_302 = arith.constant 4 : index
    %c0_303 = arith.constant 0 : index
    %c0_304 = arith.constant 0 : index
    %215 = vector.load %arg1[%c0_300, %c0_301, %c4_302, %c0_303, %c0_304] : memref<1x4x8x8x4xf32, #tpu.memory_space<vmem>>, vector<1x1x1x7x4xf32>
    %216 = vector.shape_cast %215 : vector<1x1x1x7x4xf32> to vector<7x4xf32>
    %c0_305 = arith.constant 0 : index
    %c0_306 = arith.constant 0 : index
    %217 = vector.load %arg2[%c0_305, %c0_306] : memref<36x32xf32, #tpu.memory_space<vmem>>, vector<4x32xf32>
    %cst_307 = arith.constant dense<0.000000e+00> : vector<7x32xf32>
    %218 = tpu.matmul %216, %217, %cst_307 {dimension_numbers = #tpu.dot_dimension_numbers<[1], [0], [0], [1], [0, 0, 1, 1], [], []>} : vector<7x4xf32>, vector<4x32xf32>, vector<7x32xf32> -> vector<7x32xf32>
    %219 = arith.addf %214, %218 : vector<7x32xf32>
    %c0_308 = arith.constant 0 : index
    %c1_309 = arith.constant 1 : index
    %c4_310 = arith.constant 4 : index
    %c0_311 = arith.constant 0 : index
    %c0_312 = arith.constant 0 : index
    %220 = vector.load %arg1[%c0_308, %c1_309, %c4_310, %c0_311, %c0_312] : memref<1x4x8x8x4xf32, #tpu.memory_space<vmem>>, vector<1x1x1x7x4xf32>
    %221 = vector.shape_cast %220 : vector<1x1x1x7x4xf32> to vector<7x4xf32>
    %c4_313 = arith.constant 4 : index
    %c0_314 = arith.constant 0 : index
    %222 = vector.load %arg2[%c4_313, %c0_314] : memref<36x32xf32, #tpu.memory_space<vmem>>, vector<4x32xf32>
    %cst_315 = arith.constant dense<0.000000e+00> : vector<7x32xf32>
    %223 = tpu.matmul %221, %222, %cst_315 {dimension_numbers = #tpu.dot_dimension_numbers<[1], [0], [0], [1], [0, 0, 1, 1], [], []>} : vector<7x4xf32>, vector<4x32xf32>, vector<7x32xf32> -> vector<7x32xf32>
    %224 = arith.addf %219, %223 : vector<7x32xf32>
    %c0_316 = arith.constant 0 : index
    %c0_317 = arith.constant 0 : index
    %c4_318 = arith.constant 4 : index
    %c1_319 = arith.constant 1 : index
    %c0_320 = arith.constant 0 : index
    %225 = vector.load %arg1[%c0_316, %c0_317, %c4_318, %c1_319, %c0_320] : memref<1x4x8x8x4xf32, #tpu.memory_space<vmem>>, vector<1x1x1x7x4xf32>
    %226 = vector.shape_cast %225 : vector<1x1x1x7x4xf32> to vector<7x4xf32>
    %c8_321 = arith.constant 8 : index
    %c0_322 = arith.constant 0 : index
    %227 = vector.load %arg2[%c8_321, %c0_322] : memref<36x32xf32, #tpu.memory_space<vmem>>, vector<4x32xf32>
    %cst_323 = arith.constant dense<0.000000e+00> : vector<7x32xf32>
    %228 = tpu.matmul %226, %227, %cst_323 {dimension_numbers = #tpu.dot_dimension_numbers<[1], [0], [0], [1], [0, 0, 1, 1], [], []>} : vector<7x4xf32>, vector<4x32xf32>, vector<7x32xf32> -> vector<7x32xf32>
    %229 = arith.addf %224, %228 : vector<7x32xf32>
    %c0_324 = arith.constant 0 : index
    %c2_325 = arith.constant 2 : index
    %c4_326 = arith.constant 4 : index
    %c0_327 = arith.constant 0 : index
    %c0_328 = arith.constant 0 : index
    %230 = vector.load %arg1[%c0_324, %c2_325, %c4_326, %c0_327, %c0_328] : memref<1x4x8x8x4xf32, #tpu.memory_space<vmem>>, vector<1x1x1x7x4xf32>
    %231 = vector.shape_cast %230 : vector<1x1x1x7x4xf32> to vector<7x4xf32>
    %c12_329 = arith.constant 12 : index
    %c0_330 = arith.constant 0 : index
    %232 = vector.load %arg2[%c12_329, %c0_330] : memref<36x32xf32, #tpu.memory_space<vmem>>, vector<4x32xf32>
    %cst_331 = arith.constant dense<0.000000e+00> : vector<7x32xf32>
    %233 = tpu.matmul %231, %232, %cst_331 {dimension_numbers = #tpu.dot_dimension_numbers<[1], [0], [0], [1], [0, 0, 1, 1], [], []>} : vector<7x4xf32>, vector<4x32xf32>, vector<7x32xf32> -> vector<7x32xf32>
    %234 = arith.addf %229, %233 : vector<7x32xf32>
    %c0_332 = arith.constant 0 : index
    %c3_333 = arith.constant 3 : index
    %c4_334 = arith.constant 4 : index
    %c0_335 = arith.constant 0 : index
    %c0_336 = arith.constant 0 : index
    %235 = vector.load %arg1[%c0_332, %c3_333, %c4_334, %c0_335, %c0_336] : memref<1x4x8x8x4xf32, #tpu.memory_space<vmem>>, vector<1x1x1x7x4xf32>
    %236 = vector.shape_cast %235 : vector<1x1x1x7x4xf32> to vector<7x4xf32>
    %c16_337 = arith.constant 16 : index
    %c0_338 = arith.constant 0 : index
    %237 = vector.load %arg2[%c16_337, %c0_338] : memref<36x32xf32, #tpu.memory_space<vmem>>, vector<4x32xf32>
    %cst_339 = arith.constant dense<0.000000e+00> : vector<7x32xf32>
    %238 = tpu.matmul %236, %237, %cst_339 {dimension_numbers = #tpu.dot_dimension_numbers<[1], [0], [0], [1], [0, 0, 1, 1], [], []>} : vector<7x4xf32>, vector<4x32xf32>, vector<7x32xf32> -> vector<7x32xf32>
    %239 = arith.addf %234, %238 : vector<7x32xf32>
    %c0_340 = arith.constant 0 : index
    %c2_341 = arith.constant 2 : index
    %c4_342 = arith.constant 4 : index
    %c1_343 = arith.constant 1 : index
    %c0_344 = arith.constant 0 : index
    %240 = vector.load %arg1[%c0_340, %c2_341, %c4_342, %c1_343, %c0_344] : memref<1x4x8x8x4xf32, #tpu.memory_space<vmem>>, vector<1x1x1x7x4xf32>
    %241 = vector.shape_cast %240 : vector<1x1x1x7x4xf32> to vector<7x4xf32>
    %c20_345 = arith.constant 20 : index
    %c0_346 = arith.constant 0 : index
    %242 = vector.load %arg2[%c20_345, %c0_346] : memref<36x32xf32, #tpu.memory_space<vmem>>, vector<4x32xf32>
    %cst_347 = arith.constant dense<0.000000e+00> : vector<7x32xf32>
    %243 = tpu.matmul %241, %242, %cst_347 {dimension_numbers = #tpu.dot_dimension_numbers<[1], [0], [0], [1], [0, 0, 1, 1], [], []>} : vector<7x4xf32>, vector<4x32xf32>, vector<7x32xf32> -> vector<7x32xf32>
    %244 = arith.addf %239, %243 : vector<7x32xf32>
    %c0_348 = arith.constant 0 : index
    %c0_349 = arith.constant 0 : index
    %c5 = arith.constant 5 : index
    %c0_350 = arith.constant 0 : index
    %c0_351 = arith.constant 0 : index
    %245 = vector.load %arg1[%c0_348, %c0_349, %c5, %c0_350, %c0_351] : memref<1x4x8x8x4xf32, #tpu.memory_space<vmem>>, vector<1x1x1x7x4xf32>
    %246 = vector.shape_cast %245 : vector<1x1x1x7x4xf32> to vector<7x4xf32>
    %c24_352 = arith.constant 24 : index
    %c0_353 = arith.constant 0 : index
    %247 = vector.load %arg2[%c24_352, %c0_353] : memref<36x32xf32, #tpu.memory_space<vmem>>, vector<4x32xf32>
    %cst_354 = arith.constant dense<0.000000e+00> : vector<7x32xf32>
    %248 = tpu.matmul %246, %247, %cst_354 {dimension_numbers = #tpu.dot_dimension_numbers<[1], [0], [0], [1], [0, 0, 1, 1], [], []>} : vector<7x4xf32>, vector<4x32xf32>, vector<7x32xf32> -> vector<7x32xf32>
    %249 = arith.addf %244, %248 : vector<7x32xf32>
    %c0_355 = arith.constant 0 : index
    %c1_356 = arith.constant 1 : index
    %c5_357 = arith.constant 5 : index
    %c0_358 = arith.constant 0 : index
    %c0_359 = arith.constant 0 : index
    %250 = vector.load %arg1[%c0_355, %c1_356, %c5_357, %c0_358, %c0_359] : memref<1x4x8x8x4xf32, #tpu.memory_space<vmem>>, vector<1x1x1x7x4xf32>
    %251 = vector.shape_cast %250 : vector<1x1x1x7x4xf32> to vector<7x4xf32>
    %c28_360 = arith.constant 28 : index
    %c0_361 = arith.constant 0 : index
    %252 = vector.load %arg2[%c28_360, %c0_361] : memref<36x32xf32, #tpu.memory_space<vmem>>, vector<4x32xf32>
    %cst_362 = arith.constant dense<0.000000e+00> : vector<7x32xf32>
    %253 = tpu.matmul %251, %252, %cst_362 {dimension_numbers = #tpu.dot_dimension_numbers<[1], [0], [0], [1], [0, 0, 1, 1], [], []>} : vector<7x4xf32>, vector<4x32xf32>, vector<7x32xf32> -> vector<7x32xf32>
    %254 = arith.addf %249, %253 : vector<7x32xf32>
    %c0_363 = arith.constant 0 : index
    %c0_364 = arith.constant 0 : index
    %c5_365 = arith.constant 5 : index
    %c1_366 = arith.constant 1 : index
    %c0_367 = arith.constant 0 : index
    %255 = vector.load %arg1[%c0_363, %c0_364, %c5_365, %c1_366, %c0_367] : memref<1x4x8x8x4xf32, #tpu.memory_space<vmem>>, vector<1x1x1x7x4xf32>
    %256 = vector.shape_cast %255 : vector<1x1x1x7x4xf32> to vector<7x4xf32>
    %c32_368 = arith.constant 32 : index
    %c0_369 = arith.constant 0 : index
    %257 = vector.load %arg2[%c32_368, %c0_369] : memref<36x32xf32, #tpu.memory_space<vmem>>, vector<4x32xf32>
    %cst_370 = arith.constant dense<0.000000e+00> : vector<7x32xf32>
    %258 = tpu.matmul %256, %257, %cst_370 {dimension_numbers = #tpu.dot_dimension_numbers<[1], [0], [0], [1], [0, 0, 1, 1], [], []>} : vector<7x4xf32>, vector<4x32xf32>, vector<7x32xf32> -> vector<7x32xf32>
    %259 = arith.addf %254, %258 : vector<7x32xf32>
    %260 = vector.broadcast %0 : vector<1x32xf32> to vector<7x32xf32>
    %261 = arith.addf %259, %260 : vector<7x32xf32>
    %cst_371 = arith.constant 0.000000e+00 : f32
    %262 = vector.broadcast %cst_371 : f32 to vector<7x32xf32>
    %263 = arith.maximumf %261, %262 : vector<7x32xf32>
    %c4_372 = arith.constant 4 : index
    %c0_373 = arith.constant 0 : index
    %c0_374 = arith.constant 0 : index
    %264 = vector.load %arg8[%c4_372, %c0_373, %c0_374] : memref<7x7x32xf32, #tpu.memory_space<vmem>>, vector<1x7x32xf32>
    %265 = vector.shape_cast %264 : vector<1x7x32xf32> to vector<7x32xf32>
    %266 = vector.shape_cast %263 : vector<7x32xf32> to vector<1x7x32xf32>
    tpu.vector_store %arg8[%c4_372, %c0_373, %c0_374], %266 {strides = array<i32>} : memref<7x7x32xf32, #tpu.memory_space<vmem>>, vector<1x7x32xf32>,
    %cst_375 = arith.constant 0.000000e+00 : f32
    %267 = vector.broadcast %cst_375 : f32 to vector<7x32xf32>
    %c0_376 = arith.constant 0 : index
    %c0_377 = arith.constant 0 : index
    %c5_378 = arith.constant 5 : index
    %c0_379 = arith.constant 0 : index
    %c0_380 = arith.constant 0 : index
    %268 = vector.load %arg1[%c0_376, %c0_377, %c5_378, %c0_379, %c0_380] : memref<1x4x8x8x4xf32, #tpu.memory_space<vmem>>, vector<1x1x1x7x4xf32>
    %269 = vector.shape_cast %268 : vector<1x1x1x7x4xf32> to vector<7x4xf32>
    %c0_381 = arith.constant 0 : index
    %c0_382 = arith.constant 0 : index
    %270 = vector.load %arg2[%c0_381, %c0_382] : memref<36x32xf32, #tpu.memory_space<vmem>>, vector<4x32xf32>
    %cst_383 = arith.constant dense<0.000000e+00> : vector<7x32xf32>
    %271 = tpu.matmul %269, %270, %cst_383 {dimension_numbers = #tpu.dot_dimension_numbers<[1], [0], [0], [1], [0, 0, 1, 1], [], []>} : vector<7x4xf32>, vector<4x32xf32>, vector<7x32xf32> -> vector<7x32xf32>
    %272 = arith.addf %267, %271 : vector<7x32xf32>
    %c0_384 = arith.constant 0 : index
    %c1_385 = arith.constant 1 : index
    %c5_386 = arith.constant 5 : index
    %c0_387 = arith.constant 0 : index
    %c0_388 = arith.constant 0 : index
    %273 = vector.load %arg1[%c0_384, %c1_385, %c5_386, %c0_387, %c0_388] : memref<1x4x8x8x4xf32, #tpu.memory_space<vmem>>, vector<1x1x1x7x4xf32>
    %274 = vector.shape_cast %273 : vector<1x1x1x7x4xf32> to vector<7x4xf32>
    %c4_389 = arith.constant 4 : index
    %c0_390 = arith.constant 0 : index
    %275 = vector.load %arg2[%c4_389, %c0_390] : memref<36x32xf32, #tpu.memory_space<vmem>>, vector<4x32xf32>
    %cst_391 = arith.constant dense<0.000000e+00> : vector<7x32xf32>
    %276 = tpu.matmul %274, %275, %cst_391 {dimension_numbers = #tpu.dot_dimension_numbers<[1], [0], [0], [1], [0, 0, 1, 1], [], []>} : vector<7x4xf32>, vector<4x32xf32>, vector<7x32xf32> -> vector<7x32xf32>
    %277 = arith.addf %272, %276 : vector<7x32xf32>
    %c0_392 = arith.constant 0 : index
    %c0_393 = arith.constant 0 : index
    %c5_394 = arith.constant 5 : index
    %c1_395 = arith.constant 1 : index
    %c0_396 = arith.constant 0 : index
    %278 = vector.load %arg1[%c0_392, %c0_393, %c5_394, %c1_395, %c0_396] : memref<1x4x8x8x4xf32, #tpu.memory_space<vmem>>, vector<1x1x1x7x4xf32>
    %279 = vector.shape_cast %278 : vector<1x1x1x7x4xf32> to vector<7x4xf32>
    %c8_397 = arith.constant 8 : index
    %c0_398 = arith.constant 0 : index
    %280 = vector.load %arg2[%c8_397, %c0_398] : memref<36x32xf32, #tpu.memory_space<vmem>>, vector<4x32xf32>
    %cst_399 = arith.constant dense<0.000000e+00> : vector<7x32xf32>
    %281 = tpu.matmul %279, %280, %cst_399 {dimension_numbers = #tpu.dot_dimension_numbers<[1], [0], [0], [1], [0, 0, 1, 1], [], []>} : vector<7x4xf32>, vector<4x32xf32>, vector<7x32xf32> -> vector<7x32xf32>
    %282 = arith.addf %277, %281 : vector<7x32xf32>
    %c0_400 = arith.constant 0 : index
    %c2_401 = arith.constant 2 : index
    %c5_402 = arith.constant 5 : index
    %c0_403 = arith.constant 0 : index
    %c0_404 = arith.constant 0 : index
    %283 = vector.load %arg1[%c0_400, %c2_401, %c5_402, %c0_403, %c0_404] : memref<1x4x8x8x4xf32, #tpu.memory_space<vmem>>, vector<1x1x1x7x4xf32>
    %284 = vector.shape_cast %283 : vector<1x1x1x7x4xf32> to vector<7x4xf32>
    %c12_405 = arith.constant 12 : index
    %c0_406 = arith.constant 0 : index
    %285 = vector.load %arg2[%c12_405, %c0_406] : memref<36x32xf32, #tpu.memory_space<vmem>>, vector<4x32xf32>
    %cst_407 = arith.constant dense<0.000000e+00> : vector<7x32xf32>
    %286 = tpu.matmul %284, %285, %cst_407 {dimension_numbers = #tpu.dot_dimension_numbers<[1], [0], [0], [1], [0, 0, 1, 1], [], []>} : vector<7x4xf32>, vector<4x32xf32>, vector<7x32xf32> -> vector<7x32xf32>
    %287 = arith.addf %282, %286 : vector<7x32xf32>
    %c0_408 = arith.constant 0 : index
    %c3_409 = arith.constant 3 : index
    %c5_410 = arith.constant 5 : index
    %c0_411 = arith.constant 0 : index
    %c0_412 = arith.constant 0 : index
    %288 = vector.load %arg1[%c0_408, %c3_409, %c5_410, %c0_411, %c0_412] : memref<1x4x8x8x4xf32, #tpu.memory_space<vmem>>, vector<1x1x1x7x4xf32>
    %289 = vector.shape_cast %288 : vector<1x1x1x7x4xf32> to vector<7x4xf32>
    %c16_413 = arith.constant 16 : index
    %c0_414 = arith.constant 0 : index
    %290 = vector.load %arg2[%c16_413, %c0_414] : memref<36x32xf32, #tpu.memory_space<vmem>>, vector<4x32xf32>
    %cst_415 = arith.constant dense<0.000000e+00> : vector<7x32xf32>
    %291 = tpu.matmul %289, %290, %cst_415 {dimension_numbers = #tpu.dot_dimension_numbers<[1], [0], [0], [1], [0, 0, 1, 1], [], []>} : vector<7x4xf32>, vector<4x32xf32>, vector<7x32xf32> -> vector<7x32xf32>
    %292 = arith.addf %287, %291 : vector<7x32xf32>
    %c0_416 = arith.constant 0 : index
    %c2_417 = arith.constant 2 : index
    %c5_418 = arith.constant 5 : index
    %c1_419 = arith.constant 1 : index
    %c0_420 = arith.constant 0 : index
    %293 = vector.load %arg1[%c0_416, %c2_417, %c5_418, %c1_419, %c0_420] : memref<1x4x8x8x4xf32, #tpu.memory_space<vmem>>, vector<1x1x1x7x4xf32>
    %294 = vector.shape_cast %293 : vector<1x1x1x7x4xf32> to vector<7x4xf32>
    %c20_421 = arith.constant 20 : index
    %c0_422 = arith.constant 0 : index
    %295 = vector.load %arg2[%c20_421, %c0_422] : memref<36x32xf32, #tpu.memory_space<vmem>>, vector<4x32xf32>
    %cst_423 = arith.constant dense<0.000000e+00> : vector<7x32xf32>
    %296 = tpu.matmul %294, %295, %cst_423 {dimension_numbers = #tpu.dot_dimension_numbers<[1], [0], [0], [1], [0, 0, 1, 1], [], []>} : vector<7x4xf32>, vector<4x32xf32>, vector<7x32xf32> -> vector<7x32xf32>
    %297 = arith.addf %292, %296 : vector<7x32xf32>
    %c0_424 = arith.constant 0 : index
    %c0_425 = arith.constant 0 : index
    %c6 = arith.constant 6 : index
    %c0_426 = arith.constant 0 : index
    %c0_427 = arith.constant 0 : index
    %298 = vector.load %arg1[%c0_424, %c0_425, %c6, %c0_426, %c0_427] : memref<1x4x8x8x4xf32, #tpu.memory_space<vmem>>, vector<1x1x1x7x4xf32>
    %299 = vector.shape_cast %298 : vector<1x1x1x7x4xf32> to vector<7x4xf32>
    %c24_428 = arith.constant 24 : index
    %c0_429 = arith.constant 0 : index
    %300 = vector.load %arg2[%c24_428, %c0_429] : memref<36x32xf32, #tpu.memory_space<vmem>>, vector<4x32xf32>
    %cst_430 = arith.constant dense<0.000000e+00> : vector<7x32xf32>
    %301 = tpu.matmul %299, %300, %cst_430 {dimension_numbers = #tpu.dot_dimension_numbers<[1], [0], [0], [1], [0, 0, 1, 1], [], []>} : vector<7x4xf32>, vector<4x32xf32>, vector<7x32xf32> -> vector<7x32xf32>
    %302 = arith.addf %297, %301 : vector<7x32xf32>
    %c0_431 = arith.constant 0 : index
    %c1_432 = arith.constant 1 : index
    %c6_433 = arith.constant 6 : index
    %c0_434 = arith.constant 0 : index
    %c0_435 = arith.constant 0 : index
    %303 = vector.load %arg1[%c0_431, %c1_432, %c6_433, %c0_434, %c0_435] : memref<1x4x8x8x4xf32, #tpu.memory_space<vmem>>, vector<1x1x1x7x4xf32>
    %304 = vector.shape_cast %303 : vector<1x1x1x7x4xf32> to vector<7x4xf32>
    %c28_436 = arith.constant 28 : index
    %c0_437 = arith.constant 0 : index
    %305 = vector.load %arg2[%c28_436, %c0_437] : memref<36x32xf32, #tpu.memory_space<vmem>>, vector<4x32xf32>
    %cst_438 = arith.constant dense<0.000000e+00> : vector<7x32xf32>
    %306 = tpu.matmul %304, %305, %cst_438 {dimension_numbers = #tpu.dot_dimension_numbers<[1], [0], [0], [1], [0, 0, 1, 1], [], []>} : vector<7x4xf32>, vector<4x32xf32>, vector<7x32xf32> -> vector<7x32xf32>
    %307 = arith.addf %302, %306 : vector<7x32xf32>
    %c0_439 = arith.constant 0 : index
    %c0_440 = arith.constant 0 : index
    %c6_441 = arith.constant 6 : index
    %c1_442 = arith.constant 1 : index
    %c0_443 = arith.constant 0 : index
    %308 = vector.load %arg1[%c0_439, %c0_440, %c6_441, %c1_442, %c0_443] : memref<1x4x8x8x4xf32, #tpu.memory_space<vmem>>, vector<1x1x1x7x4xf32>
    %309 = vector.shape_cast %308 : vector<1x1x1x7x4xf32> to vector<7x4xf32>
    %c32_444 = arith.constant 32 : index
    %c0_445 = arith.constant 0 : index
    %310 = vector.load %arg2[%c32_444, %c0_445] : memref<36x32xf32, #tpu.memory_space<vmem>>, vector<4x32xf32>
    %cst_446 = arith.constant dense<0.000000e+00> : vector<7x32xf32>
    %311 = tpu.matmul %309, %310, %cst_446 {dimension_numbers = #tpu.dot_dimension_numbers<[1], [0], [0], [1], [0, 0, 1, 1], [], []>} : vector<7x4xf32>, vector<4x32xf32>, vector<7x32xf32> -> vector<7x32xf32>
    %312 = arith.addf %307, %311 : vector<7x32xf32>
    %313 = vector.broadcast %0 : vector<1x32xf32> to vector<7x32xf32>
    %314 = arith.addf %312, %313 : vector<7x32xf32>
    %cst_447 = arith.constant 0.000000e+00 : f32
    %315 = vector.broadcast %cst_447 : f32 to vector<7x32xf32>
    %316 = arith.maximumf %314, %315 : vector<7x32xf32>
    %c5_448 = arith.constant 5 : index
    %c0_449 = arith.constant 0 : index
    %c0_450 = arith.constant 0 : index
    %317 = vector.load %arg8[%c5_448, %c0_449, %c0_450] : memref<7x7x32xf32, #tpu.memory_space<vmem>>, vector<1x7x32xf32>
    %318 = vector.shape_cast %317 : vector<1x7x32xf32> to vector<7x32xf32>
    %319 = vector.shape_cast %316 : vector<7x32xf32> to vector<1x7x32xf32>
    tpu.vector_store %arg8[%c5_448, %c0_449, %c0_450], %319 {strides = array<i32>} : memref<7x7x32xf32, #tpu.memory_space<vmem>>, vector<1x7x32xf32>,
    %cst_451 = arith.constant 0.000000e+00 : f32
    %320 = vector.broadcast %cst_451 : f32 to vector<7x32xf32>
    %c0_452 = arith.constant 0 : index
    %c0_453 = arith.constant 0 : index
    %c6_454 = arith.constant 6 : index
    %c0_455 = arith.constant 0 : index
    %c0_456 = arith.constant 0 : index
    %321 = vector.load %arg1[%c0_452, %c0_453, %c6_454, %c0_455, %c0_456] : memref<1x4x8x8x4xf32, #tpu.memory_space<vmem>>, vector<1x1x1x7x4xf32>
    %322 = vector.shape_cast %321 : vector<1x1x1x7x4xf32> to vector<7x4xf32>
    %c0_457 = arith.constant 0 : index
    %c0_458 = arith.constant 0 : index
    %323 = vector.load %arg2[%c0_457, %c0_458] : memref<36x32xf32, #tpu.memory_space<vmem>>, vector<4x32xf32>
    %cst_459 = arith.constant dense<0.000000e+00> : vector<7x32xf32>
    %324 = tpu.matmul %322, %323, %cst_459 {dimension_numbers = #tpu.dot_dimension_numbers<[1], [0], [0], [1], [0, 0, 1, 1], [], []>} : vector<7x4xf32>, vector<4x32xf32>, vector<7x32xf32> -> vector<7x32xf32>
    %325 = arith.addf %320, %324 : vector<7x32xf32>
    %c0_460 = arith.constant 0 : index
    %c1_461 = arith.constant 1 : index
    %c6_462 = arith.constant 6 : index
    %c0_463 = arith.constant 0 : index
    %c0_464 = arith.constant 0 : index
    %326 = vector.load %arg1[%c0_460, %c1_461, %c6_462, %c0_463, %c0_464] : memref<1x4x8x8x4xf32, #tpu.memory_space<vmem>>, vector<1x1x1x7x4xf32>
    %327 = vector.shape_cast %326 : vector<1x1x1x7x4xf32> to vector<7x4xf32>
    %c4_465 = arith.constant 4 : index
    %c0_466 = arith.constant 0 : index
    %328 = vector.load %arg2[%c4_465, %c0_466] : memref<36x32xf32, #tpu.memory_space<vmem>>, vector<4x32xf32>
    %cst_467 = arith.constant dense<0.000000e+00> : vector<7x32xf32>
    %329 = tpu.matmul %327, %328, %cst_467 {dimension_numbers = #tpu.dot_dimension_numbers<[1], [0], [0], [1], [0, 0, 1, 1], [], []>} : vector<7x4xf32>, vector<4x32xf32>, vector<7x32xf32> -> vector<7x32xf32>
    %330 = arith.addf %325, %329 : vector<7x32xf32>
    %c0_468 = arith.constant 0 : index
    %c0_469 = arith.constant 0 : index
    %c6_470 = arith.constant 6 : index
    %c1_471 = arith.constant 1 : index
    %c0_472 = arith.constant 0 : index
    %331 = vector.load %arg1[%c0_468, %c0_469, %c6_470, %c1_471, %c0_472] : memref<1x4x8x8x4xf32, #tpu.memory_space<vmem>>, vector<1x1x1x7x4xf32>
    %332 = vector.shape_cast %331 : vector<1x1x1x7x4xf32> to vector<7x4xf32>
    %c8_473 = arith.constant 8 : index
    %c0_474 = arith.constant 0 : index
    %333 = vector.load %arg2[%c8_473, %c0_474] : memref<36x32xf32, #tpu.memory_space<vmem>>, vector<4x32xf32>
    %cst_475 = arith.constant dense<0.000000e+00> : vector<7x32xf32>
    %334 = tpu.matmul %332, %333, %cst_475 {dimension_numbers = #tpu.dot_dimension_numbers<[1], [0], [0], [1], [0, 0, 1, 1], [], []>} : vector<7x4xf32>, vector<4x32xf32>, vector<7x32xf32> -> vector<7x32xf32>
    %335 = arith.addf %330, %334 : vector<7x32xf32>
    %c0_476 = arith.constant 0 : index
    %c2_477 = arith.constant 2 : index
    %c6_478 = arith.constant 6 : index
    %c0_479 = arith.constant 0 : index
    %c0_480 = arith.constant 0 : index
    %336 = vector.load %arg1[%c0_476, %c2_477, %c6_478, %c0_479, %c0_480] : memref<1x4x8x8x4xf32, #tpu.memory_space<vmem>>, vector<1x1x1x7x4xf32>
    %337 = vector.shape_cast %336 : vector<1x1x1x7x4xf32> to vector<7x4xf32>
    %c12_481 = arith.constant 12 : index
    %c0_482 = arith.constant 0 : index
    %338 = vector.load %arg2[%c12_481, %c0_482] : memref<36x32xf32, #tpu.memory_space<vmem>>, vector<4x32xf32>
    %cst_483 = arith.constant dense<0.000000e+00> : vector<7x32xf32>
    %339 = tpu.matmul %337, %338, %cst_483 {dimension_numbers = #tpu.dot_dimension_numbers<[1], [0], [0], [1], [0, 0, 1, 1], [], []>} : vector<7x4xf32>, vector<4x32xf32>, vector<7x32xf32> -> vector<7x32xf32>
    %340 = arith.addf %335, %339 : vector<7x32xf32>
    %c0_484 = arith.constant 0 : index
    %c3_485 = arith.constant 3 : index
    %c6_486 = arith.constant 6 : index
    %c0_487 = arith.constant 0 : index
    %c0_488 = arith.constant 0 : index
    %341 = vector.load %arg1[%c0_484, %c3_485, %c6_486, %c0_487, %c0_488] : memref<1x4x8x8x4xf32, #tpu.memory_space<vmem>>, vector<1x1x1x7x4xf32>
    %342 = vector.shape_cast %341 : vector<1x1x1x7x4xf32> to vector<7x4xf32>
    %c16_489 = arith.constant 16 : index
    %c0_490 = arith.constant 0 : index
    %343 = vector.load %arg2[%c16_489, %c0_490] : memref<36x32xf32, #tpu.memory_space<vmem>>, vector<4x32xf32>
    %cst_491 = arith.constant dense<0.000000e+00> : vector<7x32xf32>
    %344 = tpu.matmul %342, %343, %cst_491 {dimension_numbers = #tpu.dot_dimension_numbers<[1], [0], [0], [1], [0, 0, 1, 1], [], []>} : vector<7x4xf32>, vector<4x32xf32>, vector<7x32xf32> -> vector<7x32xf32>
    %345 = arith.addf %340, %344 : vector<7x32xf32>
    %c0_492 = arith.constant 0 : index
    %c2_493 = arith.constant 2 : index
    %c6_494 = arith.constant 6 : index
    %c1_495 = arith.constant 1 : index
    %c0_496 = arith.constant 0 : index
    %346 = vector.load %arg1[%c0_492, %c2_493, %c6_494, %c1_495, %c0_496] : memref<1x4x8x8x4xf32, #tpu.memory_space<vmem>>, vector<1x1x1x7x4xf32>
    %347 = vector.shape_cast %346 : vector<1x1x1x7x4xf32> to vector<7x4xf32>
    %c20_497 = arith.constant 20 : index
    %c0_498 = arith.constant 0 : index
    %348 = vector.load %arg2[%c20_497, %c0_498] : memref<36x32xf32, #tpu.memory_space<vmem>>, vector<4x32xf32>
    %cst_499 = arith.constant dense<0.000000e+00> : vector<7x32xf32>
    %349 = tpu.matmul %347, %348, %cst_499 {dimension_numbers = #tpu.dot_dimension_numbers<[1], [0], [0], [1], [0, 0, 1, 1], [], []>} : vector<7x4xf32>, vector<4x32xf32>, vector<7x32xf32> -> vector<7x32xf32>
    %350 = arith.addf %345, %349 : vector<7x32xf32>
    %c0_500 = arith.constant 0 : index
    %c0_501 = arith.constant 0 : index
    %c7 = arith.constant 7 : index
    %c0_502 = arith.constant 0 : index
    %c0_503 = arith.constant 0 : index
    %351 = vector.load %arg1[%c0_500, %c0_501, %c7, %c0_502, %c0_503] : memref<1x4x8x8x4xf32, #tpu.memory_space<vmem>>, vector<1x1x1x7x4xf32>
    %352 = vector.shape_cast %351 : vector<1x1x1x7x4xf32> to vector<7x4xf32>
    %c24_504 = arith.constant 24 : index
    %c0_505 = arith.constant 0 : index
    %353 = vector.load %arg2[%c24_504, %c0_505] : memref<36x32xf32, #tpu.memory_space<vmem>>, vector<4x32xf32>
    %cst_506 = arith.constant dense<0.000000e+00> : vector<7x32xf32>
    %354 = tpu.matmul %352, %353, %cst_506 {dimension_numbers = #tpu.dot_dimension_numbers<[1], [0], [0], [1], [0, 0, 1, 1], [], []>} : vector<7x4xf32>, vector<4x32xf32>, vector<7x32xf32> -> vector<7x32xf32>
    %355 = arith.addf %350, %354 : vector<7x32xf32>
    %c0_507 = arith.constant 0 : index
    %c1_508 = arith.constant 1 : index
    %c7_509 = arith.constant 7 : index
    %c0_510 = arith.constant 0 : index
    %c0_511 = arith.constant 0 : index
    %356 = vector.load %arg1[%c0_507, %c1_508, %c7_509, %c0_510, %c0_511] : memref<1x4x8x8x4xf32, #tpu.memory_space<vmem>>, vector<1x1x1x7x4xf32>
    %357 = vector.shape_cast %356 : vector<1x1x1x7x4xf32> to vector<7x4xf32>
    %c28_512 = arith.constant 28 : index
    %c0_513 = arith.constant 0 : index
    %358 = vector.load %arg2[%c28_512, %c0_513] : memref<36x32xf32, #tpu.memory_space<vmem>>, vector<4x32xf32>
    %cst_514 = arith.constant dense<0.000000e+00> : vector<7x32xf32>
    %359 = tpu.matmul %357, %358, %cst_514 {dimension_numbers = #tpu.dot_dimension_numbers<[1], [0], [0], [1], [0, 0, 1, 1], [], []>} : vector<7x4xf32>, vector<4x32xf32>, vector<7x32xf32> -> vector<7x32xf32>
    %360 = arith.addf %355, %359 : vector<7x32xf32>
    %c0_515 = arith.constant 0 : index
    %c0_516 = arith.constant 0 : index
    %c7_517 = arith.constant 7 : index
    %c1_518 = arith.constant 1 : index
    %c0_519 = arith.constant 0 : index
    %361 = vector.load %arg1[%c0_515, %c0_516, %c7_517, %c1_518, %c0_519] : memref<1x4x8x8x4xf32, #tpu.memory_space<vmem>>, vector<1x1x1x7x4xf32>
    %362 = vector.shape_cast %361 : vector<1x1x1x7x4xf32> to vector<7x4xf32>
    %c32_520 = arith.constant 32 : index
    %c0_521 = arith.constant 0 : index
    %363 = vector.load %arg2[%c32_520, %c0_521] : memref<36x32xf32, #tpu.memory_space<vmem>>, vector<4x32xf32>
    %cst_522 = arith.constant dense<0.000000e+00> : vector<7x32xf32>
    %364 = tpu.matmul %362, %363, %cst_522 {dimension_numbers = #tpu.dot_dimension_numbers<[1], [0], [0], [1], [0, 0, 1, 1], [], []>} : vector<7x4xf32>, vector<4x32xf32>, vector<7x32xf32> -> vector<7x32xf32>
    %365 = arith.addf %360, %364 : vector<7x32xf32>
    %366 = vector.broadcast %0 : vector<1x32xf32> to vector<7x32xf32>
    %367 = arith.addf %365, %366 : vector<7x32xf32>
    %cst_523 = arith.constant 0.000000e+00 : f32
    %368 = vector.broadcast %cst_523 : f32 to vector<7x32xf32>
    %369 = arith.maximumf %367, %368 : vector<7x32xf32>
    %c6_524 = arith.constant 6 : index
    %c0_525 = arith.constant 0 : index
    %c0_526 = arith.constant 0 : index
    %370 = vector.load %arg8[%c6_524, %c0_525, %c0_526] : memref<7x7x32xf32, #tpu.memory_space<vmem>>, vector<1x7x32xf32>
    %371 = vector.shape_cast %370 : vector<1x7x32xf32> to vector<7x32xf32>
    %372 = vector.shape_cast %369 : vector<7x32xf32> to vector<1x7x32xf32>
    tpu.vector_store %arg8[%c6_524, %c0_525, %c0_526], %372 {strides = array<i32>} : memref<7x7x32xf32, #tpu.memory_space<vmem>>, vector<1x7x32xf32>,
    %cst_527 = arith.constant 0.000000e+00 : f32
    %373 = vector.broadcast %cst_527 : f32 to vector<11x11x2xf32>
    %c0_528 = arith.constant 0 : index
    %c0_529 = arith.constant 0 : index
    %c0_530 = arith.constant 0 : index
    %374 = vector.load %arg9[%c0_528, %c0_529, %c0_530] : memref<11x11x2xf32, #tpu.memory_space<vmem>>, vector<11x11x2xf32>
    tpu.vector_store %arg9[%c0_528, %c0_529, %c0_530], %373 {strides = array<i32>} : memref<11x11x2xf32, #tpu.memory_space<vmem>>, vector<11x11x2xf32>,
    %cst_531 = arith.constant 0.000000e+00 : f32
    %375 = vector.broadcast %cst_531 : f32 to vector<5x64xf32>
    %c0_532 = arith.constant 0 : index
    %c0_533 = arith.constant 0 : index
    %c0_534 = arith.constant 0 : index
    %376 = vector.load %arg8[%c0_532, %c0_533, %c0_534] : memref<7x7x32xf32, #tpu.memory_space<vmem>>, vector<1x5x32xf32>
    %377 = vector.shape_cast %376 : vector<1x5x32xf32> to vector<5x32xf32>
    %c0_535 = arith.constant 0 : index
    %c0_536 = arith.constant 0 : index
    %378 = vector.load %arg4[%c0_535, %c0_536] : memref<288x64xf32, #tpu.memory_space<vmem>>, vector<32x64xf32>
    %cst_537 = arith.constant dense<0.000000e+00> : vector<5x64xf32>
    %379 = tpu.matmul %377, %378, %cst_537 {dimension_numbers = #tpu.dot_dimension_numbers<[1], [0], [0], [1], [0, 0, 1, 1], [], []>} : vector<5x32xf32>, vector<32x64xf32>, vector<5x64xf32> -> vector<5x64xf32>
    %380 = arith.addf %375, %379 : vector<5x64xf32>
    %c0_538 = arith.constant 0 : index
    %c1_539 = arith.constant 1 : index
    %c0_540 = arith.constant 0 : index
    %381 = vector.load %arg8[%c0_538, %c1_539, %c0_540] : memref<7x7x32xf32, #tpu.memory_space<vmem>>, vector<1x5x32xf32>
    %382 = vector.shape_cast %381 : vector<1x5x32xf32> to vector<5x32xf32>
    %c32_541 = arith.constant 32 : index
    %c0_542 = arith.constant 0 : index
    %383 = vector.load %arg4[%c32_541, %c0_542] : memref<288x64xf32, #tpu.memory_space<vmem>>, vector<32x64xf32>
    %cst_543 = arith.constant dense<0.000000e+00> : vector<5x64xf32>
    %384 = tpu.matmul %382, %383, %cst_543 {dimension_numbers = #tpu.dot_dimension_numbers<[1], [0], [0], [1], [0, 0, 1, 1], [], []>} : vector<5x32xf32>, vector<32x64xf32>, vector<5x64xf32> -> vector<5x64xf32>
    %385 = arith.addf %380, %384 : vector<5x64xf32>
    %c0_544 = arith.constant 0 : index
    %c2_545 = arith.constant 2 : index
    %c0_546 = arith.constant 0 : index
    %386 = vector.load %arg8[%c0_544, %c2_545, %c0_546] : memref<7x7x32xf32, #tpu.memory_space<vmem>>, vector<1x5x32xf32>
    %387 = vector.shape_cast %386 : vector<1x5x32xf32> to vector<5x32xf32>
    %c64 = arith.constant 64 : index
    %c0_547 = arith.constant 0 : index
    %388 = vector.load %arg4[%c64, %c0_547] : memref<288x64xf32, #tpu.memory_space<vmem>>, vector<32x64xf32>
    %cst_548 = arith.constant dense<0.000000e+00> : vector<5x64xf32>
    %389 = tpu.matmul %387, %388, %cst_548 {dimension_numbers = #tpu.dot_dimension_numbers<[1], [0], [0], [1], [0, 0, 1, 1], [], []>} : vector<5x32xf32>, vector<32x64xf32>, vector<5x64xf32> -> vector<5x64xf32>
    %390 = arith.addf %385, %389 : vector<5x64xf32>
    %c1_549 = arith.constant 1 : index
    %c0_550 = arith.constant 0 : index
    %c0_551 = arith.constant 0 : index
    %391 = vector.load %arg8[%c1_549, %c0_550, %c0_551] : memref<7x7x32xf32, #tpu.memory_space<vmem>>, vector<1x5x32xf32>
    %392 = vector.shape_cast %391 : vector<1x5x32xf32> to vector<5x32xf32>
    %c96 = arith.constant 96 : index
    %c0_552 = arith.constant 0 : index
    %393 = vector.load %arg4[%c96, %c0_552] : memref<288x64xf32, #tpu.memory_space<vmem>>, vector<32x64xf32>
    %cst_553 = arith.constant dense<0.000000e+00> : vector<5x64xf32>
    %394 = tpu.matmul %392, %393, %cst_553 {dimension_numbers = #tpu.dot_dimension_numbers<[1], [0], [0], [1], [0, 0, 1, 1], [], []>} : vector<5x32xf32>, vector<32x64xf32>, vector<5x64xf32> -> vector<5x64xf32>
    %395 = arith.addf %390, %394 : vector<5x64xf32>
    %c1_554 = arith.constant 1 : index
    %c1_555 = arith.constant 1 : index
    %c0_556 = arith.constant 0 : index
    %396 = vector.load %arg8[%c1_554, %c1_555, %c0_556] : memref<7x7x32xf32, #tpu.memory_space<vmem>>, vector<1x5x32xf32>
    %397 = vector.shape_cast %396 : vector<1x5x32xf32> to vector<5x32xf32>
    %c128 = arith.constant 128 : index
    %c0_557 = arith.constant 0 : index
    %398 = vector.load %arg4[%c128, %c0_557] : memref<288x64xf32, #tpu.memory_space<vmem>>, vector<32x64xf32>
    %cst_558 = arith.constant dense<0.000000e+00> : vector<5x64xf32>
    %399 = tpu.matmul %397, %398, %cst_558 {dimension_numbers = #tpu.dot_dimension_numbers<[1], [0], [0], [1], [0, 0, 1, 1], [], []>} : vector<5x32xf32>, vector<32x64xf32>, vector<5x64xf32> -> vector<5x64xf32>
    %400 = arith.addf %395, %399 : vector<5x64xf32>
    %c1_559 = arith.constant 1 : index
    %c2_560 = arith.constant 2 : index
    %c0_561 = arith.constant 0 : index
    %401 = vector.load %arg8[%c1_559, %c2_560, %c0_561] : memref<7x7x32xf32, #tpu.memory_space<vmem>>, vector<1x5x32xf32>
    %402 = vector.shape_cast %401 : vector<1x5x32xf32> to vector<5x32xf32>
    %c160 = arith.constant 160 : index
    %c0_562 = arith.constant 0 : index
    %403 = vector.load %arg4[%c160, %c0_562] : memref<288x64xf32, #tpu.memory_space<vmem>>, vector<32x64xf32>
    %cst_563 = arith.constant dense<0.000000e+00> : vector<5x64xf32>
    %404 = tpu.matmul %402, %403, %cst_563 {dimension_numbers = #tpu.dot_dimension_numbers<[1], [0], [0], [1], [0, 0, 1, 1], [], []>} : vector<5x32xf32>, vector<32x64xf32>, vector<5x64xf32> -> vector<5x64xf32>
    %405 = arith.addf %400, %404 : vector<5x64xf32>
    %c2_564 = arith.constant 2 : index
    %c0_565 = arith.constant 0 : index
    %c0_566 = arith.constant 0 : index
    %406 = vector.load %arg8[%c2_564, %c0_565, %c0_566] : memref<7x7x32xf32, #tpu.memory_space<vmem>>, vector<1x5x32xf32>
    %407 = vector.shape_cast %406 : vector<1x5x32xf32> to vector<5x32xf32>
    %c192 = arith.constant 192 : index
    %c0_567 = arith.constant 0 : index
    %408 = vector.load %arg4[%c192, %c0_567] : memref<288x64xf32, #tpu.memory_space<vmem>>, vector<32x64xf32>
    %cst_568 = arith.constant dense<0.000000e+00> : vector<5x64xf32>
    %409 = tpu.matmul %407, %408, %cst_568 {dimension_numbers = #tpu.dot_dimension_numbers<[1], [0], [0], [1], [0, 0, 1, 1], [], []>} : vector<5x32xf32>, vector<32x64xf32>, vector<5x64xf32> -> vector<5x64xf32>
    %410 = arith.addf %405, %409 : vector<5x64xf32>
    %c2_569 = arith.constant 2 : index
    %c1_570 = arith.constant 1 : index
    %c0_571 = arith.constant 0 : index
    %411 = vector.load %arg8[%c2_569, %c1_570, %c0_571] : memref<7x7x32xf32, #tpu.memory_space<vmem>>, vector<1x5x32xf32>
    %412 = vector.shape_cast %411 : vector<1x5x32xf32> to vector<5x32xf32>
    %c224 = arith.constant 224 : index
    %c0_572 = arith.constant 0 : index
    %413 = vector.load %arg4[%c224, %c0_572] : memref<288x64xf32, #tpu.memory_space<vmem>>, vector<32x64xf32>
    %cst_573 = arith.constant dense<0.000000e+00> : vector<5x64xf32>
    %414 = tpu.matmul %412, %413, %cst_573 {dimension_numbers = #tpu.dot_dimension_numbers<[1], [0], [0], [1], [0, 0, 1, 1], [], []>} : vector<5x32xf32>, vector<32x64xf32>, vector<5x64xf32> -> vector<5x64xf32>
    %415 = arith.addf %410, %414 : vector<5x64xf32>
    %c2_574 = arith.constant 2 : index
    %c2_575 = arith.constant 2 : index
    %c0_576 = arith.constant 0 : index
    %416 = vector.load %arg8[%c2_574, %c2_575, %c0_576] : memref<7x7x32xf32, #tpu.memory_space<vmem>>, vector<1x5x32xf32>
    %417 = vector.shape_cast %416 : vector<1x5x32xf32> to vector<5x32xf32>
    %c256 = arith.constant 256 : index
    %c0_577 = arith.constant 0 : index
    %418 = vector.load %arg4[%c256, %c0_577] : memref<288x64xf32, #tpu.memory_space<vmem>>, vector<32x64xf32>
    %cst_578 = arith.constant dense<0.000000e+00> : vector<5x64xf32>
    %419 = tpu.matmul %417, %418, %cst_578 {dimension_numbers = #tpu.dot_dimension_numbers<[1], [0], [0], [1], [0, 0, 1, 1], [], []>} : vector<5x32xf32>, vector<32x64xf32>, vector<5x64xf32> -> vector<5x64xf32>
    %420 = arith.addf %415, %419 : vector<5x64xf32>
    %421 = vector.broadcast %1 : vector<1x64xf32> to vector<5x64xf32>
    %422 = arith.addf %420, %421 : vector<5x64xf32>
    %cst_579 = arith.constant 0.000000e+00 : f32
    %423 = vector.broadcast %cst_579 : f32 to vector<5x64xf32>
    %424 = arith.maximumf %422, %423 : vector<5x64xf32>
    %cst_580 = arith.constant dense<0.000000e+00> : vector<5xf32>
    %425 = vector.multi_reduction <add>, %424, %cst_580 [1] : vector<5x64xf32> to vector<5xf32>
    %426 = vector.shape_cast %425 : vector<5xf32> to vector<5x1xf32>
    %cst_581 = arith.constant 6.400000e+01 : f32
    %427 = vector.broadcast %cst_581 : f32 to vector<5x1xf32>
    %428 = arith.divf %426, %427 : vector<5x1xf32>
    %cst_582 = arith.constant dense<0xFF800000> : vector<5xf32>
    %429 = vector.multi_reduction <maximumf>, %424, %cst_582 [1] : vector<5x64xf32> to vector<5xf32>
    %430 = vector.shape_cast %429 : vector<5xf32> to vector<5x1xf32>
    %431 = tpu.concatenate %428, %430 in 1 : vector<5x1xf32>, vector<5x1xf32> -> vector<5x2xf32>
    %c3_583 = arith.constant 3 : index
    %c3_584 = arith.constant 3 : index
    %c0_585 = arith.constant 0 : index
    %432 = vector.load %arg9[%c3_583, %c3_584, %c0_585] : memref<11x11x2xf32, #tpu.memory_space<vmem>>, vector<1x5x2xf32>
    %433 = vector.shape_cast %432 : vector<1x5x2xf32> to vector<5x2xf32>
    %434 = vector.shape_cast %431 : vector<5x2xf32> to vector<1x5x2xf32>
    tpu.vector_store %arg9[%c3_583, %c3_584, %c0_585], %434 {strides = array<i32>} : memref<11x11x2xf32, #tpu.memory_space<vmem>>, vector<1x5x2xf32>,
    %cst_586 = arith.constant 0.000000e+00 : f32
    %435 = vector.broadcast %cst_586 : f32 to vector<5x64xf32>
    %c1_587 = arith.constant 1 : index
    %c0_588 = arith.constant 0 : index
    %c0_589 = arith.constant 0 : index
    %436 = vector.load %arg8[%c1_587, %c0_588, %c0_589] : memref<7x7x32xf32, #tpu.memory_space<vmem>>, vector<1x5x32xf32>
    %437 = vector.shape_cast %436 : vector<1x5x32xf32> to vector<5x32xf32>
    %c0_590 = arith.constant 0 : index
    %c0_591 = arith.constant 0 : index
    %438 = vector.load %arg4[%c0_590, %c0_591] : memref<288x64xf32, #tpu.memory_space<vmem>>, vector<32x64xf32>
    %cst_592 = arith.constant dense<0.000000e+00> : vector<5x64xf32>
    %439 = tpu.matmul %437, %438, %cst_592 {dimension_numbers = #tpu.dot_dimension_numbers<[1], [0], [0], [1], [0, 0, 1, 1], [], []>} : vector<5x32xf32>, vector<32x64xf32>, vector<5x64xf32> -> vector<5x64xf32>
    %440 = arith.addf %435, %439 : vector<5x64xf32>
    %c1_593 = arith.constant 1 : index
    %c1_594 = arith.constant 1 : index
    %c0_595 = arith.constant 0 : index
    %441 = vector.load %arg8[%c1_593, %c1_594, %c0_595] : memref<7x7x32xf32, #tpu.memory_space<vmem>>, vector<1x5x32xf32>
    %442 = vector.shape_cast %441 : vector<1x5x32xf32> to vector<5x32xf32>
    %c32_596 = arith.constant 32 : index
    %c0_597 = arith.constant 0 : index
    %443 = vector.load %arg4[%c32_596, %c0_597] : memref<288x64xf32, #tpu.memory_space<vmem>>, vector<32x64xf32>
    %cst_598 = arith.constant dense<0.000000e+00> : vector<5x64xf32>
    %444 = tpu.matmul %442, %443, %cst_598 {dimension_numbers = #tpu.dot_dimension_numbers<[1], [0], [0], [1], [0, 0, 1, 1], [], []>} : vector<5x32xf32>, vector<32x64xf32>, vector<5x64xf32> -> vector<5x64xf32>
    %445 = arith.addf %440, %444 : vector<5x64xf32>
    %c1_599 = arith.constant 1 : index
    %c2_600 = arith.constant 2 : index
    %c0_601 = arith.constant 0 : index
    %446 = vector.load %arg8[%c1_599, %c2_600, %c0_601] : memref<7x7x32xf32, #tpu.memory_space<vmem>>, vector<1x5x32xf32>
    %447 = vector.shape_cast %446 : vector<1x5x32xf32> to vector<5x32xf32>
    %c64_602 = arith.constant 64 : index
    %c0_603 = arith.constant 0 : index
    %448 = vector.load %arg4[%c64_602, %c0_603] : memref<288x64xf32, #tpu.memory_space<vmem>>, vector<32x64xf32>
    %cst_604 = arith.constant dense<0.000000e+00> : vector<5x64xf32>
    %449 = tpu.matmul %447, %448, %cst_604 {dimension_numbers = #tpu.dot_dimension_numbers<[1], [0], [0], [1], [0, 0, 1, 1], [], []>} : vector<5x32xf32>, vector<32x64xf32>, vector<5x64xf32> -> vector<5x64xf32>
    %450 = arith.addf %445, %449 : vector<5x64xf32>
    %c2_605 = arith.constant 2 : index
    %c0_606 = arith.constant 0 : index
    %c0_607 = arith.constant 0 : index
    %451 = vector.load %arg8[%c2_605, %c0_606, %c0_607] : memref<7x7x32xf32, #tpu.memory_space<vmem>>, vector<1x5x32xf32>
    %452 = vector.shape_cast %451 : vector<1x5x32xf32> to vector<5x32xf32>
    %c96_608 = arith.constant 96 : index
    %c0_609 = arith.constant 0 : index
    %453 = vector.load %arg4[%c96_608, %c0_609] : memref<288x64xf32, #tpu.memory_space<vmem>>, vector<32x64xf32>
    %cst_610 = arith.constant dense<0.000000e+00> : vector<5x64xf32>
    %454 = tpu.matmul %452, %453, %cst_610 {dimension_numbers = #tpu.dot_dimension_numbers<[1], [0], [0], [1], [0, 0, 1, 1], [], []>} : vector<5x32xf32>, vector<32x64xf32>, vector<5x64xf32> -> vector<5x64xf32>
    %455 = arith.addf %450, %454 : vector<5x64xf32>
    %c2_611 = arith.constant 2 : index
    %c1_612 = arith.constant 1 : index
    %c0_613 = arith.constant 0 : index
    %456 = vector.load %arg8[%c2_611, %c1_612, %c0_613] : memref<7x7x32xf32, #tpu.memory_space<vmem>>, vector<1x5x32xf32>
    %457 = vector.shape_cast %456 : vector<1x5x32xf32> to vector<5x32xf32>
    %c128_614 = arith.constant 128 : index
    %c0_615 = arith.constant 0 : index
    %458 = vector.load %arg4[%c128_614, %c0_615] : memref<288x64xf32, #tpu.memory_space<vmem>>, vector<32x64xf32>
    %cst_616 = arith.constant dense<0.000000e+00> : vector<5x64xf32>
    %459 = tpu.matmul %457, %458, %cst_616 {dimension_numbers = #tpu.dot_dimension_numbers<[1], [0], [0], [1], [0, 0, 1, 1], [], []>} : vector<5x32xf32>, vector<32x64xf32>, vector<5x64xf32> -> vector<5x64xf32>
    %460 = arith.addf %455, %459 : vector<5x64xf32>
    %c2_617 = arith.constant 2 : index
    %c2_618 = arith.constant 2 : index
    %c0_619 = arith.constant 0 : index
    %461 = vector.load %arg8[%c2_617, %c2_618, %c0_619] : memref<7x7x32xf32, #tpu.memory_space<vmem>>, vector<1x5x32xf32>
    %462 = vector.shape_cast %461 : vector<1x5x32xf32> to vector<5x32xf32>
    %c160_620 = arith.constant 160 : index
    %c0_621 = arith.constant 0 : index
    %463 = vector.load %arg4[%c160_620, %c0_621] : memref<288x64xf32, #tpu.memory_space<vmem>>, vector<32x64xf32>
    %cst_622 = arith.constant dense<0.000000e+00> : vector<5x64xf32>
    %464 = tpu.matmul %462, %463, %cst_622 {dimension_numbers = #tpu.dot_dimension_numbers<[1], [0], [0], [1], [0, 0, 1, 1], [], []>} : vector<5x32xf32>, vector<32x64xf32>, vector<5x64xf32> -> vector<5x64xf32>
    %465 = arith.addf %460, %464 : vector<5x64xf32>
    %c3_623 = arith.constant 3 : index
    %c0_624 = arith.constant 0 : index
    %c0_625 = arith.constant 0 : index
    %466 = vector.load %arg8[%c3_623, %c0_624, %c0_625] : memref<7x7x32xf32, #tpu.memory_space<vmem>>, vector<1x5x32xf32>
    %467 = vector.shape_cast %466 : vector<1x5x32xf32> to vector<5x32xf32>
    %c192_626 = arith.constant 192 : index
    %c0_627 = arith.constant 0 : index
    %468 = vector.load %arg4[%c192_626, %c0_627] : memref<288x64xf32, #tpu.memory_space<vmem>>, vector<32x64xf32>
    %cst_628 = arith.constant dense<0.000000e+00> : vector<5x64xf32>
    %469 = tpu.matmul %467, %468, %cst_628 {dimension_numbers = #tpu.dot_dimension_numbers<[1], [0], [0], [1], [0, 0, 1, 1], [], []>} : vector<5x32xf32>, vector<32x64xf32>, vector<5x64xf32> -> vector<5x64xf32>
    %470 = arith.addf %465, %469 : vector<5x64xf32>
    %c3_629 = arith.constant 3 : index
    %c1_630 = arith.constant 1 : index
    %c0_631 = arith.constant 0 : index
    %471 = vector.load %arg8[%c3_629, %c1_630, %c0_631] : memref<7x7x32xf32, #tpu.memory_space<vmem>>, vector<1x5x32xf32>
    %472 = vector.shape_cast %471 : vector<1x5x32xf32> to vector<5x32xf32>
    %c224_632 = arith.constant 224 : index
    %c0_633 = arith.constant 0 : index
    %473 = vector.load %arg4[%c224_632, %c0_633] : memref<288x64xf32, #tpu.memory_space<vmem>>, vector<32x64xf32>
    %cst_634 = arith.constant dense<0.000000e+00> : vector<5x64xf32>
    %474 = tpu.matmul %472, %473, %cst_634 {dimension_numbers = #tpu.dot_dimension_numbers<[1], [0], [0], [1], [0, 0, 1, 1], [], []>} : vector<5x32xf32>, vector<32x64xf32>, vector<5x64xf32> -> vector<5x64xf32>
    %475 = arith.addf %470, %474 : vector<5x64xf32>
    %c3_635 = arith.constant 3 : index
    %c2_636 = arith.constant 2 : index
    %c0_637 = arith.constant 0 : index
    %476 = vector.load %arg8[%c3_635, %c2_636, %c0_637] : memref<7x7x32xf32, #tpu.memory_space<vmem>>, vector<1x5x32xf32>
    %477 = vector.shape_cast %476 : vector<1x5x32xf32> to vector<5x32xf32>
    %c256_638 = arith.constant 256 : index
    %c0_639 = arith.constant 0 : index
    %478 = vector.load %arg4[%c256_638, %c0_639] : memref<288x64xf32, #tpu.memory_space<vmem>>, vector<32x64xf32>
    %cst_640 = arith.constant dense<0.000000e+00> : vector<5x64xf32>
    %479 = tpu.matmul %477, %478, %cst_640 {dimension_numbers = #tpu.dot_dimension_numbers<[1], [0], [0], [1], [0, 0, 1, 1], [], []>} : vector<5x32xf32>, vector<32x64xf32>, vector<5x64xf32> -> vector<5x64xf32>
    %480 = arith.addf %475, %479 : vector<5x64xf32>
    %481 = vector.broadcast %1 : vector<1x64xf32> to vector<5x64xf32>
    %482 = arith.addf %480, %481 : vector<5x64xf32>
    %cst_641 = arith.constant 0.000000e+00 : f32
    %483 = vector.broadcast %cst_641 : f32 to vector<5x64xf32>
    %484 = arith.maximumf %482, %483 : vector<5x64xf32>
    %cst_642 = arith.constant dense<0.000000e+00> : vector<5xf32>
    %485 = vector.multi_reduction <add>, %484, %cst_642 [1] : vector<5x64xf32> to vector<5xf32>
    %486 = vector.shape_cast %485 : vector<5xf32> to vector<5x1xf32>
    %cst_643 = arith.constant 6.400000e+01 : f32
    %487 = vector.broadcast %cst_643 : f32 to vector<5x1xf32>
    %488 = arith.divf %486, %487 : vector<5x1xf32>
    %cst_644 = arith.constant dense<0xFF800000> : vector<5xf32>
    %489 = vector.multi_reduction <maximumf>, %484, %cst_644 [1] : vector<5x64xf32> to vector<5xf32>
    %490 = vector.shape_cast %489 : vector<5xf32> to vector<5x1xf32>
    %491 = tpu.concatenate %488, %490 in 1 : vector<5x1xf32>, vector<5x1xf32> -> vector<5x2xf32>
    %c4_645 = arith.constant 4 : index
    %c3_646 = arith.constant 3 : index
    %c0_647 = arith.constant 0 : index
    %492 = vector.load %arg9[%c4_645, %c3_646, %c0_647] : memref<11x11x2xf32, #tpu.memory_space<vmem>>, vector<1x5x2xf32>
    %493 = vector.shape_cast %492 : vector<1x5x2xf32> to vector<5x2xf32>
    %494 = vector.shape_cast %491 : vector<5x2xf32> to vector<1x5x2xf32>
    tpu.vector_store %arg9[%c4_645, %c3_646, %c0_647], %494 {strides = array<i32>} : memref<11x11x2xf32, #tpu.memory_space<vmem>>, vector<1x5x2xf32>,
    %cst_648 = arith.constant 0.000000e+00 : f32
    %495 = vector.broadcast %cst_648 : f32 to vector<5x64xf32>
    %c2_649 = arith.constant 2 : index
    %c0_650 = arith.constant 0 : index
    %c0_651 = arith.constant 0 : index
    %496 = vector.load %arg8[%c2_649, %c0_650, %c0_651] : memref<7x7x32xf32, #tpu.memory_space<vmem>>, vector<1x5x32xf32>
    %497 = vector.shape_cast %496 : vector<1x5x32xf32> to vector<5x32xf32>
    %c0_652 = arith.constant 0 : index
    %c0_653 = arith.constant 0 : index
    %498 = vector.load %arg4[%c0_652, %c0_653] : memref<288x64xf32, #tpu.memory_space<vmem>>, vector<32x64xf32>
    %cst_654 = arith.constant dense<0.000000e+00> : vector<5x64xf32>
    %499 = tpu.matmul %497, %498, %cst_654 {dimension_numbers = #tpu.dot_dimension_numbers<[1], [0], [0], [1], [0, 0, 1, 1], [], []>} : vector<5x32xf32>, vector<32x64xf32>, vector<5x64xf32> -> vector<5x64xf32>
    %500 = arith.addf %495, %499 : vector<5x64xf32>
    %c2_655 = arith.constant 2 : index
    %c1_656 = arith.constant 1 : index
    %c0_657 = arith.constant 0 : index
    %501 = vector.load %arg8[%c2_655, %c1_656, %c0_657] : memref<7x7x32xf32, #tpu.memory_space<vmem>>, vector<1x5x32xf32>
    %502 = vector.shape_cast %501 : vector<1x5x32xf32> to vector<5x32xf32>
    %c32_658 = arith.constant 32 : index
    %c0_659 = arith.constant 0 : index
    %503 = vector.load %arg4[%c32_658, %c0_659] : memref<288x64xf32, #tpu.memory_space<vmem>>, vector<32x64xf32>
    %cst_660 = arith.constant dense<0.000000e+00> : vector<5x64xf32>
    %504 = tpu.matmul %502, %503, %cst_660 {dimension_numbers = #tpu.dot_dimension_numbers<[1], [0], [0], [1], [0, 0, 1, 1], [], []>} : vector<5x32xf32>, vector<32x64xf32>, vector<5x64xf32> -> vector<5x64xf32>
    %505 = arith.addf %500, %504 : vector<5x64xf32>
    %c2_661 = arith.constant 2 : index
    %c2_662 = arith.constant 2 : index
    %c0_663 = arith.constant 0 : index
    %506 = vector.load %arg8[%c2_661, %c2_662, %c0_663] : memref<7x7x32xf32, #tpu.memory_space<vmem>>, vector<1x5x32xf32>
    %507 = vector.shape_cast %506 : vector<1x5x32xf32> to vector<5x32xf32>
    %c64_664 = arith.constant 64 : index
    %c0_665 = arith.constant 0 : index
    %508 = vector.load %arg4[%c64_664, %c0_665] : memref<288x64xf32, #tpu.memory_space<vmem>>, vector<32x64xf32>
    %cst_666 = arith.constant dense<0.000000e+00> : vector<5x64xf32>
    %509 = tpu.matmul %507, %508, %cst_666 {dimension_numbers = #tpu.dot_dimension_numbers<[1], [0], [0], [1], [0, 0, 1, 1], [], []>} : vector<5x32xf32>, vector<32x64xf32>, vector<5x64xf32> -> vector<5x64xf32>
    %510 = arith.addf %505, %509 : vector<5x64xf32>
    %c3_667 = arith.constant 3 : index
    %c0_668 = arith.constant 0 : index
    %c0_669 = arith.constant 0 : index
    %511 = vector.load %arg8[%c3_667, %c0_668, %c0_669] : memref<7x7x32xf32, #tpu.memory_space<vmem>>, vector<1x5x32xf32>
    %512 = vector.shape_cast %511 : vector<1x5x32xf32> to vector<5x32xf32>
    %c96_670 = arith.constant 96 : index
    %c0_671 = arith.constant 0 : index
    %513 = vector.load %arg4[%c96_670, %c0_671] : memref<288x64xf32, #tpu.memory_space<vmem>>, vector<32x64xf32>
    %cst_672 = arith.constant dense<0.000000e+00> : vector<5x64xf32>
    %514 = tpu.matmul %512, %513, %cst_672 {dimension_numbers = #tpu.dot_dimension_numbers<[1], [0], [0], [1], [0, 0, 1, 1], [], []>} : vector<5x32xf32>, vector<32x64xf32>, vector<5x64xf32> -> vector<5x64xf32>
    %515 = arith.addf %510, %514 : vector<5x64xf32>
    %c3_673 = arith.constant 3 : index
    %c1_674 = arith.constant 1 : index
    %c0_675 = arith.constant 0 : index
    %516 = vector.load %arg8[%c3_673, %c1_674, %c0_675] : memref<7x7x32xf32, #tpu.memory_space<vmem>>, vector<1x5x32xf32>
    %517 = vector.shape_cast %516 : vector<1x5x32xf32> to vector<5x32xf32>
    %c128_676 = arith.constant 128 : index
    %c0_677 = arith.constant 0 : index
    %518 = vector.load %arg4[%c128_676, %c0_677] : memref<288x64xf32, #tpu.memory_space<vmem>>, vector<32x64xf32>
    %cst_678 = arith.constant dense<0.000000e+00> : vector<5x64xf32>
    %519 = tpu.matmul %517, %518, %cst_678 {dimension_numbers = #tpu.dot_dimension_numbers<[1], [0], [0], [1], [0, 0, 1, 1], [], []>} : vector<5x32xf32>, vector<32x64xf32>, vector<5x64xf32> -> vector<5x64xf32>
    %520 = arith.addf %515, %519 : vector<5x64xf32>
    %c3_679 = arith.constant 3 : index
    %c2_680 = arith.constant 2 : index
    %c0_681 = arith.constant 0 : index
    %521 = vector.load %arg8[%c3_679, %c2_680, %c0_681] : memref<7x7x32xf32, #tpu.memory_space<vmem>>, vector<1x5x32xf32>
    %522 = vector.shape_cast %521 : vector<1x5x32xf32> to vector<5x32xf32>
    %c160_682 = arith.constant 160 : index
    %c0_683 = arith.constant 0 : index
    %523 = vector.load %arg4[%c160_682, %c0_683] : memref<288x64xf32, #tpu.memory_space<vmem>>, vector<32x64xf32>
    %cst_684 = arith.constant dense<0.000000e+00> : vector<5x64xf32>
    %524 = tpu.matmul %522, %523, %cst_684 {dimension_numbers = #tpu.dot_dimension_numbers<[1], [0], [0], [1], [0, 0, 1, 1], [], []>} : vector<5x32xf32>, vector<32x64xf32>, vector<5x64xf32> -> vector<5x64xf32>
    %525 = arith.addf %520, %524 : vector<5x64xf32>
    %c4_685 = arith.constant 4 : index
    %c0_686 = arith.constant 0 : index
    %c0_687 = arith.constant 0 : index
    %526 = vector.load %arg8[%c4_685, %c0_686, %c0_687] : memref<7x7x32xf32, #tpu.memory_space<vmem>>, vector<1x5x32xf32>
    %527 = vector.shape_cast %526 : vector<1x5x32xf32> to vector<5x32xf32>
    %c192_688 = arith.constant 192 : index
    %c0_689 = arith.constant 0 : index
    %528 = vector.load %arg4[%c192_688, %c0_689] : memref<288x64xf32, #tpu.memory_space<vmem>>, vector<32x64xf32>
    %cst_690 = arith.constant dense<0.000000e+00> : vector<5x64xf32>
    %529 = tpu.matmul %527, %528, %cst_690 {dimension_numbers = #tpu.dot_dimension_numbers<[1], [0], [0], [1], [0, 0, 1, 1], [], []>} : vector<5x32xf32>, vector<32x64xf32>, vector<5x64xf32> -> vector<5x64xf32>
    %530 = arith.addf %525, %529 : vector<5x64xf32>
    %c4_691 = arith.constant 4 : index
    %c1_692 = arith.constant 1 : index
    %c0_693 = arith.constant 0 : index
    %531 = vector.load %arg8[%c4_691, %c1_692, %c0_693] : memref<7x7x32xf32, #tpu.memory_space<vmem>>, vector<1x5x32xf32>
    %532 = vector.shape_cast %531 : vector<1x5x32xf32> to vector<5x32xf32>
    %c224_694 = arith.constant 224 : index
    %c0_695 = arith.constant 0 : index
    %533 = vector.load %arg4[%c224_694, %c0_695] : memref<288x64xf32, #tpu.memory_space<vmem>>, vector<32x64xf32>
    %cst_696 = arith.constant dense<0.000000e+00> : vector<5x64xf32>
    %534 = tpu.matmul %532, %533, %cst_696 {dimension_numbers = #tpu.dot_dimension_numbers<[1], [0], [0], [1], [0, 0, 1, 1], [], []>} : vector<5x32xf32>, vector<32x64xf32>, vector<5x64xf32> -> vector<5x64xf32>
    %535 = arith.addf %530, %534 : vector<5x64xf32>
    %c4_697 = arith.constant 4 : index
    %c2_698 = arith.constant 2 : index
    %c0_699 = arith.constant 0 : index
    %536 = vector.load %arg8[%c4_697, %c2_698, %c0_699] : memref<7x7x32xf32, #tpu.memory_space<vmem>>, vector<1x5x32xf32>
    %537 = vector.shape_cast %536 : vector<1x5x32xf32> to vector<5x32xf32>
    %c256_700 = arith.constant 256 : index
    %c0_701 = arith.constant 0 : index
    %538 = vector.load %arg4[%c256_700, %c0_701] : memref<288x64xf32, #tpu.memory_space<vmem>>, vector<32x64xf32>
    %cst_702 = arith.constant dense<0.000000e+00> : vector<5x64xf32>
    %539 = tpu.matmul %537, %538, %cst_702 {dimension_numbers = #tpu.dot_dimension_numbers<[1], [0], [0], [1], [0, 0, 1, 1], [], []>} : vector<5x32xf32>, vector<32x64xf32>, vector<5x64xf32> -> vector<5x64xf32>
    %540 = arith.addf %535, %539 : vector<5x64xf32>
    %541 = vector.broadcast %1 : vector<1x64xf32> to vector<5x64xf32>
    %542 = arith.addf %540, %541 : vector<5x64xf32>
    %cst_703 = arith.constant 0.000000e+00 : f32
    %543 = vector.broadcast %cst_703 : f32 to vector<5x64xf32>
    %544 = arith.maximumf %542, %543 : vector<5x64xf32>
    %cst_704 = arith.constant dense<0.000000e+00> : vector<5xf32>
    %545 = vector.multi_reduction <add>, %544, %cst_704 [1] : vector<5x64xf32> to vector<5xf32>
    %546 = vector.shape_cast %545 : vector<5xf32> to vector<5x1xf32>
    %cst_705 = arith.constant 6.400000e+01 : f32
    %547 = vector.broadcast %cst_705 : f32 to vector<5x1xf32>
    %548 = arith.divf %546, %547 : vector<5x1xf32>
    %cst_706 = arith.constant dense<0xFF800000> : vector<5xf32>
    %549 = vector.multi_reduction <maximumf>, %544, %cst_706 [1] : vector<5x64xf32> to vector<5xf32>
    %550 = vector.shape_cast %549 : vector<5xf32> to vector<5x1xf32>
    %551 = tpu.concatenate %548, %550 in 1 : vector<5x1xf32>, vector<5x1xf32> -> vector<5x2xf32>
    %c5_707 = arith.constant 5 : index
    %c3_708 = arith.constant 3 : index
    %c0_709 = arith.constant 0 : index
    %552 = vector.load %arg9[%c5_707, %c3_708, %c0_709] : memref<11x11x2xf32, #tpu.memory_space<vmem>>, vector<1x5x2xf32>
    %553 = vector.shape_cast %552 : vector<1x5x2xf32> to vector<5x2xf32>
    %554 = vector.shape_cast %551 : vector<5x2xf32> to vector<1x5x2xf32>
    tpu.vector_store %arg9[%c5_707, %c3_708, %c0_709], %554 {strides = array<i32>} : memref<11x11x2xf32, #tpu.memory_space<vmem>>, vector<1x5x2xf32>,
    %cst_710 = arith.constant 0.000000e+00 : f32
    %555 = vector.broadcast %cst_710 : f32 to vector<5x64xf32>
    %c3_711 = arith.constant 3 : index
    %c0_712 = arith.constant 0 : index
    %c0_713 = arith.constant 0 : index
    %556 = vector.load %arg8[%c3_711, %c0_712, %c0_713] : memref<7x7x32xf32, #tpu.memory_space<vmem>>, vector<1x5x32xf32>
    %557 = vector.shape_cast %556 : vector<1x5x32xf32> to vector<5x32xf32>
    %c0_714 = arith.constant 0 : index
    %c0_715 = arith.constant 0 : index
    %558 = vector.load %arg4[%c0_714, %c0_715] : memref<288x64xf32, #tpu.memory_space<vmem>>, vector<32x64xf32>
    %cst_716 = arith.constant dense<0.000000e+00> : vector<5x64xf32>
    %559 = tpu.matmul %557, %558, %cst_716 {dimension_numbers = #tpu.dot_dimension_numbers<[1], [0], [0], [1], [0, 0, 1, 1], [], []>} : vector<5x32xf32>, vector<32x64xf32>, vector<5x64xf32> -> vector<5x64xf32>
    %560 = arith.addf %555, %559 : vector<5x64xf32>
    %c3_717 = arith.constant 3 : index
    %c1_718 = arith.constant 1 : index
    %c0_719 = arith.constant 0 : index
    %561 = vector.load %arg8[%c3_717, %c1_718, %c0_719] : memref<7x7x32xf32, #tpu.memory_space<vmem>>, vector<1x5x32xf32>
    %562 = vector.shape_cast %561 : vector<1x5x32xf32> to vector<5x32xf32>
    %c32_720 = arith.constant 32 : index
    %c0_721 = arith.constant 0 : index
    %563 = vector.load %arg4[%c32_720, %c0_721] : memref<288x64xf32, #tpu.memory_space<vmem>>, vector<32x64xf32>
    %cst_722 = arith.constant dense<0.000000e+00> : vector<5x64xf32>
    %564 = tpu.matmul %562, %563, %cst_722 {dimension_numbers = #tpu.dot_dimension_numbers<[1], [0], [0], [1], [0, 0, 1, 1], [], []>} : vector<5x32xf32>, vector<32x64xf32>, vector<5x64xf32> -> vector<5x64xf32>
    %565 = arith.addf %560, %564 : vector<5x64xf32>
    %c3_723 = arith.constant 3 : index
    %c2_724 = arith.constant 2 : index
    %c0_725 = arith.constant 0 : index
    %566 = vector.load %arg8[%c3_723, %c2_724, %c0_725] : memref<7x7x32xf32, #tpu.memory_space<vmem>>, vector<1x5x32xf32>
    %567 = vector.shape_cast %566 : vector<1x5x32xf32> to vector<5x32xf32>
    %c64_726 = arith.constant 64 : index
    %c0_727 = arith.constant 0 : index
    %568 = vector.load %arg4[%c64_726, %c0_727] : memref<288x64xf32, #tpu.memory_space<vmem>>, vector<32x64xf32>
    %cst_728 = arith.constant dense<0.000000e+00> : vector<5x64xf32>
    %569 = tpu.matmul %567, %568, %cst_728 {dimension_numbers = #tpu.dot_dimension_numbers<[1], [0], [0], [1], [0, 0, 1, 1], [], []>} : vector<5x32xf32>, vector<32x64xf32>, vector<5x64xf32> -> vector<5x64xf32>
    %570 = arith.addf %565, %569 : vector<5x64xf32>
    %c4_729 = arith.constant 4 : index
    %c0_730 = arith.constant 0 : index
    %c0_731 = arith.constant 0 : index
    %571 = vector.load %arg8[%c4_729, %c0_730, %c0_731] : memref<7x7x32xf32, #tpu.memory_space<vmem>>, vector<1x5x32xf32>
    %572 = vector.shape_cast %571 : vector<1x5x32xf32> to vector<5x32xf32>
    %c96_732 = arith.constant 96 : index
    %c0_733 = arith.constant 0 : index
    %573 = vector.load %arg4[%c96_732, %c0_733] : memref<288x64xf32, #tpu.memory_space<vmem>>, vector<32x64xf32>
    %cst_734 = arith.constant dense<0.000000e+00> : vector<5x64xf32>
    %574 = tpu.matmul %572, %573, %cst_734 {dimension_numbers = #tpu.dot_dimension_numbers<[1], [0], [0], [1], [0, 0, 1, 1], [], []>} : vector<5x32xf32>, vector<32x64xf32>, vector<5x64xf32> -> vector<5x64xf32>
    %575 = arith.addf %570, %574 : vector<5x64xf32>
    %c4_735 = arith.constant 4 : index
    %c1_736 = arith.constant 1 : index
    %c0_737 = arith.constant 0 : index
    %576 = vector.load %arg8[%c4_735, %c1_736, %c0_737] : memref<7x7x32xf32, #tpu.memory_space<vmem>>, vector<1x5x32xf32>
    %577 = vector.shape_cast %576 : vector<1x5x32xf32> to vector<5x32xf32>
    %c128_738 = arith.constant 128 : index
    %c0_739 = arith.constant 0 : index
    %578 = vector.load %arg4[%c128_738, %c0_739] : memref<288x64xf32, #tpu.memory_space<vmem>>, vector<32x64xf32>
    %cst_740 = arith.constant dense<0.000000e+00> : vector<5x64xf32>
    %579 = tpu.matmul %577, %578, %cst_740 {dimension_numbers = #tpu.dot_dimension_numbers<[1], [0], [0], [1], [0, 0, 1, 1], [], []>} : vector<5x32xf32>, vector<32x64xf32>, vector<5x64xf32> -> vector<5x64xf32>
    %580 = arith.addf %575, %579 : vector<5x64xf32>
    %c4_741 = arith.constant 4 : index
    %c2_742 = arith.constant 2 : index
    %c0_743 = arith.constant 0 : index
    %581 = vector.load %arg8[%c4_741, %c2_742, %c0_743] : memref<7x7x32xf32, #tpu.memory_space<vmem>>, vector<1x5x32xf32>
    %582 = vector.shape_cast %581 : vector<1x5x32xf32> to vector<5x32xf32>
    %c160_744 = arith.constant 160 : index
    %c0_745 = arith.constant 0 : index
    %583 = vector.load %arg4[%c160_744, %c0_745] : memref<288x64xf32, #tpu.memory_space<vmem>>, vector<32x64xf32>
    %cst_746 = arith.constant dense<0.000000e+00> : vector<5x64xf32>
    %584 = tpu.matmul %582, %583, %cst_746 {dimension_numbers = #tpu.dot_dimension_numbers<[1], [0], [0], [1], [0, 0, 1, 1], [], []>} : vector<5x32xf32>, vector<32x64xf32>, vector<5x64xf32> -> vector<5x64xf32>
    %585 = arith.addf %580, %584 : vector<5x64xf32>
    %c5_747 = arith.constant 5 : index
    %c0_748 = arith.constant 0 : index
    %c0_749 = arith.constant 0 : index
    %586 = vector.load %arg8[%c5_747, %c0_748, %c0_749] : memref<7x7x32xf32, #tpu.memory_space<vmem>>, vector<1x5x32xf32>
    %587 = vector.shape_cast %586 : vector<1x5x32xf32> to vector<5x32xf32>
    %c192_750 = arith.constant 192 : index
    %c0_751 = arith.constant 0 : index
    %588 = vector.load %arg4[%c192_750, %c0_751] : memref<288x64xf32, #tpu.memory_space<vmem>>, vector<32x64xf32>
    %cst_752 = arith.constant dense<0.000000e+00> : vector<5x64xf32>
    %589 = tpu.matmul %587, %588, %cst_752 {dimension_numbers = #tpu.dot_dimension_numbers<[1], [0], [0], [1], [0, 0, 1, 1], [], []>} : vector<5x32xf32>, vector<32x64xf32>, vector<5x64xf32> -> vector<5x64xf32>
    %590 = arith.addf %585, %589 : vector<5x64xf32>
    %c5_753 = arith.constant 5 : index
    %c1_754 = arith.constant 1 : index
    %c0_755 = arith.constant 0 : index
    %591 = vector.load %arg8[%c5_753, %c1_754, %c0_755] : memref<7x7x32xf32, #tpu.memory_space<vmem>>, vector<1x5x32xf32>
    %592 = vector.shape_cast %591 : vector<1x5x32xf32> to vector<5x32xf32>
    %c224_756 = arith.constant 224 : index
    %c0_757 = arith.constant 0 : index
    %593 = vector.load %arg4[%c224_756, %c0_757] : memref<288x64xf32, #tpu.memory_space<vmem>>, vector<32x64xf32>
    %cst_758 = arith.constant dense<0.000000e+00> : vector<5x64xf32>
    %594 = tpu.matmul %592, %593, %cst_758 {dimension_numbers = #tpu.dot_dimension_numbers<[1], [0], [0], [1], [0, 0, 1, 1], [], []>} : vector<5x32xf32>, vector<32x64xf32>, vector<5x64xf32> -> vector<5x64xf32>
    %595 = arith.addf %590, %594 : vector<5x64xf32>
    %c5_759 = arith.constant 5 : index
    %c2_760 = arith.constant 2 : index
    %c0_761 = arith.constant 0 : index
    %596 = vector.load %arg8[%c5_759, %c2_760, %c0_761] : memref<7x7x32xf32, #tpu.memory_space<vmem>>, vector<1x5x32xf32>
    %597 = vector.shape_cast %596 : vector<1x5x32xf32> to vector<5x32xf32>
    %c256_762 = arith.constant 256 : index
    %c0_763 = arith.constant 0 : index
    %598 = vector.load %arg4[%c256_762, %c0_763] : memref<288x64xf32, #tpu.memory_space<vmem>>, vector<32x64xf32>
    %cst_764 = arith.constant dense<0.000000e+00> : vector<5x64xf32>
    %599 = tpu.matmul %597, %598, %cst_764 {dimension_numbers = #tpu.dot_dimension_numbers<[1], [0], [0], [1], [0, 0, 1, 1], [], []>} : vector<5x32xf32>, vector<32x64xf32>, vector<5x64xf32> -> vector<5x64xf32>
    %600 = arith.addf %595, %599 : vector<5x64xf32>
    %601 = vector.broadcast %1 : vector<1x64xf32> to vector<5x64xf32>
    %602 = arith.addf %600, %601 : vector<5x64xf32>
    %cst_765 = arith.constant 0.000000e+00 : f32
    %603 = vector.broadcast %cst_765 : f32 to vector<5x64xf32>
    %604 = arith.maximumf %602, %603 : vector<5x64xf32>
    %cst_766 = arith.constant dense<0.000000e+00> : vector<5xf32>
    %605 = vector.multi_reduction <add>, %604, %cst_766 [1] : vector<5x64xf32> to vector<5xf32>
    %606 = vector.shape_cast %605 : vector<5xf32> to vector<5x1xf32>
    %cst_767 = arith.constant 6.400000e+01 : f32
    %607 = vector.broadcast %cst_767 : f32 to vector<5x1xf32>
    %608 = arith.divf %606, %607 : vector<5x1xf32>
    %cst_768 = arith.constant dense<0xFF800000> : vector<5xf32>
    %609 = vector.multi_reduction <maximumf>, %604, %cst_768 [1] : vector<5x64xf32> to vector<5xf32>
    %610 = vector.shape_cast %609 : vector<5xf32> to vector<5x1xf32>
    %611 = tpu.concatenate %608, %610 in 1 : vector<5x1xf32>, vector<5x1xf32> -> vector<5x2xf32>
    %c6_769 = arith.constant 6 : index
    %c3_770 = arith.constant 3 : index
    %c0_771 = arith.constant 0 : index
    %612 = vector.load %arg9[%c6_769, %c3_770, %c0_771] : memref<11x11x2xf32, #tpu.memory_space<vmem>>, vector<1x5x2xf32>
    %613 = vector.shape_cast %612 : vector<1x5x2xf32> to vector<5x2xf32>
    %614 = vector.shape_cast %611 : vector<5x2xf32> to vector<1x5x2xf32>
    tpu.vector_store %arg9[%c6_769, %c3_770, %c0_771], %614 {strides = array<i32>} : memref<11x11x2xf32, #tpu.memory_space<vmem>>, vector<1x5x2xf32>,
    %cst_772 = arith.constant 0.000000e+00 : f32
    %615 = vector.broadcast %cst_772 : f32 to vector<5x64xf32>
    %c4_773 = arith.constant 4 : index
    %c0_774 = arith.constant 0 : index
    %c0_775 = arith.constant 0 : index
    %616 = vector.load %arg8[%c4_773, %c0_774, %c0_775] : memref<7x7x32xf32, #tpu.memory_space<vmem>>, vector<1x5x32xf32>
    %617 = vector.shape_cast %616 : vector<1x5x32xf32> to vector<5x32xf32>
    %c0_776 = arith.constant 0 : index
    %c0_777 = arith.constant 0 : index
    %618 = vector.load %arg4[%c0_776, %c0_777] : memref<288x64xf32, #tpu.memory_space<vmem>>, vector<32x64xf32>
    %cst_778 = arith.constant dense<0.000000e+00> : vector<5x64xf32>
    %619 = tpu.matmul %617, %618, %cst_778 {dimension_numbers = #tpu.dot_dimension_numbers<[1], [0], [0], [1], [0, 0, 1, 1], [], []>} : vector<5x32xf32>, vector<32x64xf32>, vector<5x64xf32> -> vector<5x64xf32>
    %620 = arith.addf %615, %619 : vector<5x64xf32>
    %c4_779 = arith.constant 4 : index
    %c1_780 = arith.constant 1 : index
    %c0_781 = arith.constant 0 : index
    %621 = vector.load %arg8[%c4_779, %c1_780, %c0_781] : memref<7x7x32xf32, #tpu.memory_space<vmem>>, vector<1x5x32xf32>
    %622 = vector.shape_cast %621 : vector<1x5x32xf32> to vector<5x32xf32>
    %c32_782 = arith.constant 32 : index
    %c0_783 = arith.constant 0 : index
    %623 = vector.load %arg4[%c32_782, %c0_783] : memref<288x64xf32, #tpu.memory_space<vmem>>, vector<32x64xf32>
    %cst_784 = arith.constant dense<0.000000e+00> : vector<5x64xf32>
    %624 = tpu.matmul %622, %623, %cst_784 {dimension_numbers = #tpu.dot_dimension_numbers<[1], [0], [0], [1], [0, 0, 1, 1], [], []>} : vector<5x32xf32>, vector<32x64xf32>, vector<5x64xf32> -> vector<5x64xf32>
    %625 = arith.addf %620, %624 : vector<5x64xf32>
    %c4_785 = arith.constant 4 : index
    %c2_786 = arith.constant 2 : index
    %c0_787 = arith.constant 0 : index
    %626 = vector.load %arg8[%c4_785, %c2_786, %c0_787] : memref<7x7x32xf32, #tpu.memory_space<vmem>>, vector<1x5x32xf32>
    %627 = vector.shape_cast %626 : vector<1x5x32xf32> to vector<5x32xf32>
    %c64_788 = arith.constant 64 : index
    %c0_789 = arith.constant 0 : index
    %628 = vector.load %arg4[%c64_788, %c0_789] : memref<288x64xf32, #tpu.memory_space<vmem>>, vector<32x64xf32>
    %cst_790 = arith.constant dense<0.000000e+00> : vector<5x64xf32>
    %629 = tpu.matmul %627, %628, %cst_790 {dimension_numbers = #tpu.dot_dimension_numbers<[1], [0], [0], [1], [0, 0, 1, 1], [], []>} : vector<5x32xf32>, vector<32x64xf32>, vector<5x64xf32> -> vector<5x64xf32>
    %630 = arith.addf %625, %629 : vector<5x64xf32>
    %c5_791 = arith.constant 5 : index
    %c0_792 = arith.constant 0 : index
    %c0_793 = arith.constant 0 : index
    %631 = vector.load %arg8[%c5_791, %c0_792, %c0_793] : memref<7x7x32xf32, #tpu.memory_space<vmem>>, vector<1x5x32xf32>
    %632 = vector.shape_cast %631 : vector<1x5x32xf32> to vector<5x32xf32>
    %c96_794 = arith.constant 96 : index
    %c0_795 = arith.constant 0 : index
    %633 = vector.load %arg4[%c96_794, %c0_795] : memref<288x64xf32, #tpu.memory_space<vmem>>, vector<32x64xf32>
    %cst_796 = arith.constant dense<0.000000e+00> : vector<5x64xf32>
    %634 = tpu.matmul %632, %633, %cst_796 {dimension_numbers = #tpu.dot_dimension_numbers<[1], [0], [0], [1], [0, 0, 1, 1], [], []>} : vector<5x32xf32>, vector<32x64xf32>, vector<5x64xf32> -> vector<5x64xf32>
    %635 = arith.addf %630, %634 : vector<5x64xf32>
    %c5_797 = arith.constant 5 : index
    %c1_798 = arith.constant 1 : index
    %c0_799 = arith.constant 0 : index
    %636 = vector.load %arg8[%c5_797, %c1_798, %c0_799] : memref<7x7x32xf32, #tpu.memory_space<vmem>>, vector<1x5x32xf32>
    %637 = vector.shape_cast %636 : vector<1x5x32xf32> to vector<5x32xf32>
    %c128_800 = arith.constant 128 : index
    %c0_801 = arith.constant 0 : index
    %638 = vector.load %arg4[%c128_800, %c0_801] : memref<288x64xf32, #tpu.memory_space<vmem>>, vector<32x64xf32>
    %cst_802 = arith.constant dense<0.000000e+00> : vector<5x64xf32>
    %639 = tpu.matmul %637, %638, %cst_802 {dimension_numbers = #tpu.dot_dimension_numbers<[1], [0], [0], [1], [0, 0, 1, 1], [], []>} : vector<5x32xf32>, vector<32x64xf32>, vector<5x64xf32> -> vector<5x64xf32>
    %640 = arith.addf %635, %639 : vector<5x64xf32>
    %c5_803 = arith.constant 5 : index
    %c2_804 = arith.constant 2 : index
    %c0_805 = arith.constant 0 : index
    %641 = vector.load %arg8[%c5_803, %c2_804, %c0_805] : memref<7x7x32xf32, #tpu.memory_space<vmem>>, vector<1x5x32xf32>
    %642 = vector.shape_cast %641 : vector<1x5x32xf32> to vector<5x32xf32>
    %c160_806 = arith.constant 160 : index
    %c0_807 = arith.constant 0 : index
    %643 = vector.load %arg4[%c160_806, %c0_807] : memref<288x64xf32, #tpu.memory_space<vmem>>, vector<32x64xf32>
    %cst_808 = arith.constant dense<0.000000e+00> : vector<5x64xf32>
    %644 = tpu.matmul %642, %643, %cst_808 {dimension_numbers = #tpu.dot_dimension_numbers<[1], [0], [0], [1], [0, 0, 1, 1], [], []>} : vector<5x32xf32>, vector<32x64xf32>, vector<5x64xf32> -> vector<5x64xf32>
    %645 = arith.addf %640, %644 : vector<5x64xf32>
    %c6_809 = arith.constant 6 : index
    %c0_810 = arith.constant 0 : index
    %c0_811 = arith.constant 0 : index
    %646 = vector.load %arg8[%c6_809, %c0_810, %c0_811] : memref<7x7x32xf32, #tpu.memory_space<vmem>>, vector<1x5x32xf32>
    %647 = vector.shape_cast %646 : vector<1x5x32xf32> to vector<5x32xf32>
    %c192_812 = arith.constant 192 : index
    %c0_813 = arith.constant 0 : index
    %648 = vector.load %arg4[%c192_812, %c0_813] : memref<288x64xf32, #tpu.memory_space<vmem>>, vector<32x64xf32>
    %cst_814 = arith.constant dense<0.000000e+00> : vector<5x64xf32>
    %649 = tpu.matmul %647, %648, %cst_814 {dimension_numbers = #tpu.dot_dimension_numbers<[1], [0], [0], [1], [0, 0, 1, 1], [], []>} : vector<5x32xf32>, vector<32x64xf32>, vector<5x64xf32> -> vector<5x64xf32>
    %650 = arith.addf %645, %649 : vector<5x64xf32>
    %c6_815 = arith.constant 6 : index
    %c1_816 = arith.constant 1 : index
    %c0_817 = arith.constant 0 : index
    %651 = vector.load %arg8[%c6_815, %c1_816, %c0_817] : memref<7x7x32xf32, #tpu.memory_space<vmem>>, vector<1x5x32xf32>
    %652 = vector.shape_cast %651 : vector<1x5x32xf32> to vector<5x32xf32>
    %c224_818 = arith.constant 224 : index
    %c0_819 = arith.constant 0 : index
    %653 = vector.load %arg4[%c224_818, %c0_819] : memref<288x64xf32, #tpu.memory_space<vmem>>, vector<32x64xf32>
    %cst_820 = arith.constant dense<0.000000e+00> : vector<5x64xf32>
    %654 = tpu.matmul %652, %653, %cst_820 {dimension_numbers = #tpu.dot_dimension_numbers<[1], [0], [0], [1], [0, 0, 1, 1], [], []>} : vector<5x32xf32>, vector<32x64xf32>, vector<5x64xf32> -> vector<5x64xf32>
    %655 = arith.addf %650, %654 : vector<5x64xf32>
    %c6_821 = arith.constant 6 : index
    %c2_822 = arith.constant 2 : index
    %c0_823 = arith.constant 0 : index
    %656 = vector.load %arg8[%c6_821, %c2_822, %c0_823] : memref<7x7x32xf32, #tpu.memory_space<vmem>>, vector<1x5x32xf32>
    %657 = vector.shape_cast %656 : vector<1x5x32xf32> to vector<5x32xf32>
    %c256_824 = arith.constant 256 : index
    %c0_825 = arith.constant 0 : index
    %658 = vector.load %arg4[%c256_824, %c0_825] : memref<288x64xf32, #tpu.memory_space<vmem>>, vector<32x64xf32>
    %cst_826 = arith.constant dense<0.000000e+00> : vector<5x64xf32>
    %659 = tpu.matmul %657, %658, %cst_826 {dimension_numbers = #tpu.dot_dimension_numbers<[1], [0], [0], [1], [0, 0, 1, 1], [], []>} : vector<5x32xf32>, vector<32x64xf32>, vector<5x64xf32> -> vector<5x64xf32>
    %660 = arith.addf %655, %659 : vector<5x64xf32>
    %661 = vector.broadcast %1 : vector<1x64xf32> to vector<5x64xf32>
    %662 = arith.addf %660, %661 : vector<5x64xf32>
    %cst_827 = arith.constant 0.000000e+00 : f32
    %663 = vector.broadcast %cst_827 : f32 to vector<5x64xf32>
    %664 = arith.maximumf %662, %663 : vector<5x64xf32>
    %cst_828 = arith.constant dense<0.000000e+00> : vector<5xf32>
    %665 = vector.multi_reduction <add>, %664, %cst_828 [1] : vector<5x64xf32> to vector<5xf32>
    %666 = vector.shape_cast %665 : vector<5xf32> to vector<5x1xf32>
    %cst_829 = arith.constant 6.400000e+01 : f32
    %667 = vector.broadcast %cst_829 : f32 to vector<5x1xf32>
    %668 = arith.divf %666, %667 : vector<5x1xf32>
    %cst_830 = arith.constant dense<0xFF800000> : vector<5xf32>
    %669 = vector.multi_reduction <maximumf>, %664, %cst_830 [1] : vector<5x64xf32> to vector<5xf32>
    %670 = vector.shape_cast %669 : vector<5xf32> to vector<5x1xf32>
    %671 = tpu.concatenate %668, %670 in 1 : vector<5x1xf32>, vector<5x1xf32> -> vector<5x2xf32>
    %c7_831 = arith.constant 7 : index
    %c3_832 = arith.constant 3 : index
    %c0_833 = arith.constant 0 : index
    %672 = vector.load %arg9[%c7_831, %c3_832, %c0_833] : memref<11x11x2xf32, #tpu.memory_space<vmem>>, vector<1x5x2xf32>
    %673 = vector.shape_cast %672 : vector<1x5x2xf32> to vector<5x2xf32>
    %674 = vector.shape_cast %671 : vector<5x2xf32> to vector<1x5x2xf32>
    tpu.vector_store %arg9[%c7_831, %c3_832, %c0_833], %674 {strides = array<i32>} : memref<11x11x2xf32, #tpu.memory_space<vmem>>, vector<1x5x2xf32>,
    %cst_834 = arith.constant 0.000000e+00 : f32
    %675 = vector.broadcast %cst_834 : f32 to vector<5x5x1xf32>
    %cst_835 = arith.constant 0.000000e+00 : f32
    %676 = vector.broadcast %cst_835 : f32 to vector<5x5x1xf32>
    %c0_836 = arith.constant 0 : index
    %677 = memref.load %arg6[%c0_836] : memref<98xf32, #tpu.memory_space<smem>>
    %c0_837 = arith.constant 0 : index
    %c0_838 = arith.constant 0 : index
    %c0_839 = arith.constant 0 : index
    %678 = vector.load %arg9[%c0_837, %c0_838, %c0_839] : memref<11x11x2xf32, #tpu.memory_space<vmem>>, vector<5x5x1xf32>
    %679 = vector.broadcast %677 : f32 to vector<5x5x1xf32>
    %680 = arith.mulf %679, %678 : vector<5x5x1xf32>
    %681 = arith.addf %675, %680 : vector<5x5x1xf32>
    %c49 = arith.constant 49 : index
    %682 = memref.load %arg6[%c49] : memref<98xf32, #tpu.memory_space<smem>>
    %c0_840 = arith.constant 0 : index
    %c0_841 = arith.constant 0 : index
    %c1_842 = arith.constant 1 : index
    %683 = vector.load %arg9[%c0_840, %c0_841, %c1_842] : memref<11x11x2xf32, #tpu.memory_space<vmem>>, vector<5x5x1xf32>
    %684 = vector.broadcast %682 : f32 to vector<5x5x1xf32>
    %685 = arith.mulf %684, %683 : vector<5x5x1xf32>
    %686 = arith.addf %676, %685 : vector<5x5x1xf32>
    %c1_843 = arith.constant 1 : index
    %687 = memref.load %arg6[%c1_843] : memref<98xf32, #tpu.memory_space<smem>>
    %c0_844 = arith.constant 0 : index
    %c1_845 = arith.constant 1 : index
    %c0_846 = arith.constant 0 : index
    %688 = vector.load %arg9[%c0_844, %c1_845, %c0_846] : memref<11x11x2xf32, #tpu.memory_space<vmem>>, vector<5x5x1xf32>
    %689 = vector.broadcast %687 : f32 to vector<5x5x1xf32>
    %690 = arith.mulf %689, %688 : vector<5x5x1xf32>
    %691 = arith.addf %681, %690 : vector<5x5x1xf32>
    %c50 = arith.constant 50 : index
    %692 = memref.load %arg6[%c50] : memref<98xf32, #tpu.memory_space<smem>>
    %c0_847 = arith.constant 0 : index
    %c1_848 = arith.constant 1 : index
    %c1_849 = arith.constant 1 : index
    %693 = vector.load %arg9[%c0_847, %c1_848, %c1_849] : memref<11x11x2xf32, #tpu.memory_space<vmem>>, vector<5x5x1xf32>
    %694 = vector.broadcast %692 : f32 to vector<5x5x1xf32>
    %695 = arith.mulf %694, %693 : vector<5x5x1xf32>
    %696 = arith.addf %686, %695 : vector<5x5x1xf32>
    %c2_850 = arith.constant 2 : index
    %697 = memref.load %arg6[%c2_850] : memref<98xf32, #tpu.memory_space<smem>>
    %c0_851 = arith.constant 0 : index
    %c2_852 = arith.constant 2 : index
    %c0_853 = arith.constant 0 : index
    %698 = vector.load %arg9[%c0_851, %c2_852, %c0_853] : memref<11x11x2xf32, #tpu.memory_space<vmem>>, vector<5x5x1xf32>
    %699 = vector.broadcast %697 : f32 to vector<5x5x1xf32>
    %700 = arith.mulf %699, %698 : vector<5x5x1xf32>
    %701 = arith.addf %691, %700 : vector<5x5x1xf32>
    %c51 = arith.constant 51 : index
    %702 = memref.load %arg6[%c51] : memref<98xf32, #tpu.memory_space<smem>>
    %c0_854 = arith.constant 0 : index
    %c2_855 = arith.constant 2 : index
    %c1_856 = arith.constant 1 : index
    %703 = vector.load %arg9[%c0_854, %c2_855, %c1_856] : memref<11x11x2xf32, #tpu.memory_space<vmem>>, vector<5x5x1xf32>
    %704 = vector.broadcast %702 : f32 to vector<5x5x1xf32>
    %705 = arith.mulf %704, %703 : vector<5x5x1xf32>
    %706 = arith.addf %696, %705 : vector<5x5x1xf32>
    %c3_857 = arith.constant 3 : index
    %707 = memref.load %arg6[%c3_857] : memref<98xf32, #tpu.memory_space<smem>>
    %c0_858 = arith.constant 0 : index
    %c3_859 = arith.constant 3 : index
    %c0_860 = arith.constant 0 : index
    %708 = vector.load %arg9[%c0_858, %c3_859, %c0_860] : memref<11x11x2xf32, #tpu.memory_space<vmem>>, vector<5x5x1xf32>
    %709 = vector.broadcast %707 : f32 to vector<5x5x1xf32>
    %710 = arith.mulf %709, %708 : vector<5x5x1xf32>
    %711 = arith.addf %701, %710 : vector<5x5x1xf32>
    %c52 = arith.constant 52 : index
    %712 = memref.load %arg6[%c52] : memref<98xf32, #tpu.memory_space<smem>>
    %c0_861 = arith.constant 0 : index
    %c3_862 = arith.constant 3 : index
    %c1_863 = arith.constant 1 : index
    %713 = vector.load %arg9[%c0_861, %c3_862, %c1_863] : memref<11x11x2xf32, #tpu.memory_space<vmem>>, vector<5x5x1xf32>
    %714 = vector.broadcast %712 : f32 to vector<5x5x1xf32>
    %715 = arith.mulf %714, %713 : vector<5x5x1xf32>
    %716 = arith.addf %706, %715 : vector<5x5x1xf32>
    %c4_864 = arith.constant 4 : index
    %717 = memref.load %arg6[%c4_864] : memref<98xf32, #tpu.memory_space<smem>>
    %c0_865 = arith.constant 0 : index
    %c4_866 = arith.constant 4 : index
    %c0_867 = arith.constant 0 : index
    %718 = vector.load %arg9[%c0_865, %c4_866, %c0_867] : memref<11x11x2xf32, #tpu.memory_space<vmem>>, vector<5x5x1xf32>
    %719 = vector.broadcast %717 : f32 to vector<5x5x1xf32>
    %720 = arith.mulf %719, %718 : vector<5x5x1xf32>
    %721 = arith.addf %711, %720 : vector<5x5x1xf32>
    %c53 = arith.constant 53 : index
    %722 = memref.load %arg6[%c53] : memref<98xf32, #tpu.memory_space<smem>>
    %c0_868 = arith.constant 0 : index
    %c4_869 = arith.constant 4 : index
    %c1_870 = arith.constant 1 : index
    %723 = vector.load %arg9[%c0_868, %c4_869, %c1_870] : memref<11x11x2xf32, #tpu.memory_space<vmem>>, vector<5x5x1xf32>
    %724 = vector.broadcast %722 : f32 to vector<5x5x1xf32>
    %725 = arith.mulf %724, %723 : vector<5x5x1xf32>
    %726 = arith.addf %716, %725 : vector<5x5x1xf32>
    %c5_871 = arith.constant 5 : index
    %727 = memref.load %arg6[%c5_871] : memref<98xf32, #tpu.memory_space<smem>>
    %c0_872 = arith.constant 0 : index
    %c5_873 = arith.constant 5 : index
    %c0_874 = arith.constant 0 : index
    %728 = vector.load %arg9[%c0_872, %c5_873, %c0_874] : memref<11x11x2xf32, #tpu.memory_space<vmem>>, vector<5x5x1xf32>
    %729 = vector.broadcast %727 : f32 to vector<5x5x1xf32>
    %730 = arith.mulf %729, %728 : vector<5x5x1xf32>
    %731 = arith.addf %721, %730 : vector<5x5x1xf32>
    %c54 = arith.constant 54 : index
    %732 = memref.load %arg6[%c54] : memref<98xf32, #tpu.memory_space<smem>>
    %c0_875 = arith.constant 0 : index
    %c5_876 = arith.constant 5 : index
    %c1_877 = arith.constant 1 : index
    %733 = vector.load %arg9[%c0_875, %c5_876, %c1_877] : memref<11x11x2xf32, #tpu.memory_space<vmem>>, vector<5x5x1xf32>
    %734 = vector.broadcast %732 : f32 to vector<5x5x1xf32>
    %735 = arith.mulf %734, %733 : vector<5x5x1xf32>
    %736 = arith.addf %726, %735 : vector<5x5x1xf32>
    %c6_878 = arith.constant 6 : index
    %737 = memref.load %arg6[%c6_878] : memref<98xf32, #tpu.memory_space<smem>>
    %c0_879 = arith.constant 0 : index
    %c6_880 = arith.constant 6 : index
    %c0_881 = arith.constant 0 : index
    %738 = vector.load %arg9[%c0_879, %c6_880, %c0_881] : memref<11x11x2xf32, #tpu.memory_space<vmem>>, vector<5x5x1xf32>
    %739 = vector.broadcast %737 : f32 to vector<5x5x1xf32>
    %740 = arith.mulf %739, %738 : vector<5x5x1xf32>
    %741 = arith.addf %731, %740 : vector<5x5x1xf32>
    %c55 = arith.constant 55 : index
    %742 = memref.load %arg6[%c55] : memref<98xf32, #tpu.memory_space<smem>>
    %c0_882 = arith.constant 0 : index
    %c6_883 = arith.constant 6 : index
    %c1_884 = arith.constant 1 : index
    %743 = vector.load %arg9[%c0_882, %c6_883, %c1_884] : memref<11x11x2xf32, #tpu.memory_space<vmem>>, vector<5x5x1xf32>
    %744 = vector.broadcast %742 : f32 to vector<5x5x1xf32>
    %745 = arith.mulf %744, %743 : vector<5x5x1xf32>
    %746 = arith.addf %736, %745 : vector<5x5x1xf32>
    %c7_885 = arith.constant 7 : index
    %747 = memref.load %arg6[%c7_885] : memref<98xf32, #tpu.memory_space<smem>>
    %c1_886 = arith.constant 1 : index
    %c0_887 = arith.constant 0 : index
    %c0_888 = arith.constant 0 : index
    %748 = vector.load %arg9[%c1_886, %c0_887, %c0_888] : memref<11x11x2xf32, #tpu.memory_space<vmem>>, vector<5x5x1xf32>
    %749 = vector.broadcast %747 : f32 to vector<5x5x1xf32>
    %750 = arith.mulf %749, %748 : vector<5x5x1xf32>
    %751 = arith.addf %741, %750 : vector<5x5x1xf32>
    %c56 = arith.constant 56 : index
    %752 = memref.load %arg6[%c56] : memref<98xf32, #tpu.memory_space<smem>>
    %c1_889 = arith.constant 1 : index
    %c0_890 = arith.constant 0 : index
    %c1_891 = arith.constant 1 : index
    %753 = vector.load %arg9[%c1_889, %c0_890, %c1_891] : memref<11x11x2xf32, #tpu.memory_space<vmem>>, vector<5x5x1xf32>
    %754 = vector.broadcast %752 : f32 to vector<5x5x1xf32>
    %755 = arith.mulf %754, %753 : vector<5x5x1xf32>
    %756 = arith.addf %746, %755 : vector<5x5x1xf32>
    %c8_892 = arith.constant 8 : index
    %757 = memref.load %arg6[%c8_892] : memref<98xf32, #tpu.memory_space<smem>>
    %c1_893 = arith.constant 1 : index
    %c1_894 = arith.constant 1 : index
    %c0_895 = arith.constant 0 : index
    %758 = vector.load %arg9[%c1_893, %c1_894, %c0_895] : memref<11x11x2xf32, #tpu.memory_space<vmem>>, vector<5x5x1xf32>
    %759 = vector.broadcast %757 : f32 to vector<5x5x1xf32>
    %760 = arith.mulf %759, %758 : vector<5x5x1xf32>
    %761 = arith.addf %751, %760 : vector<5x5x1xf32>
    %c57 = arith.constant 57 : index
    %762 = memref.load %arg6[%c57] : memref<98xf32, #tpu.memory_space<smem>>
    %c1_896 = arith.constant 1 : index
    %c1_897 = arith.constant 1 : index
    %c1_898 = arith.constant 1 : index
    %763 = vector.load %arg9[%c1_896, %c1_897, %c1_898] : memref<11x11x2xf32, #tpu.memory_space<vmem>>, vector<5x5x1xf32>
    %764 = vector.broadcast %762 : f32 to vector<5x5x1xf32>
    %765 = arith.mulf %764, %763 : vector<5x5x1xf32>
    %766 = arith.addf %756, %765 : vector<5x5x1xf32>
    %c9 = arith.constant 9 : index
    %767 = memref.load %arg6[%c9] : memref<98xf32, #tpu.memory_space<smem>>
    %c1_899 = arith.constant 1 : index
    %c2_900 = arith.constant 2 : index
    %c0_901 = arith.constant 0 : index
    %768 = vector.load %arg9[%c1_899, %c2_900, %c0_901] : memref<11x11x2xf32, #tpu.memory_space<vmem>>, vector<5x5x1xf32>
    %769 = vector.broadcast %767 : f32 to vector<5x5x1xf32>
    %770 = arith.mulf %769, %768 : vector<5x5x1xf32>
    %771 = arith.addf %761, %770 : vector<5x5x1xf32>
    %c58 = arith.constant 58 : index
    %772 = memref.load %arg6[%c58] : memref<98xf32, #tpu.memory_space<smem>>
    %c1_902 = arith.constant 1 : index
    %c2_903 = arith.constant 2 : index
    %c1_904 = arith.constant 1 : index
    %773 = vector.load %arg9[%c1_902, %c2_903, %c1_904] : memref<11x11x2xf32, #tpu.memory_space<vmem>>, vector<5x5x1xf32>
    %774 = vector.broadcast %772 : f32 to vector<5x5x1xf32>
    %775 = arith.mulf %774, %773 : vector<5x5x1xf32>
    %776 = arith.addf %766, %775 : vector<5x5x1xf32>
    %c10 = arith.constant 10 : index
    %777 = memref.load %arg6[%c10] : memref<98xf32, #tpu.memory_space<smem>>
    %c1_905 = arith.constant 1 : index
    %c3_906 = arith.constant 3 : index
    %c0_907 = arith.constant 0 : index
    %778 = vector.load %arg9[%c1_905, %c3_906, %c0_907] : memref<11x11x2xf32, #tpu.memory_space<vmem>>, vector<5x5x1xf32>
    %779 = vector.broadcast %777 : f32 to vector<5x5x1xf32>
    %780 = arith.mulf %779, %778 : vector<5x5x1xf32>
    %781 = arith.addf %771, %780 : vector<5x5x1xf32>
    %c59 = arith.constant 59 : index
    %782 = memref.load %arg6[%c59] : memref<98xf32, #tpu.memory_space<smem>>
    %c1_908 = arith.constant 1 : index
    %c3_909 = arith.constant 3 : index
    %c1_910 = arith.constant 1 : index
    %783 = vector.load %arg9[%c1_908, %c3_909, %c1_910] : memref<11x11x2xf32, #tpu.memory_space<vmem>>, vector<5x5x1xf32>
    %784 = vector.broadcast %782 : f32 to vector<5x5x1xf32>
    %785 = arith.mulf %784, %783 : vector<5x5x1xf32>
    %786 = arith.addf %776, %785 : vector<5x5x1xf32>
    %c11 = arith.constant 11 : index
    %787 = memref.load %arg6[%c11] : memref<98xf32, #tpu.memory_space<smem>>
    %c1_911 = arith.constant 1 : index
    %c4_912 = arith.constant 4 : index
    %c0_913 = arith.constant 0 : index
    %788 = vector.load %arg9[%c1_911, %c4_912, %c0_913] : memref<11x11x2xf32, #tpu.memory_space<vmem>>, vector<5x5x1xf32>
    %789 = vector.broadcast %787 : f32 to vector<5x5x1xf32>
    %790 = arith.mulf %789, %788 : vector<5x5x1xf32>
    %791 = arith.addf %781, %790 : vector<5x5x1xf32>
    %c60 = arith.constant 60 : index
    %792 = memref.load %arg6[%c60] : memref<98xf32, #tpu.memory_space<smem>>
    %c1_914 = arith.constant 1 : index
    %c4_915 = arith.constant 4 : index
    %c1_916 = arith.constant 1 : index
    %793 = vector.load %arg9[%c1_914, %c4_915, %c1_916] : memref<11x11x2xf32, #tpu.memory_space<vmem>>, vector<5x5x1xf32>
    %794 = vector.broadcast %792 : f32 to vector<5x5x1xf32>
    %795 = arith.mulf %794, %793 : vector<5x5x1xf32>
    %796 = arith.addf %786, %795 : vector<5x5x1xf32>
    %c12_917 = arith.constant 12 : index
    %797 = memref.load %arg6[%c12_917] : memref<98xf32, #tpu.memory_space<smem>>
    %c1_918 = arith.constant 1 : index
    %c5_919 = arith.constant 5 : index
    %c0_920 = arith.constant 0 : index
    %798 = vector.load %arg9[%c1_918, %c5_919, %c0_920] : memref<11x11x2xf32, #tpu.memory_space<vmem>>, vector<5x5x1xf32>
    %799 = vector.broadcast %797 : f32 to vector<5x5x1xf32>
    %800 = arith.mulf %799, %798 : vector<5x5x1xf32>
    %801 = arith.addf %791, %800 : vector<5x5x1xf32>
    %c61 = arith.constant 61 : index
    %802 = memref.load %arg6[%c61] : memref<98xf32, #tpu.memory_space<smem>>
    %c1_921 = arith.constant 1 : index
    %c5_922 = arith.constant 5 : index
    %c1_923 = arith.constant 1 : index
    %803 = vector.load %arg9[%c1_921, %c5_922, %c1_923] : memref<11x11x2xf32, #tpu.memory_space<vmem>>, vector<5x5x1xf32>
    %804 = vector.broadcast %802 : f32 to vector<5x5x1xf32>
    %805 = arith.mulf %804, %803 : vector<5x5x1xf32>
    %806 = arith.addf %796, %805 : vector<5x5x1xf32>
    %c13 = arith.constant 13 : index
    %807 = memref.load %arg6[%c13] : memref<98xf32, #tpu.memory_space<smem>>
    %c1_924 = arith.constant 1 : index
    %c6_925 = arith.constant 6 : index
    %c0_926 = arith.constant 0 : index
    %808 = vector.load %arg9[%c1_924, %c6_925, %c0_926] : memref<11x11x2xf32, #tpu.memory_space<vmem>>, vector<5x5x1xf32>
    %809 = vector.broadcast %807 : f32 to vector<5x5x1xf32>
    %810 = arith.mulf %809, %808 : vector<5x5x1xf32>
    %811 = arith.addf %801, %810 : vector<5x5x1xf32>
    %c62 = arith.constant 62 : index
    %812 = memref.load %arg6[%c62] : memref<98xf32, #tpu.memory_space<smem>>
    %c1_927 = arith.constant 1 : index
    %c6_928 = arith.constant 6 : index
    %c1_929 = arith.constant 1 : index
    %813 = vector.load %arg9[%c1_927, %c6_928, %c1_929] : memref<11x11x2xf32, #tpu.memory_space<vmem>>, vector<5x5x1xf32>
    %814 = vector.broadcast %812 : f32 to vector<5x5x1xf32>
    %815 = arith.mulf %814, %813 : vector<5x5x1xf32>
    %816 = arith.addf %806, %815 : vector<5x5x1xf32>
    %c14 = arith.constant 14 : index
    %817 = memref.load %arg6[%c14] : memref<98xf32, #tpu.memory_space<smem>>
    %c2_930 = arith.constant 2 : index
    %c0_931 = arith.constant 0 : index
    %c0_932 = arith.constant 0 : index
    %818 = vector.load %arg9[%c2_930, %c0_931, %c0_932] : memref<11x11x2xf32, #tpu.memory_space<vmem>>, vector<5x5x1xf32>
    %819 = vector.broadcast %817 : f32 to vector<5x5x1xf32>
    %820 = arith.mulf %819, %818 : vector<5x5x1xf32>
    %821 = arith.addf %811, %820 : vector<5x5x1xf32>
    %c63 = arith.constant 63 : index
    %822 = memref.load %arg6[%c63] : memref<98xf32, #tpu.memory_space<smem>>
    %c2_933 = arith.constant 2 : index
    %c0_934 = arith.constant 0 : index
    %c1_935 = arith.constant 1 : index
    %823 = vector.load %arg9[%c2_933, %c0_934, %c1_935] : memref<11x11x2xf32, #tpu.memory_space<vmem>>, vector<5x5x1xf32>
    %824 = vector.broadcast %822 : f32 to vector<5x5x1xf32>
    %825 = arith.mulf %824, %823 : vector<5x5x1xf32>
    %826 = arith.addf %816, %825 : vector<5x5x1xf32>
    %c15 = arith.constant 15 : index
    %827 = memref.load %arg6[%c15] : memref<98xf32, #tpu.memory_space<smem>>
    %c2_936 = arith.constant 2 : index
    %c1_937 = arith.constant 1 : index
    %c0_938 = arith.constant 0 : index
    %828 = vector.load %arg9[%c2_936, %c1_937, %c0_938] : memref<11x11x2xf32, #tpu.memory_space<vmem>>, vector<5x5x1xf32>
    %829 = vector.broadcast %827 : f32 to vector<5x5x1xf32>
    %830 = arith.mulf %829, %828 : vector<5x5x1xf32>
    %831 = arith.addf %821, %830 : vector<5x5x1xf32>
    %c64_939 = arith.constant 64 : index
    %832 = memref.load %arg6[%c64_939] : memref<98xf32, #tpu.memory_space<smem>>
    %c2_940 = arith.constant 2 : index
    %c1_941 = arith.constant 1 : index
    %c1_942 = arith.constant 1 : index
    %833 = vector.load %arg9[%c2_940, %c1_941, %c1_942] : memref<11x11x2xf32, #tpu.memory_space<vmem>>, vector<5x5x1xf32>
    %834 = vector.broadcast %832 : f32 to vector<5x5x1xf32>
    %835 = arith.mulf %834, %833 : vector<5x5x1xf32>
    %836 = arith.addf %826, %835 : vector<5x5x1xf32>
    %c16_943 = arith.constant 16 : index
    %837 = memref.load %arg6[%c16_943] : memref<98xf32, #tpu.memory_space<smem>>
    %c2_944 = arith.constant 2 : index
    %c2_945 = arith.constant 2 : index
    %c0_946 = arith.constant 0 : index
    %838 = vector.load %arg9[%c2_944, %c2_945, %c0_946] : memref<11x11x2xf32, #tpu.memory_space<vmem>>, vector<5x5x1xf32>
    %839 = vector.broadcast %837 : f32 to vector<5x5x1xf32>
    %840 = arith.mulf %839, %838 : vector<5x5x1xf32>
    %841 = arith.addf %831, %840 : vector<5x5x1xf32>
    %c65 = arith.constant 65 : index
    %842 = memref.load %arg6[%c65] : memref<98xf32, #tpu.memory_space<smem>>
    %c2_947 = arith.constant 2 : index
    %c2_948 = arith.constant 2 : index
    %c1_949 = arith.constant 1 : index
    %843 = vector.load %arg9[%c2_947, %c2_948, %c1_949] : memref<11x11x2xf32, #tpu.memory_space<vmem>>, vector<5x5x1xf32>
    %844 = vector.broadcast %842 : f32 to vector<5x5x1xf32>
    %845 = arith.mulf %844, %843 : vector<5x5x1xf32>
    %846 = arith.addf %836, %845 : vector<5x5x1xf32>
    %c17 = arith.constant 17 : index
    %847 = memref.load %arg6[%c17] : memref<98xf32, #tpu.memory_space<smem>>
    %c2_950 = arith.constant 2 : index
    %c3_951 = arith.constant 3 : index
    %c0_952 = arith.constant 0 : index
    %848 = vector.load %arg9[%c2_950, %c3_951, %c0_952] : memref<11x11x2xf32, #tpu.memory_space<vmem>>, vector<5x5x1xf32>
    %849 = vector.broadcast %847 : f32 to vector<5x5x1xf32>
    %850 = arith.mulf %849, %848 : vector<5x5x1xf32>
    %851 = arith.addf %841, %850 : vector<5x5x1xf32>
    %c66 = arith.constant 66 : index
    %852 = memref.load %arg6[%c66] : memref<98xf32, #tpu.memory_space<smem>>
    %c2_953 = arith.constant 2 : index
    %c3_954 = arith.constant 3 : index
    %c1_955 = arith.constant 1 : index
    %853 = vector.load %arg9[%c2_953, %c3_954, %c1_955] : memref<11x11x2xf32, #tpu.memory_space<vmem>>, vector<5x5x1xf32>
    %854 = vector.broadcast %852 : f32 to vector<5x5x1xf32>
    %855 = arith.mulf %854, %853 : vector<5x5x1xf32>
    %856 = arith.addf %846, %855 : vector<5x5x1xf32>
    %c18 = arith.constant 18 : index
    %857 = memref.load %arg6[%c18] : memref<98xf32, #tpu.memory_space<smem>>
    %c2_956 = arith.constant 2 : index
    %c4_957 = arith.constant 4 : index
    %c0_958 = arith.constant 0 : index
    %858 = vector.load %arg9[%c2_956, %c4_957, %c0_958] : memref<11x11x2xf32, #tpu.memory_space<vmem>>, vector<5x5x1xf32>
    %859 = vector.broadcast %857 : f32 to vector<5x5x1xf32>
    %860 = arith.mulf %859, %858 : vector<5x5x1xf32>
    %861 = arith.addf %851, %860 : vector<5x5x1xf32>
    %c67 = arith.constant 67 : index
    %862 = memref.load %arg6[%c67] : memref<98xf32, #tpu.memory_space<smem>>
    %c2_959 = arith.constant 2 : index
    %c4_960 = arith.constant 4 : index
    %c1_961 = arith.constant 1 : index
    %863 = vector.load %arg9[%c2_959, %c4_960, %c1_961] : memref<11x11x2xf32, #tpu.memory_space<vmem>>, vector<5x5x1xf32>
    %864 = vector.broadcast %862 : f32 to vector<5x5x1xf32>
    %865 = arith.mulf %864, %863 : vector<5x5x1xf32>
    %866 = arith.addf %856, %865 : vector<5x5x1xf32>
    %c19 = arith.constant 19 : index
    %867 = memref.load %arg6[%c19] : memref<98xf32, #tpu.memory_space<smem>>
    %c2_962 = arith.constant 2 : index
    %c5_963 = arith.constant 5 : index
    %c0_964 = arith.constant 0 : index
    %868 = vector.load %arg9[%c2_962, %c5_963, %c0_964] : memref<11x11x2xf32, #tpu.memory_space<vmem>>, vector<5x5x1xf32>
    %869 = vector.broadcast %867 : f32 to vector<5x5x1xf32>
    %870 = arith.mulf %869, %868 : vector<5x5x1xf32>
    %871 = arith.addf %861, %870 : vector<5x5x1xf32>
    %c68 = arith.constant 68 : index
    %872 = memref.load %arg6[%c68] : memref<98xf32, #tpu.memory_space<smem>>
    %c2_965 = arith.constant 2 : index
    %c5_966 = arith.constant 5 : index
    %c1_967 = arith.constant 1 : index
    %873 = vector.load %arg9[%c2_965, %c5_966, %c1_967] : memref<11x11x2xf32, #tpu.memory_space<vmem>>, vector<5x5x1xf32>
    %874 = vector.broadcast %872 : f32 to vector<5x5x1xf32>
    %875 = arith.mulf %874, %873 : vector<5x5x1xf32>
    %876 = arith.addf %866, %875 : vector<5x5x1xf32>
    %c20_968 = arith.constant 20 : index
    %877 = memref.load %arg6[%c20_968] : memref<98xf32, #tpu.memory_space<smem>>
    %c2_969 = arith.constant 2 : index
    %c6_970 = arith.constant 6 : index
    %c0_971 = arith.constant 0 : index
    %878 = vector.load %arg9[%c2_969, %c6_970, %c0_971] : memref<11x11x2xf32, #tpu.memory_space<vmem>>, vector<5x5x1xf32>
    %879 = vector.broadcast %877 : f32 to vector<5x5x1xf32>
    %880 = arith.mulf %879, %878 : vector<5x5x1xf32>
    %881 = arith.addf %871, %880 : vector<5x5x1xf32>
    %c69 = arith.constant 69 : index
    %882 = memref.load %arg6[%c69] : memref<98xf32, #tpu.memory_space<smem>>
    %c2_972 = arith.constant 2 : index
    %c6_973 = arith.constant 6 : index
    %c1_974 = arith.constant 1 : index
    %883 = vector.load %arg9[%c2_972, %c6_973, %c1_974] : memref<11x11x2xf32, #tpu.memory_space<vmem>>, vector<5x5x1xf32>
    %884 = vector.broadcast %882 : f32 to vector<5x5x1xf32>
    %885 = arith.mulf %884, %883 : vector<5x5x1xf32>
    %886 = arith.addf %876, %885 : vector<5x5x1xf32>
    %c21 = arith.constant 21 : index
    %887 = memref.load %arg6[%c21] : memref<98xf32, #tpu.memory_space<smem>>
    %c3_975 = arith.constant 3 : index
    %c0_976 = arith.constant 0 : index
    %c0_977 = arith.constant 0 : index
    %888 = vector.load %arg9[%c3_975, %c0_976, %c0_977] : memref<11x11x2xf32, #tpu.memory_space<vmem>>, vector<5x5x1xf32>
    %889 = vector.broadcast %887 : f32 to vector<5x5x1xf32>
    %890 = arith.mulf %889, %888 : vector<5x5x1xf32>
    %891 = arith.addf %881, %890 : vector<5x5x1xf32>
    %c70 = arith.constant 70 : index
    %892 = memref.load %arg6[%c70] : memref<98xf32, #tpu.memory_space<smem>>
    %c3_978 = arith.constant 3 : index
    %c0_979 = arith.constant 0 : index
    %c1_980 = arith.constant 1 : index
    %893 = vector.load %arg9[%c3_978, %c0_979, %c1_980] : memref<11x11x2xf32, #tpu.memory_space<vmem>>, vector<5x5x1xf32>
    %894 = vector.broadcast %892 : f32 to vector<5x5x1xf32>
    %895 = arith.mulf %894, %893 : vector<5x5x1xf32>
    %896 = arith.addf %886, %895 : vector<5x5x1xf32>
    %c22 = arith.constant 22 : index
    %897 = memref.load %arg6[%c22] : memref<98xf32, #tpu.memory_space<smem>>
    %c3_981 = arith.constant 3 : index
    %c1_982 = arith.constant 1 : index
    %c0_983 = arith.constant 0 : index
    %898 = vector.load %arg9[%c3_981, %c1_982, %c0_983] : memref<11x11x2xf32, #tpu.memory_space<vmem>>, vector<5x5x1xf32>
    %899 = vector.broadcast %897 : f32 to vector<5x5x1xf32>
    %900 = arith.mulf %899, %898 : vector<5x5x1xf32>
    %901 = arith.addf %891, %900 : vector<5x5x1xf32>
    %c71 = arith.constant 71 : index
    %902 = memref.load %arg6[%c71] : memref<98xf32, #tpu.memory_space<smem>>
    %c3_984 = arith.constant 3 : index
    %c1_985 = arith.constant 1 : index
    %c1_986 = arith.constant 1 : index
    %903 = vector.load %arg9[%c3_984, %c1_985, %c1_986] : memref<11x11x2xf32, #tpu.memory_space<vmem>>, vector<5x5x1xf32>
    %904 = vector.broadcast %902 : f32 to vector<5x5x1xf32>
    %905 = arith.mulf %904, %903 : vector<5x5x1xf32>
    %906 = arith.addf %896, %905 : vector<5x5x1xf32>
    %c23 = arith.constant 23 : index
    %907 = memref.load %arg6[%c23] : memref<98xf32, #tpu.memory_space<smem>>
    %c3_987 = arith.constant 3 : index
    %c2_988 = arith.constant 2 : index
    %c0_989 = arith.constant 0 : index
    %908 = vector.load %arg9[%c3_987, %c2_988, %c0_989] : memref<11x11x2xf32, #tpu.memory_space<vmem>>, vector<5x5x1xf32>
    %909 = vector.broadcast %907 : f32 to vector<5x5x1xf32>
    %910 = arith.mulf %909, %908 : vector<5x5x1xf32>
    %911 = arith.addf %901, %910 : vector<5x5x1xf32>
    %c72 = arith.constant 72 : index
    %912 = memref.load %arg6[%c72] : memref<98xf32, #tpu.memory_space<smem>>
    %c3_990 = arith.constant 3 : index
    %c2_991 = arith.constant 2 : index
    %c1_992 = arith.constant 1 : index
    %913 = vector.load %arg9[%c3_990, %c2_991, %c1_992] : memref<11x11x2xf32, #tpu.memory_space<vmem>>, vector<5x5x1xf32>
    %914 = vector.broadcast %912 : f32 to vector<5x5x1xf32>
    %915 = arith.mulf %914, %913 : vector<5x5x1xf32>
    %916 = arith.addf %906, %915 : vector<5x5x1xf32>
    %c24_993 = arith.constant 24 : index
    %917 = memref.load %arg6[%c24_993] : memref<98xf32, #tpu.memory_space<smem>>
    %c3_994 = arith.constant 3 : index
    %c3_995 = arith.constant 3 : index
    %c0_996 = arith.constant 0 : index
    %918 = vector.load %arg9[%c3_994, %c3_995, %c0_996] : memref<11x11x2xf32, #tpu.memory_space<vmem>>, vector<5x5x1xf32>
    %919 = vector.broadcast %917 : f32 to vector<5x5x1xf32>
    %920 = arith.mulf %919, %918 : vector<5x5x1xf32>
    %921 = arith.addf %911, %920 : vector<5x5x1xf32>
    %c73 = arith.constant 73 : index
    %922 = memref.load %arg6[%c73] : memref<98xf32, #tpu.memory_space<smem>>
    %c3_997 = arith.constant 3 : index
    %c3_998 = arith.constant 3 : index
    %c1_999 = arith.constant 1 : index
    %923 = vector.load %arg9[%c3_997, %c3_998, %c1_999] : memref<11x11x2xf32, #tpu.memory_space<vmem>>, vector<5x5x1xf32>
    %924 = vector.broadcast %922 : f32 to vector<5x5x1xf32>
    %925 = arith.mulf %924, %923 : vector<5x5x1xf32>
    %926 = arith.addf %916, %925 : vector<5x5x1xf32>
    %c25 = arith.constant 25 : index
    %927 = memref.load %arg6[%c25] : memref<98xf32, #tpu.memory_space<smem>>
    %c3_1000 = arith.constant 3 : index
    %c4_1001 = arith.constant 4 : index
    %c0_1002 = arith.constant 0 : index
    %928 = vector.load %arg9[%c3_1000, %c4_1001, %c0_1002] : memref<11x11x2xf32, #tpu.memory_space<vmem>>, vector<5x5x1xf32>
    %929 = vector.broadcast %927 : f32 to vector<5x5x1xf32>
    %930 = arith.mulf %929, %928 : vector<5x5x1xf32>
    %931 = arith.addf %921, %930 : vector<5x5x1xf32>
    %c74 = arith.constant 74 : index
    %932 = memref.load %arg6[%c74] : memref<98xf32, #tpu.memory_space<smem>>
    %c3_1003 = arith.constant 3 : index
    %c4_1004 = arith.constant 4 : index
    %c1_1005 = arith.constant 1 : index
    %933 = vector.load %arg9[%c3_1003, %c4_1004, %c1_1005] : memref<11x11x2xf32, #tpu.memory_space<vmem>>, vector<5x5x1xf32>
    %934 = vector.broadcast %932 : f32 to vector<5x5x1xf32>
    %935 = arith.mulf %934, %933 : vector<5x5x1xf32>
    %936 = arith.addf %926, %935 : vector<5x5x1xf32>
    %c26 = arith.constant 26 : index
    %937 = memref.load %arg6[%c26] : memref<98xf32, #tpu.memory_space<smem>>
    %c3_1006 = arith.constant 3 : index
    %c5_1007 = arith.constant 5 : index
    %c0_1008 = arith.constant 0 : index
    %938 = vector.load %arg9[%c3_1006, %c5_1007, %c0_1008] : memref<11x11x2xf32, #tpu.memory_space<vmem>>, vector<5x5x1xf32>
    %939 = vector.broadcast %937 : f32 to vector<5x5x1xf32>
    %940 = arith.mulf %939, %938 : vector<5x5x1xf32>
    %941 = arith.addf %931, %940 : vector<5x5x1xf32>
    %c75 = arith.constant 75 : index
    %942 = memref.load %arg6[%c75] : memref<98xf32, #tpu.memory_space<smem>>
    %c3_1009 = arith.constant 3 : index
    %c5_1010 = arith.constant 5 : index
    %c1_1011 = arith.constant 1 : index
    %943 = vector.load %arg9[%c3_1009, %c5_1010, %c1_1011] : memref<11x11x2xf32, #tpu.memory_space<vmem>>, vector<5x5x1xf32>
    %944 = vector.broadcast %942 : f32 to vector<5x5x1xf32>
    %945 = arith.mulf %944, %943 : vector<5x5x1xf32>
    %946 = arith.addf %936, %945 : vector<5x5x1xf32>
    %c27 = arith.constant 27 : index
    %947 = memref.load %arg6[%c27] : memref<98xf32, #tpu.memory_space<smem>>
    %c3_1012 = arith.constant 3 : index
    %c6_1013 = arith.constant 6 : index
    %c0_1014 = arith.constant 0 : index
    %948 = vector.load %arg9[%c3_1012, %c6_1013, %c0_1014] : memref<11x11x2xf32, #tpu.memory_space<vmem>>, vector<5x5x1xf32>
    %949 = vector.broadcast %947 : f32 to vector<5x5x1xf32>
    %950 = arith.mulf %949, %948 : vector<5x5x1xf32>
    %951 = arith.addf %941, %950 : vector<5x5x1xf32>
    %c76 = arith.constant 76 : index
    %952 = memref.load %arg6[%c76] : memref<98xf32, #tpu.memory_space<smem>>
    %c3_1015 = arith.constant 3 : index
    %c6_1016 = arith.constant 6 : index
    %c1_1017 = arith.constant 1 : index
    %953 = vector.load %arg9[%c3_1015, %c6_1016, %c1_1017] : memref<11x11x2xf32, #tpu.memory_space<vmem>>, vector<5x5x1xf32>
    %954 = vector.broadcast %952 : f32 to vector<5x5x1xf32>
    %955 = arith.mulf %954, %953 : vector<5x5x1xf32>
    %956 = arith.addf %946, %955 : vector<5x5x1xf32>
    %c28_1018 = arith.constant 28 : index
    %957 = memref.load %arg6[%c28_1018] : memref<98xf32, #tpu.memory_space<smem>>
    %c4_1019 = arith.constant 4 : index
    %c0_1020 = arith.constant 0 : index
    %c0_1021 = arith.constant 0 : index
    %958 = vector.load %arg9[%c4_1019, %c0_1020, %c0_1021] : memref<11x11x2xf32, #tpu.memory_space<vmem>>, vector<5x5x1xf32>
    %959 = vector.broadcast %957 : f32 to vector<5x5x1xf32>
    %960 = arith.mulf %959, %958 : vector<5x5x1xf32>
    %961 = arith.addf %951, %960 : vector<5x5x1xf32>
    %c77 = arith.constant 77 : index
    %962 = memref.load %arg6[%c77] : memref<98xf32, #tpu.memory_space<smem>>
    %c4_1022 = arith.constant 4 : index
    %c0_1023 = arith.constant 0 : index
    %c1_1024 = arith.constant 1 : index
    %963 = vector.load %arg9[%c4_1022, %c0_1023, %c1_1024] : memref<11x11x2xf32, #tpu.memory_space<vmem>>, vector<5x5x1xf32>
    %964 = vector.broadcast %962 : f32 to vector<5x5x1xf32>
    %965 = arith.mulf %964, %963 : vector<5x5x1xf32>
    %966 = arith.addf %956, %965 : vector<5x5x1xf32>
    %c29 = arith.constant 29 : index
    %967 = memref.load %arg6[%c29] : memref<98xf32, #tpu.memory_space<smem>>
    %c4_1025 = arith.constant 4 : index
    %c1_1026 = arith.constant 1 : index
    %c0_1027 = arith.constant 0 : index
    %968 = vector.load %arg9[%c4_1025, %c1_1026, %c0_1027] : memref<11x11x2xf32, #tpu.memory_space<vmem>>, vector<5x5x1xf32>
    %969 = vector.broadcast %967 : f32 to vector<5x5x1xf32>
    %970 = arith.mulf %969, %968 : vector<5x5x1xf32>
    %971 = arith.addf %961, %970 : vector<5x5x1xf32>
    %c78 = arith.constant 78 : index
    %972 = memref.load %arg6[%c78] : memref<98xf32, #tpu.memory_space<smem>>
    %c4_1028 = arith.constant 4 : index
    %c1_1029 = arith.constant 1 : index
    %c1_1030 = arith.constant 1 : index
    %973 = vector.load %arg9[%c4_1028, %c1_1029, %c1_1030] : memref<11x11x2xf32, #tpu.memory_space<vmem>>, vector<5x5x1xf32>
    %974 = vector.broadcast %972 : f32 to vector<5x5x1xf32>
    %975 = arith.mulf %974, %973 : vector<5x5x1xf32>
    %976 = arith.addf %966, %975 : vector<5x5x1xf32>
    %c30 = arith.constant 30 : index
    %977 = memref.load %arg6[%c30] : memref<98xf32, #tpu.memory_space<smem>>
    %c4_1031 = arith.constant 4 : index
    %c2_1032 = arith.constant 2 : index
    %c0_1033 = arith.constant 0 : index
    %978 = vector.load %arg9[%c4_1031, %c2_1032, %c0_1033] : memref<11x11x2xf32, #tpu.memory_space<vmem>>, vector<5x5x1xf32>
    %979 = vector.broadcast %977 : f32 to vector<5x5x1xf32>
    %980 = arith.mulf %979, %978 : vector<5x5x1xf32>
    %981 = arith.addf %971, %980 : vector<5x5x1xf32>
    %c79 = arith.constant 79 : index
    %982 = memref.load %arg6[%c79] : memref<98xf32, #tpu.memory_space<smem>>
    %c4_1034 = arith.constant 4 : index
    %c2_1035 = arith.constant 2 : index
    %c1_1036 = arith.constant 1 : index
    %983 = vector.load %arg9[%c4_1034, %c2_1035, %c1_1036] : memref<11x11x2xf32, #tpu.memory_space<vmem>>, vector<5x5x1xf32>
    %984 = vector.broadcast %982 : f32 to vector<5x5x1xf32>
    %985 = arith.mulf %984, %983 : vector<5x5x1xf32>
    %986 = arith.addf %976, %985 : vector<5x5x1xf32>
    %c31 = arith.constant 31 : index
    %987 = memref.load %arg6[%c31] : memref<98xf32, #tpu.memory_space<smem>>
    %c4_1037 = arith.constant 4 : index
    %c3_1038 = arith.constant 3 : index
    %c0_1039 = arith.constant 0 : index
    %988 = vector.load %arg9[%c4_1037, %c3_1038, %c0_1039] : memref<11x11x2xf32, #tpu.memory_space<vmem>>, vector<5x5x1xf32>
    %989 = vector.broadcast %987 : f32 to vector<5x5x1xf32>
    %990 = arith.mulf %989, %988 : vector<5x5x1xf32>
    %991 = arith.addf %981, %990 : vector<5x5x1xf32>
    %c80 = arith.constant 80 : index
    %992 = memref.load %arg6[%c80] : memref<98xf32, #tpu.memory_space<smem>>
    %c4_1040 = arith.constant 4 : index
    %c3_1041 = arith.constant 3 : index
    %c1_1042 = arith.constant 1 : index
    %993 = vector.load %arg9[%c4_1040, %c3_1041, %c1_1042] : memref<11x11x2xf32, #tpu.memory_space<vmem>>, vector<5x5x1xf32>
    %994 = vector.broadcast %992 : f32 to vector<5x5x1xf32>
    %995 = arith.mulf %994, %993 : vector<5x5x1xf32>
    %996 = arith.addf %986, %995 : vector<5x5x1xf32>
    %c32_1043 = arith.constant 32 : index
    %997 = memref.load %arg6[%c32_1043] : memref<98xf32, #tpu.memory_space<smem>>
    %c4_1044 = arith.constant 4 : index
    %c4_1045 = arith.constant 4 : index
    %c0_1046 = arith.constant 0 : index
    %998 = vector.load %arg9[%c4_1044, %c4_1045, %c0_1046] : memref<11x11x2xf32, #tpu.memory_space<vmem>>, vector<5x5x1xf32>
    %999 = vector.broadcast %997 : f32 to vector<5x5x1xf32>
    %1000 = arith.mulf %999, %998 : vector<5x5x1xf32>
    %1001 = arith.addf %991, %1000 : vector<5x5x1xf32>
    %c81 = arith.constant 81 : index
    %1002 = memref.load %arg6[%c81] : memref<98xf32, #tpu.memory_space<smem>>
    %c4_1047 = arith.constant 4 : index
    %c4_1048 = arith.constant 4 : index
    %c1_1049 = arith.constant 1 : index
    %1003 = vector.load %arg9[%c4_1047, %c4_1048, %c1_1049] : memref<11x11x2xf32, #tpu.memory_space<vmem>>, vector<5x5x1xf32>
    %1004 = vector.broadcast %1002 : f32 to vector<5x5x1xf32>
    %1005 = arith.mulf %1004, %1003 : vector<5x5x1xf32>
    %1006 = arith.addf %996, %1005 : vector<5x5x1xf32>
    %c33 = arith.constant 33 : index
    %1007 = memref.load %arg6[%c33] : memref<98xf32, #tpu.memory_space<smem>>
    %c4_1050 = arith.constant 4 : index
    %c5_1051 = arith.constant 5 : index
    %c0_1052 = arith.constant 0 : index
    %1008 = vector.load %arg9[%c4_1050, %c5_1051, %c0_1052] : memref<11x11x2xf32, #tpu.memory_space<vmem>>, vector<5x5x1xf32>
    %1009 = vector.broadcast %1007 : f32 to vector<5x5x1xf32>
    %1010 = arith.mulf %1009, %1008 : vector<5x5x1xf32>
    %1011 = arith.addf %1001, %1010 : vector<5x5x1xf32>
    %c82 = arith.constant 82 : index
    %1012 = memref.load %arg6[%c82] : memref<98xf32, #tpu.memory_space<smem>>
    %c4_1053 = arith.constant 4 : index
    %c5_1054 = arith.constant 5 : index
    %c1_1055 = arith.constant 1 : index
    %1013 = vector.load %arg9[%c4_1053, %c5_1054, %c1_1055] : memref<11x11x2xf32, #tpu.memory_space<vmem>>, vector<5x5x1xf32>
    %1014 = vector.broadcast %1012 : f32 to vector<5x5x1xf32>
    %1015 = arith.mulf %1014, %1013 : vector<5x5x1xf32>
    %1016 = arith.addf %1006, %1015 : vector<5x5x1xf32>
    %c34 = arith.constant 34 : index
    %1017 = memref.load %arg6[%c34] : memref<98xf32, #tpu.memory_space<smem>>
    %c4_1056 = arith.constant 4 : index
    %c6_1057 = arith.constant 6 : index
    %c0_1058 = arith.constant 0 : index
    %1018 = vector.load %arg9[%c4_1056, %c6_1057, %c0_1058] : memref<11x11x2xf32, #tpu.memory_space<vmem>>, vector<5x5x1xf32>
    %1019 = vector.broadcast %1017 : f32 to vector<5x5x1xf32>
    %1020 = arith.mulf %1019, %1018 : vector<5x5x1xf32>
    %1021 = arith.addf %1011, %1020 : vector<5x5x1xf32>
    %c83 = arith.constant 83 : index
    %1022 = memref.load %arg6[%c83] : memref<98xf32, #tpu.memory_space<smem>>
    %c4_1059 = arith.constant 4 : index
    %c6_1060 = arith.constant 6 : index
    %c1_1061 = arith.constant 1 : index
    %1023 = vector.load %arg9[%c4_1059, %c6_1060, %c1_1061] : memref<11x11x2xf32, #tpu.memory_space<vmem>>, vector<5x5x1xf32>
    %1024 = vector.broadcast %1022 : f32 to vector<5x5x1xf32>
    %1025 = arith.mulf %1024, %1023 : vector<5x5x1xf32>
    %1026 = arith.addf %1016, %1025 : vector<5x5x1xf32>
    %c35 = arith.constant 35 : index
    %1027 = memref.load %arg6[%c35] : memref<98xf32, #tpu.memory_space<smem>>
    %c5_1062 = arith.constant 5 : index
    %c0_1063 = arith.constant 0 : index
    %c0_1064 = arith.constant 0 : index
    %1028 = vector.load %arg9[%c5_1062, %c0_1063, %c0_1064] : memref<11x11x2xf32, #tpu.memory_space<vmem>>, vector<5x5x1xf32>
    %1029 = vector.broadcast %1027 : f32 to vector<5x5x1xf32>
    %1030 = arith.mulf %1029, %1028 : vector<5x5x1xf32>
    %1031 = arith.addf %1021, %1030 : vector<5x5x1xf32>
    %c84 = arith.constant 84 : index
    %1032 = memref.load %arg6[%c84] : memref<98xf32, #tpu.memory_space<smem>>
    %c5_1065 = arith.constant 5 : index
    %c0_1066 = arith.constant 0 : index
    %c1_1067 = arith.constant 1 : index
    %1033 = vector.load %arg9[%c5_1065, %c0_1066, %c1_1067] : memref<11x11x2xf32, #tpu.memory_space<vmem>>, vector<5x5x1xf32>
    %1034 = vector.broadcast %1032 : f32 to vector<5x5x1xf32>
    %1035 = arith.mulf %1034, %1033 : vector<5x5x1xf32>
    %1036 = arith.addf %1026, %1035 : vector<5x5x1xf32>
    %c36 = arith.constant 36 : index
    %1037 = memref.load %arg6[%c36] : memref<98xf32, #tpu.memory_space<smem>>
    %c5_1068 = arith.constant 5 : index
    %c1_1069 = arith.constant 1 : index
    %c0_1070 = arith.constant 0 : index
    %1038 = vector.load %arg9[%c5_1068, %c1_1069, %c0_1070] : memref<11x11x2xf32, #tpu.memory_space<vmem>>, vector<5x5x1xf32>
    %1039 = vector.broadcast %1037 : f32 to vector<5x5x1xf32>
    %1040 = arith.mulf %1039, %1038 : vector<5x5x1xf32>
    %1041 = arith.addf %1031, %1040 : vector<5x5x1xf32>
    %c85 = arith.constant 85 : index
    %1042 = memref.load %arg6[%c85] : memref<98xf32, #tpu.memory_space<smem>>
    %c5_1071 = arith.constant 5 : index
    %c1_1072 = arith.constant 1 : index
    %c1_1073 = arith.constant 1 : index
    %1043 = vector.load %arg9[%c5_1071, %c1_1072, %c1_1073] : memref<11x11x2xf32, #tpu.memory_space<vmem>>, vector<5x5x1xf32>
    %1044 = vector.broadcast %1042 : f32 to vector<5x5x1xf32>
    %1045 = arith.mulf %1044, %1043 : vector<5x5x1xf32>
    %1046 = arith.addf %1036, %1045 : vector<5x5x1xf32>
    %c37 = arith.constant 37 : index
    %1047 = memref.load %arg6[%c37] : memref<98xf32, #tpu.memory_space<smem>>
    %c5_1074 = arith.constant 5 : index
    %c2_1075 = arith.constant 2 : index
    %c0_1076 = arith.constant 0 : index
    %1048 = vector.load %arg9[%c5_1074, %c2_1075, %c0_1076] : memref<11x11x2xf32, #tpu.memory_space<vmem>>, vector<5x5x1xf32>
    %1049 = vector.broadcast %1047 : f32 to vector<5x5x1xf32>
    %1050 = arith.mulf %1049, %1048 : vector<5x5x1xf32>
    %1051 = arith.addf %1041, %1050 : vector<5x5x1xf32>
    %c86 = arith.constant 86 : index
    %1052 = memref.load %arg6[%c86] : memref<98xf32, #tpu.memory_space<smem>>
    %c5_1077 = arith.constant 5 : index
    %c2_1078 = arith.constant 2 : index
    %c1_1079 = arith.constant 1 : index
    %1053 = vector.load %arg9[%c5_1077, %c2_1078, %c1_1079] : memref<11x11x2xf32, #tpu.memory_space<vmem>>, vector<5x5x1xf32>
    %1054 = vector.broadcast %1052 : f32 to vector<5x5x1xf32>
    %1055 = arith.mulf %1054, %1053 : vector<5x5x1xf32>
    %1056 = arith.addf %1046, %1055 : vector<5x5x1xf32>
    %c38 = arith.constant 38 : index
    %1057 = memref.load %arg6[%c38] : memref<98xf32, #tpu.memory_space<smem>>
    %c5_1080 = arith.constant 5 : index
    %c3_1081 = arith.constant 3 : index
    %c0_1082 = arith.constant 0 : index
    %1058 = vector.load %arg9[%c5_1080, %c3_1081, %c0_1082] : memref<11x11x2xf32, #tpu.memory_space<vmem>>, vector<5x5x1xf32>
    %1059 = vector.broadcast %1057 : f32 to vector<5x5x1xf32>
    %1060 = arith.mulf %1059, %1058 : vector<5x5x1xf32>
    %1061 = arith.addf %1051, %1060 : vector<5x5x1xf32>
    %c87 = arith.constant 87 : index
    %1062 = memref.load %arg6[%c87] : memref<98xf32, #tpu.memory_space<smem>>
    %c5_1083 = arith.constant 5 : index
    %c3_1084 = arith.constant 3 : index
    %c1_1085 = arith.constant 1 : index
    %1063 = vector.load %arg9[%c5_1083, %c3_1084, %c1_1085] : memref<11x11x2xf32, #tpu.memory_space<vmem>>, vector<5x5x1xf32>
    %1064 = vector.broadcast %1062 : f32 to vector<5x5x1xf32>
    %1065 = arith.mulf %1064, %1063 : vector<5x5x1xf32>
    %1066 = arith.addf %1056, %1065 : vector<5x5x1xf32>
    %c39 = arith.constant 39 : index
    %1067 = memref.load %arg6[%c39] : memref<98xf32, #tpu.memory_space<smem>>
    %c5_1086 = arith.constant 5 : index
    %c4_1087 = arith.constant 4 : index
    %c0_1088 = arith.constant 0 : index
    %1068 = vector.load %arg9[%c5_1086, %c4_1087, %c0_1088] : memref<11x11x2xf32, #tpu.memory_space<vmem>>, vector<5x5x1xf32>
    %1069 = vector.broadcast %1067 : f32 to vector<5x5x1xf32>
    %1070 = arith.mulf %1069, %1068 : vector<5x5x1xf32>
    %1071 = arith.addf %1061, %1070 : vector<5x5x1xf32>
    %c88 = arith.constant 88 : index
    %1072 = memref.load %arg6[%c88] : memref<98xf32, #tpu.memory_space<smem>>
    %c5_1089 = arith.constant 5 : index
    %c4_1090 = arith.constant 4 : index
    %c1_1091 = arith.constant 1 : index
    %1073 = vector.load %arg9[%c5_1089, %c4_1090, %c1_1091] : memref<11x11x2xf32, #tpu.memory_space<vmem>>, vector<5x5x1xf32>
    %1074 = vector.broadcast %1072 : f32 to vector<5x5x1xf32>
    %1075 = arith.mulf %1074, %1073 : vector<5x5x1xf32>
    %1076 = arith.addf %1066, %1075 : vector<5x5x1xf32>
    %c40 = arith.constant 40 : index
    %1077 = memref.load %arg6[%c40] : memref<98xf32, #tpu.memory_space<smem>>
    %c5_1092 = arith.constant 5 : index
    %c5_1093 = arith.constant 5 : index
    %c0_1094 = arith.constant 0 : index
    %1078 = vector.load %arg9[%c5_1092, %c5_1093, %c0_1094] : memref<11x11x2xf32, #tpu.memory_space<vmem>>, vector<5x5x1xf32>
    %1079 = vector.broadcast %1077 : f32 to vector<5x5x1xf32>
    %1080 = arith.mulf %1079, %1078 : vector<5x5x1xf32>
    %1081 = arith.addf %1071, %1080 : vector<5x5x1xf32>
    %c89 = arith.constant 89 : index
    %1082 = memref.load %arg6[%c89] : memref<98xf32, #tpu.memory_space<smem>>
    %c5_1095 = arith.constant 5 : index
    %c5_1096 = arith.constant 5 : index
    %c1_1097 = arith.constant 1 : index
    %1083 = vector.load %arg9[%c5_1095, %c5_1096, %c1_1097] : memref<11x11x2xf32, #tpu.memory_space<vmem>>, vector<5x5x1xf32>
    %1084 = vector.broadcast %1082 : f32 to vector<5x5x1xf32>
    %1085 = arith.mulf %1084, %1083 : vector<5x5x1xf32>
    %1086 = arith.addf %1076, %1085 : vector<5x5x1xf32>
    %c41 = arith.constant 41 : index
    %1087 = memref.load %arg6[%c41] : memref<98xf32, #tpu.memory_space<smem>>
    %c5_1098 = arith.constant 5 : index
    %c6_1099 = arith.constant 6 : index
    %c0_1100 = arith.constant 0 : index
    %1088 = vector.load %arg9[%c5_1098, %c6_1099, %c0_1100] : memref<11x11x2xf32, #tpu.memory_space<vmem>>, vector<5x5x1xf32>
    %1089 = vector.broadcast %1087 : f32 to vector<5x5x1xf32>
    %1090 = arith.mulf %1089, %1088 : vector<5x5x1xf32>
    %1091 = arith.addf %1081, %1090 : vector<5x5x1xf32>
    %c90 = arith.constant 90 : index
    %1092 = memref.load %arg6[%c90] : memref<98xf32, #tpu.memory_space<smem>>
    %c5_1101 = arith.constant 5 : index
    %c6_1102 = arith.constant 6 : index
    %c1_1103 = arith.constant 1 : index
    %1093 = vector.load %arg9[%c5_1101, %c6_1102, %c1_1103] : memref<11x11x2xf32, #tpu.memory_space<vmem>>, vector<5x5x1xf32>
    %1094 = vector.broadcast %1092 : f32 to vector<5x5x1xf32>
    %1095 = arith.mulf %1094, %1093 : vector<5x5x1xf32>
    %1096 = arith.addf %1086, %1095 : vector<5x5x1xf32>
    %c42 = arith.constant 42 : index
    %1097 = memref.load %arg6[%c42] : memref<98xf32, #tpu.memory_space<smem>>
    %c6_1104 = arith.constant 6 : index
    %c0_1105 = arith.constant 0 : index
    %c0_1106 = arith.constant 0 : index
    %1098 = vector.load %arg9[%c6_1104, %c0_1105, %c0_1106] : memref<11x11x2xf32, #tpu.memory_space<vmem>>, vector<5x5x1xf32>
    %1099 = vector.broadcast %1097 : f32 to vector<5x5x1xf32>
    %1100 = arith.mulf %1099, %1098 : vector<5x5x1xf32>
    %1101 = arith.addf %1091, %1100 : vector<5x5x1xf32>
    %c91 = arith.constant 91 : index
    %1102 = memref.load %arg6[%c91] : memref<98xf32, #tpu.memory_space<smem>>
    %c6_1107 = arith.constant 6 : index
    %c0_1108 = arith.constant 0 : index
    %c1_1109 = arith.constant 1 : index
    %1103 = vector.load %arg9[%c6_1107, %c0_1108, %c1_1109] : memref<11x11x2xf32, #tpu.memory_space<vmem>>, vector<5x5x1xf32>
    %1104 = vector.broadcast %1102 : f32 to vector<5x5x1xf32>
    %1105 = arith.mulf %1104, %1103 : vector<5x5x1xf32>
    %1106 = arith.addf %1096, %1105 : vector<5x5x1xf32>
    %c43 = arith.constant 43 : index
    %1107 = memref.load %arg6[%c43] : memref<98xf32, #tpu.memory_space<smem>>
    %c6_1110 = arith.constant 6 : index
    %c1_1111 = arith.constant 1 : index
    %c0_1112 = arith.constant 0 : index
    %1108 = vector.load %arg9[%c6_1110, %c1_1111, %c0_1112] : memref<11x11x2xf32, #tpu.memory_space<vmem>>, vector<5x5x1xf32>
    %1109 = vector.broadcast %1107 : f32 to vector<5x5x1xf32>
    %1110 = arith.mulf %1109, %1108 : vector<5x5x1xf32>
    %1111 = arith.addf %1101, %1110 : vector<5x5x1xf32>
    %c92 = arith.constant 92 : index
    %1112 = memref.load %arg6[%c92] : memref<98xf32, #tpu.memory_space<smem>>
    %c6_1113 = arith.constant 6 : index
    %c1_1114 = arith.constant 1 : index
    %c1_1115 = arith.constant 1 : index
    %1113 = vector.load %arg9[%c6_1113, %c1_1114, %c1_1115] : memref<11x11x2xf32, #tpu.memory_space<vmem>>, vector<5x5x1xf32>
    %1114 = vector.broadcast %1112 : f32 to vector<5x5x1xf32>
    %1115 = arith.mulf %1114, %1113 : vector<5x5x1xf32>
    %1116 = arith.addf %1106, %1115 : vector<5x5x1xf32>
    %c44 = arith.constant 44 : index
    %1117 = memref.load %arg6[%c44] : memref<98xf32, #tpu.memory_space<smem>>
    %c6_1116 = arith.constant 6 : index
    %c2_1117 = arith.constant 2 : index
    %c0_1118 = arith.constant 0 : index
    %1118 = vector.load %arg9[%c6_1116, %c2_1117, %c0_1118] : memref<11x11x2xf32, #tpu.memory_space<vmem>>, vector<5x5x1xf32>
    %1119 = vector.broadcast %1117 : f32 to vector<5x5x1xf32>
    %1120 = arith.mulf %1119, %1118 : vector<5x5x1xf32>
    %1121 = arith.addf %1111, %1120 : vector<5x5x1xf32>
    %c93 = arith.constant 93 : index
    %1122 = memref.load %arg6[%c93] : memref<98xf32, #tpu.memory_space<smem>>
    %c6_1119 = arith.constant 6 : index
    %c2_1120 = arith.constant 2 : index
    %c1_1121 = arith.constant 1 : index
    %1123 = vector.load %arg9[%c6_1119, %c2_1120, %c1_1121] : memref<11x11x2xf32, #tpu.memory_space<vmem>>, vector<5x5x1xf32>
    %1124 = vector.broadcast %1122 : f32 to vector<5x5x1xf32>
    %1125 = arith.mulf %1124, %1123 : vector<5x5x1xf32>
    %1126 = arith.addf %1116, %1125 : vector<5x5x1xf32>
    %c45 = arith.constant 45 : index
    %1127 = memref.load %arg6[%c45] : memref<98xf32, #tpu.memory_space<smem>>
    %c6_1122 = arith.constant 6 : index
    %c3_1123 = arith.constant 3 : index
    %c0_1124 = arith.constant 0 : index
    %1128 = vector.load %arg9[%c6_1122, %c3_1123, %c0_1124] : memref<11x11x2xf32, #tpu.memory_space<vmem>>, vector<5x5x1xf32>
    %1129 = vector.broadcast %1127 : f32 to vector<5x5x1xf32>
    %1130 = arith.mulf %1129, %1128 : vector<5x5x1xf32>
    %1131 = arith.addf %1121, %1130 : vector<5x5x1xf32>
    %c94 = arith.constant 94 : index
    %1132 = memref.load %arg6[%c94] : memref<98xf32, #tpu.memory_space<smem>>
    %c6_1125 = arith.constant 6 : index
    %c3_1126 = arith.constant 3 : index
    %c1_1127 = arith.constant 1 : index
    %1133 = vector.load %arg9[%c6_1125, %c3_1126, %c1_1127] : memref<11x11x2xf32, #tpu.memory_space<vmem>>, vector<5x5x1xf32>
    %1134 = vector.broadcast %1132 : f32 to vector<5x5x1xf32>
    %1135 = arith.mulf %1134, %1133 : vector<5x5x1xf32>
    %1136 = arith.addf %1126, %1135 : vector<5x5x1xf32>
    %c46 = arith.constant 46 : index
    %1137 = memref.load %arg6[%c46] : memref<98xf32, #tpu.memory_space<smem>>
    %c6_1128 = arith.constant 6 : index
    %c4_1129 = arith.constant 4 : index
    %c0_1130 = arith.constant 0 : index
    %1138 = vector.load %arg9[%c6_1128, %c4_1129, %c0_1130] : memref<11x11x2xf32, #tpu.memory_space<vmem>>, vector<5x5x1xf32>
    %1139 = vector.broadcast %1137 : f32 to vector<5x5x1xf32>
    %1140 = arith.mulf %1139, %1138 : vector<5x5x1xf32>
    %1141 = arith.addf %1131, %1140 : vector<5x5x1xf32>
    %c95 = arith.constant 95 : index
    %1142 = memref.load %arg6[%c95] : memref<98xf32, #tpu.memory_space<smem>>
    %c6_1131 = arith.constant 6 : index
    %c4_1132 = arith.constant 4 : index
    %c1_1133 = arith.constant 1 : index
    %1143 = vector.load %arg9[%c6_1131, %c4_1132, %c1_1133] : memref<11x11x2xf32, #tpu.memory_space<vmem>>, vector<5x5x1xf32>
    %1144 = vector.broadcast %1142 : f32 to vector<5x5x1xf32>
    %1145 = arith.mulf %1144, %1143 : vector<5x5x1xf32>
    %1146 = arith.addf %1136, %1145 : vector<5x5x1xf32>
    %c47 = arith.constant 47 : index
    %1147 = memref.load %arg6[%c47] : memref<98xf32, #tpu.memory_space<smem>>
    %c6_1134 = arith.constant 6 : index
    %c5_1135 = arith.constant 5 : index
    %c0_1136 = arith.constant 0 : index
    %1148 = vector.load %arg9[%c6_1134, %c5_1135, %c0_1136] : memref<11x11x2xf32, #tpu.memory_space<vmem>>, vector<5x5x1xf32>
    %1149 = vector.broadcast %1147 : f32 to vector<5x5x1xf32>
    %1150 = arith.mulf %1149, %1148 : vector<5x5x1xf32>
    %1151 = arith.addf %1141, %1150 : vector<5x5x1xf32>
    %c96_1137 = arith.constant 96 : index
    %1152 = memref.load %arg6[%c96_1137] : memref<98xf32, #tpu.memory_space<smem>>
    %c6_1138 = arith.constant 6 : index
    %c5_1139 = arith.constant 5 : index
    %c1_1140 = arith.constant 1 : index
    %1153 = vector.load %arg9[%c6_1138, %c5_1139, %c1_1140] : memref<11x11x2xf32, #tpu.memory_space<vmem>>, vector<5x5x1xf32>
    %1154 = vector.broadcast %1152 : f32 to vector<5x5x1xf32>
    %1155 = arith.mulf %1154, %1153 : vector<5x5x1xf32>
    %1156 = arith.addf %1146, %1155 : vector<5x5x1xf32>
    %c48 = arith.constant 48 : index
    %1157 = memref.load %arg6[%c48] : memref<98xf32, #tpu.memory_space<smem>>
    %c6_1141 = arith.constant 6 : index
    %c6_1142 = arith.constant 6 : index
    %c0_1143 = arith.constant 0 : index
    %1158 = vector.load %arg9[%c6_1141, %c6_1142, %c0_1143] : memref<11x11x2xf32, #tpu.memory_space<vmem>>, vector<5x5x1xf32>
    %1159 = vector.broadcast %1157 : f32 to vector<5x5x1xf32>
    %1160 = arith.mulf %1159, %1158 : vector<5x5x1xf32>
    %1161 = arith.addf %1151, %1160 : vector<5x5x1xf32>
    %c97 = arith.constant 97 : index
    %1162 = memref.load %arg6[%c97] : memref<98xf32, #tpu.memory_space<smem>>
    %c6_1144 = arith.constant 6 : index
    %c6_1145 = arith.constant 6 : index
    %c1_1146 = arith.constant 1 : index
    %1163 = vector.load %arg9[%c6_1144, %c6_1145, %c1_1146] : memref<11x11x2xf32, #tpu.memory_space<vmem>>, vector<5x5x1xf32>
    %1164 = vector.broadcast %1162 : f32 to vector<5x5x1xf32>
    %1165 = arith.mulf %1164, %1163 : vector<5x5x1xf32>
    %1166 = arith.addf %1156, %1165 : vector<5x5x1xf32>
    %1167 = arith.addf %1161, %1166 : vector<5x5x1xf32>
    %1168 = arith.negf %1167 : vector<5x5x1xf32>
    %1169 = math.exp %1168 : vector<5x5x1xf32>
    %cst_1147 = arith.constant 1.000000e+00 : f32
    %1170 = vector.broadcast %cst_1147 : f32 to vector<5x5x1xf32>
    %1171 = arith.addf %1170, %1169 : vector<5x5x1xf32>
    %1172 = arith.divf %1170, %1171 : vector<5x5x1xf32>
    %c0_1148 = arith.constant 0 : index
    %c0_1149 = arith.constant 0 : index
    %c0_1150 = arith.constant 0 : index
    %c0_1151 = arith.constant 0 : index
    %1173 = vector.load %arg7[%c0_1148, %c0_1149, %c0_1150, %c0_1151] : memref<1x5x5x1xf32, #tpu.memory_space<vmem>>, vector<1x5x5x1xf32>
    %1174 = vector.shape_cast %1173 : vector<1x5x5x1xf32> to vector<5x5x1xf32>
    %1175 = vector.shape_cast %1172 : vector<5x5x1xf32> to vector<1x5x5x1xf32>
    tpu.vector_store %arg7[%c0_1148, %c0_1149, %c0_1150, %c0_1151], %1175 {strides = array<i32>} : memref<1x5x5x1xf32, #tpu.memory_space<vmem>>, vector<1x5x5x1xf32>,
    return
  }
  func.func @transform_0(%arg0: i32) -> (i32, i32, i32, i32, i32) {
    %c0_i32 = arith.constant 0 : i32
    %c0_i32_0 = arith.constant 0 : i32
    %c0_i32_1 = arith.constant 0 : i32
    %c0_i32_2 = arith.constant 0 : i32
    %c0_i32_3 = arith.constant 0 : i32
    return %arg0, %c0_i32, %c0_i32_0, %c0_i32_1, %c0_i32_2 : i32, i32, i32, i32, i32
  }
  func.func @transform_1(%arg0: i32) -> (i32, i32) {
    %c0_i32 = arith.constant 0 : i32
    %c0_i32_0 = arith.constant 0 : i32
    %c0_i32_1 = arith.constant 0 : i32
    return %c0_i32, %c0_i32_0 : i32, i32
  }
  func.func @transform_2(%arg0: i32) -> (i32, i32) {
    %c0_i32 = arith.constant 0 : i32
    %c0_i32_0 = arith.constant 0 : i32
    %c0_i32_1 = arith.constant 0 : i32
    return %c0_i32, %c0_i32_0 : i32, i32
  }
  func.func @transform_3(%arg0: i32) -> (i32, i32) {
    %c0_i32 = arith.constant 0 : i32
    %c0_i32_0 = arith.constant 0 : i32
    %c0_i32_1 = arith.constant 0 : i32
    return %c0_i32, %c0_i32_0 : i32, i32
  }
  func.func @transform_4(%arg0: i32) -> (i32, i32) {
    %c0_i32 = arith.constant 0 : i32
    %c0_i32_0 = arith.constant 0 : i32
    %c0_i32_1 = arith.constant 0 : i32
    return %c0_i32, %c0_i32_0 : i32, i32
  }
  func.func @transform_5(%arg0: i32) -> i32 {
    %c0_i32 = arith.constant 0 : i32
    %c0_i32_0 = arith.constant 0 : i32
    return %c0_i32 : i32
  }
  func.func @transform_6(%arg0: i32) -> (i32, i32, i32, i32) {
    %c0_i32 = arith.constant 0 : i32
    %c0_i32_0 = arith.constant 0 : i32
    %c0_i32_1 = arith.constant 0 : i32
    %c0_i32_2 = arith.constant 0 : i32
    return %arg0, %c0_i32, %c0_i32_0, %c0_i32_1 : i32, i32, i32, i32
  }
}

</mosaic_0001>

<bundles_post_ra>
// kernel: srm_pixel_attention.1
= control target key start
LH: loop header
LB: loop body
LE: loop exit
PB: predicated region body
PF: predicated region fallthrough
CT: control target
= control target key end

     0   :  { %11 = vsyncpa [#allocation5], 0  ;;  %s12405_s21 = smov 0   ;;  %s15486_s0 = inlined_call_operand.vmem [shape: f32[2,4,8,8,4], index: 0, kind: input, shape index: {}]   ;;  %s15487_s1 = inlined_call_operand.vmem [shape: f32[36,32], index: 1, kind: input, shape index: {}]   ;;  %s15488_s2 = inlined_call_operand.vmem [shape: f32[1,32], index: 2, kind: input, shape index: {}]   ;;  %s15489_s3 = inlined_call_operand.vmem [shape: f32[288,64], index: 3, kind: input, shape index: {}]   ;;  %s15490_s4 = inlined_call_operand.vmem [shape: f32[1,64], index: 4, kind: input, shape index: {}]   ;;  %s15491_s5 = inlined_call_operand.vmem [shape: f32[98], index: 5, kind: input, shape index: {}]   ;;  %s15492_s6 = inlined_call_operand.vmem [shape: f32[2,5,5,1], index: 6, kind: output, shape index: {}]  }
   0x1 LB: > { %s12411_s22 = sadd.s32 4294967295, %s12363_s21   ;;  %p10489_p0 = scmp.ge.s32.totalorder %s12363_s21, 1  ;;  %s12363_s21 = sphi %s12405_s21, %s17_s21  }
   0x2   : > { %p179_p1 = scmp.lt.s32.totalorder %s12363_s21, 3  ;;  %s204_s25 = sshll.u32 %s15491_s5, 4  ;;  %s205_s25 = int_to_ptr.vmem [resolvable:$true] %s204_s25 }
   0x3   : > { %p12276_p3 = scmp.eq.s32.totalorder %s12411_s22, 0  ;;  %s12338_s27 = scalar_lea.vmem %s205_s25, 16 }
   0x4   : > { %p12418_p2 = pnand %p10489_p0, %p179_p1  ;;  %p12339_p6 = scmp.ne.s32.totalorder %s205_s25, %s12338_s27 }
   0x5   : > { %p12346_p10 = scmp.lt.s32.totalorder %s205_s25, %s205_s25  ;;  %p12347_p11 = scmp.lt.s32.totalorder %s12338_s27, %s12338_s27 }
   0x6   : > { %p12272_p4 = pneg %p12418_p2 }
   0x7   : > { %p12348_p12 = por %p12347_p11, %p12346_p10 }
   0x8   : > { %p12273_p5 = pnand %p12276_p3, %p12272_p4 }
   0xa   : > { %p12340_p7 = pneg %p12273_p5 }
   0xc   : > { %p12341_p8 = pnand %p12340_p7, %p12339_p6 }
   0xe   : > { %p12342_p9 = pneg %p12341_p8 }
  0x10   : > { %p12349_p13 = pnand %p12348_p12, %p12342_p9 }
  0x12   : > { %12352 = shalt.err (!%p12349_p13)
}
  0x13   : > { %s12365_s28 = smov [#allocation4]   ;;  %225 = sbr.rel (%p12418_p2) target bundleno = 1095 (0x447), region = 44 }
  0x14   : > { %12275 = dma.vmem_to_smem (!%p12273_p5), %s205_s25, 16, %s12365_s28, [#allocation5]  }
  0x1a   : > { %12358 = dma.done.wait (%p12276_p3), [#allocation5], 16  }
  0x1b   : > { %12360 = vsyncadd (%p12276_p3), [#allocation5], 4294967280 }
  0x1c   : > { %231 = sfence }
  0x1d   : > { %v272_v0 = vld [vmem:[%s15487_s1 + $0x4] sm:$0xf]  ;;  %vm277_vm0 = vcmask 1043456   ;;  %p256_p0 = scmp.lt.s32.totalorder %s12411_s22, 1  ;;  %v12366_v1 = vmov 0.0   ;;  %vm12367_vm1 = vmmov 0  }
  0x1e   : > { %11187 = vmatprep.subr.mxu0 %v12366_v1  ;;  %11192 = vmatprep.subr.mxu1 %v12366_v1  ;;  %v269_v2 = vld [vmem:[%s15487_s1] sm:$0xf]  ;;  %vm273_vm2 = vcmask 31744   ;;  %v428_v3 = vld [vmem:[%s15487_s1 + $0x8] sm:$0xf]  ;;  %vm992_vm3 = vcmask 260096  }
  0x1f   : > { %11188 = vmatpush3.msk.msra.mxu0 %vm277_vm0, %v272_v0  ;;  %11189 = vmatprep.mubr.msk.f32.mxu0 %vm12367_vm1, %v12366_v1  ;;  %s16262_s22 = smov (!%p256_p0, %s12411_s22), 1  ;;  %v508_v4 = vld [vmem:[%s15487_s1 + $0xc] sm:$0xf]  ;;  %v588_v9 = vld [vmem:[%s15487_s1 + $0x10] sm:$0xf]  ;;  %vm5330_vm4 = vcmask 261120  }
  0x20   : > { %11193 = vmatpush3.msk.msra.mxu1 %vm277_vm0, %v269_v2  ;;  %11194 = vmatprep.mubr.msk.f32.mxu1 %vm12367_vm1, %v12366_v1  ;;  %s10835_s9 = sshll.u32 %s16262_s22, 8  ;;  %v667_v10 = vld [vmem:[%s15487_s1 + $0x14] sm:$0xf]  ;;  %v747_v13 = vld [vmem:[%s15487_s1 + $0x18] sm:$0xf]  ;;  %vm5296_vm5 = vcmask 15360  }
  0x21   : > { %11197 = vmatprep.subr.mxu0 %v12366_v1  ;;  %11202 = vmatprep.subr.mxu1 %v12366_v1  ;;  %s12457_s12 = scalar_lea.vmem %s15486_s0, %s10835_s9  ;;  %v827_v14 = vld [vmem:[%s15487_s1 + $0x1c] sm:$0xf]  ;;  %v906_v17 = vld [vmem:[%s15487_s1 + $0x20] sm:$0xf]  ;;  %v997_v18 = vld [vmem:[%s15487_s1 + $0x4] sm:$0xf] }
  0x22   : > { %v10497_v5 = vld [vmem:[%s12457_s12 + $0x40] sm:$0x7f]  ;;  %v10513_v15 = vld [vmem:[%s12457_s12 + $0x8] sm:$0x7f]  ;;  %v1311_v26 = vld [vmem:[%s15487_s1 + $0x10] sm:$0xf] }
  0x23   : > { %v268_v6 = vld [vmem:[%s12457_s12] sm:$0x7f]  ;;  %11190 = vmatmul.mubr.msk.f32.vlgmr.msra.gmra.mrb[0].mxu0 %vm273_vm2, %v10497_v5  ;;  %v10516_v16 = vld [vmem:[%s12457_s12 + $0x48] sm:$0x7f]  ;;  %v1390_v29 = vld [vmem:[%s15487_s1 + $0x14] sm:$0xf] }
  0x24   : > { %11195 = vmatmul.mubr.msk.f32.vlgmr.msra.gmra.mrb[0].mxu1 %vm273_vm2, %v268_v6  ;;  %11198 = vmatpush3.msk.msra.mxu0 %vm277_vm0, %v428_v3  ;;  %v427_v7 = vld [vmem:[%s12457_s12 + $0x1] sm:$0x7f]  ;;  %v10519_v19 = vld [vmem:[%s12457_s12 + $0x9] sm:$0x7f]  ;;  %v1470_v30 = vld [vmem:[%s15487_s1 + $0x18] sm:$0xf] }
  0x25   : > { %11203 = vmatpush3.msk.msra.mxu1 %vm277_vm0, %v508_v4  ;;  %v10504_v8 = vld [vmem:[%s12457_s12 + $0x80] sm:$0x7f]  ;;  %11199 = vmatprep.mubr.msk.f32.mxu0 %vm12367_vm1, %v12366_v1  ;;  %v10524_v20 = vld [vmem:[%s12457_s12 + $0x48] sm:$0x7f]  ;;  %v10541_v32 = vld [vmem:[%s12457_s12 + $0x10] sm:$0x7f] }
  0x26   : > { %11204 = vmatprep.mubr.msk.f32.mxu1 %vm12367_vm1, %v12366_v1  ;;  %11207 = vmatprep.subr.mxu0 %v12366_v1  ;;  %v10507_v11 = vld [vmem:[%s12457_s12 + $0xc0] sm:$0x7f]  ;;  %v1151_v22 = vld [vmem:[%s15487_s1 + $0x8] sm:$0xf]  ;;  %v1231_v25 = vld [vmem:[%s15487_s1 + $0xc] sm:$0xf] }
  0x27   : > { %11212 = vmatprep.subr.mxu1 %v12366_v1  ;;  %11200 = vmatmul.mubr.msk.f32.vlgmr.msra.gmra.mrb[2].mxu0 %vm273_vm2, %v427_v7  ;;  %v10510_v12 = vld [vmem:[%s12457_s12 + $0x81] sm:$0x7f]  ;;  %v10523_v23 = vld [vmem:[%s12457_s12 + $0x8] sm:$0x7f]  ;;  %v1550_v33 = vld [vmem:[%s15487_s1 + $0x1c] sm:$0xf] }
  0x28   : > { %11205 = vmatmul.mubr.msk.f32.vlgmr.msra.gmra.mrb[2].mxu1 %vm273_vm2, %v10504_v8  ;;  %11208 = vmatpush3.msk.msra.mxu0 %vm277_vm0, %v588_v9  ;;  %v995_v21 = vld [vmem:[%s15487_s1] sm:$0xf]  ;;  %v10529_v24 = vld [vmem:[%s12457_s12 + $0x9] sm:$0x7f]  ;;  %v10544_v35 = vld [vmem:[%s12457_s12 + $0x50] sm:$0x7f] }
  0x29   : > { %11213 = vmatpush3.msk.msra.mxu1 %vm277_vm0, %v667_v10  ;;  %11209 = vmatprep.mubr.msk.f32.mxu0 %vm12367_vm1, %v12366_v1  ;;  %v10532_v27 = vld [vmem:[%s12457_s12 + $0x88] sm:$0x7f]  ;;  %v1629_v34 = vld [vmem:[%s15487_s1 + $0x20] sm:$0xf]  ;;  %v10547_v36 = vld [vmem:[%s12457_s12 + $0x11] sm:$0x7f] }
  0x2a   : > { %11214 = vmatprep.mubr.msk.f32.mxu1 %vm12367_vm1, %v12366_v1  ;;  %11217 = vmatprep.subr.mxu0 %v12366_v1  ;;  %v10535_v28 = vld [vmem:[%s12457_s12 + $0xc8] sm:$0x7f]  ;;  %v1714_v37 = vld [vmem:[%s15487_s1 + $0x4] sm:$0xf]  ;;  %v1712_v38 = vld [vmem:[%s15487_s1] sm:$0xf] }
  0x2b   : > { %11222 = vmatprep.subr.mxu1 %v12366_v1  ;;  %11210 = vmatmul.mubr.msk.f32.vlgmr.msra.gmra.mrb[4].mxu0 %vm273_vm2, %v10507_v11  ;;  %v10538_v31 = vld [vmem:[%s12457_s12 + $0x89] sm:$0x7f]  ;;  %v10551_v39 = vld [vmem:[%s12457_s12 + $0x50] sm:$0x7f]  ;;  %v2187_v49 = vld [vmem:[%s15487_s1 + $0x18] sm:$0xf] }
  0x2c   : > { %11215 = vmatmul.mubr.msk.f32.vlgmr.msra.gmra.mrb[4].mxu1 %vm273_vm2, %v10510_v12  ;;  %11218 = vmatpush3.msk.msra.mxu0 %vm277_vm0, %v747_v13  ;;  %v10550_v40 = vld [vmem:[%s12457_s12 + $0x10] sm:$0x7f]  ;;  %v1868_v41 = vld [vmem:[%s15487_s1 + $0x8] sm:$0xf]  ;;  %v1948_v42 = vld [vmem:[%s15487_s1 + $0xc] sm:$0xf] }
  0x2d   : > { %11223 = vmatpush3.msk.msra.mxu1 %vm277_vm0, %v827_v14  ;;  %11219 = vmatprep.mubr.msk.f32.mxu0 %vm12367_vm1, %v12366_v1  ;;  %v10556_v43 = vld [vmem:[%s12457_s12 + $0x11] sm:$0x7f]  ;;  %v2267_v50 = vld [vmem:[%s15487_s1 + $0x1c] sm:$0xf]  ;;  %v2346_v53 = vld [vmem:[%s15487_s1 + $0x20] sm:$0xf] }
  0x2e   : > { %11224 = vmatprep.mubr.msk.f32.mxu1 %vm12367_vm1, %v12366_v1  ;;  %11227 = vmatprep.subr.mxu0 %v12366_v1  ;;  %v10559_v44 = vld [vmem:[%s12457_s12 + $0x90] sm:$0x7f]  ;;  %v10568_v51 = vld [vmem:[%s12457_s12 + $0x18] sm:$0x7f]  ;;  %v2431_v54 = vld [vmem:[%s15487_s1 + $0x4] sm:$0xf] }
  0x2f   : > { %11232 = vmatprep.subr.mxu1 %v12366_v1  ;;  %11220 = vmatmul.mubr.msk.f32.vlgmr.msra.gmra.mrb[6].mxu0 %vm273_vm2, %v10513_v15  ;;  %v2028_v45 = vld [vmem:[%s15487_s1 + $0x10] sm:$0xf]  ;;  %v2107_v46 = vld [vmem:[%s15487_s1 + $0x14] sm:$0xf]  ;;  %v10571_v52 = vld [vmem:[%s12457_s12 + $0x58] sm:$0x7f] }
  0x30   : > { %11225 = vmatmul.mubr.msk.f32.vlgmr.msra.gmra.mrb[6].mxu1 %vm273_vm2, %v10516_v16  ;;  %11228 = vmatpush3.msk.msra.mxu0 %vm277_vm0, %v906_v17  ;;  %v10562_v47 = vld [vmem:[%s12457_s12 + $0xd0] sm:$0x7f]  ;;  %v10574_v55 = vld [vmem:[%s12457_s12 + $0x19] sm:$0x7f]  ;;  %v2429_v57 = vld [vmem:[%s15487_s1] sm:$0xf] }
  0x31   : > { %11233 = vmatpush3.msk.msra.mxu1 %vm277_vm0, %v997_v18  ;;  %11229 = vmatprep.mubr.msk.f32.mxu0 %vm12367_vm1, %v12366_v1  ;;  %v10565_v48 = vld [vmem:[%s12457_s12 + $0x91] sm:$0x7f]  ;;  %v10578_v56 = vld [vmem:[%s12457_s12 + $0x58] sm:$0x7f]  ;;  %v2585_v58 = vld [vmem:[%s15487_s1 + $0x8] sm:$0xf] }
  0x32   : > { %11234 = vmatprep.mubr.msk.f32.mxu1 %vm12367_vm1, %v12366_v1  ;;  %11237 = vmatprep.subr.mxu0 %v12366_v1  ;;  %v10577_v59 = vld [vmem:[%s12457_s12 + $0x18] sm:$0x7f]  ;;  %v2665_v61 = vld [vmem:[%s15487_s1 + $0xc] sm:$0xf]  ;;  %v2745_v62 = vld [vmem:[%s15487_s1 + $0x10] sm:$0xf] }
  0x33   : > { %11242 = vmatprep.subr.mxu1 %v12366_v1  ;;  %11230 = vmatmul.mubr.msk.f32.vlgmr.msra.gmra.mrb[8].mxu0 %vm273_vm2, %v10519_v19  ;;  %v10583_v60 = vld [vmem:[%s12457_s12 + $0x19] sm:$0x7f]  ;;  %v2824_v2 = vld [vmem:[%s15487_s1 + $0x14] sm:$0xf]  ;;  %v10595_v5 = vld [vmem:[%s12457_s12 + $0x20] sm:$0x7f] }
  0x34   : > { %11235 = vmatmul.mubr.msk.f32.vlgmr.msra.gmra.mrb[8].mxu1 %vm273_vm2, %v10524_v20  ;;  %11238 = vmatpush3.msk.msra.mxu0 %vm277_vm0, %v995_v21  ;;  %v10586_v63 = vld [vmem:[%s12457_s12 + $0x98] sm:$0x7f]  ;;  %v3063_v7 = vld [vmem:[%s15487_s1 + $0x20] sm:$0xf]  ;;  %v3148_v10 = vld [vmem:[%s15487_s1 + $0x4] sm:$0xf] }
  0x35   : > { %11243 = vmatpush3.msk.msra.mxu1 %vm277_vm0, %v1151_v22  ;;  %11239 = vmatprep.mubr.msk.f32.mxu0 %vm12367_vm1, %v12366_v1  ;;  %v10589_v0 = vld [vmem:[%s12457_s12 + $0xd8] sm:$0x7f]  ;;  %v10598_v8 = vld [vmem:[%s12457_s12 + $0x60] sm:$0x7f]  ;;  %v3302_v14 = vld [vmem:[%s15487_s1 + $0x8] sm:$0xf] }
  0x36   : > { %11244 = vmatprep.mubr.msk.f32.mxu1 %vm12367_vm1, %v12366_v1  ;;  %11247 = vmatprep.subr.mxu0 %v12366_v1  ;;  %v2904_v3 = vld [vmem:[%s15487_s1 + $0x18] sm:$0xf]  ;;  %v2984_v6 = vld [vmem:[%s15487_s1 + $0x1c] sm:$0xf]  ;;  %v10601_v9 = vld [vmem:[%s12457_s12 + $0x21] sm:$0x7f] }
  0x37   : > { %11252 = vmatprep.subr.mxu1 %v12366_v1  ;;  %11240 = vmatmul.mubr.msk.f32.vlgmr.msra.gmra.mrb[10].mxu0 %vm273_vm2, %v10523_v23  ;;  %v10592_v4 = vld [vmem:[%s12457_s12 + $0x99] sm:$0x7f]  ;;  %v3146_v11 = vld [vmem:[%s15487_s1] sm:$0xf]  ;;  %v3382_v15 = vld [vmem:[%s15487_s1 + $0xc] sm:$0xf] }
  0x38   : > { %11245 = vmatmul.mubr.msk.f32.vlgmr.msra.gmra.mrb[10].mxu1 %vm273_vm2, %v10529_v24  ;;  %11248 = vmatpush3.msk.msra.mxu0 %vm277_vm0, %v1231_v25  ;;  %v10605_v12 = vld [vmem:[%s12457_s12 + $0x60] sm:$0x7f]  ;;  %v3462_v18 = vld [vmem:[%s15487_s1 + $0x10] sm:$0xf]  ;;  %v3541_v19 = vld [vmem:[%s15487_s1 + $0x14] sm:$0xf] }
  0x39   : > { %11253 = vmatpush3.msk.msra.mxu1 %vm277_vm0, %v1311_v26  ;;  %11249 = vmatprep.mubr.msk.f32.mxu0 %vm12367_vm1, %v12366_v1  ;;  %v10604_v13 = vld [vmem:[%s12457_s12 + $0x20] sm:$0x7f]  ;;  %v3621_v22 = vld [vmem:[%s15487_s1 + $0x18] sm:$0xf]  ;;  %v3701_v23 = vld [vmem:[%s15487_s1 + $0x1c] sm:$0xf] }
  0x3a   : > { %11254 = vmatprep.mubr.msk.f32.mxu1 %vm12367_vm1, %v12366_v1  ;;  %11257 = vmatprep.subr.mxu0 %v12366_v1  ;;  %v10610_v16 = vld [vmem:[%s12457_s12 + $0x21] sm:$0x7f]  ;;  %v10622_v24 = vld [vmem:[%s12457_s12 + $0x28] sm:$0x7f]  ;;  %5297 = vst.msk [vmem:[#allocation3] sm:$0xff] %vm5296_vm5, %v12366_v1  ;;  %5300 = vst.msk [vmem:[#allocation3 + $0x10] sm:$0xff] %vm5296_vm5, %v12366_v1 }
  0x3b   : > { %11262 = vmatprep.subr.mxu1 %v12366_v1  ;;  %11250 = vmatmul.mubr.msk.f32.vlgmr.msra.gmra.mrb[12].mxu0 %vm273_vm2, %v10532_v27  ;;  %v10613_v17 = vld [vmem:[%s12457_s12 + $0xa0] sm:$0x7f]  ;;  %v10625_v25 = vld [vmem:[%s12457_s12 + $0x68] sm:$0x7f]  ;;  %5302 = vst.msk [vmem:[#allocation3 + $0x20] sm:$0xff] %vm5296_vm5, %v12366_v1  ;;  %5304 = vst.msk [vmem:[#allocation3 + $0x30] sm:$0xff] %vm5296_vm5, %v12366_v1 }
  0x3c   : > { %11255 = vmatmul.mubr.msk.f32.vlgmr.msra.gmra.mrb[12].mxu1 %vm273_vm2, %v10535_v28  ;;  %11258 = vmatpush3.msk.msra.mxu0 %vm277_vm0, %v1390_v29  ;;  %v10616_v20 = vld [vmem:[%s12457_s12 + $0xe0] sm:$0x7f]  ;;  %v10628_v28 = vld [vmem:[%s12457_s12 + $0x29] sm:$0x7f]  ;;  %5306 = vst.msk [vmem:[#allocation3 + $0x40] sm:$0xff] %vm5296_vm5, %v12366_v1  ;;  %5308 = vst.msk [vmem:[#allocation3 + $0x50] sm:$0xff] %vm5296_vm5, %v12366_v1 }
  0x3d   : > { %11263 = vmatpush3.msk.msra.mxu1 %vm277_vm0, %v1470_v30  ;;  %11259 = vmatprep.mubr.msk.f32.mxu0 %vm12367_vm1, %v12366_v1  ;;  %v10619_v21 = vld [vmem:[%s12457_s12 + $0xa1] sm:$0x7f]  ;;  %v10632_v29 = vld [vmem:[%s12457_s12 + $0x68] sm:$0x7f]  ;;  %5310 = vst.msk [vmem:[#allocation3 + $0x60] sm:$0xff] %vm5296_vm5, %v12366_v1  ;;  %5312 = vst.msk [vmem:[#allocation3 + $0x70] sm:$0xff] %vm5296_vm5, %v12366_v1 }
  0x3e   : > { %11264 = vmatprep.mubr.msk.f32.mxu1 %vm12367_vm1, %v12366_v1  ;;  %11267 = vmatprep.subr.mxu0 %v12366_v1  ;;  %v3780_v26 = vld [vmem:[%s15487_s1 + $0x20] sm:$0xf]  ;;  %v3865_v27 = vld [vmem:[%s15487_s1 + $0x4] sm:$0xf]  ;;  %5314 = vst.msk [vmem:[#allocation3 + $0x80] sm:$0xff] %vm5296_vm5, %v12366_v1  ;;  %5316 = vst.msk [vmem:[#allocation3 + $0x90] sm:$0xff] %vm5296_vm5, %v12366_v1 }
  0x3f   : > { %11272 = vmatprep.subr.mxu1 %v12366_v1  ;;  %11260 = vmatmul.mubr.msk.f32.vlgmr.msra.gmra.mrb[14].mxu0 %vm273_vm2, %v10538_v31  ;;  %v3863_v30 = vld [vmem:[%s15487_s1] sm:$0xf]  ;;  %v4019_v31 = vld [vmem:[%s15487_s1 + $0x8] sm:$0xf]  ;;  %5318 = vst.msk [vmem:[#allocation3 + $0xa0] sm:$0xff] %vm5296_vm5, %v12366_v1  ;;  %s8936_s25 = sld [smem:[#allocation4]] }
  0x40   : > { %11265 = vmatmul.mubr.msk.f32.vlgmr.msra.gmra.mrb[14].mxu1 %vm273_vm2, %v10541_v32  ;;  %11268 = vmatpush3.msk.msra.mxu0 %vm277_vm0, %v1550_v33  ;;  %v10631_v32 = vld [vmem:[%s12457_s12 + $0x28] sm:$0x7f]  ;;  %s10732_s26 = sld [smem:[#allocation4 + $0x1]]  ;;  %vm5298_vm6 = vcmask 10240   ;;  %s10736_s27 = sld [smem:[#allocation4 + $0x3]]  ;;  %vm6038_vm7 = vcmask 520192  }
  0x41   : > { %11273 = vmatpush3.msk.msra.mxu1 %vm277_vm0, %v1629_v34  ;;  %11269 = vmatprep.mubr.msk.f32.mxu0 %vm12367_vm1, %v12366_v1  ;;  %v10637_v33 = vld [vmem:[%s12457_s12 + $0x29] sm:$0x7f]  ;;  %5299 = vst.msk [vmem:[#allocation3 + $0x8] sm:$0x7] %vm5298_vm6, %v12366_v1  ;;  %5301 = vst.msk [vmem:[#allocation3 + $0x18] sm:$0x7] %vm5298_vm6, %v12366_v1 }
  0x42   : > { %11274 = vmatprep.mubr.msk.f32.mxu1 %vm12367_vm1, %v12366_v1  ;;  %11277 = vmatprep.subr.mxu0 %v12366_v1  ;;  %v4099_v34 = vld [vmem:[%s15487_s1 + $0xc] sm:$0xf]  ;;  %5303 = vst.msk [vmem:[#allocation3 + $0x28] sm:$0x7] %vm5298_vm6, %v12366_v1  ;;  %5305 = vst.msk [vmem:[#allocation3 + $0x38] sm:$0x7] %vm5298_vm6, %v12366_v1 }
  0x43   : > { %11282 = vmatprep.subr.mxu1 %v12366_v1  ;;  %11270 = vmatmul.mubr.msk.f32.vlgmr.msra.gmra.mrb[16].mxu0 %vm273_vm2, %v10544_v35  ;;  %v4179_v35 = vld [vmem:[%s15487_s1 + $0x10] sm:$0xf]  ;;  %5307 = vst.msk [vmem:[#allocation3 + $0x48] sm:$0x7] %vm5298_vm6, %v12366_v1  ;;  %5309 = vst.msk [vmem:[#allocation3 + $0x58] sm:$0x7] %vm5298_vm6, %v12366_v1 }
  0x44   : > { %11275 = vmatmul.mubr.msk.f32.vlgmr.msra.gmra.mrb[16].mxu1 %vm273_vm2, %v10547_v36  ;;  %11278 = vmatpush3.msk.msra.mxu0 %vm277_vm0, %v1714_v37  ;;  %v10640_v36 = vld [vmem:[%s12457_s12 + $0xa8] sm:$0x7f]  ;;  %5311 = vst.msk [vmem:[#allocation3 + $0x68] sm:$0x7] %vm5298_vm6, %v12366_v1  ;;  %5313 = vst.msk [vmem:[#allocation3 + $0x78] sm:$0x7] %vm5298_vm6, %v12366_v1 }
  0x45   : > { %11283 = vmatpush3.msk.msra.mxu1 %vm277_vm0, %v1712_v38  ;;  %11279 = vmatprep.mubr.msk.f32.mxu0 %vm12367_vm1, %v12366_v1  ;;  %v10643_v37 = vld [vmem:[%s12457_s12 + $0xe8] sm:$0x7f]  ;;  %v4258_v38 = vld [vmem:[%s15487_s1 + $0x14] sm:$0xf]  ;;  %5315 = vst.msk [vmem:[#allocation3 + $0x88] sm:$0x7] %vm5298_vm6, %v12366_v1 }
  0x46   : > { %11284 = vmatprep.mubr.msk.f32.mxu1 %vm12367_vm1, %v12366_v1  ;;  %11287 = vmatprep.subr.mxu0 %v12366_v1  ;;  %5317 = vst.msk [vmem:[#allocation3 + $0x98] sm:$0x7] %vm5298_vm6, %v12366_v1  ;;  %5319 = vst.msk [vmem:[#allocation3 + $0xa8] sm:$0x7] %vm5298_vm6, %v12366_v1  ;;  %s10738_s28 = sld [smem:[#allocation4 + $0x4]]  ;;  %s10740_s29 = sld [smem:[#allocation4 + $0x5]] }
  0x47   : > { %11292 = vmatprep.subr.mxu1 %v12366_v1  ;;  %11280 = vmatmul.mubr.msk.f32.vlgmr.msra.gmra.mrb[18].mxu0 %vm273_vm2, %v10551_v39  ;;  %v4338_v39 = vld [vmem:[%s15487_s1 + $0x18] sm:$0xf]  ;;  %s10742_s30 = sld [smem:[#allocation4 + $0x6]]  ;;  %s10744_s9 = sld [smem:[#allocation4 + $0x7]]  ;;  %vm6047_vm8 = vcmask 7168   ;;  %vm6050_vm9 = vcmask 12288  }
  0x48   : > { %11285 = vmatmul.mubr.msk.f32.vlgmr.msra.gmra.mrb[18].mxu1 %vm273_vm2, %v10550_v40  ;;  %11288 = vmatpush3.msk.msra.mxu0 %vm277_vm0, %v1868_v41  ;;  %v10646_v40 = vld [vmem:[%s12457_s12 + $0xa9] sm:$0x7f]  ;;  %v10649_v41 = vld [vmem:[%s12457_s12 + $0x30] sm:$0x7f]  ;;  %s10746_s10 = sld [smem:[#allocation4 + $0x8]]  ;;  %s13648_s11 = sld [smem:[#allocation4 + $0x9]] }
  0x49   : > { %11293 = vmatpush3.msk.msra.mxu1 %vm277_vm0, %v1948_v42  ;;  %11289 = vmatprep.mubr.msk.f32.mxu0 %vm12367_vm1, %v12366_v1  ;;  %v4418_v42 = vld [vmem:[%s15487_s1 + $0x1c] sm:$0xf]  ;;  %s13658_s13 = sld [smem:[#allocation4 + $0xa]]  ;;  %s13710_s14 = sld [smem:[#allocation4 + $0xb]]  ;;  %vm10414_vm10 = vcmask 4096  }
  0x4a   : > { %11297 = vmatprep.subr.mxu0 %v12366_v1  ;;  %11294 = vmatprep.mubr.msk.f32.mxu1 %vm12367_vm1, %v12366_v1  ;;  %s13734_s15 = sld [smem:[#allocation4 + $0xc]]  ;;  %s10756_s16 = sld [smem:[#allocation4 + $0xd]] }
  0x4b   : > { %11302 = vmatprep.subr.mxu1 %v12366_v1  ;;  %11290 = vmatmul.mubr.msk.f32.vlgmr.msra.gmra.mrb[20].mxu0 %vm273_vm2, %v10556_v43  ;;  %v4497_v43 = vld [vmem:[%s15487_s1 + $0x20] sm:$0xf]  ;;  %s13767_s17 = sld [smem:[#allocation4 + $0xe]]  ;;  %s13778_s18 = sld [smem:[#allocation4 + $0xf]] }
  0x4c   : > { %11295 = vmatmul.mubr.msk.f32.vlgmr.msra.gmra.mrb[20].mxu1 %vm273_vm2, %v10559_v44  ;;  %11298 = vmatpush3.msk.msra.mxu0 %vm277_vm0, %v2028_v45  ;;  %v10652_v44 = vld [vmem:[%s12457_s12 + $0x70] sm:$0x7f]  ;;  %s13790_s19 = sld [smem:[#allocation4 + $0x10]]  ;;  %s10764_s20 = sld [smem:[#allocation4 + $0x11]] }
  0x4d   : > { %11303 = vmatpush3.msk.msra.mxu1 %vm277_vm0, %v2107_v46  ;;  %11299 = vmatprep.mubr.msk.f32.mxu0 %vm12367_vm1, %v12366_v1  ;;  %v10655_v45 = vld [vmem:[%s12457_s12 + $0x31] sm:$0x7f]  ;;  %v4582_v46 = vld [vmem:[%s15487_s1 + $0x4] sm:$0xf]  ;;  %s10766_s23 = sld [smem:[#allocation4 + $0x12]]  ;;  %s10768_s24 = sld [smem:[#allocation4 + $0x13]] }
  0x4e   : > { %11307 = vmatprep.subr.mxu0 %v12366_v1  ;;  %11304 = vmatprep.mubr.msk.f32.mxu1 %vm12367_vm1, %v12366_v1  ;;  %s10743_s7 = sld [smem:[#allocation4 + $0x37]]  ;;  %s10745_s8 = sld [smem:[#allocation4 + $0x38]] }
  0x4f   : > { %11312 = vmatprep.subr.mxu1 %v12366_v1  ;;  %11300 = vmatmul.mubr.msk.f32.vlgmr.msra.gmra.mrb[22].mxu0 %vm273_vm2, %v10562_v47  ;;  %v4580_v47 = vld [vmem:[%s15487_s1] sm:$0xf] }
  0x50   : > { %11305 = vmatmul.mubr.msk.f32.vlgmr.msra.gmra.mrb[22].mxu1 %vm273_vm2, %v10565_v48  ;;  %11308 = vmatpush3.msk.msra.mxu0 %vm277_vm0, %v2187_v49  ;;  %v10659_v48 = vld [vmem:[%s12457_s12 + $0x70] sm:$0x7f] }
  0x51   : > { %11313 = vmatpush3.msk.msra.mxu1 %vm277_vm0, %v2267_v50  ;;  %11309 = vmatprep.mubr.msk.f32.mxu0 %vm12367_vm1, %v12366_v1  ;;  %v10658_v49 = vld [vmem:[%s12457_s12 + $0x30] sm:$0x7f]  ;;  %v4736_v50 = vld [vmem:[%s15487_s1 + $0x8] sm:$0xf] }
  0x52   : > { %11317 = vmatprep.subr.mxu0 %v12366_v1  ;;  %11314 = vmatprep.mubr.msk.f32.mxu1 %vm12367_vm1, %v12366_v1 }
  0x53   : > { %11322 = vmatprep.subr.mxu1 %v12366_v1  ;;  %11310 = vmatmul.mubr.msk.f32.vlgmr.msra.gmra.mrb[24].mxu0 %vm273_vm2, %v10568_v51  ;;  %v4816_v51 = vld [vmem:[%s15487_s1 + $0xc] sm:$0xf] }
  0x54   : > { %11315 = vmatmul.mubr.msk.f32.vlgmr.msra.gmra.mrb[24].mxu1 %vm273_vm2, %v10571_v52  ;;  %11318 = vmatpush3.msk.msra.mxu0 %vm277_vm0, %v2346_v53  ;;  %v10664_v52 = vld [vmem:[%s12457_s12 + $0x31] sm:$0x7f] }
  0x55   : > { %11319 = vmatprep.mubr.msk.f32.mxu0 %vm12367_vm1, %v12366_v1  ;;  %11323 = vmatpush3.msk.msra.mxu1 %vm277_vm0, %v2431_v54  ;;  %v10667_v53 = vld [vmem:[%s12457_s12 + $0xb0] sm:$0x7f] }
  0x56   : > { %11324 = vmatprep.mubr.msk.f32.mxu1 %vm12367_vm1, %v12366_v1  ;;  %11327 = vmatprep.subr.mxu0 %v12366_v1  ;;  %v4896_v54 = vld [vmem:[%s15487_s1 + $0x10] sm:$0xf] }
  0x57   : > { %11332 = vmatprep.subr.mxu1 %v12366_v1  ;;  %11320 = vmatmul.mubr.msk.f32.vlgmr.msra.gmra.mrb[26].mxu0 %vm273_vm2, %v10574_v55  ;;  %v4975_v55 = vld [vmem:[%s15487_s1 + $0x14] sm:$0xf] }
  0x58   : > { %11325 = vmatmul.mubr.msk.f32.vlgmr.msra.gmra.mrb[26].mxu1 %vm273_vm2, %v10578_v56  ;;  %11328 = vmatpush3.msk.msra.mxu0 %vm277_vm0, %v2429_v57  ;;  %v10670_v56 = vld [vmem:[%s12457_s12 + $0xf0] sm:$0x7f] }
  0x59   : > { %11329 = vmatprep.mubr.msk.f32.mxu0 %vm12367_vm1, %v12366_v1  ;;  %11333 = vmatpush3.msk.msra.mxu1 %vm277_vm0, %v2585_v58  ;;  %v10673_v57 = vld [vmem:[%s12457_s12 + $0xb1] sm:$0x7f]  ;;  %v5055_v58 = vld [vmem:[%s15487_s1 + $0x18] sm:$0xf] }
  0x5a   : > { %11334 = vmatprep.mubr.msk.f32.mxu1 %vm12367_vm1, %v12366_v1  ;;  %11337 = vmatprep.subr.mxu0 %v12366_v1 }
  0x5b   : > { %11342 = vmatprep.subr.mxu1 %v12366_v1  ;;  %11330 = vmatmul.mubr.msk.f32.vlgmr.msra.gmra.mrb[28].mxu0 %vm273_vm2, %v10577_v59  ;;  %v5135_v59 = vld [vmem:[%s15487_s1 + $0x1c] sm:$0xf] }
  0x5c   : > { %11335 = vmatmul.mubr.msk.f32.vlgmr.msra.gmra.mrb[28].mxu1 %vm273_vm2, %v10583_v60  ;;  %11338 = vmatpush3.msk.msra.mxu0 %vm277_vm0, %v2665_v61  ;;  %v5326_v60 = vld [vmem:[%s15489_s3 + $0x20] sm:$0xff]  ;;  %v5327_v61 = vld [vmem:[%s15489_s3 + $0x28] sm:$0xff] }
  0x5d   : > { %11339 = vmatprep.mubr.msk.f32.mxu0 %vm12367_vm1, %v12366_v1  ;;  %11343 = vmatpush3.msk.msra.mxu1 %vm277_vm0, %v2745_v62  ;;  %v10676_v62 = vld [vmem:[%s12457_s12 + $0x38] sm:$0x7f] }
  0x5e   : > { %11344 = vmatprep.mubr.msk.f32.mxu1 %vm12367_vm1, %v12366_v1  ;;  %11347 = vmatprep.subr.mxu0 %v12366_v1 }
  0x5f   : > { %11352 = vmatprep.subr.mxu1 %v12366_v1  ;;  %11340 = vmatmul.mubr.msk.f32.vlgmr.msra.gmra.mrb[30].mxu0 %vm273_vm2, %v10586_v63  ;;  %v10679_v63 = vld [vmem:[%s12457_s12 + $0x78] sm:$0x7f] }
  0x60   : > { %11345 = vmatmul.mubr.msk.f32.vlgmr.msra.gmra.mrb[30].mxu1 %vm273_vm2, %v10589_v0  ;;  %11348 = vmatpush3.msk.msra.mxu0 %vm277_vm0, %v2824_v2  ;;  %v5214_v0 = vld [vmem:[%s15487_s1 + $0x20] sm:$0xf]  ;;  %v13008_v2 = vpack.c.bf16 %v5327_v61, %v5326_v60 }
  0x61   : > { %11349 = vmatprep.mubr.msk.f32.mxu0 %vm12367_vm1, %v12366_v1  ;;  %11353 = vmatpush3.msk.msra.mxu1 %vm277_vm0, %v2904_v3  ;;  %v5321_v3 = vld [vmem:[%s15489_s3] sm:$0xff] }
  0x62   : > { %11354 = vmatprep.mubr.msk.f32.mxu1 %vm12367_vm1, %v12366_v1  ;;  %11357 = vmatprep.subr.mxu0 %v12366_v1 }
  0x63   : > { %11362 = vmatprep.subr.mxu1 %v12366_v1  ;;  %11350 = vmatmul.mubr.msk.f32.vlgmr.msra.gmra.mrb[32].mxu0 %vm273_vm2, %v10592_v4  ;;  %v5322_v4 = vld [vmem:[%s15489_s3 + $0x8] sm:$0xff] }
  0x64   : > { %11355 = vmatmul.mubr.msk.f32.vlgmr.msra.gmra.mrb[32].mxu1 %vm273_vm2, %v10595_v5  ;;  %11358 = vmatpush3.msk.msra.mxu0 %vm277_vm0, %v2984_v6  ;;  %v12368_v5 = vmov 0.0|0.0   ;;  %v5328_v6 = vld [vmem:[%s15489_s3 + $0x30] sm:$0xff] }
  0x65   : > { %11359 = vmatprep.mubr.msk.f32.mxu0 %vm12367_vm1, %v12366_v1  ;;  %11363 = vmatpush3.msk.msra.mxu1 %vm277_vm0, %v3063_v7  ;;  %v5329_v7 = vld [vmem:[%s15489_s3 + $0x38] sm:$0xff] }
  0x66   : > { %11364 = vmatprep.mubr.msk.f32.mxu1 %vm12367_vm1, %v12366_v1  ;;  %11367 = vmatprep.subr.mxu0 %v12366_v1 }
  0x67   : > { %11372 = vmatprep.subr.mxu1 %v12366_v1  ;;  %11360 = vmatmul.mubr.msk.f32.vlgmr.msra.gmra.mrb[34].mxu0 %vm273_vm2, %v10598_v8  ;;  %v10682_v8 = vld [vmem:[%s12457_s12 + $0x39] sm:$0x7f]  ;;  %s10734_s12 = sld [smem:[#allocation4 + $0x2]] }
  0x68   : > { %11365 = vmatmul.mubr.msk.f32.vlgmr.msra.gmra.mrb[34].mxu1 %vm273_vm2, %v10601_v9  ;;  %11368 = vmatpush3.msk.msra.mxu0 %vm277_vm0, %v3148_v10  ;;  %v13030_v9 = vpack.c.bf16 %v5322_v4, %v5321_v3  ;;  %v13034_v10 = vpack.c.bf16 %v5329_v7, %v5328_v6  ;;  %v5480_v6 = vld [vmem:[%s15489_s3 + $0x50] sm:$0xff]  ;;  %v5481_v7 = vld [vmem:[%s15489_s3 + $0x58] sm:$0xff] }
  0x69   : > { %11369 = vmatprep.mubr.msk.f32.mxu0 %vm12367_vm1, %v12366_v1  ;;  %11373 = vmatpush3.msk.msra.mxu1 %vm277_vm0, %v3146_v11  ;;  %v5323_v11 = vld [vmem:[%s15489_s3 + $0x10] sm:$0xff] }
  0x6a   : > { %11374 = vmatprep.mubr.msk.f32.mxu1 %vm12367_vm1, %v12366_v1  ;;  %11377 = vmatprep.subr.mxu0 %v12366_v1 }
  0x6b   : > { %11382 = vmatprep.subr.mxu1 %v12366_v1  ;;  %11370 = vmatmul.mubr.msk.f32.vlgmr.msra.gmra.mrb[36].mxu0 %vm273_vm2, %v10605_v12  ;;  %v5324_v12 = vld [vmem:[%s15489_s3 + $0x18] sm:$0xff] }
  0x6c   : > { %11375 = vmatmul.mubr.msk.f32.vlgmr.msra.gmra.mrb[36].mxu1 %vm273_vm2, %v10604_v13  ;;  %11378 = vmatpush3.msk.msra.mxu0 %vm277_vm0, %v3302_v14  ;;  %v13047_v13 = vpack.c.bf16 %v5324_v12, %v5323_v11  ;;  %v5559_v11 = vld [vmem:[%s15489_s3 + $0x70] sm:$0xff] }
  0x6d   : > { %11379 = vmatprep.mubr.msk.f32.mxu0 %vm12367_vm1, %v12366_v1  ;;  %11383 = vmatpush3.msk.msra.mxu1 %vm277_vm0, %v3382_v15 }
  0x6e   : > { %11384 = vmatprep.mubr.msk.f32.mxu1 %vm12367_vm1, %v12366_v1  ;;  %11387 = vmatprep.subr.mxu0 %v12366_v1 }
  0x6f   : > { %11392 = vmatprep.subr.mxu1 %v12366_v1  ;;  %11380 = vmatmul.mubr.msk.f32.vlgmr.msra.gmra.mrb[38].mxu0 %vm273_vm2, %v10610_v16 }
  0x70   : > { %11385 = vmatmul.mubr.msk.f32.vlgmr.msra.gmra.mrb[38].mxu1 %vm273_vm2, %v10613_v17  ;;  %11388 = vmatpush3.msk.msra.mxu0 %vm277_vm0, %v3462_v18 }
  0x71   : > { %11389 = vmatprep.mubr.msk.f32.mxu0 %vm12367_vm1, %v12366_v1  ;;  %11393 = vmatpush3.msk.msra.mxu1 %vm277_vm0, %v3541_v19 }
  0x72   : > { %11394 = vmatprep.mubr.msk.f32.mxu1 %vm12367_vm1, %v12366_v1  ;;  %11397 = vmatprep.subr.mxu0 %v12366_v1 }
  0x73   : > { %11402 = vmatprep.subr.mxu1 %v12366_v1  ;;  %11390 = vmatmul.mubr.msk.f32.vlgmr.msra.gmra.mrb[40].mxu0 %vm273_vm2, %v10616_v20 }
  0x74   : > { %11395 = vmatmul.mubr.msk.f32.vlgmr.msra.gmra.mrb[40].mxu1 %vm273_vm2, %v10619_v21  ;;  %11398 = vmatpush3.msk.msra.mxu0 %vm277_vm0, %v3621_v22 }
  0x75   : > { %11399 = vmatprep.mubr.msk.f32.mxu0 %vm12367_vm1, %v12366_v1  ;;  %11403 = vmatpush3.msk.msra.mxu1 %vm277_vm0, %v3701_v23 }
  0x76   : > { %11404 = vmatprep.mubr.msk.f32.mxu1 %vm12367_vm1, %v12366_v1  ;;  %11407 = vmatprep.subr.mxu0 %v12366_v1 }
  0x77   : > { %11412 = vmatprep.subr.mxu1 %v12366_v1  ;;  %11400 = vmatmul.mubr.msk.f32.vlgmr.msra.gmra.mrb[42].mxu0 %vm273_vm2, %v10622_v24 }
  0x78   : > { %11405 = vmatmul.mubr.msk.f32.vlgmr.msra.gmra.mrb[42].mxu1 %vm273_vm2, %v10625_v25  ;;  %11408 = vmatpush3.msk.msra.mxu0 %vm277_vm0, %v3780_v26 }
  0x79   : > { %11409 = vmatprep.mubr.msk.f32.mxu0 %vm12367_vm1, %v12366_v1  ;;  %11413 = vmatpush3.msk.msra.mxu1 %vm277_vm0, %v3865_v27 }
  0x7a   : > { %11414 = vmatprep.mubr.msk.f32.mxu1 %vm12367_vm1, %v12366_v1  ;;  %11417 = vmatprep.subr.mxu0 %v12366_v1 }
  0x7b   : > { %11422 = vmatprep.subr.mxu1 %v12366_v1  ;;  %11410 = vmatmul.mubr.msk.f32.vlgmr.msra.gmra.mrb[44].mxu0 %vm273_vm2, %v10628_v28 }
  0x7c   : > { %11415 = vmatmul.mubr.msk.f32.vlgmr.msra.gmra.mrb[44].mxu1 %vm273_vm2, %v10632_v29  ;;  %11418 = vmatpush3.msk.msra.mxu0 %vm277_vm0, %v3863_v30 }
  0x7d   : > { %11419 = vmatprep.mubr.msk.f32.mxu0 %vm12367_vm1, %v12366_v1  ;;  %11423 = vmatpush3.msk.msra.mxu1 %vm277_vm0, %v4019_v31 }
  0x7e   : > { %11424 = vmatprep.mubr.msk.f32.mxu1 %vm12367_vm1, %v12366_v1  ;;  %11427 = vmatprep.subr.mxu0 %v12366_v1 }
  0x7f   : > { %11432 = vmatprep.subr.mxu1 %v12366_v1  ;;  %11420 = vmatmul.mubr.msk.f32.vlgmr.msra.gmra.mrb[46].mxu0 %vm273_vm2, %v10631_v32 }
  0x80   : > { %11425 = vmatmul.mubr.msk.f32.vlgmr.msra.gmra.mrb[46].mxu1 %vm273_vm2, %v10637_v33  ;;  %11428 = vmatpush3.msk.msra.mxu0 %vm277_vm0, %v4099_v34 }
  0x81   : > { %11429 = vmatprep.mubr.msk.f32.mxu0 %vm12367_vm1, %v12366_v1  ;;  %11433 = vmatpush3.msk.msra.mxu1 %vm277_vm0, %v4179_v35 }
  0x82   : > { %11434 = vmatprep.mubr.msk.f32.mxu1 %vm12367_vm1, %v12366_v1  ;;  %11437 = vmatprep.subr.mxu0 %v12366_v1 }
  0x83   : > { %11442 = vmatprep.subr.mxu1 %v12366_v1  ;;  %11430 = vmatmul.mubr.msk.f32.vlgmr.msra.gmra.mrb[48].mxu0 %vm273_vm2, %v10640_v36 }
  0x84   : > { %11435 = vmatmul.mubr.msk.f32.vlgmr.msra.gmra.mrb[48].mxu1 %vm273_vm2, %v10643_v37  ;;  %11438 = vmatpush3.msk.msra.mxu0 %vm277_vm0, %v4258_v38  ;;  %v13059_v37 = vld [vmem:[%s15488_s2] ss:$0 sm:$0xff] }
  0x85   : > { %11439 = vmatprep.mubr.msk.f32.mxu0 %vm12367_vm1, %v12366_v1  ;;  %11443 = vmatpush3.msk.msra.mxu1 %vm277_vm0, %v4338_v39 }
  0x86   : > { %11444 = vmatprep.mubr.msk.f32.mxu1 %vm12367_vm1, %v12366_v1  ;;  %11447 = vmatprep.subr.mxu0 %v12366_v1 }
  0x87   : > { %11452 = vmatprep.subr.mxu1 %v12366_v1  ;;  %11440 = vmatmul.mubr.msk.f32.vlgmr.msra.gmra.mrb[50].mxu0 %vm273_vm2, %v10646_v40 }
  0x88   : > { %11445 = vmatmul.mubr.msk.f32.vlgmr.msra.gmra.mrb[50].mxu1 %vm273_vm2, %v10649_v41  ;;  %11448 = vmatpush3.msk.msra.mxu0 %vm277_vm0, %v4418_v42 }
  0x89   : > { %11449 = vmatprep.mubr.msk.f32.mxu0 %vm12367_vm1, %v12366_v1  ;;  %11453 = vmatpush3.msk.msra.mxu1 %vm277_vm0, %v4497_v43 }
  0x8a   : > { %11454 = vmatprep.mubr.msk.f32.mxu1 %vm12367_vm1, %v12366_v1  ;;  %11457 = vmatprep.subr.mxu0 %v12366_v1 }
  0x8b   : > { %11462 = vmatprep.subr.mxu1 %v12366_v1  ;;  %11450 = vmatmul.mubr.msk.f32.vlgmr.msra.gmra.mrb[52].mxu0 %vm273_vm2, %v10652_v44 }
  0x8c   : > { %11455 = vmatmul.mubr.msk.f32.vlgmr.msra.gmra.mrb[52].mxu1 %vm273_vm2, %v10655_v45  ;;  %11458 = vmatpush3.msk.msra.mxu0 %vm277_vm0, %v4582_v46 }
  0x8d   : > { %11459 = vmatprep.mubr.msk.f32.mxu0 %vm12367_vm1, %v12366_v1  ;;  %11463 = vmatpush3.msk.msra.mxu1 %vm277_vm0, %v4580_v47 }
  0x8e   : > { %11464 = vmatprep.mubr.msk.f32.mxu1 %vm12367_vm1, %v12366_v1  ;;  %11467 = vmatprep.subr.mxu0 %v12366_v1 }
  0x8f   : > { %11472 = vmatprep.subr.mxu1 %v12366_v1  ;;  %11460 = vmatmul.mubr.msk.f32.vlgmr.msra.gmra.mrb[54].mxu0 %vm273_vm2, %v10659_v48 }
  0x90   : > { %11465 = vmatmul.mubr.msk.f32.vlgmr.msra.gmra.mrb[54].mxu1 %vm273_vm2, %v10658_v49  ;;  %11468 = vmatpush3.msk.msra.mxu0 %vm277_vm0, %v4736_v50 }
  0x91   : > { %11469 = vmatprep.mubr.msk.f32.mxu0 %vm12367_vm1, %v12366_v1  ;;  %11473 = vmatpush3.msk.msra.mxu1 %vm277_vm0, %v4816_v51 }
  0x92   : > { %11474 = vmatprep.mubr.msk.f32.mxu1 %vm12367_vm1, %v12366_v1  ;;  %11477 = vmatprep.subr.mxu0 %v12366_v1 }
  0x93   : > { %11482 = vmatprep.subr.mxu1 %v12366_v1  ;;  %11470 = vmatmul.mubr.msk.f32.vlgmr.msra.gmra.mrb[56].mxu0 %vm273_vm2, %v10664_v52 }
  0x94   : > { %11475 = vmatmul.mubr.msk.f32.vlgmr.msra.gmra.mrb[56].mxu1 %vm273_vm2, %v10667_v53  ;;  %11478 = vmatpush3.msk.msra.mxu0 %vm277_vm0, %v4896_v54 }
  0x95   : > { %11479 = vmatprep.mubr.msk.f32.mxu0 %vm12367_vm1, %v12366_v1  ;;  %11483 = vmatpush3.msk.msra.mxu1 %vm277_vm0, %v4975_v55 }
  0x96   : > { %11484 = vmatprep.mubr.msk.f32.mxu1 %vm12367_vm1, %v12366_v1  ;;  %11487 = vmatprep.subr.mxu0 %v12366_v1 }
  0x97   : > { %11492 = vmatprep.subr.mxu1 %v12366_v1  ;;  %11480 = vmatmul.mubr.msk.f32.vlgmr.msra.gmra.mrb[58].mxu0 %vm273_vm2, %v10670_v56  ;;  %v5478_v56 = vld [vmem:[%s15489_s3 + $0x40] sm:$0xff] }
  0x98   : > { %11485 = vmatmul.mubr.msk.f32.vlgmr.msra.gmra.mrb[58].mxu1 %vm273_vm2, %v10673_v57  ;;  %11488 = vmatpush3.msk.msra.mxu0 %vm277_vm0, %v5055_v58  ;;  %v5479_v57 = vld [vmem:[%s15489_s3 + $0x48] sm:$0xff]  ;;  %v5557_v58 = vld [vmem:[%s15489_s3 + $0x60] sm:$0xff] }
  0x99   : > { %11489 = vmatprep.mubr.msk.f32.mxu0 %vm12367_vm1, %v12366_v1  ;;  %11493 = vmatpush3.msk.msra.mxu1 %vm277_vm0, %v5135_v59  ;;  %v5558_v59 = vld [vmem:[%s15489_s3 + $0x68] sm:$0xff] }
  0x9a   : > { %11494 = vmatprep.mubr.msk.f32.mxu1 %vm12367_vm1, %v12366_v1  ;;  %11497 = vmatprep.subr.mxu0 %v12366_v1 }
  0x9b   : > { %11997 = vmatprep.subr.bf16.mxu1 %v12368_v5  ;;  %11490 = vmatmul.mubr.msk.f32.vlgmr.msra.gmra.mrb[60].mxu0 %vm273_vm2, %v10676_v62 }
  0x9c   : > { %11495 = vmatmul.mubr.msk.f32.vlgmr.msra.gmra.mrb[60].mxu1 %vm273_vm2, %v10679_v63  ;;  %11498 = vmatpush3.msk.msra.mxu0 %vm277_vm0, %v5214_v0  ;;  %v13075_v63 = vpack.c.bf16 %v5479_v57, %v5478_v56  ;;  %v5717_v56 = vld [vmem:[%s15489_s3 + $0xb0] sm:$0xff] }
  0x9d   : > { %11499 = vmatprep.mubr.msk.f32.mxu0 %vm12367_vm1, %v12366_v1  ;;  %11999 = vmatpush3.bf16.msra.mxu1 %v13008_v2 }
  0x9e   : > { %12003 = vmatprep.subr.bf16.mxu0 %v12368_v5  ;;  %12000 = vmatprep.subr.bf16.mxu1 %v12368_v5 }
  0x9f   : > { %11510 = vmatprep.mubr.msk.f32.mxu1 %vm12367_vm1, %v12366_v1  ;;  %11500 = vmatmul.mubr.msk.f32.vlgmr.msra.gmra.mrb[62].mxu0 %vm273_vm2, %v10682_v8  ;;  %v13083_v8 = vpack.c.bf16 %v5558_v59, %v5557_v58  ;;  %v5718_v58 = vld [vmem:[%s15489_s3 + $0xb8] sm:$0xff] }
  0xa0   : > { %12005 = vmatpush3.bf16.msra.mxu0 %v13030_v9  ;;  %11521 = vmatprep.mubr.msk.f32.mxu0 %vm12367_vm1, %v12366_v1 }
  0xa1   : > { %12002 = vmatpush3.bf16.msra.mxu1 %v13034_v10  ;;  %12006 = vmatprep.subr.bf16.mxu0 %v12368_v5 }
  0xa2   : > { %12009 = vmatprep.subr.bf16.mxu1 %v12368_v5 }
  0xa4   : > { %12008 = vmatpush3.bf16.msra.mxu0 %v13047_v13 }
  0xa5   : > { %12015 = vmatprep.subr.bf16.mxu0 %v12368_v5 }
  0xf6   : > { %v347_v14 = vpop.f32.mrb[0].mxu0 }
  0xf7   : > { %v423_v15 = vpop.f32.mrb[0].mxu1  ;;  %v11191_v17 = vpop.f32.mrb[1].mxu0 }
  0xf8   : > { %v424_v16 = vadd.f32 %v423_v15, %v347_v14  ;;  %v11196_v18 = vpop.f32.mrb[1].mxu1  ;;  %v5560_v15 = vld [vmem:[%s15489_s3 + $0x78] sm:$0xff] }
  0xfa   : > { %v501_v19 = vpop.f32.mrb[2].mxu0 }
  0xfb   : > { %v581_v20 = vpop.f32.mrb[2].mxu1  ;;  %v505_v21 = vadd.f32 %v501_v19, %v424_v16  ;;  %v11201_v22 = vpop.f32.mrb[3].mxu0  ;;  %v13094_v19 = vpack.c.bf16 %v5481_v7, %v5480_v6 }
  0xfc   : > { %v11206_v23 = vpop.f32.mrb[3].mxu1 }
  0xfd   : > { %v585_v24 = vadd.f32 %v581_v20, %v505_v21  ;;  %v5636_v23 = vld [vmem:[%s15489_s3 + $0x80] sm:$0xff] }
  0xfe   : > { %v661_v25 = vpop.f32.mrb[4].mxu0 }
  0xff   : > { %v740_v26 = vpop.f32.mrb[4].mxu1  ;;  %v665_v27 = vadd.f32 %v661_v25, %v585_v24  ;;  %v11211_v28 = vpop.f32.mrb[5].mxu0  ;;  %v5637_v24 = vld [vmem:[%s15489_s3 + $0x88] sm:$0xff]  ;;  %v13106_v25 = vpack.c.bf16 %v5560_v15, %v5559_v11  ;;  %v5873_v15 = vld [vmem:[%s15489_s3 + $0xe0] sm:$0xff] }
 0x100   : > { %v11216_v29 = vpop.f32.mrb[5].mxu1 }
 0x101   : > { %v744_v30 = vadd.f32 %v740_v26, %v665_v27  ;;  %v13112_v29 = vpack.c.bf16 %v5637_v24, %v5636_v23 }
 0x102   : > { %v820_v31 = vpop.f32.mrb[6].mxu0 }
 0x103   : > { %v900_v32 = vpop.f32.mrb[6].mxu1  ;;  %v824_v33 = vadd.f32 %v820_v31, %v744_v30  ;;  %v11221_v34 = vpop.f32.mrb[7].mxu0 }
 0x104   : > { %v11226_v35 = vpop.f32.mrb[7].mxu1  ;;  %v5638_v34 = vld [vmem:[%s15489_s3 + $0x90] sm:$0xff] }
 0x105   : > { %v904_v36 = vadd.f32 %v900_v32, %v824_v33  ;;  %v5639_v35 = vld [vmem:[%s15489_s3 + $0x98] sm:$0xff] }
 0x106   : > { %v979_v38 = vpop.f32.mrb[8].mxu0 }
 0x107   : > { %v1070_v39 = vpop.f32.mrb[8].mxu1  ;;  %v983_v40 = vadd.f32 %v979_v38, %v904_v36  ;;  %v11231_v41 = vpop.f32.mrb[9].mxu0 }
 0x108   : > { %v11236_v42 = vpop.f32.mrb[9].mxu1  ;;  %v13126_v41 = vpack.c.bf16 %v5639_v35, %v5638_v34 }
 0x109   : > { %v990_v43 = vadd.f32 %v13059_v37, %v983_v40 }
 0x10a   : > { %v1146_v44 = vpop.f32.mrb[10].mxu0 }
 0x10b   : > { %v1224_v45 = vpop.f32.mrb[10].mxu1  ;;  %v991_v46 = vmax.f32 %v990_v43, 0.0  ;;  %v1147_v47 = vadd.f32 %v1146_v44, %v1070_v39  ;;  %v11241_v48 = vpop.f32.mrb[11].mxu0 }
 0x10c   : > { %v11246_v49 = vpop.f32.mrb[11].mxu1 }
 0x10d   : > { %993 = vst.msk [vmem:[#allocation2] sm:$0x7f] %vm992_vm3, %v991_v46  ;;  %v1228_v50 = vadd.f32 %v1224_v45, %v1147_v47  ;;  %v5715_v46 = vld [vmem:[%s15489_s3 + $0xa0] sm:$0xff]  ;;  %v5716_v47 = vld [vmem:[%s15489_s3 + $0xa8] sm:$0xff] }
 0x10e   : > { %v1304_v51 = vpop.f32.mrb[12].mxu0 }
 0x10f   : > { %v1384_v52 = vpop.f32.mrb[12].mxu1  ;;  %v1308_v53 = vadd.f32 %v1304_v51, %v1228_v50  ;;  %v11251_v54 = vpop.f32.mrb[13].mxu0  ;;  %v5794_v50 = vld [vmem:[%s15489_s3 + $0xc0] sm:$0xff]  ;;  %v5795_v51 = vld [vmem:[%s15489_s3 + $0xc8] sm:$0xff] }
 0x110   : > { %v11256_v55 = vpop.f32.mrb[13].mxu1  ;;  %v13154_v59 = vpack.c.bf16 %v5795_v51, %v5794_v50 }
 0x111   : > { %v1388_v60 = vadd.f32 %v1384_v52, %v1308_v53  ;;  %v13146_v55 = vpack.c.bf16 %v5716_v47, %v5715_v46 }
 0x112   : > { %v1463_v61 = vpop.f32.mrb[14].mxu0 }
 0x113   : > { %v1543_v62 = vpop.f32.mrb[14].mxu1  ;;  %v1467_v0 = vadd.f32 %v1463_v61, %v1388_v60  ;;  %v11261_v3 = vpop.f32.mrb[15].mxu0  ;;  %v5796_v60 = vld [vmem:[%s15489_s3 + $0xd0] sm:$0xff]  ;;  %v5797_v61 = vld [vmem:[%s15489_s3 + $0xd8] sm:$0xff] }
 0x114   : > { %v11266_v4 = vpop.f32.mrb[15].mxu1  ;;  %v5325_v12 = vld [vmem:[#allocation2 + $0x1] sm:$0x1f] }
 0x115   : > { %v5320_v14 = vld [vmem:[#allocation2] sm:$0x1f]  ;;  %v1547_v16 = vadd.f32 %v1543_v62, %v1467_v0  ;;  %11511 = vmatmul.mubr.msk.f32.vlgmr.msra.gmra.mrb[62].mxu1 %vm5330_vm4, %v5325_v12  ;;  %v13165_v12 = vpack.c.bf16 %v5718_v58, %v5717_v56 }
 0x116   : > { %11522 = vmatmul.mubr.msk.f32.vlgmr.msra.gmra.mrb[64].mxu0 %vm5330_vm4, %v5320_v14  ;;  %12011 = vmatpush3.bf16.msra.mxu1 %v13075_v63  ;;  %v1623_v17 = vpop.f32.mrb[16].mxu0  ;;  %v5477_v36 = vld [vmem:[#allocation2 + $0x2] sm:$0x1f] }
 0x117   : > { %v1702_v18 = vpop.f32.mrb[16].mxu1  ;;  %11532 = vmatprep.mubr.msk.f32.mxu1 %vm12367_vm1, %v12366_v1  ;;  %v1627_v20 = vadd.f32 %v1623_v17, %v1547_v16  ;;  %v11271_v21 = vpop.f32.mrb[17].mxu0  ;;  %12012 = vmatprep.subr.bf16.mxu1 %v12368_v5  ;;  %v5874_v16 = vld [vmem:[%s15489_s3 + $0xe8] sm:$0xff]  ;;  %v13177_v17 = vpack.c.bf16 %v5797_v61, %v5796_v60 }
 0x118   : > { %v11276_v22 = vpop.f32.mrb[17].mxu1  ;;  %12017 = vmatpush3.bf16.msra.mxu0 %v13083_v8  ;;  %11543 = vmatprep.mubr.msk.f32.mxu0 %vm12367_vm1, %v12366_v1  ;;  %v13183_v24 = vpack.c.bf16 %v5874_v16, %v5873_v15 }
 0x119   : > { %12018 = vmatprep.subr.bf16.mxu0 %v12368_v5  ;;  %v1706_v26 = vadd.f32 %v1702_v18, %v1627_v20 }
 0x11a   : > { %12014 = vmatpush3.bf16.msra.mxu1 %v13094_v19  ;;  %v1787_v27 = vpop.f32.mrb[18].mxu0 }
 0x11b   : > { %v1863_v28 = vpop.f32.mrb[18].mxu1  ;;  %v1707_v30 = vadd.f32 %v13059_v37, %v1706_v26  ;;  %v11281_v32 = vpop.f32.mrb[19].mxu0  ;;  %12021 = vmatprep.subr.bf16.mxu1 %v12368_v5 }
 0x11c   : > { %v1864_v31 = vadd.f32 %v1863_v28, %v1787_v27  ;;  %v11286_v33 = vpop.f32.mrb[19].mxu1  ;;  %12020 = vmatpush3.bf16.msra.mxu0 %v13106_v25  ;;  %v5875_v27 = vld [vmem:[%s15489_s3 + $0xf0] sm:$0xff]  ;;  %v5876_v28 = vld [vmem:[%s15489_s3 + $0xf8] sm:$0xff] }
 0x11d   : > { %12027 = vmatprep.subr.bf16.mxu0 %v12368_v5  ;;  %v1708_v38 = vmax.f32 %v1707_v30, 0.0  ;;  %11533 = vmatmul.mubr.msk.f32.vlgmr.msra.gmra.mrb[64].mxu1 %vm5330_vm4, %v5477_v36 }
 0x11e   : > { %v1941_v39 = vpop.f32.mrb[20].mxu0  ;;  %12023 = vmatpush3.bf16.msra.mxu1 %v13112_v29  ;;  %11554 = vmatprep.mubr.msk.f32.mxu1 %vm12367_vm1, %v12366_v1 }
 0x11f   : > { %v2021_v40 = vpop.f32.mrb[20].mxu1  ;;  %1710 = vst.msk [vmem:[#allocation2 + $0x8] sm:$0x7f] %vm992_vm3, %v1708_v38  ;;  %v1945_v42 = vadd.f32 %v1941_v39, %v1864_v31  ;;  %v11291_v43 = vpop.f32.mrb[21].mxu0  ;;  %12024 = vmatprep.subr.bf16.mxu1 %v12368_v5  ;;  %v13197_v38 = vpack.c.bf16 %v5876_v28, %v5875_v27 }
 0x120   : > { %v11296_v44 = vpop.f32.mrb[21].mxu1  ;;  %v5952_v43 = vld [vmem:[%s15489_s3 + $0x100] sm:$0xff] }
 0x121   : > { %v2025_v45 = vadd.f32 %v2021_v40, %v1945_v42  ;;  %v5953_v44 = vld [vmem:[%s15489_s3 + $0x108] sm:$0xff] }
 0x122   : > { %v2101_v48 = vpop.f32.mrb[22].mxu0  ;;  %12026 = vmatpush3.bf16.msra.mxu1 %v13126_v41 }
 0x123   : > { %v2180_v49 = vpop.f32.mrb[22].mxu1  ;;  %v2105_v52 = vadd.f32 %v2101_v48, %v2025_v45  ;;  %v11301_v53 = vpop.f32.mrb[23].mxu0  ;;  %12033 = vmatprep.subr.bf16.mxu1 %v12368_v5 }
 0x124   : > { %v11306_v54 = vpop.f32.mrb[23].mxu1  ;;  %v5955_v53 = vld [vmem:[%s15489_s3 + $0x118] sm:$0xff] }
 0x125   : > { %v2184_v57 = vadd.f32 %v2180_v49, %v2105_v52  ;;  %v13211_v49 = vpack.c.bf16 %v5953_v44, %v5952_v43  ;;  %v5954_v52 = vld [vmem:[%s15489_s3 + $0x110] sm:$0xff] }
 0x126   : > { %v2260_v62 = vpop.f32.mrb[24].mxu0  ;;  %v5556_v3 = vld [vmem:[#allocation2 + $0x8] sm:$0x1f] }
 0x127   : > { %v2340_v0 = vpop.f32.mrb[24].mxu1  ;;  %v5635_v4 = vld [vmem:[#allocation2 + $0x9] sm:$0x1f]  ;;  %v2264_v6 = vadd.f32 %v2260_v62, %v2184_v57  ;;  %v11311_v7 = vpop.f32.mrb[25].mxu0  ;;  %11544 = vmatmul.mubr.msk.f32.vlgmr.msra.gmra.mrb[66].mxu0 %vm5330_vm4, %v5556_v3  ;;  %v13223_v62 = vpack.c.bf16 %v5955_v53, %v5954_v52 }
 0x128   : > { %11555 = vmatmul.mubr.msk.f32.vlgmr.msra.gmra.mrb[66].mxu1 %vm5330_vm4, %v5635_v4  ;;  %v11316_v11 = vpop.f32.mrb[25].mxu1  ;;  %12029 = vmatpush3.bf16.msra.mxu0 %v13146_v55  ;;  %v5714_v30 = vld [vmem:[#allocation2 + $0xa] sm:$0x1f] }
 0x129   : > { %11565 = vmatprep.mubr.msk.f32.mxu0 %vm12367_vm1, %v12366_v1  ;;  %v2344_v14 = vadd.f32 %v2340_v0, %v2264_v6  ;;  %12030 = vmatprep.subr.bf16.mxu0 %v12368_v5  ;;  %v6208_v43 = vld [vmem:[#allocation2 + $0xa] sm:$0x1f] }
 0x12a   : > { %12035 = vmatpush3.bf16.msra.mxu1 %v13154_v59  ;;  %v2419_v18 = vpop.f32.mrb[26].mxu0  ;;  %11576 = vmatprep.mubr.msk.f32.mxu1 %vm12367_vm1, %v12366_v1 }
 0x12b   : > { %12036 = vmatprep.subr.bf16.mxu1 %v12368_v5  ;;  %v2504_v20 = vpop.f32.mrb[26].mxu1  ;;  %v2423_v21 = vadd.f32 %v2419_v18, %v2344_v14  ;;  %v11321_v22 = vpop.f32.mrb[27].mxu0 }
 0x12c   : > { %v11326_v23 = vpop.f32.mrb[27].mxu1  ;;  %12032 = vmatpush3.bf16.msra.mxu0 %v13165_v12 }
 0x12d   : > { %v2424_v26 = vadd.f32 %v13059_v37, %v2423_v21  ;;  %12039 = vmatprep.subr.bf16.mxu0 %v12368_v5  ;;  %v6057_v23 = vld [vmem:[#allocation2 + $0x9] sm:$0x1f] }
 0x12e   : > { %12038 = vmatpush3.bf16.msra.mxu1 %v13177_v17  ;;  %v2580_v31 = vpop.f32.mrb[28].mxu0 }
 0x12f   : > { %12045 = vmatprep.subr.bf16.mxu1 %v12368_v5  ;;  %v2658_v32 = vpop.f32.mrb[28].mxu1  ;;  %v2425_v33 = vmax.f32 %v2424_v26, 0.0  ;;  %11566 = vmatmul.mubr.msk.f32.vlgmr.msra.gmra.mrb[68].mxu0 %vm5330_vm4, %v5714_v30  ;;  %v2581_v34 = vadd.f32 %v2580_v31, %v2504_v20  ;;  %v11331_v35 = vpop.f32.mrb[29].mxu0 }
 0x130   : > { %v11336_v36 = vpop.f32.mrb[29].mxu1  ;;  %12041 = vmatpush3.bf16.msra.mxu0 %v13183_v24  ;;  %11587 = vmatprep.mubr.msk.f32.mxu0 %vm12367_vm1, %v12366_v1 }
 0x131   : > { %2427 = vst.msk [vmem:[#allocation2 + $0x10] sm:$0x7f] %vm992_vm3, %v2425_v33  ;;  %12042 = vmatprep.subr.bf16.mxu0 %v12368_v5  ;;  %v2662_v39 = vadd.f32 %v2658_v32, %v2581_v34 }
 0x132   : > { %v2738_v40 = vpop.f32.mrb[30].mxu0 }
 0x133   : > { %v2818_v42 = vpop.f32.mrb[30].mxu1  ;;  %v2742_v45 = vadd.f32 %v2738_v40, %v2662_v39  ;;  %v11341_v46 = vpop.f32.mrb[31].mxu0 }
 0x134   : > { %v11346_v47 = vpop.f32.mrb[31].mxu1  ;;  %12044 = vmatpush3.bf16.msra.mxu0 %v13197_v38 }
 0x135   : > { %12051 = vmatprep.subr.bf16.mxu0 %v12368_v5  ;;  %v2822_v48 = vadd.f32 %v2818_v42, %v2742_v45  ;;  %v6052_v42 = vld [vmem:[#allocation2 + $0x8] sm:$0x1f] }
 0x136   : > { %v2897_v50 = vpop.f32.mrb[32].mxu0 }
 0x137   : > { %v2977_v51 = vpop.f32.mrb[32].mxu1  ;;  %v2901_v54 = vadd.f32 %v2897_v50, %v2822_v48  ;;  %v11351_v56 = vpop.f32.mrb[33].mxu0 }
 0x138   : > { %v11356_v57 = vpop.f32.mrb[33].mxu1  ;;  %v5793_v58 = vld [vmem:[#allocation2 + $0x10] sm:$0x1f] }
 0x139   : > { %v5872_v60 = vld [vmem:[#allocation2 + $0x11] sm:$0x1f]  ;;  %11577 = vmatmul.mubr.msk.f32.vlgmr.msra.gmra.mrb[68].mxu1 %vm5330_vm4, %v5793_v58  ;;  %v2981_v61 = vadd.f32 %v2977_v51, %v2901_v54 }
 0x13a   : > { %11588 = vmatmul.mubr.msk.f32.vlgmr.msra.gmra.mrb[70].mxu0 %vm5330_vm4, %v5872_v60  ;;  %12047 = vmatpush3.bf16.msra.mxu1 %v13211_v49  ;;  %v3057_v0 = vpop.f32.mrb[34].mxu0  ;;  %v5951_v22 = vld [vmem:[#allocation2 + $0x12] sm:$0x1f] }
 0x13b   : > { %12053 = vmatpush3.bf16.msra.mxu0 %v13008_v2  ;;  %v3136_v3 = vpop.f32.mrb[34].mxu1  ;;  %12048 = vmatprep.subr.bf16.mxu1 %v12368_v5  ;;  %v3061_v4 = vadd.f32 %v3057_v0, %v2981_v61  ;;  %v11361_v6 = vpop.f32.mrb[35].mxu0  ;;  %v6287_v57 = vld [vmem:[#allocation2 + $0x10] sm:$0x1f] }
 0x13c   : > { %12054 = vmatprep.subr.bf16.mxu0 %v12368_v5  ;;  %v11366_v7 = vpop.f32.mrb[35].mxu1  ;;  %11598 = vmatprep.mubr.msk.f32.mxu1 %vm12367_vm1, %v12366_v1  ;;  %v6366_v58 = vld [vmem:[#allocation2 + $0x11] sm:$0x1f] }
 0x13d   : > { %11609 = vmatprep.mubr.msk.f32.mxu0 %vm12367_vm1, %v12366_v1  ;;  %v3140_v11 = vadd.f32 %v3136_v3, %v3061_v4 }
 0x13e   : > { %12050 = vmatpush3.bf16.msra.mxu1 %v13223_v62  ;;  %v3221_v14 = vpop.f32.mrb[36].mxu0 }
 0x13f   : > { %12056 = vmatpush3.bf16.msra.mxu0 %v13034_v10  ;;  %v3297_v15 = vpop.f32.mrb[36].mxu1  ;;  %12057 = vmatprep.subr.bf16.mxu1 %v12368_v5  ;;  %v3141_v16 = vadd.f32 %v13059_v37, %v3140_v11  ;;  %v11371_v18 = vpop.f32.mrb[37].mxu0 }
 0x140   : > { %12063 = vmatprep.subr.bf16.mxu0 %v12368_v5  ;;  %v3298_v20 = vadd.f32 %v3297_v15, %v3221_v14  ;;  %v11376_v21 = vpop.f32.mrb[37].mxu1 }
 0x141   : > { %11599 = vmatmul.mubr.msk.f32.vlgmr.msra.gmra.mrb[70].mxu1 %vm5330_vm4, %v5951_v22  ;;  %v3142_v26 = vmax.f32 %v3141_v16, 0.0 }
 0x142   : > { %11610 = vmatmul.mubr.msk.f32.vlgmr.msra.gmra.mrb[72].mxu0 %vm5330_vm4, %v6057_v23  ;;  %12059 = vmatpush3.bf16.msra.mxu1 %v13030_v9  ;;  %v3375_v27 = vpop.f32.mrb[38].mxu0  ;;  %v6445_v23 = vld [vmem:[#allocation2 + $0x12] sm:$0x1f] }
 0x143   : > { %12065 = vmatpush3.bf16.msra.mxu0 %v13075_v63  ;;  %v3455_v28 = vpop.f32.mrb[38].mxu1  ;;  %12060 = vmatprep.subr.bf16.mxu1 %v12368_v5  ;;  %3144 = vst.msk [vmem:[#allocation2 + $0x18] sm:$0x7f] %vm992_vm3, %v3142_v26  ;;  %v3379_v30 = vadd.f32 %v3375_v27, %v3298_v20  ;;  %v11381_v31 = vpop.f32.mrb[39].mxu0 }
 0x144   : > { %12066 = vmatprep.subr.bf16.mxu0 %v12368_v5  ;;  %v11386_v32 = vpop.f32.mrb[39].mxu1  ;;  %11620 = vmatprep.mubr.msk.f32.mxu1 %vm12367_vm1, %v12366_v1 }
 0x145   : > { %11631 = vmatprep.mubr.msk.f32.mxu0 %vm12367_vm1, %v12366_v1  ;;  %v3459_v33 = vadd.f32 %v3455_v28, %v3379_v30 }
 0x146   : > { %12062 = vmatpush3.bf16.msra.mxu1 %v13047_v13  ;;  %v3535_v34 = vpop.f32.mrb[40].mxu0 }
 0x147   : > { %12068 = vmatpush3.bf16.msra.mxu0 %v13094_v19  ;;  %v3614_v35 = vpop.f32.mrb[40].mxu1  ;;  %12069 = vmatprep.subr.bf16.mxu1 %v12368_v5  ;;  %v3539_v36 = vadd.f32 %v3535_v34, %v3459_v33  ;;  %v11391_v39 = vpop.f32.mrb[41].mxu0 }
 0x148   : > { %12075 = vmatprep.subr.bf16.mxu0 %v12368_v5  ;;  %v11396_v40 = vpop.f32.mrb[41].mxu1 }
 0x149   : > { %11621 = vmatmul.mubr.msk.f32.vlgmr.msra.gmra.mrb[72].mxu1 %vm5330_vm4, %v6052_v42  ;;  %v3618_v44 = vadd.f32 %v3614_v35, %v3539_v36 }
 0x14a   : > { %11632 = vmatmul.mubr.msk.f32.vlgmr.msra.gmra.mrb[74].mxu0 %vm5330_vm4, %v6208_v43  ;;  %12071 = vmatpush3.bf16.msra.mxu1 %v13083_v8  ;;  %v3694_v45 = vpop.f32.mrb[42].mxu0  ;;  %v6524_v15 = vld [vmem:[#allocation2 + $0x18] sm:$0x1f] }
 0x14b   : > { %12077 = vmatpush3.bf16.msra.mxu0 %v13112_v29  ;;  %12072 = vmatprep.subr.bf16.mxu1 %v12368_v5  ;;  %v3774_v46 = vpop.f32.mrb[42].mxu1  ;;  %v3698_v47 = vadd.f32 %v3694_v45, %v3618_v44  ;;  %v11401_v48 = vpop.f32.mrb[43].mxu0  ;;  %v6603_v42 = vld [vmem:[#allocation2 + $0x19] sm:$0x1f] }
 0x14c   : > { %12078 = vmatprep.subr.bf16.mxu0 %v12368_v5  ;;  %11642 = vmatprep.mubr.msk.f32.mxu1 %vm12367_vm1, %v12366_v1  ;;  %v11406_v50 = vpop.f32.mrb[43].mxu1  ;;  %v6682_v43 = vld [vmem:[#allocation2 + $0x1a] sm:$0x1f] }
 0x14d   : > { %11653 = vmatprep.mubr.msk.f32.mxu0 %vm12367_vm1, %v12366_v1  ;;  %v3778_v51 = vadd.f32 %v3774_v46, %v3698_v47 }
 0x14e   : > { %12074 = vmatpush3.bf16.msra.mxu1 %v13106_v25  ;;  %v3853_v52 = vpop.f32.mrb[44].mxu0 }
 0x14f   : > { %12080 = vmatpush3.bf16.msra.mxu0 %v13126_v41  ;;  %v3938_v53 = vpop.f32.mrb[44].mxu1  ;;  %12081 = vmatprep.subr.bf16.mxu1 %v12368_v5  ;;  %v11411_v54 = vpop.f32.mrb[45].mxu0  ;;  %v3857_v60 = vadd.f32 %v3853_v52, %v3778_v51 }
 0x150   : > { %12087 = vmatprep.subr.bf16.mxu0 %v12368_v5  ;;  %v11416_v56 = vpop.f32.mrb[45].mxu1 }
 0x151   : > { %11643 = vmatmul.mubr.msk.f32.vlgmr.msra.gmra.mrb[74].mxu1 %vm5330_vm4, %v6287_v57  ;;  %v3858_v61 = vadd.f32 %v13059_v37, %v3857_v60  ;;  %v6778_v60 = vld [vmem:[#allocation2 + $0x11] sm:$0x1f] }
 0x152   : > { %11654 = vmatmul.mubr.msk.f32.vlgmr.msra.gmra.mrb[76].mxu0 %vm5330_vm4, %v6366_v58  ;;  %12083 = vmatpush3.bf16.msra.mxu1 %v13146_v55  ;;  %v4014_v0 = vpop.f32.mrb[46].mxu0 }
 0x153   : > { %12089 = vmatpush3.bf16.msra.mxu0 %v13154_v59  ;;  %v4092_v3 = vpop.f32.mrb[46].mxu1  ;;  %12084 = vmatprep.subr.bf16.mxu1 %v12368_v5  ;;  %v4015_v4 = vadd.f32 %v4014_v0, %v3938_v53  ;;  %v11421_v6 = vpop.f32.mrb[47].mxu0  ;;  %v3859_v11 = vmax.f32 %v3858_v61, 0.0  ;;  %v6773_v61 = vld [vmem:[#allocation2 + $0x10] sm:$0x1f] }
 0x154   : > { %12090 = vmatprep.subr.bf16.mxu0 %v12368_v5  ;;  %v11426_v7 = vpop.f32.mrb[47].mxu1  ;;  %11664 = vmatprep.mubr.msk.f32.mxu1 %vm12367_vm1, %v12366_v1 }
 0x155   : > { %11675 = vmatprep.mubr.msk.f32.mxu0 %vm12367_vm1, %v12366_v1  ;;  %v4096_v14 = vadd.f32 %v4092_v3, %v4015_v4  ;;  %3861 = vst.msk [vmem:[#allocation2 + $0x20] sm:$0x7f] %vm992_vm3, %v3859_v11 }
 0x156   : > { %12086 = vmatpush3.bf16.msra.mxu1 %v13165_v12  ;;  %v4172_v16 = vpop.f32.mrb[48].mxu0 }
 0x157   : > { %12092 = vmatpush3.bf16.msra.mxu0 %v13177_v17  ;;  %v4252_v18 = vpop.f32.mrb[48].mxu1  ;;  %12093 = vmatprep.subr.bf16.mxu1 %v12368_v5  ;;  %v4176_v20 = vadd.f32 %v4172_v16, %v4096_v14  ;;  %v11431_v21 = vpop.f32.mrb[49].mxu0 }
 0x158   : > { %12099 = vmatprep.subr.bf16.mxu0 %v12368_v5  ;;  %v11436_v22 = vpop.f32.mrb[49].mxu1 }
 0x159   : > { %11665 = vmatmul.mubr.msk.f32.vlgmr.msra.gmra.mrb[76].mxu1 %vm5330_vm4, %v6445_v23  ;;  %v4256_v26 = vadd.f32 %v4252_v18, %v4176_v20  ;;  %v6929_v18 = vld [vmem:[#allocation2 + $0x12] sm:$0x1f]  ;;  %v7008_v20 = vld [vmem:[#allocation2 + $0x18] sm:$0x1f] }
 0x15a   : > { %11676 = vmatmul.mubr.msk.f32.vlgmr.msra.gmra.mrb[78].mxu0 %vm5330_vm4, %v6524_v15  ;;  %12095 = vmatpush3.bf16.msra.mxu1 %v13183_v24  ;;  %v4331_v27 = vpop.f32.mrb[50].mxu0 }
 0x15b   : > { %12101 = vmatpush3.bf16.msra.mxu0 %v13211_v49  ;;  %v4411_v28 = vpop.f32.mrb[50].mxu1  ;;  %12096 = vmatprep.subr.bf16.mxu1 %v12368_v5  ;;  %v4335_v30 = vadd.f32 %v4331_v27, %v4256_v26  ;;  %v11441_v31 = vpop.f32.mrb[51].mxu0 }
 0x15c   : > { %12102 = vmatprep.subr.bf16.mxu0 %v12368_v5  ;;  %v11446_v32 = vpop.f32.mrb[51].mxu1  ;;  %11686 = vmatprep.mubr.msk.f32.mxu1 %vm12367_vm1, %v12366_v1 }
 0x15d   : > { %11697 = vmatprep.mubr.msk.f32.mxu0 %vm12367_vm1, %v12366_v1  ;;  %v4415_v33 = vadd.f32 %v4411_v28, %v4335_v30  ;;  %v7087_v32 = vld [vmem:[#allocation2 + $0x19] sm:$0x1f] }
 0x15e   : > { %12098 = vmatpush3.bf16.msra.mxu1 %v13197_v38  ;;  %v4491_v34 = vpop.f32.mrb[52].mxu0 }
 0x15f   : > { %12104 = vmatpush3.bf16.msra.mxu0 %v13223_v62  ;;  %v4570_v35 = vpop.f32.mrb[52].mxu1  ;;  %12105 = vmatprep.subr.bf16.mxu1 %v12368_v5  ;;  %v4495_v36 = vadd.f32 %v4491_v34, %v4415_v33  ;;  %v11451_v39 = vpop.f32.mrb[53].mxu0  ;;  %v7166_v33 = vld [vmem:[#allocation2 + $0x1a] sm:$0x1f] }
 0x160   : > { %12111 = vmatprep.subr.bf16.mxu0 %v12368_v5  ;;  %v11456_v40 = vpop.f32.mrb[53].mxu1 }
 0x161   : > { %11687 = vmatmul.mubr.msk.f32.vlgmr.msra.gmra.mrb[78].mxu1 %vm5330_vm4, %v6603_v42  ;;  %v4574_v44 = vadd.f32 %v4570_v35, %v4495_v36  ;;  %v7324_v35 = vld [vmem:[#allocation2 + $0x21] sm:$0x1f] }
 0x162   : > { %11698 = vmatmul.mubr.msk.f32.vlgmr.msra.gmra.mrb[80].mxu0 %vm5330_vm4, %v6682_v43  ;;  %12107 = vmatpush3.bf16.msra.mxu1 %v13008_v2  ;;  %v4655_v45 = vpop.f32.mrb[54].mxu0  ;;  %v7403_v36 = vld [vmem:[#allocation2 + $0x22] sm:$0x1f] }
 0x163   : > { %12113 = vmatpush3.bf16.msra.mxu0 %v13030_v9  ;;  %v4731_v46 = vpop.f32.mrb[54].mxu1  ;;  %12108 = vmatprep.subr.bf16.mxu1 %v12368_v5  ;;  %v4575_v47 = vadd.f32 %v13059_v37, %v4574_v44  ;;  %v11461_v48 = vpop.f32.mrb[55].mxu0  ;;  %v8372_v43 = vld [vmem:[%s15489_s3 + $0x40] sm:$0xff]  ;;  %v8373_v44 = vld [vmem:[%s15489_s3 + $0x48] sm:$0xff] }
 0x164   : > { %12114 = vmatprep.subr.bf16.mxu0 %v12368_v5  ;;  %v4732_v50 = vadd.f32 %v4731_v46, %v4655_v45  ;;  %v11466_v51 = vpop.f32.mrb[55].mxu1  ;;  %11708 = vmatprep.mubr.msk.f32.mxu1 %vm12367_vm1, %v12366_v1  ;;  %v8451_v45 = vld [vmem:[%s15489_s3 + $0x60] sm:$0xff]  ;;  %v8452_v46 = vld [vmem:[%s15489_s3 + $0x68] sm:$0xff] }
 0x165   : > { %11719 = vmatprep.mubr.msk.f32.mxu0 %vm12367_vm1, %v12366_v1  ;;  %v4576_v52 = vmax.f32 %v4575_v47, 0.0  ;;  %v12226_v47 = vpack.c.bf16 %v8373_v44, %v8372_v43  ;;  %v12232_v48 = vpack.c.bf16 %v8452_v46, %v8451_v45  ;;  %v8375_v51 = vld [vmem:[%s15489_s3 + $0x58] sm:$0xff] }
 0x166   : > { %12110 = vmatpush3.bf16.msra.mxu1 %v13034_v10  ;;  %v4809_v53 = vpop.f32.mrb[56].mxu0 }
 0x167   : > { %12116 = vmatpush3.bf16.msra.mxu0 %v13047_v13  ;;  %v4889_v54 = vpop.f32.mrb[56].mxu1  ;;  %12117 = vmatprep.subr.bf16.mxu1 %v12368_v5  ;;  %4578 = vst.msk [vmem:[#allocation2 + $0x28] sm:$0x7f] %vm992_vm3, %v4576_v52  ;;  %v4813_v56 = vadd.f32 %v4809_v53, %v4732_v50  ;;  %v11471_v57 = vpop.f32.mrb[57].mxu0  ;;  %v8374_v50 = vld [vmem:[%s15489_s3 + $0x50] sm:$0xff]  ;;  %v8454_v53 = vld [vmem:[%s15489_s3 + $0x78] sm:$0xff] }
 0x168   : > { %12123 = vmatprep.subr.bf16.mxu0 %v12368_v5  ;;  %v11476_v58 = vpop.f32.mrb[57].mxu1  ;;  %v8453_v52 = vld [vmem:[%s15489_s3 + $0x70] sm:$0xff]  ;;  %v12229_v57 = vpack.c.bf16 %v8375_v51, %v8374_v50 }
 0x169   : > { %11709 = vmatmul.mubr.msk.f32.vlgmr.msra.gmra.mrb[80].mxu1 %vm5330_vm4, %v6778_v60  ;;  %v4893_v0 = vadd.f32 %v4889_v54, %v4813_v56  ;;  %v8220_v54 = vld [vmem:[#allocation2 + $0x21] sm:$0x1f]  ;;  %v12235_v58 = vpack.c.bf16 %v8454_v53, %v8453_v52 }
 0x16a   : > { %11720 = vmatmul.mubr.msk.f32.vlgmr.msra.gmra.mrb[82].mxu0 %vm5330_vm4, %v6773_v61  ;;  %12119 = vmatpush3.bf16.msra.mxu1 %v13075_v63  ;;  %v4969_v3 = vpop.f32.mrb[58].mxu0  ;;  %v8215_v56 = vld [vmem:[#allocation2 + $0x20] sm:$0x1f]  ;;  %v8531_v61 = vld [vmem:[%s15489_s3 + $0x88] sm:$0xff] }
 0x16b   : > { %12125 = vmatpush3.bf16.msra.mxu0 %v13083_v8  ;;  %v5048_v4 = vpop.f32.mrb[58].mxu1  ;;  %12120 = vmatprep.subr.bf16.mxu1 %v12368_v5  ;;  %v4973_v6 = vadd.f32 %v4969_v3, %v4893_v0  ;;  %v11481_v7 = vpop.f32.mrb[59].mxu0  ;;  %v8530_v60 = vld [vmem:[%s15489_s3 + $0x80] sm:$0xff]  ;;  %v8610_v3 = vld [vmem:[%s15489_s3 + $0xa8] sm:$0xff] }
 0x16c   : > { %12126 = vmatprep.subr.bf16.mxu0 %v12368_v5  ;;  %v11486_v11 = vpop.f32.mrb[59].mxu1  ;;  %11730 = vmatprep.mubr.msk.f32.mxu1 %vm12367_vm1, %v12366_v1  ;;  %v8609_v0 = vld [vmem:[%s15489_s3 + $0xa0] sm:$0xff]  ;;  %v8532_v7 = vld [vmem:[%s15489_s3 + $0x90] sm:$0xff] }
 0x16d   : > { %11741 = vmatprep.mubr.msk.f32.mxu0 %vm12367_vm1, %v12366_v1  ;;  %v5052_v14 = vadd.f32 %v5048_v4, %v4973_v6  ;;  %v12238_v4 = vpack.c.bf16 %v8531_v61, %v8530_v60  ;;  %v12244_v6 = vpack.c.bf16 %v8610_v3, %v8609_v0  ;;  %v8533_v11 = vld [vmem:[%s15489_s3 + $0x98] sm:$0xff]  ;;  %v13608_v61 = vstv %s10732_s26  ;;  %s10731_s26 = sld [smem:[#allocation4 + $0x31]] }
 0x16e   : > { %12122 = vmatpush3.bf16.msra.mxu1 %v13094_v19  ;;  %v5128_v15 = vpop.f32.mrb[60].mxu0  ;;  %v8124_v39 = vld [vmem:[#allocation2 + $0x2a] sm:$0x1f]  ;;  %15733 = vst [vmem:[#allocation8_spill] sm:$0xff] %v13608_v61  ;;  %v13612_v3 = vld [vmem:[#allocation3 + $0x2] sm:$0x1f] }
 0x16f   : > { %12128 = vmatpush3.bf16.msra.mxu0 %v13106_v25  ;;  %12129 = vmatprep.subr.bf16.mxu1 %v12368_v5  ;;  %v5208_v16 = vpop.f32.mrb[60].mxu1  ;;  %v5132_v21 = vadd.f32 %v5128_v15, %v5052_v14  ;;  %v11491_v22 = vpop.f32.mrb[61].mxu0  ;;  %v8611_v14 = vld [vmem:[%s15489_s3 + $0xb0] sm:$0xff]  ;;  %v8612_v15 = vld [vmem:[%s15489_s3 + $0xb8] sm:$0xff] }
 0x170   : > { %12135 = vmatprep.subr.bf16.mxu0 %v12368_v5  ;;  %v11496_v23 = vpop.f32.mrb[61].mxu1  ;;  %v8688_v22 = vld [vmem:[%s15489_s3 + $0xc0] sm:$0xff] }
 0x171   : > { %11731 = vmatmul.mubr.msk.f32.vlgmr.msra.gmra.mrb[82].mxu1 %vm5330_vm4, %v6929_v18  ;;  %v5212_v26 = vadd.f32 %v5208_v16, %v5132_v21  ;;  %v8371_v16 = vld [vmem:[#allocation2 + $0x22] sm:$0x1f]  ;;  %v8450_v18 = vld [vmem:[#allocation2 + $0x28] sm:$0x1f]  ;;  %v12247_v21 = vpack.c.bf16 %v8612_v15, %v8611_v14  ;;  %v13625_v14 = vld [vmem:[%s15490_s4] ss:$0 sm:$0xff] }
 0x172   : > { %11742 = vmatmul.mubr.msk.f32.vlgmr.msra.gmra.mrb[84].mxu0 %vm5330_vm4, %v7008_v20  ;;  %12131 = vmatpush3.bf16.msra.mxu1 %v13112_v29  ;;  %v5287_v27 = vpop.f32.mrb[62].mxu0  ;;  %v12241_v20 = vpack.c.bf16 %v8533_v11, %v8532_v7  ;;  %v8689_v23 = vld [vmem:[%s15489_s3 + $0xc8] sm:$0xff]  ;;  %v13618_v7 = vld [vmem:[#allocation3 + $0x3] sm:$0x1f]  ;;  %v13620_v11 = vstv %s10736_s27  ;;  %s10735_s27 = sld [smem:[#allocation4 + $0x33]] }
 0x173   : > { %12137 = vmatpush3.bf16.msra.mxu0 %v13146_v55  ;;  %12132 = vmatprep.subr.bf16.mxu1 %v12368_v5  ;;  %v11501_v28 = vpop.f32.mrb[63].mxu0  ;;  %v5291_v30 = vadd.f32 %v5287_v27, %v5212_v26  ;;  %v8767_v26 = vld [vmem:[%s15489_s3 + $0xe0] sm:$0xff]  ;;  %v8768_v27 = vld [vmem:[%s15489_s3 + $0xe8] sm:$0xff]  ;;  %15735 = vst [vmem:[#allocation10_spill] sm:$0xff] %v13620_v11  ;;  %v9030_v15 = vmul.f32 %v13620_v11, %v13618_v7 }
 0x174   : > { %12138 = vmatprep.subr.bf16.mxu0 %v12368_v5  ;;  %11752 = vmatprep.mubr.msk.f32.mxu1 %vm12367_vm1, %v12366_v1  ;;  %v12250_v28 = vpack.c.bf16 %v8689_v23, %v8688_v22  ;;  %v13631_v22 = vstv %s10738_s28  ;;  %s10737_s28 = sld [smem:[#allocation4 + $0x34]] }
 0x175   : > { %11763 = vmatprep.mubr.msk.f32.mxu0 %vm12367_vm1, %v12366_v1  ;;  %v5292_v31 = vadd.f32 %v13059_v37, %v5291_v30  ;;  %v7245_v37 = vld [vmem:[#allocation2 + $0x20] sm:$0x1f]  ;;  %v12256_v30 = vpack.c.bf16 %v8768_v27, %v8767_v26  ;;  %15736 = vst [vmem:[#allocation11_spill] sm:$0xff] %v13631_v22 }
 0x176   : > { %12134 = vmatpush3.bf16.msra.mxu1 %v13126_v41 }
 0x177   : > { %12140 = vmatpush3.bf16.msra.mxu0 %v13165_v12  ;;  %12141 = vmatprep.subr.bf16.mxu1 %v12368_v5  ;;  %v5293_v34 = vmax.f32 %v5292_v31, 0.0  ;;  %v8690_v31 = vld [vmem:[%s15489_s3 + $0xd0] sm:$0xff] }
 0x178   : > { %12147 = vmatprep.subr.bf16.mxu0 %v12368_v5 }
 0x179   : > { %11753 = vmatmul.mubr.msk.f32.vlgmr.msra.gmra.mrb[84].mxu1 %vm5330_vm4, %v7087_v32  ;;  %5295 = vst.msk [vmem:[#allocation2 + $0x30] sm:$0x7f] %vm992_vm3, %v5293_v34  ;;  %v8691_v32 = vld [vmem:[%s15489_s3 + $0xd8] sm:$0xff] }
 0x17a   : > { %11764 = vmatmul.mubr.msk.f32.vlgmr.msra.gmra.mrb[86].mxu0 %vm5330_vm4, %v7166_v33  ;;  %12143 = vmatpush3.bf16.msra.mxu1 %v13154_v59  ;;  %v8769_v33 = vld [vmem:[%s15489_s3 + $0xf0] sm:$0xff]  ;;  %v8770_v34 = vld [vmem:[%s15489_s3 + $0xf8] sm:$0xff] }
 0x17b   : > { %12149 = vmatpush3.bf16.msra.mxu0 %v13183_v24  ;;  %12144 = vmatprep.subr.bf16.mxu1 %v12368_v5 }
 0x17c   : > { %12150 = vmatprep.subr.bf16.mxu0 %v12368_v5  ;;  %11774 = vmatprep.mubr.msk.f32.mxu1 %vm12367_vm1, %v12366_v1 }
 0x17d   : > { %11785 = vmatprep.mubr.msk.f32.mxu0 %vm12367_vm1, %v12366_v1 }
 0x17e   : > { %12146 = vmatpush3.bf16.msra.mxu1 %v13177_v17 }
 0x17f   : > { %12152 = vmatpush3.bf16.msra.mxu0 %v13197_v38  ;;  %12153 = vmatprep.subr.bf16.mxu1 %v12368_v5 }
 0x180   : > { %12159 = vmatprep.subr.bf16.mxu0 %v12368_v5 }
 0x181   : > { %11775 = vmatmul.mubr.msk.f32.vlgmr.msra.gmra.mrb[86].mxu1 %vm5330_vm4, %v7245_v37  ;;  %v8529_v37 = vld [vmem:[#allocation2 + $0x29] sm:$0x1f] }
 0x182   : > { %11786 = vmatmul.mubr.msk.f32.vlgmr.msra.gmra.mrb[88].mxu0 %vm5330_vm4, %v7324_v35  ;;  %12155 = vmatpush3.bf16.msra.mxu1 %v13211_v49  ;;  %v8608_v35 = vld [vmem:[#allocation2 + $0x2a] sm:$0x1f] }
 0x183   : > { %12161 = vmatpush3.bf16.msra.mxu0 %v13008_v2  ;;  %12156 = vmatprep.subr.bf16.mxu1 %v12368_v5  ;;  %v7499_v2 = vld [vmem:[#allocation2 + $0x19] sm:$0x1f] }
 0x184   : > { %12162 = vmatprep.subr.bf16.mxu0 %v12368_v5  ;;  %11796 = vmatprep.mubr.msk.f32.mxu1 %vm12367_vm1, %v12366_v1 }
 0x185   : > { %11807 = vmatprep.mubr.msk.f32.mxu0 %vm12367_vm1, %v12366_v1 }
 0x186   : > { %12158 = vmatpush3.bf16.msra.mxu1 %v13223_v62 }
 0x187   : > { %12164 = vmatpush3.bf16.msra.mxu0 %v13034_v10  ;;  %12165 = vmatprep.subr.bf16.mxu1 %v12368_v5  ;;  %v7650_v10 = vld [vmem:[#allocation2 + $0x1a] sm:$0x1f] }
 0x188   : > { %12171 = vmatprep.subr.bf16.mxu0 %v12368_v5 }
 0x189   : > { %11797 = vmatmul.mubr.msk.f32.vlgmr.msra.gmra.mrb[88].mxu1 %vm5330_vm4, %v7403_v36  ;;  %v12253_v36 = vpack.c.bf16 %v8691_v32, %v8690_v31  ;;  %v13635_v31 = vld [vmem:[#allocation3 + $0x5] sm:$0x1f]  ;;  %v13637_v32 = vstv %s10740_s29  ;;  %s10739_s29 = sld [smem:[#allocation4 + $0x35]] }
 0x18a   : > { %11808 = vmatmul.mubr.msk.f32.vlgmr.msra.gmra.mrb[90].mxu0 %vm5330_vm4, %v7499_v2  ;;  %12167 = vmatpush3.bf16.msra.mxu1 %v13030_v9  ;;  %v7494_v9 = vld [vmem:[#allocation2 + $0x18] sm:$0x1f]  ;;  %v12259_v2 = vpack.c.bf16 %v8770_v34, %v8769_v33  ;;  %15737 = vst [vmem:[#allocation12_spill] sm:$0xff] %v13637_v32  ;;  %v9088_v34 = vmul.f32 %v13637_v32, %v13635_v31 }
 0x18b   : > { %12173 = vmatpush3.bf16.msra.mxu0 %v13075_v63  ;;  %12168 = vmatprep.subr.bf16.mxu1 %v12368_v5  ;;  %v7808_v63 = vld [vmem:[#allocation2 + $0x21] sm:$0x1f] }
 0x18c   : > { %12174 = vmatprep.subr.bf16.mxu0 %v12368_v5  ;;  %11818 = vmatprep.mubr.msk.f32.mxu1 %vm12367_vm1, %v12366_v1 }
 0x18d   : > { %11829 = vmatprep.mubr.msk.f32.mxu0 %vm12367_vm1, %v12366_v1 }
 0x18e   : > { %12170 = vmatpush3.bf16.msra.mxu1 %v13047_v13  ;;  %v7729_v13 = vld [vmem:[#allocation2 + $0x20] sm:$0x1f] }
 0x18f   : > { %12176 = vmatpush3.bf16.msra.mxu0 %v13094_v19  ;;  %12177 = vmatprep.subr.bf16.mxu1 %v12368_v5  ;;  %v7887_v19 = vld [vmem:[#allocation2 + $0x22] sm:$0x1f] }
 0x190   : > { %12183 = vmatprep.subr.bf16.mxu0 %v12368_v5 }
 0x191   : > { %11819 = vmatmul.mubr.msk.f32.vlgmr.msra.gmra.mrb[90].mxu1 %vm5330_vm4, %v7494_v9  ;;  %v8846_v9 = vld [vmem:[%s15489_s3 + $0x100] sm:$0xff] }
 0x192   : > { %11830 = vmatmul.mubr.msk.f32.vlgmr.msra.gmra.mrb[92].mxu0 %vm5330_vm4, %v7650_v10  ;;  %12179 = vmatpush3.bf16.msra.mxu1 %v13083_v8  ;;  %v7966_v8 = vld [vmem:[#allocation2 + $0x28] sm:$0x1f] }
 0x193   : > { %12185 = vmatpush3.bf16.msra.mxu0 %v13112_v29  ;;  %12180 = vmatprep.subr.bf16.mxu1 %v12368_v5  ;;  %v8222_v29 = vld [vmem:[%s15489_s3 + $0x28] sm:$0xff] }
 0x194   : > { %12186 = vmatprep.subr.bf16.mxu0 %v12368_v5  ;;  %11840 = vmatprep.mubr.msk.f32.mxu1 %vm12367_vm1, %v12366_v1  ;;  %v8847_v10 = vld [vmem:[%s15489_s3 + $0x108] sm:$0xff] }
 0x195   : > { %11851 = vmatprep.mubr.msk.f32.mxu0 %vm12367_vm1, %v12366_v1 }
 0x196   : > { %12182 = vmatpush3.bf16.msra.mxu1 %v13106_v25  ;;  %v8221_v25 = vld [vmem:[%s15489_s3 + $0x20] sm:$0xff] }
 0x197   : > { %12188 = vmatpush3.bf16.msra.mxu0 %v13126_v41  ;;  %12189 = vmatprep.subr.bf16.mxu1 %v12368_v5  ;;  %v8216_v41 = vld [vmem:[%s15489_s3] sm:$0xff] }
 0x198   : > { %12195 = vmatprep.subr.bf16.mxu0 %v12368_v5 }
 0x199   : > { %11841 = vmatmul.mubr.msk.f32.vlgmr.msra.gmra.mrb[92].mxu1 %vm5330_vm4, %v7729_v13  ;;  %v8687_v13 = vld [vmem:[#allocation2 + $0x30] sm:$0x1f] }
 0x19a   : > { %11852 = vmatmul.mubr.msk.f32.vlgmr.msra.gmra.mrb[94].mxu0 %vm5330_vm4, %v7808_v63  ;;  %12191 = vmatpush3.bf16.msra.mxu1 %v13146_v55  ;;  %v8217_v55 = vld [vmem:[%s15489_s3 + $0x8] sm:$0xff]  ;;  %v8766_v63 = vld [vmem:[#allocation2 + $0x31] sm:$0x1f] }
 0x19b   : > { %12197 = vmatpush3.bf16.msra.mxu0 %v13154_v59  ;;  %12192 = vmatprep.subr.bf16.mxu1 %v12368_v5  ;;  %v12214_v59 = vpack.c.bf16 %v8222_v29, %v8221_v25  ;;  %v8849_v25 = vld [vmem:[%s15489_s3 + $0x118] sm:$0xff] }
 0x19c   : > { %12198 = vmatprep.subr.bf16.mxu0 %v12368_v5  ;;  %11862 = vmatprep.mubr.msk.f32.mxu1 %vm12367_vm1, %v12366_v1 }
 0x19d   : > { %11873 = vmatprep.mubr.msk.f32.mxu0 %vm12367_vm1, %v12366_v1 }
 0x19e   : > { %12194 = vmatpush3.bf16.msra.mxu1 %v13165_v12  ;;  %v12220_v12 = vpack.c.bf16 %v8217_v55, %v8216_v41  ;;  %v8845_v41 = vld [vmem:[#allocation2 + $0x32] sm:$0x1f] }
 0x19f   : > { %12200 = vmatpush3.bf16.msra.mxu0 %v13177_v17  ;;  %12201 = vmatprep.subr.bf16.mxu1 %v12368_v5  ;;  %v8223_v17 = vld [vmem:[%s15489_s3 + $0x30] sm:$0xff] }
 0x1a0   : > { %12207 = vmatprep.subr.bf16.mxu0 %v12368_v5 }
 0x1a1   : > { %11863 = vmatmul.mubr.msk.f32.vlgmr.msra.gmra.mrb[94].mxu1 %vm5330_vm4, %v7887_v19  ;;  %v8848_v19 = vld [vmem:[%s15489_s3 + $0x110] sm:$0xff] }
 0x1a2   : > { %11874 = vmatmul.mubr.msk.f32.vlgmr.msra.gmra.mrb[96].mxu0 %vm5330_vm4, %v7966_v8  ;;  %12203 = vmatpush3.bf16.msra.mxu1 %v13183_v24  ;;  %v8224_v24 = vld [vmem:[%s15489_s3 + $0x38] sm:$0xff]  ;;  %v12262_v8 = vpack.c.bf16 %v8847_v10, %v8846_v9  ;;  %v12265_v29 = vpack.c.bf16 %v8849_v25, %v8848_v19 }
 0x1a3   : > { %12209 = vmatpush3.bf16.msra.mxu0 %v13211_v49  ;;  %12204 = vmatprep.subr.bf16.mxu1 %v12368_v5  ;;  %v8219_v49 = vld [vmem:[%s15489_s3 + $0x18] sm:$0xff]  ;;  %v12217_v40 = vpack.c.bf16 %v8224_v24, %v8223_v17 }
 0x1a4   : > { %12210 = vmatprep.subr.bf16.mxu0 %v12368_v5  ;;  %11884 = vmatprep.mubr.msk.f32.mxu1 %vm12367_vm1, %v12366_v1 }
 0x1a5   : > { %11895 = vmatprep.mubr.msk.f32.mxu0 %vm12367_vm1, %v12366_v1 }
 0x1a6   : > { %12206 = vmatpush3.bf16.msra.mxu1 %v13197_v38  ;;  %v8218_v38 = vld [vmem:[%s15489_s3 + $0x10] sm:$0xff] }
 0x1a7   : > { %12212 = vmatpush3.bf16.msra.mxu0 %v13223_v62  ;;  %12213 = vmatprep.subr.bf16.mxu1 %v12368_v5  ;;  %v8045_v62 = vld [vmem:[#allocation2 + $0x29] sm:$0x1f]  ;;  %v12223_v42 = vpack.c.bf16 %v8219_v49, %v8218_v38 }
 0x1a8   : > { %12219 = vmatprep.subr.bf16.mxu0 %v12368_v5 }
 0x1a9   : > { %11885 = vmatmul.mubr.msk.f32.vlgmr.msra.gmra.mrb[96].mxu1 %vm5330_vm4, %v8045_v62 }
 0x1aa   : > { %11896 = vmatmul.mubr.msk.f32.vlgmr.msra.gmra.mrb[98].mxu0 %vm5330_vm4, %v8124_v39  ;;  %12215 = vmatpush3.bf16.msra.mxu1 %v12214_v59 }
 0x1ab   : > { %12221 = vmatpush3.bf16.msra.mxu0 %v12220_v12  ;;  %12216 = vmatprep.subr.bf16.mxu1 %v12368_v5 }
 0x1ac   : > { %12222 = vmatprep.subr.bf16.mxu0 %v12368_v5  ;;  %11906 = vmatprep.mubr.msk.f32.mxu1 %vm12367_vm1, %v12366_v1 }
 0x1ad   : > { %11917 = vmatprep.mubr.msk.f32.mxu0 %vm12367_vm1, %v12366_v1 }
 0x1ae   : > { %12218 = vmatpush3.bf16.msra.mxu1 %v12217_v40 }
 0x1af   : > { %12224 = vmatpush3.bf16.msra.mxu0 %v12223_v42  ;;  %12225 = vmatprep.subr.bf16.mxu1 %v12368_v5 }
 0x1b0   : > { %12231 = vmatprep.subr.bf16.mxu0 %v12368_v5 }
 0x1b1   : > { %11907 = vmatmul.mubr.msk.f32.vlgmr.msra.gmra.mrb[98].mxu1 %vm5330_vm4, %v8220_v54  ;;  %v13600_v54 = vld [vmem:[#allocation3] sm:$0x1f] }
 0x1b2   : > { %11918 = vmatmul.mubr.msk.f32.vlgmr.msra.gmra.mrb[100].mxu0 %vm5330_vm4, %v8215_v56  ;;  %12227 = vmatpush3.bf16.msra.mxu1 %v12226_v47  ;;  %v13602_v56 = vstv %s8936_s25  ;;  %s10770_s25 = sld [smem:[#allocation4 + $0x14]] }
 0x1b3   : > { %12233 = vmatpush3.bf16.msra.mxu0 %v12232_v48  ;;  %12228 = vmatprep.subr.bf16.mxu1 %v12368_v5  ;;  %15732 = vst [vmem:[#allocation7_spill] sm:$0xff] %v13602_v56  ;;  %v8943_v60 = vmul.f32 %v13602_v56, %v13600_v54 }
 0x1b4   : > { %12234 = vmatprep.subr.bf16.mxu0 %v12368_v5  ;;  %11928 = vmatprep.mubr.msk.f32.mxu1 %vm12367_vm1, %v12366_v1 }
 0x1b5   : > { %11939 = vmatprep.mubr.msk.f32.mxu0 %vm12367_vm1, %v12366_v1 }
 0x1b6   : > { %12230 = vmatpush3.bf16.msra.mxu1 %v12229_v57  ;;  %v13604_v57 = vld [vmem:[#allocation3 + $0x1] sm:$0x1f] }
 0x1b7   : > { %12236 = vmatpush3.bf16.msra.mxu0 %v12235_v58  ;;  %12237 = vmatprep.subr.bf16.mxu1 %v12368_v5  ;;  %v8972_v0 = vmul.f32 %v13608_v61, %v13604_v57 }
 0x1b8   : > { %12243 = vmatprep.subr.bf16.mxu0 %v12368_v5 }
 0x1b9   : > { %11929 = vmatmul.mubr.msk.f32.vlgmr.msra.gmra.mrb[100].mxu1 %vm5330_vm4, %v8371_v16 }
 0x1ba   : > { %11940 = vmatmul.mubr.msk.f32.vlgmr.msra.gmra.mrb[102].mxu0 %vm5330_vm4, %v8450_v18  ;;  %12239 = vmatpush3.bf16.msra.mxu1 %v12238_v4  ;;  %v13614_v4 = vstv %s10734_s12  ;;  %s10733_s12 = sld [smem:[#allocation4 + $0x32]] }
 0x1bb   : > { %12245 = vmatpush3.bf16.msra.mxu0 %v12244_v6  ;;  %12240 = vmatprep.subr.bf16.mxu1 %v12368_v5  ;;  %15734 = vst [vmem:[#allocation9_spill] sm:$0xff] %v13614_v4  ;;  %v8977_v6 = vadd.f32 %v8972_v0, %v8943_v60 }
 0x1bc   : > { %12246 = vmatprep.subr.bf16.mxu0 %v12368_v5  ;;  %11950 = vmatprep.mubr.msk.f32.mxu1 %vm12367_vm1, %v12366_v1 }
 0x1bd   : > { %11961 = vmatprep.mubr.msk.f32.mxu0 %vm12367_vm1, %v12366_v1 }
 0x1be   : > { %12242 = vmatpush3.bf16.msra.mxu1 %v12241_v20 }
 0x1bf   : > { %12248 = vmatpush3.bf16.msra.mxu0 %v12247_v21  ;;  %12249 = vmatprep.subr.bf16.mxu1 %v12368_v5  ;;  %v13629_v21 = vld [vmem:[#allocation3 + $0x4] sm:$0x1f] }
 0x1c0   : > { %12255 = vmatprep.subr.bf16.mxu0 %v12368_v5 }
 0x1c1   : > { %11951 = vmatmul.mubr.msk.f32.vlgmr.msra.gmra.mrb[102].mxu1 %vm5330_vm4, %v8529_v37 }
 0x1c2   : > { %11962 = vmatmul.mubr.msk.f32.vlgmr.msra.gmra.mrb[104].mxu0 %vm5330_vm4, %v8608_v35  ;;  %12251 = vmatpush3.bf16.msra.mxu1 %v12250_v28  ;;  %v9059_v28 = vmul.f32 %v13631_v22, %v13629_v21  ;;  %v13642_v35 = vld [vmem:[#allocation3 + $0x6] sm:$0x1f] }
 0x1c3   : > { %12257 = vmatpush3.bf16.msra.mxu0 %v12256_v30  ;;  %12252 = vmatprep.subr.bf16.mxu1 %v12368_v5 }
 0x1c4   : > { %12258 = vmatprep.subr.bf16.mxu0 %v12368_v5  ;;  %11972 = vmatprep.mubr.msk.f32.mxu1 %vm12367_vm1, %v12366_v1 }
 0x1c5   : > { %11983 = vmatprep.mubr.msk.f32.mxu0 %vm12367_vm1, %v12366_v1 }
 0x1c6   : > { %12254 = vmatpush3.bf16.msra.mxu1 %v12253_v36  ;;  %v13644_v36 = vstv %s10742_s30  ;;  %s10741_s30 = sld [smem:[#allocation4 + $0x36]] }
 0x1c7   : > { %12260 = vmatpush3.bf16.msra.mxu0 %v12259_v2  ;;  %12261 = vmatprep.subr.bf16.mxu1 %v12368_v5  ;;  %15738 = vst [vmem:[#allocation13_spill] sm:$0xff] %v13644_v36  ;;  %v9117_v9 = vmul.f32 %v13644_v36, %v13642_v35 }
 0x1c9   : > { %11973 = vmatmul.mubr.msk.f32.vlgmr.msra.gmra.mrb[104].mxu1 %vm5330_vm4, %v8687_v13  ;;  %v13650_v13 = vld [vmem:[#allocation3 + $0x10] sm:$0x1f] }
 0x1ca   : > { %11984 = vmatmul.mubr.msk.f32.vlgmr.msra.gmra.mrb[106].mxu0 %vm5330_vm4, %v8766_v63  ;;  %12263 = vmatpush3.bf16.msra.mxu1 %v12262_v8  ;;  %v13652_v63 = vstv %s10744_s9  ;;  %s10747_s9 = sld [smem:[#allocation4 + $0x39]] }
 0x1cb   : > { %11994 = vmatprep.mubr.msk.f32.mxu1 %vm12367_vm1, %v12366_v1  ;;  %12264 = vmatprep.subr.bf16.mxu1 %v12368_v5  ;;  %v9001_v1 = vmul.f32 %v13614_v4, %v13612_v3  ;;  %15739 = vst [vmem:[#allocation14_spill] sm:$0xff] %v13652_v63  ;;  %v9147_v25 = vmul.f32 %v13652_v63, %v13650_v13 }
 0x1cd   : > { %v9006_v20 = vadd.f32 %v9001_v1, %v8977_v6  ;;  %v13693_v6 = vld [vmem:[#allocation3 + $0x13] sm:$0x1f] }
 0x1ce   : > { %12266 = vmatpush3.bf16.msra.mxu1 %v12265_v29 }
 0x1cf   : > { %v9035_v30 = vadd.f32 %v9030_v15, %v9006_v20 }
 0x1d1   : > { %11995 = vmatmul.mubr.msk.f32.vlgmr.msra.gmra.mrb[106].mxu1 %vm5330_vm4, %v8845_v41  ;;  %v9064_v37 = vadd.f32 %v9059_v28, %v9035_v30 }
 0x1d3   : > { %v9093_v10 = vadd.f32 %v9088_v34, %v9064_v37  ;;  %v13702_v34 = vld [vmem:[#allocation3 + $0x16] sm:$0x1f] }
 0x1e8   : > { %v5400_v55 = vpop.f32.mrb[62].mxu1 }
 0x1e9   : > { %v5473_v59 = vpop.f32.mrb[64].mxu0  ;;  %v11512_v17 = vpop.f32.mrb[63].mxu1 }
 0x1ea   : > { %v5474_v12 = vadd.f32 %v5473_v59, %v5400_v55  ;;  %v11523_v24 = vpop.f32.mrb[65].mxu0  ;;  %v13660_v55 = vld [vmem:[#allocation3 + $0x10] sm:$0x1f] }
 0x1eb   : > { %v13662_v59 = vld [vmem:[#allocation3 + $0x11] sm:$0x1f] }
 0x1f0   : > { %v5551_v38 = vpop.f32.mrb[64].mxu1 }
 0x1f1   : > { %v5555_v49 = vadd.f32 %v5551_v38, %v5474_v12  ;;  %v11534_v62 = vpop.f32.mrb[65].mxu1  ;;  %v9122_v12 = vadd.f32 %v9117_v9, %v9093_v10  ;;  %v9118_v10 = vmul.f32 %v13644_v36, %v13702_v34 }
 0x1f2   : > { %v8973_v62 = vmul.f32 %v13608_v61, %v13662_v59 }
 0x1fa   : > { %v5630_v39 = vpop.f32.mrb[66].mxu0 }
 0x1fb   : > { %v5709_v40 = vpop.f32.mrb[66].mxu1  ;;  %v5634_v42 = vadd.f32 %v5630_v39, %v5555_v49  ;;  %v11545_v43 = vpop.f32.mrb[67].mxu0  ;;  %v8944_v49 = vmul.f32 %v13602_v56, %v13660_v55  ;;  %v13668_v39 = vld [vmem:[#allocation3 + $0x11] sm:$0x1f] }
 0x1fc   : > { %v11556_v44 = vpop.f32.mrb[67].mxu1  ;;  %v9152_v43 = vadd.f32 %v9147_v25, %v9122_v12  ;;  %v13712_v25 = vld [vmem:[#allocation3 + $0x20] sm:$0x1f] }
 0x1fd   : > { %v5713_v45 = vadd.f32 %v5709_v40, %v5634_v42  ;;  %v13670_v40 = vstv %s10746_s10  ;;  %v13672_v42 = vld [vmem:[#allocation3 + $0x12] sm:$0x1f]  ;;  %v8945_v12 = vmul.f32 %v13602_v56, %v13712_v25  ;;  %s10749_s10 = sld [smem:[#allocation4 + $0x3a]] }
 0x1fe   : > { %15740 = vst [vmem:[#allocation15_spill] sm:$0xff] %v13670_v40 }
 0x202   : > { %v5788_v46 = vpop.f32.mrb[68].mxu0 }
 0x203   : > { %v5792_v5 = vadd.f32 %v5788_v46, %v5713_v45  ;;  %v11567_v47 = vpop.f32.mrb[69].mxu0  ;;  %v8978_v45 = vadd.f32 %v8973_v62, %v8944_v49  ;;  %v9002_v46 = vmul.f32 %v13614_v4, %v13672_v42  ;;  %v13726_v62 = vld [vmem:[#allocation3 + $0x24] sm:$0x1f] }
 0x204   : > { %v13678_v47 = vld [vmem:[#allocation3 + $0x13] sm:$0x1f] }
 0x20c   : > { %v5867_v48 = vpop.f32.mrb[68].mxu1 }
 0x20d   : > { %v5946_v50 = vpop.f32.mrb[70].mxu0  ;;  %v5871_v51 = vadd.f32 %v5867_v48, %v5792_v5  ;;  %v11578_v52 = vpop.f32.mrb[69].mxu1  ;;  %v13676_v5 = vld [vmem:[#allocation3 + $0x12] sm:$0x1f]  ;;  %v9176_v48 = vmul.f32 %v13670_v40, %v13668_v39 }
 0x20e   : > { %v11589_v53 = vpop.f32.mrb[71].mxu0  ;;  %v13685_v52 = vstv %s13648_s11  ;;  %s10751_s11 = sld [smem:[#allocation4 + $0x3b]] }
 0x20f   : > { %v5950_v58 = vadd.f32 %v5946_v50, %v5871_v51  ;;  %v9007_v50 = vadd.f32 %v9002_v46, %v8978_v45  ;;  %v9031_v51 = vmul.f32 %v13620_v11, %v13678_v47  ;;  %15741 = vst [vmem:[#allocation16_spill] sm:$0xff] %v13685_v52  ;;  %v13687_v53 = vld [vmem:[#allocation3 + $0x14] sm:$0x1f]  ;;  %v9205_v60 = vmul.f32 %v13685_v52, %v13676_v5 }
 0x210   : > { %v9060_v1 = vmul.f32 %v13631_v22, %v13687_v53 }
 0x211   : > { %v9036_v0 = vadd.f32 %v9031_v51, %v9007_v50  ;;  %v13732_v50 = vld [vmem:[#allocation3 + $0x21] sm:$0x1f] }
 0x213   : > { %v9065_v30 = vadd.f32 %v9060_v1, %v9036_v0  ;;  %v13736_v0 = vld [vmem:[#allocation3 + $0x25] sm:$0x1f] }
 0x214   : > { %v6025_v16 = vpop.f32.mrb[70].mxu1  ;;  %v13738_v1 = vld [vmem:[#allocation3 + $0x22] sm:$0x1f] }
 0x215   : > { %v6131_v18 = vpop.f32.mrb[72].mxu0  ;;  %v6029_v23 = vadd.f32 %v6025_v16, %v5950_v58  ;;  %v11600_v26 = vpop.f32.mrb[71].mxu1  ;;  %v9181_v58 = vadd.f32 %v9176_v48, %v9152_v43 }
 0x216   : > { %v11611_v27 = vpop.f32.mrb[73].mxu0 }
 0x217   : > { %v6036_v33 = vadd.f32 %v13625_v14, %v6029_v23  ;;  %v9210_v20 = vadd.f32 %v9205_v60, %v9181_v58  ;;  %v13698_v23 = vstv %s13658_s13  ;;  %s10753_s13 = sld [smem:[#allocation4 + $0x3c]] }
 0x218   : > { %15742 = vst [vmem:[#allocation17_spill] sm:$0xff] %v13698_v23  ;;  %v9234_v37 = vmul.f32 %v13698_v23, %v13693_v6 }
 0x219   : > { %v6037_v2 = vmax.f32 %v6036_v33, 0.0 }
 0x21b   : > { %v6044_v8 = vsel %vm6038_vm7, %v6037_v2, -inf  ;;  %v6039_v19 = vsel %vm6038_vm7, %v6037_v2, 0.0 }
 0x21c   : > { %6045 = vmax.xlane.f32.xlu1 %v6044_v8  ;;  %6040 = vadd.xlane.f32.xlu0 %v6039_v19  ;;  %v6204_v41 = vpop.f32.mrb[72].mxu1  ;;  %v13708_v8 = vld [vmem:[#allocation3 + $0x20] sm:$0x1f]  ;;  %v9239_v19 = vadd.f32 %v9234_v37, %v9210_v20  ;;  %v9090_v37 = vmul.f32 %v13637_v32, %v13736_v0 }
 0x21d   : > { %v6282_v29 = vpop.f32.mrb[74].mxu0  ;;  %v6205_v17 = vadd.f32 %v6204_v41, %v6131_v18  ;;  %v11622_v24 = vpop.f32.mrb[73].mxu1  ;;  %v13695_v18 = vld [vmem:[#allocation3 + $0x15] sm:$0x1f]  ;;  %v9148_v43 = vmul.f32 %v13652_v63, %v13708_v8  ;;  %v13742_v20 = vld [vmem:[#allocation3 + $0x23] sm:$0x1f] }
 0x21e   : > { %v11633_v38 = vpop.f32.mrb[75].mxu0  ;;  %v9089_v33 = vmul.f32 %v13637_v32, %v13695_v18  ;;  %v13720_v24 = vld [vmem:[#allocation3 + $0x22] sm:$0x1f]  ;;  %v13836_v32 = vstv %s10768_s24  ;;  %s13961_s24 = sld [smem:[#allocation4 + $0x45]] }
 0x21f   : > { %v6286_v44 = vadd.f32 %v6282_v29, %v6205_v17  ;;  %v13714_v29 = vld [vmem:[#allocation3 + $0x21] sm:$0x1f]  ;;  %v9003_v49 = vmul.f32 %v13614_v4, %v13720_v24  ;;  %15755 = vst [vmem:[#allocation30_spill] sm:$0xff] %v13836_v32 }
 0x220   : > { %v9094_v9 = vadd.f32 %v9089_v33, %v9065_v30  ;;  %v8974_v17 = vmul.f32 %v13608_v61, %v13714_v29  ;;  %v13722_v38 = vld [vmem:[#allocation3 + $0x23] sm:$0x1f]  ;;  %v9177_v30 = vmul.f32 %v13670_v40, %v13732_v50 }
 0x221   : > { %v9032_v48 = vmul.f32 %v13620_v11, %v13722_v38 }
 0x222   : > { %v9123_v41 = vadd.f32 %v9118_v10, %v9094_v9  ;;  %v8979_v46 = vadd.f32 %v8974_v17, %v8945_v12  ;;  %v13752_v9 = vld [vmem:[#allocation3 + $0x14] sm:$0x1f]  ;;  %v13754_v10 = vld [vmem:[#allocation3 + $0x24] sm:$0x1f]  ;;  %v13757_v12 = vstv %s13710_s14  ;;  %s10755_s14 = sld [smem:[#allocation4 + $0x3d]] }
 0x223   : > { %15743 = vst [vmem:[#allocation18_spill] sm:$0xff] %v13757_v12 }
 0x224   : > { %v6361_v15 = vpop.f32.mrb[74].mxu1 }
 0x225   : > { %v6440_v16 = vpop.f32.mrb[76].mxu0  ;;  %v6365_v26 = vadd.f32 %v6361_v15, %v6286_v44  ;;  %v11644_v27 = vpop.f32.mrb[75].mxu1  ;;  %v9008_v15 = vadd.f32 %v9003_v49, %v8979_v46  ;;  %v9264_v46 = vmul.f32 %v13757_v12, %v13754_v10 }
 0x226   : > { %v11655_v28 = vpop.f32.mrb[77].mxu0  ;;  %v13744_v27 = vld [vmem:[#allocation3 + $0x26] sm:$0x1f] }
 0x227   : > { %v6444_v2 = vadd.f32 %v6440_v16, %v6365_v26  ;;  %v9061_v16 = vmul.f32 %v13631_v22, %v13726_v62  ;;  %v9153_v28 = vadd.f32 %v9148_v43, %v9123_v41  ;;  %v9037_v33 = vadd.f32 %v9032_v48, %v9008_v15  ;;  %v13838_v22 = vld [vmem:[#allocation3 + $0x26] sm:$0x1f] }
 0x228   : > { %v9235_v41 = vmul.f32 %v13698_v23, %v13742_v20  ;;  %v9119_v43 = vmul.f32 %v13644_v36, %v13744_v27  ;;  %v13772_v15 = vstv %s13734_s15  ;;  %s10757_s15 = sld [smem:[#allocation4 + $0x3e]] }
 0x229   : > { %v9182_v17 = vadd.f32 %v9177_v30, %v9153_v28  ;;  %v9066_v49 = vadd.f32 %v9061_v16, %v9037_v33  ;;  %15744 = vst [vmem:[#allocation19_spill] sm:$0xff] %v13772_v15 }
 0x22c   : > { %v6519_v44 = vpop.f32.mrb[76].mxu1 }
 0x22d   : > { %v6598_v45 = vpop.f32.mrb[78].mxu0  ;;  %v6523_v51 = vadd.f32 %v6519_v44, %v6444_v2  ;;  %v11666_v58 = vpop.f32.mrb[77].mxu1  ;;  %v9206_v2 = vmul.f32 %v13685_v52, %v13738_v1  ;;  %v13784_v52 = vld [vmem:[#allocation3 + $0x26] sm:$0x1f] }
 0x22e   : > { %v11677_v60 = vpop.f32.mrb[79].mxu0  ;;  %v9095_v58 = vadd.f32 %v9090_v37, %v9066_v49  ;;  %v13782_v49 = vld [vmem:[#allocation3 + $0x16] sm:$0x1f] }
 0x22f   : > { %v6602_v26 = vadd.f32 %v6598_v45, %v6523_v51  ;;  %v9211_v44 = vadd.f32 %v9206_v2, %v9182_v17  ;;  %v9263_v45 = vmul.f32 %v13757_v12, %v13752_v9  ;;  %v13769_v60 = vld [vmem:[#allocation3 + $0x15] sm:$0x1f]  ;;  %v13774_v17 = vld [vmem:[#allocation3 + $0x25] sm:$0x1f] }
 0x230   : > { %v13776_v23 = vadd.f32 %v9119_v43, %v9095_v58  ;;  %v9292_v37 = vmul.f32 %v13772_v15, %v13769_v60  ;;  %v13800_v58 = vstv %s13767_s17  ;;  %s10761_s17 = sld [smem:[#allocation4 + $0x40]] }
 0x231   : > { %v9240_v33 = vadd.f32 %v9235_v41, %v9211_v44  ;;  %v9268_v2 = vadd.f32 %v9263_v45, %v9239_v19  ;;  %v13788_v19 = vstv %s10756_s16  ;;  %15747 = vst [vmem:[#allocation22_spill] sm:$0xff] %v13800_v58  ;;  %s10759_s16 = sld [smem:[#allocation4 + $0x3f]] }
 0x232   : > { %15745 = vst [vmem:[#allocation20_spill] sm:$0xff] %v13776_v23  ;;  %15746 = vst [vmem:[#allocation21_spill] sm:$0xff] %v13788_v19  ;;  %v9321_v45 = vmul.f32 %v13788_v19, %v13782_v49 }
 0x233   : > { %v9269_v36 = vadd.f32 %v9264_v46, %v9240_v33  ;;  %v9297_v43 = vadd.f32 %v9292_v37, %v9268_v2  ;;  %v9322_v46 = vmul.f32 %v13788_v19, %v13784_v52  ;;  %v13804_v33 = vld [vmem:[#allocation3 + $0x21] sm:$0x1f] }
 0x234   : > { %v6677_v48 = vpop.f32.mrb[78].mxu1 }
 0x235   : > { %v6756_v51 = vpop.f32.mrb[80].mxu0  ;;  %v6681_v16 = vadd.f32 %v6677_v48, %v6602_v26  ;;  %v11688_v28 = vpop.f32.mrb[79].mxu1  ;;  %v9293_v26 = vmul.f32 %v13772_v15, %v13774_v17  ;;  %v13811_v15 = vstv %s13778_s18  ;;  %s10763_s18 = sld [smem:[#allocation4 + $0x41]] }
 0x236   : > { %v11699_v30 = vpop.f32.mrb[81].mxu0  ;;  %15749 = vst [vmem:[#allocation24_spill] sm:$0xff] %v13811_v15 }
 0x237   : > { %v6760_v12 = vadd.f32 %v6756_v51, %v6681_v16  ;;  %v9298_v44 = vadd.f32 %v9293_v26, %v9269_v36  ;;  %v13797_v51 = vld [vmem:[#allocation3 + $0x20] sm:$0x1f]  ;;  %v9326_v30 = vadd.f32 %v9321_v45, %v9297_v43 }
 0x238   : > { %v9351_v19 = vmul.f32 %v13800_v58, %v13797_v51  ;;  %v13813_v43 = vld [vmem:[#allocation3 + $0x22] sm:$0x1f] }
 0x239   : > { %v6761_v41 = vadd.f32 %v13625_v14, %v6760_v12  ;;  %v13802_v12 = vadd.f32 %v9322_v46, %v9298_v44  ;;  %v9380_v44 = vmul.f32 %v13811_v15, %v13804_v33  ;;  %v13817_v45 = vld [vmem:[#allocation3 + $0x23] sm:$0x1f] }
 0x23a   : > { %v9356_v46 = vadd.f32 %v9351_v19, %v9326_v30 }
 0x23b   : > { %v6762_v48 = vmax.f32 %v6761_v41, 0.0  ;;  %15748 = vst [vmem:[#allocation23_spill] sm:$0xff] %v13802_v12  ;;  %v13832_v12 = vld [vmem:[#allocation3 + $0x25] sm:$0x1f] }
 0x23c   : > { %v6852_v16 = vpop.f32.mrb[80].mxu1  ;;  %15754 = vst [vmem:[#allocation29_spill] sm:$0xff] %v13832_v12 }
 0x23d   : > { %v6925_v28 = vpop.f32.mrb[82].mxu0  ;;  %v11710_v2 = vpop.f32.mrb[81].mxu1  ;;  %v6767_v26 = vsel %vm6038_vm7, %v6762_v48, -inf  ;;  %v6763_v41 = vsel %vm6038_vm7, %v6762_v48, 0.0 }
 0x23e   : > { %v6926_v36 = vadd.f32 %v6925_v28, %v6852_v16  ;;  %v11721_v37 = vpop.f32.mrb[83].mxu0  ;;  %6768 = vmax.xlane.f32.xlu1 %v6767_v26  ;;  %6764 = vadd.xlane.f32.xlu0 %v6763_v41  ;;  %v13820_v16 = vstv %s13790_s19  ;;  %v13824_v28 = vstv %s10764_s20  ;;  %v13826_v2 = vld [vmem:[#allocation3 + $0x24] sm:$0x1f]  ;;  %v13830_v41 = vstv %s10766_s23  ;;  %s10765_s19 = sld [smem:[#allocation4 + $0x42]]  ;;  %s10767_s20 = sld [smem:[#allocation4 + $0x43]] }
 0x23f   : > { %15750 = vst [vmem:[#allocation25_spill] sm:$0xff] %v13820_v16  ;;  %v9409_v48 = vmul.f32 %v13820_v16, %v13813_v43  ;;  %15751 = vst [vmem:[#allocation26_spill] sm:$0xff] %v13824_v28  ;;  %v9385_v37 = vadd.f32 %v9380_v44, %v9356_v46  ;;  %v9438_v26 = vmul.f32 %v13824_v28, %v13817_v45  ;;  %v13842_v28 = vstv %s10770_s25  ;;  %s10769_s23 = sld [smem:[#allocation4 + $0x44]]  ;;  %s13969_s25 = sld [smem:[#allocation4 + $0x15]] }
 0x240   : > { %15752 = vst [vmem:[#allocation27_spill] sm:$0xff] %v13826_v2  ;;  %15753 = vst [vmem:[#allocation28_spill] sm:$0xff] %v13830_v41  ;;  %v9467_v30 = vmul.f32 %v13830_v41, %v13826_v2  ;;  %v9496_v46 = vmul.f32 %v13836_v32, %v13832_v12 }
 0x241   : > { %v9414_v19 = vadd.f32 %v9409_v48, %v9385_v37  ;;  %15756 = vst [vmem:[#allocation31_spill] sm:$0xff] %v13842_v28  ;;  %v9525_v48 = vmul.f32 %v13842_v28, %v13838_v22 }
 0x243   : > { %v9443_v44 = vadd.f32 %v9438_v26, %v9414_v19 }
 0x244   : > { %v7003_v15 = vpop.f32.mrb[82].mxu1 }
 0x245   : > { %v7082_v58 = vpop.f32.mrb[84].mxu0  ;;  %v7007_v16 = vadd.f32 %v7003_v15, %v6926_v36  ;;  %v11732_v40 = vpop.f32.mrb[83].mxu1  ;;  %v9472_v11 = vadd.f32 %v9467_v30, %v9443_v44 }
 0x246   : > { %v11743_v23 = vpop.f32.mrb[85].mxu0 }
 0x247   : > { %v7086_v63 = vadd.f32 %v7082_v58, %v7007_v16  ;;  %v9501_v37 = vadd.f32 %v9496_v46, %v9472_v11 }
 0x249   : > { %v13846_v2 = vadd.f32 %v9525_v48, %v9501_v37 }
 0x24c   : > { %v7161_v41 = vpop.f32.mrb[84].mxu1 }
 0x24d   : > { %v7240_v4 = vpop.f32.mrb[86].mxu0  ;;  %v7165_v40 = vadd.f32 %v7161_v41, %v7086_v63  ;;  %v11754_v23 = vpop.f32.mrb[85].mxu1 }
 0x24e   : > { %v11765_v15 = vpop.f32.mrb[87].mxu0 }
 0x24f   : > { %v7244_v36 = vadd.f32 %v7240_v4, %v7165_v40 }
 0x254   : > { %v7319_v26 = vpop.f32.mrb[86].mxu1 }
 0x255   : > { %v7398_v19 = vpop.f32.mrb[88].mxu0  ;;  %v7323_v61 = vadd.f32 %v7319_v26, %v7244_v36  ;;  %v11776_v32 = vpop.f32.mrb[87].mxu1  ;;  %v13851_v26 = vstv %s10731_s26  ;;  %s13971_s26 = sld [smem:[#allocation4 + $0x46]] }
 0x256   : > { %v11787_v12 = vpop.f32.mrb[89].mxu0 }
 0x257   : > { %v7402_v56 = vadd.f32 %v7398_v19, %v7323_v61  ;;  %v13853_v19 = vstv %s10733_s12  ;;  %s13973_s12 = sld [smem:[#allocation4 + $0x16]] }
 0x258   : > { %15757 = vst [vmem:[#allocation32_spill] sm:$0xff] %v13853_v19 }
 0x25c   : > { %v7477_v58 = vpop.f32.mrb[88].mxu1 }
 0x25d   : > { %v7573_v16 = vpop.f32.mrb[90].mxu0  ;;  %v7481_v30 = vadd.f32 %v7477_v58, %v7402_v56  ;;  %v11798_v44 = vpop.f32.mrb[89].mxu1  ;;  %v8955_v58 = vmul.f32 %v13851_v26, %v13600_v54 }
 0x25e   : > { %v11809_v28 = vpop.f32.mrb[91].mxu0 }
 0x25f   : > { %v7482_v11 = vadd.f32 %v13625_v14, %v7481_v30  ;;  %v13859_v30 = vstv %s10735_s27  ;;  %s13975_s27 = sld [smem:[#allocation4 + $0x47]] }
 0x260   : > { %15758 = vst [vmem:[#allocation33_spill] sm:$0xff] %v13859_v30 }
 0x261   : > { %v7483_v46 = vmax.f32 %v7482_v11, 0.0 }
 0x263   : > { %v7488_v48 = vsel %vm6038_vm7, %v7483_v46, -inf  ;;  %v7484_v63 = vsel %vm6038_vm7, %v7483_v46, 0.0 }
 0x264   : > { %7489 = vmax.xlane.f32.xlu1 %v7488_v48  ;;  %7485 = vadd.xlane.f32.xlu0 %v7484_v63  ;;  %v7646_v4 = vpop.f32.mrb[90].mxu1 }
 0x265   : > { %v7724_v41 = vpop.f32.mrb[92].mxu0  ;;  %v7647_v37 = vadd.f32 %v7646_v4, %v7573_v16  ;;  %v11820_v32 = vpop.f32.mrb[91].mxu1  ;;  %v8984_v16 = vmul.f32 %v13853_v19, %v13604_v57  ;;  %v9013_v4 = vmul.f32 %v13859_v30, %v13612_v3 }
 0x266   : > { %v11831_v12 = vpop.f32.mrb[93].mxu0  ;;  %v13863_v32 = vstv %s10737_s28  ;;  %s13979_s28 = sld [smem:[#allocation4 + $0x17]] }
 0x267   : > { %v7728_v61 = vadd.f32 %v7724_v41, %v7647_v37  ;;  %v8989_v41 = vadd.f32 %v8984_v16, %v8955_v58  ;;  %v9042_v57 = vmul.f32 %v13863_v32, %v13618_v7  ;;  %v13867_v12 = vstv %s10739_s29  ;;  %s13981_s29 = sld [smem:[#allocation4 + $0x48]] }
 0x268   : > { %v9071_v3 = vmul.f32 %v13867_v12, %v13629_v21  ;;  %v13871_v58 = vstv %s10741_s30  ;;  %v8985_v21 = vmul.f32 %v13853_v19, %v13662_v59  ;;  %v9014_v59 = vmul.f32 %v13859_v30, %v13672_v42  ;;  %s13985_s30 = sld [smem:[#allocation4 + $0x18]] }
 0x269   : > { %v9018_v54 = vadd.f32 %v9013_v4, %v8989_v41  ;;  %15759 = vst [vmem:[#allocation34_spill] sm:$0xff] %v13871_v58  ;;  %v9100_v7 = vmul.f32 %v13871_v58, %v13635_v31  ;;  %v8956_v41 = vmul.f32 %v13851_v26, %v13660_v55 }
 0x26b   : > { %v8990_v55 = vadd.f32 %v8985_v21, %v8956_v41  ;;  %v13898_v41 = vstv %s10749_s10  ;;  %v9072_v21 = vmul.f32 %v13867_v12, %v13687_v53  ;;  %s14014_s10 = sld [smem:[#allocation4 + $0x1a]] }
 0x26c   : > { %v7803_v56 = vpop.f32.mrb[92].mxu1  ;;  %15763 = vst [vmem:[#allocation38_spill] sm:$0xff] %v13898_v41 }
 0x26d   : > { %v7882_v28 = vpop.f32.mrb[94].mxu0  ;;  %v7807_v40 = vadd.f32 %v7803_v56, %v7728_v61  ;;  %v11842_v23 = vpop.f32.mrb[93].mxu1 }
 0x26e   : > { %v11853_v15 = vpop.f32.mrb[95].mxu0 }
 0x26f   : > { %v7886_v36 = vadd.f32 %v7882_v28, %v7807_v40  ;;  %v9047_v15 = vadd.f32 %v9042_v57, %v9018_v54 }
 0x274   : > { %v7961_v44 = vpop.f32.mrb[94].mxu1 }
 0x275   : > { %v8040_v11 = vpop.f32.mrb[96].mxu0  ;;  %v7965_v46 = vadd.f32 %v7961_v44, %v7886_v36  ;;  %v11864_v48 = vpop.f32.mrb[95].mxu1  ;;  %v9076_v44 = vadd.f32 %v9071_v3, %v9047_v15  ;;  %v13892_v15 = vstv %s10747_s9  ;;  %s14003_s9 = sld [smem:[#allocation4 + $0x4a]] }
 0x276   : > { %v11875_v63 = vpop.f32.mrb[97].mxu0  ;;  %15762 = vst [vmem:[#allocation37_spill] sm:$0xff] %v13892_v15  ;;  %v9188_v42 = vmul.f32 %v13892_v15, %v13668_v39  ;;  %v9101_v39 = vmul.f32 %v13871_v58, %v13695_v18  ;;  %v13916_v18 = vstv %s10755_s14  ;;  %s14051_s14 = sld [smem:[#allocation4 + $0x4c]] }
 0x277   : > { %v8044_v37 = vadd.f32 %v8040_v11, %v7965_v46  ;;  %v13876_v46 = vstv %s10743_s7  ;;  %v9105_v31 = vadd.f32 %v9100_v7, %v9076_v44  ;;  %15766 = vst [vmem:[#allocation41_spill] sm:$0xff] %v13916_v18  ;;  %s13987_s7 = sld [smem:[#allocation4 + $0x49]] }
 0x278   : > { %15760 = vst [vmem:[#allocation35_spill] sm:$0xff] %v13876_v46 }
 0x27c   : > { %v8119_v61 = vpop.f32.mrb[96].mxu1 }
 0x27d   : > { %v8198_v56 = vpop.f32.mrb[98].mxu0  ;;  %v8123_v28 = vadd.f32 %v8119_v61, %v8044_v37  ;;  %v11886_v40 = vpop.f32.mrb[97].mxu1 }
 0x27e   : > { %v11897_v23 = vpop.f32.mrb[99].mxu0 }
 0x27f   : > { %v8202_v36 = vadd.f32 %v8198_v56, %v8123_v28  ;;  %v9129_v56 = vmul.f32 %v13876_v46, %v13642_v35  ;;  %v13886_v28 = vstv %s10745_s8  ;;  %v9043_v35 = vmul.f32 %v13863_v32, %v13678_v47  ;;  %s14001_s8 = sld [smem:[#allocation4 + $0x19]] }
 0x280   : > { %15761 = vst [vmem:[#allocation36_spill] sm:$0xff] %v13886_v28  ;;  %v9159_v23 = vmul.f32 %v13886_v28, %v13650_v13  ;;  %v13904_v47 = vstv %s10751_s11  ;;  %s14029_s11 = sld [smem:[#allocation4 + $0x4b]] }
 0x281   : > { %v8203_v16 = vadd.f32 %v13625_v14, %v8202_v36  ;;  %v9134_v40 = vadd.f32 %v9129_v56, %v9105_v31  ;;  %15764 = vst [vmem:[#allocation39_spill] sm:$0xff] %v13904_v47  ;;  %v9246_v53 = vmul.f32 %v13904_v47, %v13693_v6  ;;  %v9160_v6 = vmul.f32 %v13886_v28, %v13708_v8 }
 0x282   : > { %v9189_v8 = vmul.f32 %v13892_v15, %v13732_v50 }
 0x283   : > { %v8204_v11 = vmax.f32 %v8203_v16, 0.0  ;;  %v9019_v16 = vadd.f32 %v9014_v59, %v8990_v55 }
 0x284   : > { %v8294_v48 = vpop.f32.mrb[98].mxu1 }
 0x285   : > { %v8367_v63 = vpop.f32.mrb[100].mxu0  ;;  %v11908_v37 = vpop.f32.mrb[99].mxu1  ;;  %v8209_v57 = vsel %vm6038_vm7, %v8204_v11, -inf  ;;  %v8205_v61 = vsel %vm6038_vm7, %v8204_v11, 0.0  ;;  %v9048_v13 = vadd.f32 %v9043_v35, %v9019_v16 }
 0x286   : > { %v8368_v4 = vadd.f32 %v8367_v63, %v8294_v48  ;;  %v11919_v54 = vpop.f32.mrb[101].mxu0  ;;  %8210 = vmax.xlane.f32.xlu1 %v8209_v57  ;;  %8206 = vadd.xlane.f32.xlu0 %v8205_v61  ;;  %v9164_v48 = vadd.f32 %v9159_v23, %v9134_v40  ;;  %v13910_v23 = vstv %s10753_s13  ;;  %s14037_s13 = sld [smem:[#allocation4 + $0x1b]] }
 0x287   : > { %v9217_v54 = vmul.f32 %v13898_v41, %v13676_v5  ;;  %v9077_v61 = vadd.f32 %v9072_v21, %v9048_v13  ;;  %15765 = vst [vmem:[#allocation40_spill] sm:$0xff] %v13910_v23  ;;  %v9275_v16 = vmul.f32 %v13910_v23, %v13752_v9  ;;  %v8957_v9 = vmul.f32 %v13851_v26, %v13712_v25 }
 0x288   : > { %v9193_v37 = vadd.f32 %v9188_v42, %v9164_v48  ;;  %v8986_v21 = vmul.f32 %v13853_v19, %v13714_v29 }
 0x289   : > { %v9106_v5 = vadd.f32 %v9101_v39, %v9077_v61  ;;  %v13934_v39 = vstv %s10759_s16  ;;  %s14154_s16 = sld [smem:[#allocation4 + $0x4e]] }
 0x28a   : > { %v9222_v59 = vadd.f32 %v9217_v54, %v9193_v37  ;;  %v13926_v37 = vstv %s10757_s15  ;;  %v8991_v61 = vadd.f32 %v8986_v21, %v8957_v9  ;;  %15768 = vst [vmem:[#allocation43_spill] sm:$0xff] %v13934_v39  ;;  %v9363_v50 = vmul.f32 %v13934_v39, %v13797_v51  ;;  %s14082_s15 = sld [smem:[#allocation4 + $0x4d]] }
 0x28b   : > { %15767 = vst [vmem:[#allocation42_spill] sm:$0xff] %v13926_v37  ;;  %v9073_v51 = vmul.f32 %v13867_v12, %v13726_v62  ;;  %v9305_v9 = vmul.f32 %v13916_v18, %v13774_v17 }
 0x28c   : > { %v8445_v3 = vpop.f32.mrb[100].mxu1 }
 0x28d   : > { %v8524_v36 = vpop.f32.mrb[102].mxu0  ;;  %v8449_v44 = vadd.f32 %v8445_v3, %v8368_v4  ;;  %v11930_v7 = vpop.f32.mrb[101].mxu1  ;;  %v9130_v3 = vmul.f32 %v13876_v46, %v13702_v34  ;;  %v9304_v34 = vmul.f32 %v13916_v18, %v13769_v60  ;;  %v9015_v60 = vmul.f32 %v13859_v30, %v13720_v24  ;;  %v15803_v18 = vld [vmem:[#allocation24_spill] sm:$0xff] }
 0x28e   : > { %v11941_v11 = vpop.f32.mrb[103].mxu0  ;;  %v9044_v24 = vmul.f32 %v13863_v32, %v13722_v38 }
 0x28f   : > { %v8528_v63 = vadd.f32 %v8524_v36, %v8449_v44  ;;  %v9251_v36 = vadd.f32 %v9246_v53, %v9222_v59  ;;  %v9135_v7 = vadd.f32 %v9130_v3, %v9106_v5  ;;  %v9020_v53 = vadd.f32 %v9015_v60, %v8991_v61 }
 0x290   : > { %v9247_v3 = vmul.f32 %v13904_v47, %v13742_v20  ;;  %v13999_v60 = vstv %s10769_s23  ;;  %s14178_s23 = sld [smem:[#allocation4 + $0x53]] }
 0x291   : > { %v9165_v54 = vadd.f32 %v9160_v6, %v9135_v7  ;;  %v13951_v7 = vstv %s10763_s18  ;;  %15771 = vst [vmem:[#allocation46_spill] sm:$0xff] %v13999_v60  ;;  %s14168_s18 = sld [smem:[#allocation4 + $0x50]] }
 0x293   : > { %v9194_v29 = vadd.f32 %v9189_v8, %v9165_v54  ;;  %v9131_v54 = vmul.f32 %v13876_v46, %v13744_v27 }
 0x294   : > { %v8603_v4 = vpop.f32.mrb[102].mxu1 }
 0x295   : > { %v8682_v57 = vpop.f32.mrb[104].mxu0  ;;  %v8607_v31 = vadd.f32 %v8603_v4, %v8528_v63  ;;  %v11952_v56 = vpop.f32.mrb[103].mxu1  ;;  %v9280_v63 = vadd.f32 %v9275_v16, %v9251_v36 }
 0x296   : > { %v11963_v55 = vpop.f32.mrb[105].mxu0 }
 0x297   : > { %v8686_v40 = vadd.f32 %v8682_v57, %v8607_v31  ;;  %v9309_v4 = vadd.f32 %v9304_v34, %v9280_v63  ;;  %v9333_v57 = vmul.f32 %v13926_v37, %v13782_v49  ;;  %v9218_v31 = vmul.f32 %v13898_v41, %v13738_v1 }
 0x298   : > { %v13963_v63 = vstv %s10765_s19  ;;  %s14172_s19 = sld [smem:[#allocation4 + $0x51]] }
 0x299   : > { %v9338_v59 = vadd.f32 %v9333_v57, %v9309_v4  ;;  %v9223_v5 = vadd.f32 %v9218_v31, %v9194_v29  ;;  %v9450_v21 = vmul.f32 %v13963_v63, %v13817_v45  ;;  %v9334_v4 = vmul.f32 %v13926_v37, %v13784_v52  ;;  %v15773_v29 = vld [vmem:[#allocation8_spill] sm:$0xff] }
 0x29b   : > { %v9368_v16 = vadd.f32 %v9363_v50, %v9338_v59  ;;  %v14012_v59 = vstv %s13961_s24  ;;  %s14180_s24 = sld [smem:[#allocation4 + $0x1c]] }
 0x29c   : > { %v8761_v35 = vpop.f32.mrb[104].mxu1 }
 0x29d   : > { %v8840_v44 = vpop.f32.mrb[106].mxu0  ;;  %v8765_v11 = vadd.f32 %v8761_v35, %v8686_v40  ;;  %v11974_v48 = vpop.f32.mrb[105].mxu1  ;;  %v13943_v40 = vstv %s10761_s17  ;;  %s14166_s17 = sld [smem:[#allocation4 + $0x4f]] }
 0x29e   : > { %v11985_v42 = vpop.f32.mrb[107].mxu0  ;;  %15769 = vst [vmem:[#allocation44_spill] sm:$0xff] %v13943_v40  ;;  %v9276_v48 = vmul.f32 %v13910_v23, %v13754_v10 }
 0x29f   : > { %v8844_v13 = vadd.f32 %v8840_v44, %v8765_v11  ;;  %v9049_v44 = vadd.f32 %v9044_v24, %v9020_v53  ;;  %v9252_v11 = vadd.f32 %v9247_v3, %v9223_v5  ;;  %v9421_v42 = vmul.f32 %v13951_v7, %v13813_v43  ;;  %v15776_v24 = vld [vmem:[#allocation9_spill] sm:$0xff] }
 0x2a1   : > { %v9078_v34 = vadd.f32 %v9073_v51, %v9049_v44  ;;  %v9281_v10 = vadd.f32 %v9276_v48, %v9252_v11  ;;  %v15780_v11 = vld [vmem:[#allocation14_spill] sm:$0xff] }
 0x2a3   : > { %v9310_v8 = vadd.f32 %v9305_v9, %v9281_v10  ;;  %v15783_v9 = vld [vmem:[#allocation11_spill] sm:$0xff] }
 0x2a4   : > { %v8919_v25 = vpop.f32.mrb[106].mxu1 }
 0x2a5   : > { %v8923_v56 = vadd.f32 %v8919_v25, %v8844_v13  ;;  %v11996_v55 = vpop.f32.mrb[107].mxu1  ;;  %v9102_v13 = vmul.f32 %v13871_v58, %v13736_v0  ;;  %v13983_v0 = vstv %s10767_s20  ;;  %v15772_v25 = vld [vmem:[#allocation7_spill] sm:$0xff]  ;;  %s14174_s20 = sld [smem:[#allocation4 + $0x52]] }
 0x2a6   : > { %15770 = vst [vmem:[#allocation45_spill] sm:$0xff] %v13983_v0 }
 0x2a7   : > { %v8924_v49 = vadd.f32 %v13625_v14, %v8923_v56  ;;  %v9392_v14 = vmul.f32 %v13943_v40, %v13804_v33  ;;  %v9107_v17 = vadd.f32 %v9102_v13, %v9078_v34  ;;  %v15774_v56 = vld [vmem:[#allocation27_spill] sm:$0xff]  ;;  %v14049_v34 = vstv %s13975_s27  ;;  %s14199_s27 = sld [smem:[#allocation4 + $0x55]] }
 0x2a8   : > { %v9479_v55 = vmul.f32 %v13983_v0, %v15774_v56  ;;  %15775 = vst [vmem:[#allocation27_spill] sm:$0xff] %v14012_v59 }
 0x2a9   : > { %v6041_v1 = vpop.xlane.xlu0 %6040  ;;  %v8925_v36 = vmax.f32 %v8924_v49, 0.0  ;;  %v6046_v38 = vpop.xlane.xlu1 %6045  ;;  %v9397_v33 = vadd.f32 %v9392_v14, %v9368_v16  ;;  %v14020_v3 = vadd.f32 %v9131_v54, %v9107_v17  ;;  %v14027_v16 = vstv %s13969_s25  ;;  %v15785_v54 = vld [vmem:[#allocation15_spill] sm:$0xff]  ;;  %s14183_s25 = sld [smem:[#allocation4 + $0x1d]] }
 0x2aa   : > { %v6043_v35 = vmul.f32 0.015625, %v6041_v1  ;;  %v14022_v1 = vadd.f32 %v9334_v4, %v9310_v8  ;;  %v14063_v4 = vstv %s13979_s28  ;;  %s14201_s28 = sld [smem:[#allocation4 + $0x56]] }
 0x2ab   : > { %v8930_v6 = vsel %vm6038_vm7, %v8925_v36, -inf  ;;  %v8926_v20 = vsel %vm6038_vm7, %v8925_v36, 0.0  ;;  %v9426_v43 = vadd.f32 %v9421_v42, %v9397_v33  ;;  %v15777_v36 = vld [vmem:[#allocation29_spill] sm:$0xff]  ;;  %v14043_v33 = vstv %s13971_s26  ;;  %s14185_s26 = sld [smem:[#allocation4 + $0x1e]] }
 0x2ac   : > { %v6048_v62 = vsel %vm6047_vm8, %v6043_v35, %v6046_v38  ;;  %8931 = vmax.xlane.f32.xlu1 %v8930_v6  ;;  %8927 = vadd.xlane.f32.xlu0 %v8926_v20  ;;  %v9508_v51 = vmul.f32 %v13999_v60, %v15777_v36  ;;  %15778 = vst [vmem:[#allocation29_spill] sm:$0xff] %v14027_v16  ;;  %v15779_v6 = vld [vmem:[#allocation10_spill] sm:$0xff]  ;;  %15781 = vst [vmem:[#allocation47_spill] sm:$0xff] %v14043_v33  ;;  %v14046_v42 = vstv %s13973_s12  ;;  %s14193_s12 = sld [smem:[#allocation4 + $0x54]] }
 0x2ad   : > { %6051 = vst.msk [vmem:[#allocation3 + $0x33] sm:$0x1f] %vm6050_vm9, %v6048_v62  ;;  %v9455_v52 = vadd.f32 %v9450_v21, %v9426_v43  ;;  %v9537_v38 = vmul.f32 %v14012_v59, %v13838_v22  ;;  %15782 = vst [vmem:[#allocation48_spill] sm:$0xff] %v14046_v42  ;;  %v15784_v21 = vld [vmem:[#allocation20_spill] sm:$0xff]  ;;  %v15797_v59 = vld [vmem:[#allocation22_spill] sm:$0xff]  ;;  %v14115_v60 = vstv %s14051_s14  ;;  %s14248_s14 = sld [smem:[#allocation4 + $0x5f]] }
 0x2ae   : > { %15786 = vst [vmem:[#allocation20_spill] sm:$0xff] %v14063_v4  ;;  %15801 = vst [vmem:[#allocation57_spill] sm:$0xff] %v14115_v60 }
 0x2af   : > { %v9484_v62 = vadd.f32 %v9479_v55, %v9455_v52  ;;  %v14072_v52 = vstv %s13987_s7  ;;  %s14213_s7 = sld [smem:[#allocation4 + $0x59]] }
 0x2b4   : > { %v13993_v45 = vld [vmem:[#allocation3 + $0x30] sm:$0x1f]  ;;  %v14053_v22 = vld [vmem:[#allocation3 + $0x35] sm:$0x1f] }
 0x2b5   : > { %v13995_v57 = vld [vmem:[#allocation3 + $0x31] sm:$0x1f]  ;;  %v8946_v27 = vmul.f32 %v15772_v25, %v13993_v45  ;;  %v14074_v56 = vld [vmem:[#allocation3 + $0x36] sm:$0x1f]  ;;  %v14100_v25 = vstv %s14029_s11  ;;  %s14235_s11 = sld [smem:[#allocation4 + $0x5d]] }
 0x2b6   : > { %v13997_v61 = vld [vmem:[#allocation3 + $0x32] sm:$0x1f]  ;;  %v8975_v31 = vmul.f32 %v15773_v29, %v13995_v57  ;;  %15788 = vst [vmem:[#allocation50_spill] sm:$0xff] %v14074_v56  ;;  %15796 = vst [vmem:[#allocation54_spill] sm:$0xff] %v14100_v25 }
 0x2b7   : > { %v14016_v50 = vld [vmem:[#allocation3 + $0x33] sm:$0x1f]  ;;  %v9004_v5 = vmul.f32 %v15776_v24, %v13997_v61 }
 0x2b8   : > { %v9143_v49 = vld [vmem:[#allocation3 + $0x30] sm:$0x1f]  ;;  %v8980_v53 = vadd.f32 %v8975_v31, %v8946_v27  ;;  %v9033_v20 = vmul.f32 %v15779_v6, %v14016_v50  ;;  %v14066_v27 = vstv %s13981_s29  ;;  %v14069_v31 = vstv %s13985_s30  ;;  %v14117_v25 = vld [vmem:[#allocation3 + $0x36] sm:$0x1f]  ;;  %s14207_s29 = sld [smem:[#allocation4 + $0x57]]  ;;  %s14209_s30 = sld [smem:[#allocation4 + $0x58]] }
 0x2b9   : > { %v14031_v14 = vld [vmem:[#allocation3 + $0x34] sm:$0x1f]  ;;  %v9149_v48 = vmul.f32 %v15780_v11, %v9143_v49  ;;  %15787 = vst [vmem:[#allocation49_spill] sm:$0xff] %v14069_v31  ;;  %v14085_v11 = vstv %s14001_s8  ;;  %v14091_v6 = vstv %s14014_s10  ;;  %s14215_s8 = sld [smem:[#allocation4 + $0x5a]]  ;;  %s14229_s10 = sld [smem:[#allocation4 + $0x5c]] }
 0x2ba   : > { %v14033_v35 = vld [vmem:[#allocation3 + $0x31] sm:$0x1f]  ;;  %v9009_v44 = vadd.f32 %v9004_v5, %v8980_v53  ;;  %v9062_v43 = vmul.f32 %v15783_v9, %v14031_v14  ;;  %v15789_v5 = vld [vmem:[#allocation12_spill] sm:$0xff]  ;;  %15791 = vst [vmem:[#allocation51_spill] sm:$0xff] %v14085_v11  ;;  %v14088_v9 = vstv %s14003_s9  ;;  %15793 = vst [vmem:[#allocation53_spill] sm:$0xff] %v14091_v6  ;;  %s14227_s9 = sld [smem:[#allocation4 + $0x5b]] }
 0x2bb   : > { %v14055_v13 = vld [vmem:[#allocation3 + $0x32] sm:$0x1f]  ;;  %v9154_v17 = vadd.f32 %v9149_v48, %v15784_v21  ;;  %v9178_v8 = vmul.f32 %v15785_v54, %v14033_v35  ;;  %v9091_v36 = vmul.f32 %v15789_v5, %v14053_v22  ;;  %v9513_v54 = vadd.f32 %v9508_v51, %v9484_v62  ;;  %15792 = vst [vmem:[#allocation52_spill] sm:$0xff] %v14088_v9  ;;  %v15794_v5 = vld [vmem:[#allocation13_spill] sm:$0xff] }
 0x2bc   : > { %v9038_v10 = vadd.f32 %v9033_v20, %v9009_v44  ;;  %v14076_v55 = vld [vmem:[#allocation3 + $0x33] sm:$0x1f]  ;;  %v15790_v20 = vld [vmem:[#allocation16_spill] sm:$0xff]  ;;  %v9161_v51 = vmul.f32 %v13886_v28, %v9143_v49 }
 0x2bd   : > { %v9183_v44 = vadd.f32 %v9178_v8, %v9154_v17  ;;  %v9207_v48 = vmul.f32 %v15790_v20, %v14055_v13  ;;  %v9346_v21 = vld [vmem:[#allocation3 + $0x30] sm:$0x1f]  ;;  %v9120_v17 = vmul.f32 %v15794_v5, %v14074_v56  ;;  %v15795_v20 = vld [vmem:[#allocation17_spill] sm:$0xff]  ;;  %v14103_v62 = vld [vmem:[#allocation3 + $0x35] sm:$0x1f]  ;;  %v9542_v56 = vadd.f32 %v9537_v38, %v9513_v54 }
 0x2be   : > { %v9067_v53 = vadd.f32 %v9062_v43, %v9038_v10  ;;  %v14093_v10 = vld [vmem:[#allocation3 + $0x34] sm:$0x1f]  ;;  %v9236_v24 = vmul.f32 %v15795_v20, %v14076_v55  ;;  %v9352_v37 = vmul.f32 %v15797_v59, %v9346_v21  ;;  %v9364_v46 = vmul.f32 %v13934_v39, %v9346_v21 }
 0x2bf   : > { %v9212_v8 = vadd.f32 %v9207_v48, %v9183_v44  ;;  %v9375_v29 = vld [vmem:[#allocation3 + $0x31] sm:$0x1f]  ;;  %v15800_v44 = vld [vmem:[#allocation18_spill] sm:$0xff]  ;;  %v8958_v21 = vmul.f32 %v13851_v26, %v13993_v45  ;;  %v9166_v54 = vadd.f32 %v9161_v51, %v14020_v3  ;;  %v9016_v45 = vmul.f32 %v13859_v30, %v13997_v61 }
 0x2c0   : > { %v9096_v43 = vadd.f32 %v9091_v36, %v9067_v53  ;;  %v14108_v53 = vstv %s14037_s13  ;;  %v9265_v48 = vmul.f32 %v15800_v44, %v14093_v10  ;;  %v9404_v20 = vld [vmem:[#allocation3 + $0x32] sm:$0x1f]  ;;  %v9381_v59 = vmul.f32 %v15803_v18, %v9375_v29  ;;  %s14237_s13 = sld [smem:[#allocation4 + $0x5e]] }
 0x2c1   : > { %15798 = vst [vmem:[#allocation55_spill] sm:$0xff] %v14108_v53  ;;  %v9241_v5 = vadd.f32 %v9236_v24, %v9212_v8  ;;  %v15802_v49 = vld [vmem:[#allocation23_spill] sm:$0xff]  ;;  %v8987_v24 = vmul.f32 %v13853_v19, %v13995_v57  ;;  %v15806_v57 = vld [vmem:[#allocation21_spill] sm:$0xff]  ;;  %v9190_v3 = vmul.f32 %v13892_v15, %v14033_v35  ;;  %v15809_v35 = vld [vmem:[#allocation28_spill] sm:$0xff] }
 0x2c2   : > { %v14110_v36 = vadd.f32 %v9120_v17, %v9096_v43  ;;  %v9357_v28 = vadd.f32 %v9352_v37, %v15802_v49  ;;  %v15804_v17 = vld [vmem:[#allocation19_spill] sm:$0xff]  ;;  %v15805_v49 = vld [vmem:[#allocation25_spill] sm:$0xff] }
 0x2c3   : > { %v9270_v43 = vadd.f32 %v9265_v48, %v9241_v5  ;;  %v9294_v8 = vmul.f32 %v15804_v17, %v14103_v62  ;;  %v14127_v38 = vld [vmem:[#allocation3 + $0x33] sm:$0x1f]  ;;  %v9410_v44 = vmul.f32 %v15805_v49, %v9404_v20  ;;  %v9323_v5 = vmul.f32 %v15806_v57, %v14117_v25 }
 0x2c4   : > { %15799 = vst [vmem:[#allocation56_spill] sm:$0xff] %v14110_v36  ;;  %v9369_v36 = vadd.f32 %v9364_v46, %v14022_v1  ;;  %v9386_v37 = vadd.f32 %v9381_v59, %v9357_v28  ;;  %v9548_v18 = vld [vmem:[#allocation3 + $0x30] sm:$0x1f]  ;;  %v14139_v17 = vstv %s14082_s15  ;;  %v9393_v46 = vmul.f32 %v13943_v40, %v9375_v29  ;;  %v15808_v59 = vld [vmem:[#allocation26_spill] sm:$0xff]  ;;  %s14250_s15 = sld [smem:[#allocation4 + $0x1f]] }
 0x2c5   : > { %v9299_v39 = vadd.f32 %v9294_v8, %v9270_v43  ;;  %v14136_v48 = vld [vmem:[#allocation3 + $0x34] sm:$0x1f]  ;;  %15807 = vst [vmem:[#allocation23_spill] sm:$0xff] %v14139_v17  ;;  %v9439_v1 = vmul.f32 %v15808_v59, %v14127_v38  ;;  %v8992_v49 = vadd.f32 %v8987_v24, %v8958_v21  ;;  %v9554_v8 = vmul.f32 %v14027_v16, %v9548_v18 }
 0x2c6   : > { %v9415_v28 = vadd.f32 %v9410_v44, %v9386_v37  ;;  %v9577_v51 = vld [vmem:[#allocation3 + $0x31] sm:$0x1f]  ;;  %v9566_v57 = vmul.f32 %v14043_v33, %v9548_v18  ;;  %v9195_v17 = vadd.f32 %v9190_v3, %v9166_v54  ;;  %v9398_v30 = vadd.f32 %v9393_v46, %v9369_v36  ;;  %v14156_v37 = vld [vmem:[#allocation3 + $0x36] sm:$0x1f]  ;;  %v15810_v3 = vld [vmem:[#allocation30_spill] sm:$0xff] }
 0x2c7   : > { %v14146_v61 = vadd.f32 %v9323_v5, %v9299_v39  ;;  %v14148_v43 = vld [vmem:[#allocation3 + $0x35] sm:$0x1f]  ;;  %v9468_v29 = vmul.f32 %v15809_v35, %v14136_v48  ;;  %v9559_v39 = vadd.f32 %v9554_v8, %v13846_v2  ;;  %v9583_v24 = vmul.f32 %v14046_v42, %v9577_v51 }
 0x2c8   : > { %v9444_v19 = vadd.f32 %v9439_v1, %v9415_v28  ;;  %v9606_v44 = vld [vmem:[#allocation3 + $0x32] sm:$0x1f]  ;;  %v9571_v21 = vadd.f32 %v9566_v57, %v9542_v56  ;;  %v9595_v5 = vmul.f32 %v14049_v34, %v9577_v51  ;;  %v9219_v18 = vmul.f32 %v13898_v41, %v14055_v13 }
 0x2c9   : > { %v9422_v36 = vmul.f32 %v13951_v7, %v9404_v20  ;;  %v9497_v46 = vmul.f32 %v15810_v3, %v14148_v43  ;;  %v9635_v28 = vld [vmem:[#allocation3 + $0x33] sm:$0x1f]  ;;  %v9588_v2 = vadd.f32 %v9583_v24, %v9559_v39  ;;  %v9612_v57 = vmul.f32 %v14063_v4, %v9606_v44 }
 0x2ca   : > { %v9473_v54 = vadd.f32 %v9468_v29, %v9444_v19  ;;  %v9600_v56 = vadd.f32 %v9595_v5, %v9571_v21  ;;  %v9624_v1 = vmul.f32 %v14066_v27, %v9606_v44  ;;  %v9021_v19 = vadd.f32 %v9016_v45, %v8992_v49  ;;  %v15811_v8 = vld [vmem:[#allocation31_spill] sm:$0xff] }
 0x2cb   : > { %v6765_v51 = vpop.xlane.xlu0 %6764  ;;  %v9224_v13 = vadd.f32 %v9219_v18, %v9195_v17  ;;  %v9526_v29 = vmul.f32 %v15811_v8, %v14156_v37  ;;  %v9664_v3 = vld [vmem:[#allocation3 + $0x34] sm:$0x1f]  ;;  %v9427_v39 = vadd.f32 %v9422_v36, %v9398_v30  ;;  %v9617_v21 = vadd.f32 %v9612_v57, %v9588_v2  ;;  %v6769_v2 = vpop.xlane.xlu1 %6768 }
 0x2cc   : > { %v9502_v20 = vadd.f32 %v9497_v46, %v9473_v54  ;;  %v9629_v24 = vadd.f32 %v9624_v1, %v9600_v56  ;;  %v9641_v44 = vmul.f32 %v14069_v31, %v9635_v28  ;;  %v9045_v17 = vmul.f32 %v13863_v32, %v14016_v50  ;;  %v9693_v5 = vld [vmem:[#allocation3 + $0x35] sm:$0x1f] }
 0x2cd   : > { %v9248_v49 = vmul.f32 %v13904_v47, %v14076_v55  ;;  %v6766_v18 = vmul.f32 0.015625, %v6765_v51  ;;  %v9451_v30 = vmul.f32 %v13963_v63, %v14127_v38  ;;  %v9653_v54 = vmul.f32 %v14072_v52, %v9635_v28  ;;  %v9722_v56 = vld [vmem:[#allocation3 + $0x36] sm:$0x1f] }
 0x2ce   : > { %v14191_v45 = vadd.f32 %v9526_v29, %v9502_v20  ;;  %v9646_v36 = vadd.f32 %v9641_v44, %v9617_v21  ;;  %v9670_v46 = vmul.f32 %v14085_v11, %v9664_v3  ;;  %v9050_v50 = vadd.f32 %v9045_v17, %v9021_v19  ;;  %v15832_v11 = vld [vmem:[#allocation50_spill] sm:$0xff] }
 0x2cf   : > { %v9253_v55 = vadd.f32 %v9248_v49, %v9224_v13  ;;  %v6770_v57 = vsel %vm6047_vm8, %v6766_v18, %v6769_v2  ;;  %v14205_v1 = vstv %s14154_s16  ;;  %v9456_v38 = vadd.f32 %v9451_v30, %v9427_v39  ;;  %s14413_s16 = sld [smem:[#allocation4 + $0x60]] }
 0x2d0   : > { %v9658_v28 = vadd.f32 %v9653_v54, %v9629_v24  ;;  %v9675_v51 = vadd.f32 %v9670_v46, %v9646_v36  ;;  %v9699_v20 = vmul.f32 %v14091_v6, %v9693_v5  ;;  %6772 = vst.msk [vmem:[#allocation3 + $0x43] sm:$0x1f] %vm6050_vm9, %v6770_v57  ;;  %v9074_v19 = vmul.f32 %v13867_v12, %v14031_v14 }
 0x2d1   : > { %v9277_v13 = vmul.f32 %v13910_v23, %v14093_v10  ;;  %v14222_v29 = vstv %s14166_s17  ;;  %v14225_v39 = vstv %s14168_s18  ;;  %v9480_v21 = vmul.f32 %v13983_v0, %v14136_v48  ;;  %v15861_v0 = vld [vmem:[#allocation17_spill] sm:$0xff]  ;;  %s14415_s17 = sld [smem:[#allocation4 + $0x20]]  ;;  %s14424_s18 = sld [smem:[#allocation4 + $0x21]] }
 0x2d2   : > { %15812 = vst [vmem:[#allocation26_spill] sm:$0xff] %v14225_v39  ;;  %v9682_v24 = vmul.f32 %v14088_v9, %v9664_v3  ;;  %v9704_v44 = vadd.f32 %v9699_v20, %v9675_v51  ;;  %v9728_v14 = vmul.f32 %v14108_v53, %v9722_v56  ;;  %v9079_v10 = vadd.f32 %v9074_v19, %v9050_v50  ;;  %v15823_v20 = vld [vmem:[#allocation54_spill] sm:$0xff]  ;;  %v15860_v9 = vld [vmem:[#allocation43_spill] sm:$0xff] }
 0x2d3   : > { %v14240_v17 = vstv %s14172_s19  ;;  %v14243_v49 = vstv %s14174_s20  ;;  %v14246_v48 = vstv %s14178_s23  ;;  %v9282_v3 = vadd.f32 %v9277_v13, %v9253_v55  ;;  %v15821_v55 = vld [vmem:[#allocation41_spill] sm:$0xff]  ;;  %s14431_s19 = sld [smem:[#allocation4 + $0x61]]  ;;  %s14434_s20 = sld [smem:[#allocation4 + $0x22]] }
 0x2d4   : > { %15813 = vst [vmem:[#allocation28_spill] sm:$0xff] %v14240_v17  ;;  %15814 = vst [vmem:[#allocation58_spill] sm:$0xff] %v14243_v49  ;;  %v9485_v18 = vadd.f32 %v9480_v21, %v9456_v38  ;;  %v9687_v30 = vadd.f32 %v9682_v24, %v9658_v28  ;;  %v14252_v36 = vadd.f32 %v9728_v14, %v9704_v44  ;;  %v14255_v54 = vstv %s14193_s12  ;;  %v15822_v28 = vld [vmem:[#allocation46_spill] sm:$0xff]  ;;  %s14441_s23 = sld [smem:[#allocation4 + $0x23]]  ;;  %s14466_s12 = sld [smem:[#allocation4 + $0x27]] }
 0x2d5   : > { %15815 = vst [vmem:[#allocation59_spill] sm:$0xff] %v14246_v48  ;;  %15817 = vst [vmem:[#allocation61_spill] sm:$0xff] %v14255_v54  ;;  %v14258_v46 = vstv %s14180_s24  ;;  %v14261_v2 = vstv %s14183_s25  ;;  %v14264_v50 = vstv %s14185_s26  ;;  %v9103_v57 = vmul.f32 %v13871_v58, %v14053_v22  ;;  %v15843_v48 = vld [vmem:[#allocation8_spill] sm:$0xff]  ;;  %v15855_v49 = vld [vmem:[#allocation14_spill] sm:$0xff]  ;;  %s14443_s24 = sld [smem:[#allocation4 + $0x24]]  ;;  %s14450_s25 = sld [smem:[#allocation4 + $0x25]] }
 0x2d6   : > { %15816 = vst [vmem:[#allocation60_spill] sm:$0xff] %v14252_v36  ;;  %15818 = vst [vmem:[#allocation62_spill] sm:$0xff] %v14258_v46  ;;  %v9306_v38 = vmul.f32 %v15821_v55, %v14103_v62  ;;  %v9509_v51 = vmul.f32 %v15822_v28, %v14148_v43  ;;  %v9711_v19 = vmul.f32 %v15823_v20, %v9693_v5  ;;  %v14274_v13 = vstv %s14199_s27  ;;  %v15857_v55 = vld [vmem:[#allocation15_spill] sm:$0xff]  ;;  %s14458_s26 = sld [smem:[#allocation4 + $0x26]]  ;;  %s14468_s27 = sld [smem:[#allocation4 + $0x28]] }
 0x2d7   : > { %15819 = vst [vmem:[#allocation63_spill] sm:$0xff] %v14261_v2  ;;  %15820 = vst [vmem:[#allocation64_spill] sm:$0xff] %v14264_v50  ;;  %v14277_v21 = vstv %s14201_s28  ;;  %v14280_v24 = vstv %s14207_s29  ;;  %v14283_v44 = vstv %s14209_s30  ;;  %v9108_v14 = vadd.f32 %v9103_v57, %v9079_v10  ;;  %v15833_v2 = vld [vmem:[#allocation35_spill] sm:$0xff]  ;;  %v15834_v10 = vld [vmem:[#allocation42_spill] sm:$0xff]  ;;  %s12369_s28 = smov 127   ;;  %s14933_s29 = sld [smem:[#allocation4 + $0x29]] }
 0x2d8   : > { %15824 = vst [vmem:[#allocation65_spill] sm:$0xff] %v14274_v13  ;;  %15825 = vst [vmem:[#allocation66_spill] sm:$0xff] %v14277_v21  ;;  %v9311_v53 = vadd.f32 %v9306_v38, %v9282_v3  ;;  %v9514_v22 = vadd.f32 %v9509_v51, %v9485_v18  ;;  %v9716_v62 = vadd.f32 %v9711_v19, %v9687_v30  ;;  %v14286_v50 = vstv %s14213_s7  ;;  %v15835_v3 = vld [vmem:[#allocation27_spill] sm:$0xff]  ;;  %v8941_v38 = vld [vmem:[#allocation3 + $0x40] sm:$0x1f]  ;;  %s14935_s30 = sld [smem:[#allocation4 + $0x2a]] }
 0x2d9   : > { %15826 = vst [vmem:[#allocation67_spill] sm:$0xff] %v14280_v24  ;;  %15827 = vst [vmem:[#allocation68_spill] sm:$0xff] %v14283_v44  ;;  %v14289_v43 = vstv %s14215_s8  ;;  %v14292_v5 = vstv %s14227_s9  ;;  %v14295_v6 = vstv %s14229_s10  ;;  %v9132_v36 = vmul.f32 %v15833_v2, %v15832_v11  ;;  %v8970_v51 = vld [vmem:[#allocation3 + $0x41] sm:$0x1f]  ;;  %s14942_s7 = sld [smem:[#allocation4 + $0x2b]]  ;;  %s14944_s8 = sld [smem:[#allocation4 + $0x2c]] }
 0x2da   : > { %15828 = vst [vmem:[#allocation69_spill] sm:$0xff] %v14286_v50  ;;  %15829 = vst [vmem:[#allocation70_spill] sm:$0xff] %v14289_v43  ;;  %v9335_v57 = vmul.f32 %v15834_v10, %v14117_v25  ;;  %v9538_v18 = vmul.f32 %v15835_v3, %v14156_v37  ;;  %v9740_v30 = vmul.f32 %v14115_v60, %v9722_v56  ;;  %v8999_v19 = vld [vmem:[#allocation3 + $0x42] sm:$0x1f]  ;;  %v14305_v43 = vstv %s14235_s11  ;;  %v15842_v60 = vld [vmem:[#allocation7_spill] sm:$0xff]  ;;  %s14958_s9 = sld [smem:[#allocation4 + $0x2d]] }
 0x2db   : > { %15830 = vst [vmem:[#allocation71_spill] sm:$0xff] %v14292_v5  ;;  %15831 = vst [vmem:[#allocation72_spill] sm:$0xff] %v14295_v6  ;;  %v9028_v46 = vld [vmem:[#allocation3 + $0x43] sm:$0x1f]  ;;  %v14308_v50 = vstv %s14237_s13  ;;  %v14311_v44 = vstv %s14248_s14  ;;  %v14314_v24 = vstv %s14250_s15  ;;  %v9137_v11 = vadd.f32 %v9132_v36, %v9108_v14  ;;  %v15844_v3 = vld [vmem:[#allocation32_spill] sm:$0xff]  ;;  %s14960_s10 = sld [smem:[#allocation4 + $0x2e]] }
 0x2dc   : > { %15836 = vst [vmem:[#allocation50_spill] sm:$0xff] %v14305_v43  ;;  %15837 = vst [vmem:[#allocation73_spill] sm:$0xff] %v14308_v50  ;;  %v9340_v21 = vadd.f32 %v9335_v57, %v9311_v53  ;;  %v9543_v25 = vadd.f32 %v9538_v18, %v9514_v22  ;;  %v14316_v13 = vadd.f32 %v9740_v30, %v9716_v62  ;;  %v9057_v37 = vld [vmem:[#allocation3 + $0x44] sm:$0x1f]  ;;  %s14991_s11 = sld [smem:[#allocation4 + $0x2f]]  ;;  %s15001_s13 = sld [smem:[#allocation4 + $0x30]] }
 0x2dd   : > { %15838 = vst [vmem:[#allocation74_spill] sm:$0xff] %v14311_v44  ;;  %15839 = vst [vmem:[#allocation75_spill] sm:$0xff] %v14314_v24  ;;  %v14318_v54 = vld [vmem:[#allocation3 + $0x45] sm:$0x1f]  ;;  %v9144_v6 = vld [vmem:[#allocation3 + $0x40] sm:$0x1f]  ;;  %v8947_v43 = vmul.f32 %v15842_v60, %v8941_v38  ;;  %v8959_v50 = vmul.f32 %v13851_v26, %v8941_v38  ;;  %v8976_v44 = vmul.f32 %v15843_v48, %v8970_v51 }
 0x2de   : > { %15840 = vst [vmem:[#allocation76_spill] sm:$0xff] %v14318_v54  ;;  %v14320_v56 = vld [vmem:[#allocation3 + $0x46] sm:$0x1f]  ;;  %v9173_v5 = vld [vmem:[#allocation3 + $0x41] sm:$0x1f]  ;;  %v8988_v24 = vmul.f32 %v15844_v3, %v8970_v51  ;;  %v14332_v10 = vmul.f32 %v13863_v32, %v9028_v46  ;;  %v15849_v38 = vld [vmem:[#allocation11_spill] sm:$0xff]  ;;  %v14340_v3 = vmul.f32 %v13867_v12, %v9057_v37  ;;  %v9150_v20 = vmul.f32 %v15855_v49, %v9144_v6 }
 0x2df   : > { %15841 = vst [vmem:[#allocation77_spill] sm:$0xff] %v14320_v56  ;;  %v9202_v36 = vld [vmem:[#allocation3 + $0x42] sm:$0x1f]  ;;  %v15847_v18 = vld [vmem:[#allocation10_spill] sm:$0xff]  ;;  %v14337_v48 = vmul.f32 %v15849_v38, %v9057_v37  ;;  %v15851_v51 = vld [vmem:[#allocation12_spill] sm:$0xff]  ;;  %v9179_v12 = vmul.f32 %v15857_v55, %v9173_v5  ;;  %v9191_v37 = vmul.f32 %v13892_v15, %v9173_v5  ;;  %s12267_s14 = smul.u32 40, %s16262_s22 }
 0x2e0   : > { %v9347_v53 = vld [vmem:[#allocation3 + $0x40] sm:$0x1f]  ;;  %v9034_v30 = vmul.f32 %v15847_v18, %v9028_v46  ;;  %15850 = vst [vmem:[#allocation8_spill] sm:$0xff] %v14340_v3  ;;  %v14350_v32 = vld [vmem:[#allocation3 + $0x45] sm:$0x1f]  ;;  %v15856_v38 = vld [vmem:[#allocation36_spill] sm:$0xff]  ;;  %v9220_v17 = vmul.f32 %v13898_v41, %v9202_v36 }
 0x2e1   : > { %v15845_v14 = vld [vmem:[#allocation9_spill] sm:$0xff]  ;;  %15853 = vst [vmem:[#allocation32_spill] sm:$0xff] %v14350_v32  ;;  %v9162_v28 = vmul.f32 %v15856_v38, %v9144_v6  ;;  %v9365_v3 = vmul.f32 %v15860_v9, %v9347_v53  ;;  %v15862_v5 = vld [vmem:[#allocation18_spill] sm:$0xff] }
 0x2e2   : > { %v9005_v22 = vmul.f32 %v15845_v14, %v8999_v19  ;;  %v15846_v62 = vld [vmem:[#allocation33_spill] sm:$0xff]  ;;  %v14344_v14 = vmul.f32 %v15851_v51, %v14318_v54  ;;  %v15858_v51 = vld [vmem:[#allocation16_spill] sm:$0xff] }
 0x2e3   : > { %v14328_v57 = vmul.f32 %v15846_v62, %v8999_v19  ;;  %v9231_v2 = vld [vmem:[#allocation3 + $0x43] sm:$0x1f]  ;;  %v9208_v54 = vmul.f32 %v15858_v51, %v9202_v36  ;;  %v15863_v36 = vld [vmem:[#allocation19_spill] sm:$0xff] }
 0x2e4   : > { %v14334_v60 = vld [vmem:[#allocation3 + $0x44] sm:$0x1f]  ;;  %v9237_v8 = vmul.f32 %v15861_v0, %v9231_v2  ;;  %v14364_v23 = vmul.f32 %v13904_v47, %v9231_v2  ;;  %v14374_v41 = vmul.f32 %v15863_v36, %v14350_v32  ;;  %v15867_v0 = vld [vmem:[#allocation24_spill] sm:$0xff]  ;;  %v9370_v32 = vadd.f32 %v9365_v3, %v9340_v21 }
 0x2e5   : > { %15848 = vst [vmem:[#allocation7_spill] sm:$0xff] %v14334_v60  ;;  %v9549_v26 = vld [vmem:[#allocation3 + $0x40] sm:$0x1f]  ;;  %v14352_v46 = vld [vmem:[#allocation3 + $0x46] sm:$0x1f]  ;;  %v14370_v15 = vmul.f32 %v15862_v5, %v14334_v60  ;;  %v15869_v5 = vld [vmem:[#allocation56_spill] sm:$0xff]  ;;  %v9167_v60 = vadd.f32 %v9162_v28, %v9137_v11 }
 0x2e6   : > { %v15852_v19 = vld [vmem:[#allocation13_spill] sm:$0xff]  ;;  %15854 = vst [vmem:[#allocation9_spill] sm:$0xff] %v14352_v46  ;;  %v9555_v6 = vmul.f32 %v14027_v16, %v9549_v26  ;;  %v9567_v55 = vmul.f32 %v14043_v33, %v9549_v26  ;;  %15864 = vst [vmem:[#allocation33_spill] sm:$0xff] %v14374_v41  ;;  %v8981_v33 = vadd.f32 %v8976_v44, %v8947_v43 }
 0x2e7   : > { %v14348_v62 = vmul.f32 %v15852_v19, %v14320_v56  ;;  %v9376_v18 = vld [vmem:[#allocation3 + $0x41] sm:$0x1f]  ;;  %v15859_v19 = vld [vmem:[#allocation22_spill] sm:$0xff]  ;;  %v9155_v49 = vadd.f32 %v9150_v20, %v15869_v5  ;;  %v9196_v20 = vadd.f32 %v9191_v37, %v9167_v60 }
 0x2e8   : > { %v9405_v58 = vld [vmem:[#allocation3 + $0x42] sm:$0x1f]  ;;  %v9353_v56 = vmul.f32 %v15859_v19, %v9347_v53  ;;  %v9382_v2 = vmul.f32 %v15867_v0, %v9376_v18  ;;  %v9394_v47 = vmul.f32 %v13943_v40, %v9376_v18  ;;  %v9010_v0 = vadd.f32 %v9005_v22, %v8981_v33  ;;  %v15872_v22 = vld [vmem:[#allocation23_spill] sm:$0xff] }
 0x2e9   : > { %v9578_v38 = vld [vmem:[#allocation3 + $0x41] sm:$0x1f]  ;;  %v9423_v26 = vmul.f32 %v13951_v7, %v9405_v58  ;;  %v9184_v40 = vadd.f32 %v9179_v12, %v9155_v49 }
 0x2ea   : > { %v15865_v53 = vld [vmem:[#allocation21_spill] sm:$0xff]  ;;  %v9358_v36 = vadd.f32 %v9353_v56, %v14146_v61  ;;  %v9584_v41 = vmul.f32 %v14046_v42, %v9578_v38  ;;  %v9596_v18 = vmul.f32 %v14049_v34, %v9578_v38  ;;  %v9039_v11 = vadd.f32 %v9034_v30, %v9010_v0  ;;  %v15933_v42 = vld [vmem:[#allocation66_spill] sm:$0xff] }
 0x2eb   : > { %v14378_v9 = vmul.f32 %v15865_v53, %v14352_v46  ;;  %v15868_v16 = vld [vmem:[#allocation25_spill] sm:$0xff]  ;;  %v9560_v53 = vadd.f32 %v9555_v6, %v14191_v45  ;;  %v9572_v46 = vadd.f32 %v9567_v55, %v9543_v25  ;;  %v9399_v56 = vadd.f32 %v9394_v47, %v9370_v32  ;;  %v15876_v6 = vld [vmem:[#allocation30_spill] sm:$0xff] }
 0x2ec   : > { %v9411_v19 = vmul.f32 %v15868_v16, %v9405_v58  ;;  %v9607_v51 = vld [vmem:[#allocation3 + $0x42] sm:$0x1f]  ;;  %v8993_v16 = vadd.f32 %v8988_v24, %v8959_v50  ;;  %v9387_v58 = vadd.f32 %v9382_v2, %v9358_v36  ;;  %v9213_v55 = vadd.f32 %v9208_v54, %v9184_v40 }
 0x2ed   : > { %15866 = vst [vmem:[#allocation10_spill] sm:$0xff] %v14378_v9  ;;  %v9434_v9 = vld [vmem:[#allocation3 + $0x43] sm:$0x1f]  ;;  %v9613_v61 = vmul.f32 %v14063_v4, %v9607_v51  ;;  %v9589_v21 = vadd.f32 %v9584_v41, %v9560_v53  ;;  %v9601_v45 = vadd.f32 %v9596_v18, %v9572_v46  ;;  %v9625_v41 = vmul.f32 %v14066_v27, %v9607_v51 }
 0x2ee   : > { %v14389_v44 = vld [vmem:[#allocation3 + $0x40] sm:$0x1f]  ;;  %v9416_v33 = vadd.f32 %v9411_v19, %v9387_v58  ;;  %v9440_v50 = vmul.f32 %v15808_v59, %v9434_v9  ;;  %v9452_v49 = vmul.f32 %v13963_v63, %v9434_v9  ;;  %v9022_v40 = vadd.f32 %v14328_v57, %v8993_v16  ;;  %v14407_v54 = vld [vmem:[#allocation3 + $0x45] sm:$0x1f] }
 0x2ef   : > { %15870 = vst [vmem:[#allocation11_spill] sm:$0xff] %v14389_v44  ;;  %v14391_v43 = vld [vmem:[#allocation3 + $0x44] sm:$0x1f]  ;;  %v9618_v24 = vadd.f32 %v9613_v61, %v9589_v21  ;;  %v9769_v3 = vmul.f32 %v15872_v22, %v14389_v44  ;;  %v9225_v30 = vadd.f32 %v9220_v17, %v9196_v20  ;;  %v9068_v32 = vadd.f32 %v14337_v48, %v9039_v11 }
 0x2f0   : > { %v9636_v28 = vld [vmem:[#allocation3 + $0x43] sm:$0x1f]  ;;  %v9469_v38 = vmul.f32 %v15809_v35, %v14391_v43  ;;  %v9428_v46 = vadd.f32 %v9423_v26, %v9399_v56  ;;  %v9630_v12 = vadd.f32 %v9625_v41, %v9601_v45  ;;  %v9242_v37 = vadd.f32 %v9237_v8, %v9213_v55  ;;  %v15880_v56 = vld [vmem:[#allocation40_spill] sm:$0xff]  ;;  %v15881_v45 = vld [vmem:[#allocation31_spill] sm:$0xff] }
 0x2f1   : > { %v14394_v25 = vld [vmem:[#allocation3 + $0x41] sm:$0x1f]  ;;  %v9642_v47 = vmul.f32 %v14069_v31, %v9636_v28  ;;  %v9774_v9 = vadd.f32 %v9769_v3, %v14316_v13  ;;  %v9445_v51 = vadd.f32 %v9440_v50, %v9416_v33  ;;  %v9097_v19 = vadd.f32 %v14344_v14, %v9068_v32  ;;  %v14426_v48 = vld [vmem:[#allocation3 + $0x46] sm:$0x1f]  ;;  %v7486_v2 = vpop.xlane.xlu0 %7485  ;;  %v15886_v32 = vld [vmem:[#allocation52_spill] sm:$0xff] }
 0x2f2   : > { %15871 = vst [vmem:[#allocation12_spill] sm:$0xff] %v14394_v25  ;;  %v14405_v0 = vld [vmem:[#allocation3 + $0x42] sm:$0x1f]  ;;  %v9798_v60 = vmul.f32 %v14205_v1, %v14394_v25  ;;  %v9498_v8 = vmul.f32 %v15876_v6, %v14407_v54  ;;  %v9654_v5 = vmul.f32 %v14072_v52, %v9636_v28  ;;  %v9271_v36 = vadd.f32 %v14370_v15, %v9242_v37  ;;  %v15921_v25 = vld [vmem:[#allocation50_spill] sm:$0xff] }
 0x2f3   : > { %15873 = vst [vmem:[#allocation13_spill] sm:$0xff] %v14405_v0  ;;  %v9827_v57 = vmul.f32 %v14222_v29, %v14405_v0  ;;  %v14419_v17 = vld [vmem:[#allocation3 + $0x43] sm:$0x1f]  ;;  %v14421_v13 = vadd.f32 %v9642_v47, %v9618_v24  ;;  %v9474_v53 = vadd.f32 %v9469_v38, %v9445_v51  ;;  %v9051_v26 = vadd.f32 %v14332_v10, %v9022_v40  ;;  %v7490_v10 = vpop.xlane.xlu1 %7489  ;;  %v15917_v0 = vld [vmem:[#allocation71_spill] sm:$0xff] }
 0x2f4   : > { %v9803_v16 = vadd.f32 %v9798_v60, %v9774_v9  ;;  %15874 = vst [vmem:[#allocation56_spill] sm:$0xff] %v14419_v17  ;;  %v9254_v18 = vadd.f32 %v14364_v23, %v9225_v30  ;;  %v14439_v58 = vadd.f32 %v14348_v62, %v9097_v19  ;;  %v7487_v28 = vmul.f32 0.015625, %v7486_v2  ;;  %v15877_v20 = vld [vmem:[#allocation33_spill] sm:$0xff]  ;;  %v15879_v23 = vld [vmem:[#allocation7_spill] sm:$0xff]  ;;  %v15884_v47 = vld [vmem:[#allocation10_spill] sm:$0xff] }
 0x2f5   : > { %15875 = vst [vmem:[#allocation23_spill] sm:$0xff] %v14421_v13  ;;  %v9856_v15 = vmul.f32 %v14225_v39, %v14419_v17  ;;  %v9457_v61 = vadd.f32 %v9452_v49, %v9428_v46  ;;  %v9300_v21 = vadd.f32 %v15877_v20, %v9271_v36  ;;  %v14448_v11 = vld [vmem:[#allocation3 + $0x44] sm:$0x1f]  ;;  %v9278_v62 = vmul.f32 %v15880_v56, %v15879_v23  ;;  %v15885_v30 = vld [vmem:[#allocation8_spill] sm:$0xff] }
 0x2f6   : > { %v9832_v14 = vadd.f32 %v9827_v57, %v9803_v16  ;;  %15878 = vst [vmem:[#allocation30_spill] sm:$0xff] %v14448_v11  ;;  %v9527_v55 = vmul.f32 %v15881_v45, %v14426_v48  ;;  %v14456_v33 = vld [vmem:[#allocation3 + $0x44] sm:$0x1f]  ;;  %v9659_v50 = vadd.f32 %v9654_v5, %v9630_v12  ;;  %v9503_v24 = vadd.f32 %v9498_v8, %v9474_v53  ;;  %v15887_v12 = vld [vmem:[#allocation28_spill] sm:$0xff] }
 0x2f7   : > { %15882 = vst [vmem:[#allocation33_spill] sm:$0xff] %v14456_v33  ;;  %v15883_v49 = vld [vmem:[#allocation45_spill] sm:$0xff]  ;;  %v7491_v38 = vsel %vm6047_vm8, %v7487_v28, %v7490_v10  ;;  %v14464_v40 = vadd.f32 %v15884_v47, %v9300_v21  ;;  %v9080_v9 = vadd.f32 %v15885_v30, %v9051_v26  ;;  %v9283_v60 = vadd.f32 %v9278_v62, %v9254_v18  ;;  %v15891_v8 = vld [vmem:[#allocation76_spill] sm:$0xff]  ;;  %v15892_v5 = vld [vmem:[#allocation34_spill] sm:$0xff] }
 0x2f8   : > { %v9481_v3 = vmul.f32 %v15883_v49, %v14391_v43  ;;  %v9861_v41 = vadd.f32 %v9856_v15, %v9832_v14  ;;  %7493 = vst.msk [vmem:[#allocation3 + $0x53] sm:$0x1f] %vm6050_vm9, %v7491_v38  ;;  %v9683_v43 = vmul.f32 %v15886_v32, %v14448_v11  ;;  %v14474_v46 = vadd.f32 %v9527_v55, %v9503_v24  ;;  %v14481_v57 = vld [vmem:[#allocation3 + $0x45] sm:$0x1f]  ;;  %v15893_v53 = vld [vmem:[#allocation32_spill] sm:$0xff] }
 0x2f9   : > { %v9885_v37 = vmul.f32 %v15887_v12, %v14456_v33  ;;  %v14479_v51 = vstv %s14413_s16  ;;  %15889 = vst [vmem:[#allocation40_spill] sm:$0xff] %v14481_v57  ;;  %v14484_v19 = vstv %s14415_s17  ;;  %v9104_v36 = vmul.f32 %v15892_v5, %v15891_v8  ;;  %v15894_v2 = vld [vmem:[#allocation41_spill] sm:$0xff]  ;;  %v15897_v15 = vld [vmem:[#allocation46_spill] sm:$0xff]  ;;  %v15908_v8 = vld [vmem:[#allocation35_spill] sm:$0xff]  ;;  %s15430_s17 = scalar_lea.vmem %s15492_s6, %s12267_s14 }
 0x2fa   : > { %15888 = vst [vmem:[#allocation7_spill] sm:$0xff] %v14479_v51  ;;  %v9486_v16 = vadd.f32 %v9481_v3, %v9457_v61  ;;  %15890 = vst [vmem:[#allocation31_spill] sm:$0xff] %v14484_v19  ;;  %v9307_v26 = vmul.f32 %v15894_v2, %v15893_v53  ;;  %v14490_v14 = vld [vmem:[#allocation3 + $0x45] sm:$0x1f]  ;;  %v9688_v18 = vadd.f32 %v9683_v43, %v9659_v50  ;;  %v14493_v28 = vstv %s14424_s18  ;;  %v9957_v19 = vld [vmem:[#allocation3 + $0x80] sm:$0x1f] }
 0x2fb   : > { %15895 = vst [vmem:[#allocation45_spill] sm:$0xff] %v14490_v14  ;;  %15896 = vst [vmem:[#allocation10_spill] sm:$0xff] %v14493_v28  ;;  %v9510_v61 = vmul.f32 %v15897_v15, %v14407_v54  ;;  %v9890_v20 = vadd.f32 %v9885_v37, %v9861_v41  ;;  %v14498_v21 = vstv %s14431_s19  ;;  %v14501_v10 = vstv %s14434_s20  ;;  %v14503_v23 = vld [vmem:[#allocation3 + $0x46] sm:$0x1f]  ;;  %v10159_v41 = vld [vmem:[#allocation3 + $0x80] sm:$0x1f] }
 0x2fc   : > { %15898 = vst [vmem:[#allocation8_spill] sm:$0xff] %v14498_v21  ;;  %15899 = vst [vmem:[#allocation76_spill] sm:$0xff] %v14501_v10  ;;  %v9109_v62 = vadd.f32 %v9104_v36, %v9080_v9  ;;  %v9312_v55 = vadd.f32 %v9307_v26, %v9283_v60  ;;  %v15901_v24 = vld [vmem:[#allocation54_spill] sm:$0xff]  ;;  %v14508_v3 = vstv %s14441_s23  ;;  %v10188_v43 = vld [vmem:[#allocation3 + $0x81] sm:$0x1f]  ;;  %v14515_v37 = vstv %s14443_s24 }
 0x2fd   : > { %15900 = vst [vmem:[#allocation34_spill] sm:$0xff] %v14503_v23  ;;  %v9712_v50 = vmul.f32 %v15901_v24, %v14481_v57  ;;  %15902 = vst [vmem:[#allocation32_spill] sm:$0xff] %v14508_v3  ;;  %v15903_v38 = vld [vmem:[#allocation58_spill] sm:$0xff]  ;;  %v9515_v30 = vadd.f32 %v9510_v61, %v9486_v16  ;;  %v14518_v9 = vstv %s14450_s25  ;;  %v15907_v60 = vld [vmem:[#allocation77_spill] sm:$0xff]  ;;  %v14525_v61 = vstv %s14458_s26 }
 0x2fe   : > { %v9914_v47 = vmul.f32 %v15903_v38, %v14490_v14  ;;  %v14512_v54 = vld [vmem:[#allocation3 + $0x46] sm:$0x1f]  ;;  %15905 = vst [vmem:[#allocation79_spill] sm:$0xff] %v14515_v37  ;;  %15906 = vst [vmem:[#allocation80_spill] sm:$0xff] %v14518_v9  ;;  %v9133_v5 = vmul.f32 %v15908_v8, %v15907_v60  ;;  %v15912_v3 = vld [vmem:[#allocation27_spill] sm:$0xff]  ;;  %v14530_v9 = vstv %s14466_s12  ;;  %v14533_v33 = vstv %s14468_s27 }
 0x2ff   : > { %15904 = vst [vmem:[#allocation78_spill] sm:$0xff] %v14512_v54  ;;  %v15909_v36 = vld [vmem:[#allocation9_spill] sm:$0xff]  ;;  %v15910_v53 = vld [vmem:[#allocation42_spill] sm:$0xff]  ;;  %v9717_v57 = vadd.f32 %v9712_v50, %v9688_v18  ;;  %15911 = vst [vmem:[#allocation77_spill] sm:$0xff] %v14525_v61  ;;  %v9539_v10 = vmul.f32 %v15912_v3, %v14426_v48  ;;  %v14546_v31 = vmul.f32 %v15917_v0, %v10159_v41 }
 0x300   : > { %v9336_v26 = vmul.f32 %v15910_v53, %v15909_v36  ;;  %v10217_v13 = vld [vmem:[#allocation3 + $0x82] sm:$0x1f]  ;;  %v9919_v28 = vadd.f32 %v9914_v47, %v9890_v20  ;;  %15913 = vst [vmem:[#allocation35_spill] sm:$0xff] %v14530_v9  ;;  %15914 = vst [vmem:[#allocation9_spill] sm:$0xff] %v14533_v33  ;;  %v15915_v60 = vld [vmem:[#allocation59_spill] sm:$0xff]  ;;  %v14537_v18 = vadd.f32 %v9133_v5, %v9109_v62 }
 0x301   : > { %v10246_v11 = vld [vmem:[#allocation3 + $0x83] sm:$0x1f]  ;;  %v9943_v8 = vmul.f32 %v15915_v60, %v14503_v23  ;;  %v14543_v47 = vadd.f32 %v9539_v10, %v9515_v30  ;;  %15918 = vst [vmem:[#allocation81_spill] sm:$0xff] %v14546_v31  ;;  %v15919_v9 = vld [vmem:[#allocation72_spill] sm:$0xff]  ;;  %v14552_v23 = vmul.f32 %v15921_v25, %v10217_v13  ;;  %v15925_v60 = vld [vmem:[#allocation74_spill] sm:$0xff] }
 0x302   : > { %v10275_v16 = vld [vmem:[#allocation3 + $0x84] sm:$0x1f]  ;;  %v14539_v50 = vadd.f32 %v9336_v26, %v9312_v55  ;;  %v14549_v33 = vmul.f32 %v15919_v9, %v10188_v43  ;;  %v10160_v41 = vld [vmem:[#allocation3 + $0x90] sm:$0x1f]  ;;  %v15937_v53 = vld [vmem:[#allocation68_spill] sm:$0xff] }
 0x303   : > { %v10304_v14 = vld [vmem:[#allocation3 + $0x85] sm:$0x1f]  ;;  %15922 = vst [vmem:[#allocation83_spill] sm:$0xff] %v14552_v23  ;;  %v14560_v10 = vmul.f32 %v15925_v60, %v10275_v16  ;;  %v10189_v43 = vld [vmem:[#allocation3 + $0x91] sm:$0x1f]  ;;  %v9948_v23 = vadd.f32 %v9943_v8, %v9919_v28 }
 0x304   : > { %v10333_v37 = vld [vmem:[#allocation3 + $0x86] sm:$0x1f]  ;;  %v9986_v17 = vld [vmem:[#allocation3 + $0x81] sm:$0x1f]  ;;  %15920 = vst [vmem:[#allocation82_spill] sm:$0xff] %v14549_v33  ;;  %v14563_v30 = vmul.f32 %v14479_v51, %v10304_v14 }
 0x305   : > { %v15916_v36 = vld [vmem:[#allocation57_spill] sm:$0xff]  ;;  %15926 = vst [vmem:[#allocation85_spill] sm:$0xff] %v14560_v10  ;;  %v10218_v33 = vld [vmem:[#allocation3 + $0x92] sm:$0x1f]  ;;  %v14566_v4 = vmul.f32 %v14498_v21, %v10333_v37 }
 0x306   : > { %v9741_v61 = vmul.f32 %v15916_v36, %v14512_v54  ;;  %v10015_v48 = vld [vmem:[#allocation3 + $0x82] sm:$0x1f]  ;;  %15927 = vst [vmem:[#allocation86_spill] sm:$0xff] %v14563_v30  ;;  %v9145_v31 = vld [vmem:[#allocation3 + $0x50] sm:$0x1f] }
 0x307   : > { %v10044_v20 = vld [vmem:[#allocation3 + $0x83] sm:$0x1f]  ;;  %v9174_v13 = vld [vmem:[#allocation3 + $0x51] sm:$0x1f]  ;;  %15928 = vst [vmem:[#allocation87_spill] sm:$0xff] %v14566_v4  ;;  %v14575_v14 = vmul.f32 %v15933_v42, %v10015_v48  ;;  %v14594_v48 = vmul.f32 %v15917_v0, %v10160_v41  ;;  %v15953_v0 = vld [vmem:[#allocation16_spill] sm:$0xff] }
 0x308   : > { %v10073_v62 = vld [vmem:[#allocation3 + $0x84] sm:$0x1f]  ;;  %v14554_v26 = vadd.f32 %v9741_v61, %v9717_v57  ;;  %v9203_v16 = vld [vmem:[#allocation3 + $0x52] sm:$0x1f] }
 0x309   : > { %v10102_v55 = vld [vmem:[#allocation3 + $0x85] sm:$0x1f]  ;;  %v9348_v10 = vld [vmem:[#allocation3 + $0x50] sm:$0x1f]  ;;  %15934 = vst [vmem:[#allocation66_spill] sm:$0xff] %v14575_v14  ;;  %v14581_v44 = vmul.f32 %v15937_v53, %v10073_v62  ;;  %15944 = vst [vmem:[#allocation94_spill] sm:$0xff] %v14594_v48  ;;  %v14600_v62 = vmul.f32 %v15921_v25, %v10218_v33 }
 0x30a   : > { %v10131_v5 = vld [vmem:[#allocation3 + $0x86] sm:$0x1f]  ;;  %v15935_v30 = vld [vmem:[#allocation67_spill] sm:$0xff] }
 0x30b   : > { %v15923_v54 = vld [vmem:[#allocation73_spill] sm:$0xff]  ;;  %v14578_v3 = vmul.f32 %v15935_v30, %v10044_v20  ;;  %15938 = vst [vmem:[#allocation90_spill] sm:$0xff] %v14581_v44  ;;  %v9232_v8 = vld [vmem:[#allocation3 + $0x53] sm:$0x1f]  ;;  %v14597_v20 = vmul.f32 %v15919_v9, %v10189_v43  ;;  %15946 = vst [vmem:[#allocation96_spill] sm:$0xff] %v14600_v62  ;;  %v9209_v43 = vmul.f32 %v15953_v0, %v9203_v16 }
 0x30c   : > { %v14557_v36 = vmul.f32 %v15923_v54, %v10246_v11  ;;  %v15929_v57 = vld [vmem:[#allocation61_spill] sm:$0xff]  ;;  %v14588_v4 = vld [vmem:[#allocation3 + $0x50] sm:$0x1f]  ;;  %v14602_v44 = vld [vmem:[#allocation3 + $0x55] sm:$0x1f] }
 0x30d   : > { %v14569_v61 = vmul.f32 %v15929_v57, %v9957_v19  ;;  %v15931_v11 = vld [vmem:[#allocation65_spill] sm:$0xff]  ;;  %15936 = vst [vmem:[#allocation67_spill] sm:$0xff] %v14578_v3  ;;  %v14586_v19 = vld [vmem:[#allocation3 + $0x54] sm:$0x1f]  ;;  %15941 = vst [vmem:[#allocation92_spill] sm:$0xff] %v14588_v4 }
 0x30e   : > { %15924 = vst [vmem:[#allocation84_spill] sm:$0xff] %v14557_v36  ;;  %v14572_v36 = vmul.f32 %v15931_v11, %v9986_v17  ;;  %v15939_v28 = vld [vmem:[#allocation69_spill] sm:$0xff]  ;;  %v15942_v17 = vld [vmem:[#allocation70_spill] sm:$0xff]  ;;  %15945 = vst [vmem:[#allocation95_spill] sm:$0xff] %v14597_v20 }
 0x30f   : > { %15930 = vst [vmem:[#allocation88_spill] sm:$0xff] %v14569_v61  ;;  %v14584_v37 = vmul.f32 %v15939_v28, %v10102_v55  ;;  %15947 = vst [vmem:[#allocation97_spill] sm:$0xff] %v14602_v44  ;;  %v14604_v55 = vld [vmem:[#allocation3 + $0x56] sm:$0x1f]  ;;  %v15949_v3 = vld [vmem:[#allocation14_spill] sm:$0xff] }
 0x310   : > { %15932 = vst [vmem:[#allocation89_spill] sm:$0xff] %v14572_v36  ;;  %v14591_v36 = vmul.f32 %v15942_v17, %v10131_v5  ;;  %15948 = vst [vmem:[#allocation98_spill] sm:$0xff] %v14604_v55  ;;  %v9151_v14 = vmul.f32 %v15949_v3, %v9145_v31  ;;  %v15950_v61 = vld [vmem:[#allocation36_spill] sm:$0xff]  ;;  %v15951_v5 = vld [vmem:[#allocation15_spill] sm:$0xff] }
 0x311   : > { %15940 = vst [vmem:[#allocation91_spill] sm:$0xff] %v14584_v37  ;;  %v9377_v37 = vld [vmem:[#allocation3 + $0x51] sm:$0x1f]  ;;  %v9163_v24 = vmul.f32 %v15950_v61, %v9145_v31  ;;  %v15952_v17 = vld [vmem:[#allocation37_spill] sm:$0xff]  ;;  %v15954_v20 = vld [vmem:[#allocation38_spill] sm:$0xff] }
 0x312   : > { %15943 = vst [vmem:[#allocation93_spill] sm:$0xff] %v14591_v36  ;;  %v9180_v36 = vmul.f32 %v15951_v5, %v9174_v13  ;;  %v9192_v41 = vmul.f32 %v15952_v17, %v9174_v13  ;;  %v9406_v48 = vld [vmem:[#allocation3 + $0x52] sm:$0x1f]  ;;  %v9221_v9 = vmul.f32 %v15954_v20, %v9203_v16  ;;  %v15955_v33 = vld [vmem:[#allocation22_spill] sm:$0xff]  ;;  %v15958_v51 = vld [vmem:[#allocation17_spill] sm:$0xff]  ;;  %v9972_v13 = vmul.f32 %v15929_v57, %v14588_v4 }
 0x313   : > { %v9354_v62 = vmul.f32 %v15955_v33, %v9348_v10  ;;  %v15956_v25 = vld [vmem:[#allocation43_spill] sm:$0xff]  ;;  %v9238_v15 = vmul.f32 %v15958_v51, %v9232_v8  ;;  %v15960_v31 = vld [vmem:[#allocation18_spill] sm:$0xff]  ;;  %v15964_v5 = vld [vmem:[#allocation24_spill] sm:$0xff]  ;;  %v9156_v57 = vadd.f32 %v9151_v14, %v14439_v58 }
 0x314   : > { %v9366_v38 = vmul.f32 %v15956_v25, %v9348_v10  ;;  %v14614_v21 = vld [vmem:[#allocation3 + $0x51] sm:$0x1f]  ;;  %v9267_v61 = vmul.f32 %v15960_v31, %v14586_v19  ;;  %v15963_v10 = vld [vmem:[#allocation21_spill] sm:$0xff]  ;;  %v9383_v51 = vmul.f32 %v15964_v5, %v9377_v37  ;;  %v15965_v25 = vld [vmem:[#allocation44_spill] sm:$0xff]  ;;  %v9977_v60 = vadd.f32 %v9972_v13, %v9948_v23 }
 0x315   : > { %15957 = vst [vmem:[#allocation14_spill] sm:$0xff] %v14614_v21  ;;  %v15959_v3 = vld [vmem:[#allocation39_spill] sm:$0xff]  ;;  %v14630_v20 = vmul.f32 %v15963_v10, %v14604_v55  ;;  %v15967_v33 = vld [vmem:[#allocation25_spill] sm:$0xff]  ;;  %v10001_v4 = vmul.f32 %v15931_v11, %v14614_v21  ;;  %v9168_v10 = vadd.f32 %v9163_v24, %v14537_v18  ;;  %v9359_v5 = vadd.f32 %v9354_v62, %v14464_v40 }
 0x316   : > { %v14618_v2 = vmul.f32 %v15959_v3, %v9232_v8  ;;  %v14624_v0 = vld [vmem:[#allocation3 + $0x50] sm:$0x1f]  ;;  %v9395_v8 = vmul.f32 %v15965_v25, %v9377_v37  ;;  %v9412_v31 = vmul.f32 %v15967_v33, %v9406_v48  ;;  %v9371_v37 = vadd.f32 %v9366_v38, %v14539_v50  ;;  %v14650_v14 = vld [vmem:[#allocation3 + $0x55] sm:$0x1f] }
 0x317   : > { %15961 = vst [vmem:[#allocation36_spill] sm:$0xff] %v14624_v0  ;;  %v15962_v16 = vld [vmem:[#allocation19_spill] sm:$0xff]  ;;  %v9770_v25 = vmul.f32 %v15872_v22, %v14624_v0  ;;  %v9424_v23 = vmul.f32 %v13951_v7, %v9406_v48  ;;  %v10006_v13 = vadd.f32 %v10001_v4, %v9977_v60  ;;  %v9185_v21 = vadd.f32 %v9180_v36, %v9156_v57 }
 0x318   : > { %v9296_v17 = vmul.f32 %v15962_v16, %v14602_v44  ;;  %v14634_v3 = vld [vmem:[#allocation3 + $0x51] sm:$0x1f]  ;;  %v9197_v11 = vadd.f32 %v9192_v41, %v9168_v10  ;;  %v9388_v55 = vadd.f32 %v9383_v51, %v9359_v5  ;;  %v9400_v24 = vadd.f32 %v9395_v8, %v9371_v37 }
 0x319   : > { %15966 = vst [vmem:[#allocation15_spill] sm:$0xff] %v14634_v3  ;;  %v9435_v32 = vld [vmem:[#allocation3 + $0x53] sm:$0x1f]  ;;  %v9799_v58 = vmul.f32 %v14205_v1, %v14634_v3  ;;  %v9775_v40 = vadd.f32 %v9770_v25, %v14554_v26  ;;  %v9214_v60 = vadd.f32 %v9209_v43, %v9185_v21  ;;  %v9499_v8 = vmul.f32 %v15876_v6, %v14650_v14 }
 0x31a   : > { %v9550_v16 = vld [vmem:[#allocation3 + $0x50] sm:$0x1f]  ;;  %v9441_v50 = vmul.f32 %v15808_v59, %v9435_v32  ;;  %v9453_v36 = vmul.f32 %v13963_v63, %v9435_v32  ;;  %v9417_v5 = vadd.f32 %v9412_v31, %v9388_v55  ;;  %v14665_v26 = vld [vmem:[#allocation3 + $0x56] sm:$0x1f]  ;;  %v9226_v43 = vadd.f32 %v9221_v9, %v9197_v11 }
 0x31b   : > { %v14640_v44 = vld [vmem:[#allocation3 + $0x52] sm:$0x1f]  ;;  %v9804_v25 = vadd.f32 %v9799_v58, %v9775_v40  ;;  %v9243_v37 = vadd.f32 %v9238_v15, %v9214_v60  ;;  %v9429_v3 = vadd.f32 %v9424_v23, %v9400_v24 }
 0x31c   : > { %15968 = vst [vmem:[#allocation37_spill] sm:$0xff] %v14640_v44  ;;  %v9464_v33 = vld [vmem:[#allocation3 + $0x54] sm:$0x1f]  ;;  %v10030_v4 = vmul.f32 %v15933_v42, %v14640_v44  ;;  %v9446_v0 = vadd.f32 %v9441_v50, %v9417_v5 }
 0x31d   : > { %v14653_v18 = vld [vmem:[#allocation3 + $0x52] sm:$0x1f]  ;;  %v9470_v57 = vmul.f32 %v15809_v35, %v9464_v33  ;;  %v9272_v40 = vadd.f32 %v9267_v61, %v9243_v37 }
 0x31e   : > { %15969 = vst [vmem:[#allocation16_spill] sm:$0xff] %v14653_v18  ;;  %v14655_v38 = vld [vmem:[#allocation3 + $0x51] sm:$0x1f]  ;;  %v10035_v10 = vadd.f32 %v10030_v4, %v10006_v13  ;;  %v9828_v21 = vmul.f32 %v14222_v29, %v14653_v18  ;;  %v9528_v13 = vmul.f32 %v15881_v45, %v14665_v26  ;;  %v15974_v4 = vld [vmem:[#allocation29_spill] sm:$0xff] }
 0x31f   : > { %v15970_v62 = vld [vmem:[#allocation47_spill] sm:$0xff]  ;;  %v9597_v32 = vmul.f32 %v14049_v34, %v14655_v38  ;;  %v9556_v60 = vmul.f32 %v15974_v4, %v9550_v16  ;;  %v9475_v23 = vadd.f32 %v9470_v57, %v9446_v0  ;;  %v9301_v50 = vadd.f32 %v9296_v17, %v9272_v40  ;;  %v8211_v40 = vpop.xlane.xlu1 %8210 }
 0x320   : > { %v9568_v48 = vmul.f32 %v15970_v62, %v9550_v16  ;;  %v14663_v41 = vld [vmem:[#allocation3 + $0x53] sm:$0x1f]  ;;  %v9833_v44 = vadd.f32 %v9828_v21, %v9804_v25  ;;  %v9458_v25 = vadd.f32 %v9453_v36, %v9429_v3  ;;  %v8207_v21 = vpop.xlane.xlu0 %8206 }
 0x321   : > { %15971 = vst [vmem:[#allocation38_spill] sm:$0xff] %v14663_v41  ;;  %v14667_v51 = vld [vmem:[#allocation3 + $0x52] sm:$0x1f]  ;;  %v10059_v58 = vmul.f32 %v15935_v30, %v14663_v41  ;;  %v9504_v37 = vadd.f32 %v9499_v8, %v9475_v23  ;;  %v14699_v0 = vadd.f32 %v14630_v20, %v9301_v50  ;;  %v8208_v3 = vmul.f32 0.015625, %v8207_v21  ;;  %v15985_v21 = vld [vmem:[#allocation97_spill] sm:$0xff] }
 0x322   : > { %v14675_v55 = vld [vmem:[#allocation3 + $0x53] sm:$0x1f]  ;;  %v9573_v15 = vadd.f32 %v9568_v48, %v14543_v47  ;;  %v9626_v9 = vmul.f32 %v14066_v27, %v14667_v51  ;;  %v9255_v48 = vadd.f32 %v14618_v2, %v9226_v43  ;;  %v9482_v2 = vmul.f32 %v15883_v49, %v9464_v33 }
 0x323   : > { %15972 = vst [vmem:[#allocation17_spill] sm:$0xff] %v14675_v55  ;;  %v14677_v31 = vld [vmem:[#allocation3 + $0x53] sm:$0x1f]  ;;  %v10064_v24 = vadd.f32 %v10059_v58, %v10035_v10  ;;  %v9857_v5 = vmul.f32 %v14225_v39, %v14675_v55  ;;  %v9279_v58 = vmul.f32 %v15880_v56, %v14586_v19  ;;  %v14706_v8 = vadd.f32 %v9528_v13, %v9504_v37 }
 0x324   : > { %15973 = vst [vmem:[#allocation39_spill] sm:$0xff] %v14677_v31  ;;  %v14687_v11 = vld [vmem:[#allocation3 + $0x54] sm:$0x1f]  ;;  %v9602_v61 = vadd.f32 %v9597_v32, %v9573_v15  ;;  %v9655_v47 = vmul.f32 %v14072_v52, %v14677_v31  ;;  %v8212_v19 = vsel %vm6047_vm8, %v8208_v3, %v8211_v40  ;;  %v9487_v50 = vadd.f32 %v9482_v2, %v9458_v25  ;;  %v9813_v25 = vld [vmem:[#allocation3 + $0x82] sm:$0x1f] }
 0x325   : > { %15975 = vst [vmem:[#allocation18_spill] sm:$0xff] %v14687_v11  ;;  %v14694_v16 = vld [vmem:[#allocation3 + $0x54] sm:$0x1f]  ;;  %v10088_v18 = vmul.f32 %v15937_v53, %v14687_v11  ;;  %v9862_v17 = vadd.f32 %v9857_v5, %v9833_v44  ;;  %v9284_v33 = vadd.f32 %v9279_v58, %v9255_v48  ;;  %8214 = vst.msk [vmem:[#allocation3 + $0x63] sm:$0x1f] %vm6050_vm9, %v8212_v19 }
 0x326   : > { %15976 = vst [vmem:[#allocation19_spill] sm:$0xff] %v14694_v16  ;;  %v9631_v57 = vadd.f32 %v9626_v9, %v9602_v61  ;;  %v10247_v10 = vld [vmem:[#allocation3 + $0x93] sm:$0x1f]  ;;  %v9886_v44 = vmul.f32 %v15887_v12, %v14694_v16  ;;  %v14713_v9 = vadd.f32 %v9556_v60, %v14474_v46  ;;  %v9755_v61 = vld [vmem:[#allocation3 + $0x80] sm:$0x1f]  ;;  %v15982_v46 = vld [vmem:[#allocation52_spill] sm:$0xff] }
 0x327   : > { %v10276_v32 = vld [vmem:[#allocation3 + $0x94] sm:$0x1f]  ;;  %v10093_v15 = vadd.f32 %v10088_v18, %v10064_v24  ;;  %v14719_v13 = vmul.f32 %v15923_v54, %v10247_v10  ;;  %v9784_v48 = vld [vmem:[#allocation3 + $0x81] sm:$0x1f]  ;;  %v15987_v10 = vld [vmem:[#allocation46_spill] sm:$0xff] }
 0x328   : > { %v14704_v36 = vld [vmem:[#allocation3 + $0x55] sm:$0x1f]  ;;  %v9660_v20 = vadd.f32 %v9655_v47, %v9631_v57  ;;  %15979 = vst [vmem:[#allocation100_spill] sm:$0xff] %v14713_v9  ;;  %v9891_v24 = vadd.f32 %v9886_v44, %v9862_v17  ;;  %v15983_v47 = vld [vmem:[#allocation74_spill] sm:$0xff]  ;;  %v15986_v57 = vld [vmem:[#allocation41_spill] sm:$0xff]  ;;  %v9511_v2 = vmul.f32 %v15987_v10, %v14650_v14  ;;  %v14751_v55 = vmul.f32 %v14205_v1, %v9784_v48 }
 0x329   : > { %15977 = vst [vmem:[#allocation21_spill] sm:$0xff] %v14704_v36  ;;  %v14708_v43 = vld [vmem:[#allocation3 + $0x54] sm:$0x1f]  ;;  %15981 = vst [vmem:[#allocation102_spill] sm:$0xff] %v14719_v13  ;;  %v10117_v18 = vmul.f32 %v15939_v28, %v14704_v36  ;;  %v14727_v37 = vmul.f32 %v15983_v47, %v10276_v32  ;;  %v9308_v58 = vmul.f32 %v15986_v57, %v15985_v21  ;;  %v16006_v48 = vld [vmem:[#allocation42_spill] sm:$0xff] }
 0x32a   : > { %15978 = vst [vmem:[#allocation99_spill] sm:$0xff] %v14708_v43  ;;  %v10305_v23 = vld [vmem:[#allocation3 + $0x95] sm:$0x1f]  ;;  %v9684_v60 = vmul.f32 %v15982_v46, %v14708_v43  ;;  %v14746_v21 = vmul.f32 %v15872_v22, %v9755_v61  ;;  %v9516_v14 = vadd.f32 %v9511_v2, %v9487_v50  ;;  %15997 = vst [vmem:[#allocation107_spill] sm:$0xff] %v14751_v55  ;;  %v14762_v61 = vld [vmem:[#allocation3 + $0x83] sm:$0x1f] }
 0x32b   : > { %v10334_v56 = vld [vmem:[#allocation3 + $0x96] sm:$0x1f]  ;;  %15984 = vst [vmem:[#allocation103_spill] sm:$0xff] %v14727_v37  ;;  %v10122_v32 = vadd.f32 %v10117_v18, %v10093_v15  ;;  %v15994_v37 = vld [vmem:[#allocation58_spill] sm:$0xff]  ;;  %v9313_v57 = vadd.f32 %v9308_v58, %v9284_v33  ;;  %16002 = vst [vmem:[#allocation110_spill] sm:$0xff] %v14762_v61  ;;  %v14795_v36 = vmul.f32 %v14225_v39, %v14762_v61 }
 0x32c   : > { %v14716_v5 = vld [vmem:[#allocation3 + $0x55] sm:$0x1f]  ;;  %v9689_v31 = vadd.f32 %v9684_v60, %v9660_v20  ;;  %15995 = vst [vmem:[#allocation105_spill] sm:$0xff] %v14746_v21  ;;  %v16004_v50 = vld [vmem:[#allocation62_spill] sm:$0xff]  ;;  %v16018_v28 = vld [vmem:[#allocation57_spill] sm:$0xff] }
 0x32d   : > { %15980 = vst [vmem:[#allocation101_spill] sm:$0xff] %v14716_v5  ;;  %v14733_v3 = vld [vmem:[#allocation3 + $0x56] sm:$0x1f]  ;;  %v9915_v43 = vmul.f32 %v15994_v37, %v14716_v5  ;;  %v16005_v2 = vld [vmem:[#allocation98_spill] sm:$0xff] }
 0x32e   : > { %15988 = vst [vmem:[#allocation97_spill] sm:$0xff] %v14733_v3  ;;  %v14735_v40 = vld [vmem:[#allocation3 + $0x55] sm:$0x1f]  ;;  %v14780_v5 = vld [vmem:[#allocation3 + $0x85] sm:$0x1f] }
 0x32f   : > { %15989 = vst [vmem:[#allocation41_spill] sm:$0xff] %v14735_v40  ;;  %v15990_v19 = vld [vmem:[#allocation7_spill] sm:$0xff]  ;;  %v15992_v44 = vld [vmem:[#allocation8_spill] sm:$0xff]  ;;  %v9920_v18 = vadd.f32 %v9915_v43, %v9891_v24  ;;  %v14782_v9 = vld [vmem:[#allocation3 + $0x86] sm:$0x1f] }
 0x330   : > { %v14738_v17 = vmul.f32 %v15990_v19, %v10305_v23  ;;  %v14741_v13 = vmul.f32 %v15992_v44, %v10334_v56  ;;  %v14748_v16 = vld [vmem:[#allocation3 + $0x56] sm:$0x1f]  ;;  %v14754_v23 = vmul.f32 %v14222_v29, %v9813_v25  ;;  %v15999_v56 = vld [vmem:[#allocation70_spill] sm:$0xff] }
 0x331   : > { %15996 = vst [vmem:[#allocation106_spill] sm:$0xff] %v14748_v16  ;;  %v10146_v15 = vmul.f32 %v15999_v56, %v14733_v3  ;;  %v14760_v60 = vld [vmem:[#allocation3 + $0x56] sm:$0x1f]  ;;  %v9349_v56 = vld [vmem:[#allocation3 + $0x60] sm:$0x1f]  ;;  %v16024_v61 = vld [vmem:[#allocation22_spill] sm:$0xff] }
 0x332   : > { %15991 = vst [vmem:[#allocation46_spill] sm:$0xff] %v14738_v17  ;;  %15993 = vst [vmem:[#allocation104_spill] sm:$0xff] %v14741_v13  ;;  %v16000_v13 = vld [vmem:[#allocation54_spill] sm:$0xff]  ;;  %v16003_v33 = vld [vmem:[#allocation11_spill] sm:$0xff]  ;;  %v9337_v17 = vmul.f32 %v16006_v48, %v16005_v2  ;;  %v9742_v53 = vmul.f32 %v16018_v28, %v14760_v60 }
 0x333   : > { %15998 = vst [vmem:[#allocation108_spill] sm:$0xff] %v14754_v23  ;;  %v9713_v20 = vmul.f32 %v16000_v13, %v14735_v40  ;;  %16001 = vst [vmem:[#allocation109_spill] sm:$0xff] %v14760_v60  ;;  %v9757_v58 = vmul.f32 %v16004_v50, %v16003_v33  ;;  %v16007_v25 = vld [vmem:[#allocation27_spill] sm:$0xff]  ;;  %v16008_v55 = vld [vmem:[#allocation48_spill] sm:$0xff]  ;;  %v10151_v33 = vadd.f32 %v10146_v15, %v10122_v32 }
 0x334   : > { %v9540_v23 = vmul.f32 %v16007_v25, %v14665_v26  ;;  %v14772_v21 = vmul.f32 %v16008_v55, %v14655_v38  ;;  %v16010_v43 = vld [vmem:[#allocation20_spill] sm:$0xff]  ;;  %v14778_v40 = vld [vmem:[#allocation3 + $0x84] sm:$0x1f]  ;;  %16013 = vst [vmem:[#allocation27_spill] sm:$0xff] %v14780_v5  ;;  %v16015_v2 = vld [vmem:[#allocation59_spill] sm:$0xff] }
 0x335   : > { %v14776_v24 = vmul.f32 %v16010_v43, %v14667_v51  ;;  %16012 = vst [vmem:[#allocation42_spill] sm:$0xff] %v14778_v40  ;;  %16014 = vst [vmem:[#allocation20_spill] sm:$0xff] %v14782_v9  ;;  %v9944_v48 = vmul.f32 %v16015_v2, %v14748_v16  ;;  %v9718_v3 = vadd.f32 %v9713_v20, %v9689_v31  ;;  %v14786_v26 = vld [vmem:[#allocation3 + $0x90] sm:$0x1f]  ;;  %v16017_v38 = vld [vmem:[#allocation60_spill] sm:$0xff] }
 0x336   : > { %16009 = vst [vmem:[#allocation11_spill] sm:$0xff] %v14772_v21  ;;  %16016 = vst [vmem:[#allocation111_spill] sm:$0xff] %v14786_v26  ;;  %v9987_v50 = vld [vmem:[#allocation3 + $0x91] sm:$0x1f]  ;;  %v14789_v21 = vadd.f32 %v9757_v58, %v16017_v38  ;;  %v9342_v51 = vadd.f32 %v9337_v17, %v9313_v57  ;;  %v9378_v16 = vld [vmem:[#allocation3 + $0x61] sm:$0x1f]  ;;  %v14801_v58 = vmul.f32 %v15887_v12, %v14778_v40 }
 0x337   : > { %16011 = vst [vmem:[#allocation98_spill] sm:$0xff] %v14776_v24  ;;  %v9545_v24 = vadd.f32 %v9540_v23, %v9516_v14  ;;  %16019 = vst [vmem:[#allocation60_spill] sm:$0xff] %v14795_v36  ;;  %v10016_v32 = vld [vmem:[#allocation3 + $0x92] sm:$0x1f]  ;;  %v9407_v31 = vld [vmem:[#allocation3 + $0x62] sm:$0x1f]  ;;  %v14797_v20 = vadd.f32 %v9944_v48, %v9920_v18  ;;  %v14805_v17 = vmul.f32 %v15994_v37, %v14780_v5 }
 0x338   : > { %v10045_v15 = vld [vmem:[#allocation3 + $0x93] sm:$0x1f]  ;;  %16020 = vst [vmem:[#allocation112_spill] sm:$0xff] %v14801_v58  ;;  %v14809_v57 = vmul.f32 %v16015_v2, %v14782_v9  ;;  %v9551_v14 = vld [vmem:[#allocation3 + $0x60] sm:$0x1f]  ;;  %v9355_v18 = vmul.f32 %v16024_v61, %v9349_v56  ;;  %v14828_v2 = vadd.f32 %v9742_v53, %v9718_v3  ;;  %v14831_v37 = vmul.f32 %v15933_v42, %v10016_v32  ;;  %v16037_v39 = vld [vmem:[#allocation12_spill] sm:$0xff] }
 0x339   : > { %16021 = vst [vmem:[#allocation113_spill] sm:$0xff] %v14805_v17  ;;  %v14811_v23 = vld [vmem:[#allocation3 + $0x60] sm:$0x1f]  ;;  %v16025_v48 = vld [vmem:[#allocation43_spill] sm:$0xff]  ;;  %v14834_v61 = vmul.f32 %v15935_v30, %v10045_v15  ;;  %v9557_v28 = vmul.f32 %v15974_v4, %v9551_v14  ;;  %v9569_v11 = vmul.f32 %v15970_v62, %v9551_v14 }
 0x33a   : > { %16022 = vst [vmem:[#allocation114_spill] sm:$0xff] %v14809_v57  ;;  %16023 = vst [vmem:[#allocation115_spill] sm:$0xff] %v14811_v23  ;;  %v14813_v38 = vld [vmem:[#allocation3 + $0x61] sm:$0x1f]  ;;  %v9367_v36 = vmul.f32 %v16025_v48, %v9349_v56  ;;  %v16030_v17 = vld [vmem:[#allocation71_spill] sm:$0xff] }
 0x33b   : > { %v16026_v40 = vld [vmem:[#allocation61_spill] sm:$0xff]  ;;  %v10175_v9 = vmul.f32 %v16030_v17, %v14811_v23  ;;  %v16038_v53 = vld [vmem:[#allocation63_spill] sm:$0xff] }
 0x33c   : > { %v14819_v58 = vmul.f32 %v16026_v40, %v14786_v26  ;;  %v16028_v60 = vld [vmem:[#allocation65_spill] sm:$0xff]  ;;  %16031 = vst [vmem:[#allocation61_spill] sm:$0xff] %v14831_v37  ;;  %v14845_v3 = vmul.f32 %v16038_v53, %v16037_v39  ;;  %v16039_v37 = vld [vmem:[#allocation72_spill] sm:$0xff]  ;;  %v9360_v39 = vadd.f32 %v9355_v18, %v14699_v0  ;;  %v9562_v18 = vadd.f32 %v9557_v28, %v14706_v8 }
 0x33d   : > { %v14822_v5 = vmul.f32 %v16028_v60, %v9987_v50  ;;  %v14826_v57 = vld [vmem:[#allocation3 + $0x62] sm:$0x1f]  ;;  %16032 = vst [vmem:[#allocation65_spill] sm:$0xff] %v14834_v61  ;;  %v16034_v50 = vld [vmem:[#allocation24_spill] sm:$0xff]  ;;  %v10180_v32 = vadd.f32 %v10175_v9, %v10151_v33  ;;  %v10204_v15 = vmul.f32 %v16039_v37, %v14813_v38 }
 0x33e   : > { %16027 = vst [vmem:[#allocation22_spill] sm:$0xff] %v14819_v58  ;;  %v9580_v56 = vld [vmem:[#allocation3 + $0x61] sm:$0x1f]  ;;  %v16035_v58 = vld [vmem:[#allocation44_spill] sm:$0xff] }
 0x33f   : > { %16029 = vst [vmem:[#allocation43_spill] sm:$0xff] %v14822_v5  ;;  %v14836_v48 = vld [vmem:[#allocation3 + $0x63] sm:$0x1f]  ;;  %v9384_v5 = vmul.f32 %v16034_v50, %v9378_v16  ;;  %v9396_v12 = vmul.f32 %v16035_v58, %v9378_v16  ;;  %v16040_v50 = vld [vmem:[#allocation50_spill] sm:$0xff]  ;;  %v9425_v58 = vmul.f32 %v13951_v7, %v9407_v31  ;;  %v10209_v33 = vadd.f32 %v10204_v15, %v10180_v32 }
 0x340   : > { %v14838_v26 = vld [vmem:[#allocation3 + $0x64] sm:$0x1f]  ;;  %v10233_v41 = vmul.f32 %v16040_v50, %v14826_v57  ;;  %v10262_v37 = vmul.f32 %v15923_v54, %v14836_v48  ;;  %v9586_v14 = vmul.f32 %v16008_v55, %v9580_v56  ;;  %v9598_v4 = vmul.f32 %v14049_v34, %v9580_v56 }
 0x341   : > { %16033 = vst [vmem:[#allocation116_spill] sm:$0xff] %v14838_v26  ;;  %v16036_v17 = vld [vmem:[#allocation25_spill] sm:$0xff]  ;;  %v10291_v53 = vmul.f32 %v15983_v47, %v14838_v26  ;;  %v9389_v7 = vadd.f32 %v9384_v5, %v9360_v39  ;;  %v9574_v32 = vadd.f32 %v9569_v11, %v9545_v24 }
 0x342   : > { %v9413_v23 = vmul.f32 %v16036_v17, %v9407_v31  ;;  %v14849_v61 = vld [vmem:[#allocation3 + $0x65] sm:$0x1f]  ;;  %v9372_v17 = vadd.f32 %v9367_v36, %v9342_v51  ;;  %v10238_v0 = vadd.f32 %v10233_v41, %v10209_v33  ;;  %v14876_v8 = vld [vmem:[#allocation3 + $0x60] sm:$0x1f] }
 0x343   : > { %v14855_v16 = vld [vmem:[#allocation3 + $0x66] sm:$0x1f]  ;;  %v10320_v50 = vmul.f32 %v15990_v19, %v14849_v61  ;;  %v9603_v41 = vadd.f32 %v9598_v4, %v9574_v32  ;;  %16041 = vst [vmem:[#allocation24_spill] sm:$0xff] %v14876_v8 }
 0x344   : > { %v9609_v9 = vld [vmem:[#allocation3 + $0x62] sm:$0x1f]  ;;  %v9401_v31 = vadd.f32 %v9396_v12, %v9372_v17  ;;  %v10349_v36 = vmul.f32 %v15992_v44, %v14855_v16  ;;  %v9418_v47 = vadd.f32 %v9413_v23, %v9389_v7  ;;  %v10267_v19 = vadd.f32 %v10262_v37, %v10238_v0 }
 0x345   : > { %v9436_v62 = vld [vmem:[#allocation3 + $0x63] sm:$0x1f]  ;;  %v9615_v15 = vmul.f32 %v16010_v43, %v9609_v9  ;;  %v9627_v56 = vmul.f32 %v14066_v27, %v9609_v9  ;;  %v9591_v12 = vadd.f32 %v9586_v14, %v9562_v18 }
 0x346   : > { %v9465_v51 = vld [vmem:[#allocation3 + $0x64] sm:$0x1f]  ;;  %v9430_v54 = vadd.f32 %v9425_v58, %v9401_v31  ;;  %v9442_v55 = vmul.f32 %v15808_v59, %v9436_v62  ;;  %v9454_v17 = vmul.f32 %v13963_v63, %v9436_v62  ;;  %v10296_v24 = vadd.f32 %v10291_v53, %v10267_v19 }
 0x347   : > { %v9638_v26 = vld [vmem:[#allocation3 + $0x63] sm:$0x1f]  ;;  %v9471_v33 = vmul.f32 %v15809_v35, %v9465_v51  ;;  %v9483_v28 = vmul.f32 %v15883_v49, %v9465_v51  ;;  %v9620_v59 = vadd.f32 %v9615_v15, %v9591_v12  ;;  %v9632_v37 = vadd.f32 %v9627_v56, %v9603_v41 }
 0x348   : > { %v9494_v5 = vld [vmem:[#allocation3 + $0x65] sm:$0x1f]  ;;  %v9447_v39 = vadd.f32 %v9442_v55, %v9418_v47  ;;  %v9459_v14 = vadd.f32 %v9454_v17, %v9430_v54  ;;  %v9656_v63 = vmul.f32 %v14072_v52, %v9638_v26  ;;  %v10325_v49 = vadd.f32 %v10320_v50, %v10296_v24  ;;  %v16044_v47 = vld [vmem:[#allocation51_spill] sm:$0xff]  ;;  %v14896_v12 = vld [vmem:[#allocation3 + $0x60] sm:$0x1f] }
 0x349   : > { %v9667_v11 = vld [vmem:[#allocation3 + $0x64] sm:$0x1f]  ;;  %v9500_v55 = vmul.f32 %v15876_v6, %v9494_v5  ;;  %v9973_v19 = vmul.f32 %v16026_v40, %v14876_v8  ;;  %16047 = vst [vmem:[#allocation12_spill] sm:$0xff] %v14896_v12  ;;  %v16063_v8 = vld [vmem:[#allocation32_spill] sm:$0xff] }
 0x34a   : > { %v14878_v23 = vld [vmem:[#allocation3 + $0x66] sm:$0x1f]  ;;  %v9476_v4 = vadd.f32 %v9471_v33, %v9447_v39  ;;  %v14883_v35 = vld [vmem:[#allocation3 + $0x61] sm:$0x1f]  ;;  %v9673_v31 = vmul.f32 %v16044_v47, %v9667_v11  ;;  %v9661_v51 = vadd.f32 %v9656_v63, %v9632_v37  ;;  %v9488_v41 = vadd.f32 %v9483_v28, %v9459_v14  ;;  %v16049_v33 = vld [vmem:[#allocation64_spill] sm:$0xff] }
 0x34b   : > { %v16042_v58 = vld [vmem:[#allocation49_spill] sm:$0xff]  ;;  %16043 = vst [vmem:[#allocation44_spill] sm:$0xff] %v14883_v35  ;;  %v9529_v0 = vmul.f32 %v15881_v45, %v14878_v23  ;;  %v9978_v50 = vadd.f32 %v9973_v19, %v14797_v20  ;;  %v10002_v56 = vmul.f32 %v16028_v60, %v14883_v35  ;;  %v9685_v45 = vmul.f32 %v15982_v46, %v9667_v11  ;;  %v16053_v14 = vld [vmem:[#allocation56_spill] sm:$0xff] }
 0x34c   : > { %v9644_v9 = vmul.f32 %v16042_v58, %v9638_v26  ;;  %v9696_v7 = vld [vmem:[#allocation3 + $0x65] sm:$0x1f]  ;;  %v9505_v53 = vadd.f32 %v9500_v55, %v9476_v4  ;;  %v10354_v26 = vadd.f32 %v10349_v36, %v10325_v49  ;;  %v9771_v11 = vmul.f32 %v15872_v22, %v14896_v12  ;;  %v16054_v55 = vld [vmem:[#allocation75_spill] sm:$0xff]  ;;  %v16061_v12 = vld [vmem:[#allocation76_spill] sm:$0xff] }
 0x34d   : > { %v16045_v54 = vld [vmem:[#allocation53_spill] sm:$0xff]  ;;  %v10007_v20 = vadd.f32 %v10002_v56, %v9978_v50  ;;  %v9844_v63 = vmul.f32 %v16054_v55, %v16053_v14  ;;  %v16060_v14 = vld [vmem:[#allocation34_spill] sm:$0xff] }
 0x34e   : > { %v9649_v62 = vadd.f32 %v9644_v9, %v9620_v59  ;;  %v9702_v18 = vmul.f32 %v16045_v54, %v9696_v7  ;;  %v9725_v32 = vld [vmem:[#allocation3 + $0x66] sm:$0x1f]  ;;  %v14898_v39 = vadd.f32 %v9529_v0, %v9505_v53  ;;  %10364 = vrot.lane.b32.xlu0 %v10354_v26, %s12369_s28  ;;  %v16050_v59 = vld [vmem:[#allocation55_spill] sm:$0xff]  ;;  %v14907_v4 = vld [vmem:[#allocation3 + $0x61] sm:$0x1f]  ;;  %v9690_v26 = vadd.f32 %v9685_v45, %v9661_v51 }
 0x34f   : > { %v14891_v6 = vld [vmem:[#allocation3 + $0x62] sm:$0x1f]  ;;  %v9731_v37 = vmul.f32 %v16050_v59, %v9725_v32  ;;  %16051 = vst [vmem:[#allocation49_spill] sm:$0xff] %v14907_v4  ;;  %v16058_v53 = vld [vmem:[#allocation10_spill] sm:$0xff]  ;;  %v9931_v35 = vmul.f32 %v16061_v12, %v16060_v14  ;;  %v9791_v51 = vadd.f32 %v14845_v3, %v14789_v21  ;;  %v9541_v21 = vmul.f32 %v16007_v25, %v14878_v23 }
 0x350   : > { %16046 = vst [vmem:[#allocation25_spill] sm:$0xff] %v14891_v6  ;;  %v9678_v15 = vadd.f32 %v9673_v31, %v9649_v62  ;;  %v16048_v17 = vld [vmem:[#allocation13_spill] sm:$0xff]  ;;  %v10031_v9 = vmul.f32 %v15933_v42, %v14891_v6  ;;  %v16056_v62 = vld [vmem:[#allocation31_spill] sm:$0xff]  ;;  %v9800_v6 = vmul.f32 %v14205_v1, %v14907_v4 }
 0x351   : > { %v9815_v24 = vmul.f32 %v16049_v33, %v16048_v17  ;;  %v14909_v28 = vld [vmem:[#allocation3 + $0x63] sm:$0x1f]  ;;  %v9776_v17 = vadd.f32 %v9771_v11, %v14828_v2  ;;  %v16068_v11 = vld [vmem:[#allocation80_spill] sm:$0xff] }
 0x352   : > { %v9707_v36 = vadd.f32 %v9702_v18, %v9678_v15  ;;  %16052 = vst [vmem:[#allocation53_spill] sm:$0xff] %v14909_v28  ;;  %v16055_v49 = vld [vmem:[#allocation33_spill] sm:$0xff]  ;;  %v9512_v18 = vmul.f32 %v15987_v10, %v9494_v5  ;;  %v10036_v50 = vadd.f32 %v10031_v9, %v10007_v20  ;;  %v9714_v5 = vmul.f32 %v16000_v13, %v9696_v7  ;;  %v16065_v20 = vld [vmem:[#allocation14_spill] sm:$0xff] }
 0x353   : > { %v9873_v31 = vmul.f32 %v16056_v62, %v16055_v49  ;;  %v16057_v19 = vld [vmem:[#allocation45_spill] sm:$0xff]  ;;  %v16062_v49 = vld [vmem:[#allocation92_spill] sm:$0xff]  ;;  %v10060_v2 = vmul.f32 %v15935_v30, %v14909_v28  ;;  %v16103_v13 = vld [vmem:[#allocation62_spill] sm:$0xff] }
 0x354   : > { %v9902_v0 = vmul.f32 %v16058_v53, %v16057_v19  ;;  %v14920_v15 = vadd.f32 %v9731_v37, %v9707_v36  ;;  %v14922_v56 = vld [vmem:[#allocation3 + $0x62] sm:$0x1f]  ;;  %v14931_v46 = vmul.f32 %v16063_v8, %v16062_v49  ;;  %v9517_v10 = vadd.f32 %v9512_v18, %v9488_v41  ;;  %v16066_v41 = vld [vmem:[#allocation79_spill] sm:$0xff] }
 0x355   : > { %16059 = vst [vmem:[#allocation13_spill] sm:$0xff] %v14922_v56  ;;  %v14946_v45 = vld [vmem:[#allocation3 + $0x64] sm:$0x1f]  ;;  %v9805_v36 = vadd.f32 %v9800_v6, %v9776_v17  ;;  %v9829_v37 = vmul.f32 %v14222_v29, %v14922_v56  ;;  %v14952_v9 = vmul.f32 %v16066_v41, %v16065_v20  ;;  %v9719_v3 = vadd.f32 %v9714_v5, %v9690_v26  ;;  %v16078_v41 = vld [vmem:[#allocation35_spill] sm:$0xff] }
 0x356   : > { %16064 = vst [vmem:[#allocation64_spill] sm:$0xff] %v14946_v45  ;;  %v16067_v7 = vld [vmem:[#allocation37_spill] sm:$0xff]  ;;  %v10065_v6 = vadd.f32 %v10060_v2, %v10036_v50  ;;  %v9820_v49 = vadd.f32 %v9815_v24, %v9791_v51  ;;  %v14984_v50 = vadd.f32 %v9541_v21, %v9517_v10  ;;  %v8928_v24 = vpop.xlane.xlu0 %8927  ;;  %v16084_v51 = vld [vmem:[#allocation68_spill] sm:$0xff]  ;;  %v16088_v10 = vld [vmem:[#allocation26_spill] sm:$0xff] }
 0x357   : > { %v14956_v19 = vmul.f32 %v16068_v11, %v16067_v7  ;;  %v14964_v18 = vld [vmem:[#allocation3 + $0x65] sm:$0x1f]  ;;  %v9834_v20 = vadd.f32 %v9829_v37, %v9805_v36  ;;  %v10089_v36 = vmul.f32 %v16084_v51, %v14946_v45 }
 0x358   : > { %16070 = vst [vmem:[#allocation56_spill] sm:$0xff] %v14964_v18  ;;  %v14966_v17 = vld [vmem:[#allocation3 + $0x66] sm:$0x1f] }
 0x359   : > { %16069 = vst [vmem:[#allocation55_spill] sm:$0xff] %v14956_v19  ;;  %16071 = vst [vmem:[#allocation75_spill] sm:$0xff] %v14966_v17  ;;  %v14968_v14 = vld [vmem:[#allocation3 + $0x63] sm:$0x1f]  ;;  %v16074_v7 = vld [vmem:[#allocation38_spill] sm:$0xff] }
 0x35a   : > { %16072 = vst [vmem:[#allocation33_spill] sm:$0xff] %v14968_v14  ;;  %v14970_v56 = vld [vmem:[#allocation3 + $0x64] sm:$0x1f] }
 0x35b   : > { %16073 = vst [vmem:[#allocation45_spill] sm:$0xff] %v14970_v56  ;;  %v16075_v4 = vld [vmem:[#allocation77_spill] sm:$0xff]  ;;  %v16077_v11 = vld [vmem:[#allocation18_spill] sm:$0xff] }
 0x35c   : > { %v14974_v28 = vmul.f32 %v16075_v4, %v16074_v7  ;;  %v14978_v8 = vmul.f32 %v16078_v41, %v16077_v11  ;;  %v16080_v25 = vld [vmem:[#allocation21_spill] sm:$0xff]  ;;  %v9849_v7 = vadd.f32 %v9844_v63, %v9820_v49  ;;  %v8929_v4 = vmul.f32 0.015625, %v8928_v24  ;;  %v8932_v63 = vpop.xlane.xlu1 %8931 }
 0x35d   : > { %v16081_v23 = vld [vmem:[#allocation9_spill] sm:$0xff]  ;;  %v10094_v24 = vadd.f32 %v10089_v36, %v10065_v6  ;;  %v15016_v36 = vstv %s14933_s29 }
 0x35e   : > { %16076 = vst [vmem:[#allocation34_spill] sm:$0xff] %v14974_v28  ;;  %16079 = vst [vmem:[#allocation76_spill] sm:$0xff] %v14978_v8  ;;  %v14982_v26 = vmul.f32 %v16081_v23, %v16080_v25  ;;  %v16083_v5 = vld [vmem:[#allocation57_spill] sm:$0xff]  ;;  %v16087_v25 = vld [vmem:[#allocation70_spill] sm:$0xff] }
 0x35f   : > { %v9743_v2 = vmul.f32 %v16083_v5, %v9725_v32  ;;  %v14989_v37 = vld [vmem:[#allocation3 + $0x65] sm:$0x1f]  ;;  %v10147_v23 = vmul.f32 %v16087_v25, %v14966_v17  ;;  %v9858_v32 = vmul.f32 %v16088_v10, %v14968_v14  ;;  %v8933_v17 = vsel %vm6047_vm8, %v8929_v4, %v8932_v63  ;;  %v16098_v63 = vld [vmem:[#allocation40_spill] sm:$0xff] }
 0x360   : > { %16082 = vst [vmem:[#allocation92_spill] sm:$0xff] %v14982_v26  ;;  %16085 = vst [vmem:[#allocation14_spill] sm:$0xff] %v14989_v37  ;;  %v16086_v11 = vld [vmem:[#allocation69_spill] sm:$0xff]  ;;  %v9878_v26 = vadd.f32 %v9873_v31, %v9849_v7  ;;  %v16091_v25 = vld [vmem:[#allocation58_spill] sm:$0xff]  ;;  %v15019_v31 = vstv %s14935_s30  ;;  %v15022_v4 = vstv %s14942_s7 }
 0x361   : > { %v10118_v41 = vmul.f32 %v16086_v11, %v14964_v18  ;;  %v14999_v21 = vld [vmem:[#allocation3 + $0x66] sm:$0x1f]  ;;  %v15003_v49 = vadd.f32 %v9743_v2, %v9719_v3  ;;  %v16090_v18 = vld [vmem:[#allocation28_spill] sm:$0xff]  ;;  %v9863_v14 = vadd.f32 %v9858_v32, %v9834_v20  ;;  %v9916_v8 = vmul.f32 %v16091_v25, %v14989_v37  ;;  %8935 = vst.msk [vmem:[#allocation3 + $0x73] sm:$0x1f] %vm6050_vm9, %v8933_v17  ;;  %v16093_v3 = vld [vmem:[#allocation59_spill] sm:$0xff] }
 0x362   : > { %16089 = vst [vmem:[#allocation37_spill] sm:$0xff] %v14999_v21  ;;  %v9887_v45 = vmul.f32 %v16090_v18, %v14970_v56  ;;  %v16092_v5 = vld [vmem:[#allocation30_spill] sm:$0xff]  ;;  %v9945_v6 = vmul.f32 %v16093_v3, %v14999_v21  ;;  %v9907_v2 = vadd.f32 %v9902_v0, %v9878_v26  ;;  %16094 = vst [vmem:[#allocation38_spill] sm:$0xff] %v15019_v31  ;;  %v15025_v20 = vstv %s14944_s8  ;;  %v16097_v7 = vld [vmem:[#allocation23_spill] sm:$0xff] }
 0x363   : > { %v9671_v28 = vmul.f32 %v16044_v47, %v16092_v5  ;;  %16095 = vst [vmem:[#allocation18_spill] sm:$0xff] %v15022_v4  ;;  %16096 = vst [vmem:[#allocation21_spill] sm:$0xff] %v15025_v20  ;;  %v9700_v5 = vmul.f32 %v16045_v54, %v16098_v63  ;;  %v10123_v17 = vadd.f32 %v10118_v41, %v10094_v24  ;;  %v15031_v56 = vstv %s14958_s9  ;;  %v16101_v47 = vld [vmem:[#allocation78_spill] sm:$0xff]  ;;  %v16102_v25 = vld [vmem:[#allocation36_spill] sm:$0xff] }
 0x364   : > { %v9936_v37 = vadd.f32 %v9931_v35, %v9907_v2  ;;  %16099 = vst [vmem:[#allocation68_spill] sm:$0xff] %v15031_v56  ;;  %v15034_v0 = vstv %s14960_s10  ;;  %v9892_v26 = vadd.f32 %v9887_v45, %v9863_v14  ;;  %v9729_v3 = vmul.f32 %v16050_v59, %v16101_v47  ;;  %v16105_v41 = vld [vmem:[#allocation115_spill] sm:$0xff]  ;;  %v16108_v2 = vld [vmem:[#allocation116_spill] sm:$0xff] }
 0x365   : > { %v9676_v32 = vadd.f32 %v9671_v28, %v16097_v7  ;;  %16100 = vst [vmem:[#allocation69_spill] sm:$0xff] %v15034_v0  ;;  %v9758_v18 = vmul.f32 %v16103_v13, %v16102_v25  ;;  %v16104_v7 = vld [vmem:[#allocation97_spill] sm:$0xff]  ;;  %v15047_v35 = vmul.f32 %v15019_v31, %v16105_v41  ;;  %v15050_v24 = vstv %s14991_s11  ;;  %v16110_v63 = vld [vmem:[#allocation11_spill] sm:$0xff] }
 0x366   : > { %v9965_v28 = vadd.f32 %v14931_v46, %v9936_v37  ;;  %v15043_v19 = vmul.f32 %v15016_v36, %v16104_v7  ;;  %16106 = vst [vmem:[#allocation26_spill] sm:$0xff] %v15050_v24  ;;  %v15054_v45 = vmul.f32 %v15022_v4, %v14813_v38  ;;  %v15058_v47 = vmul.f32 %v15025_v20, %v14826_v57  ;;  %v16109_v38 = vld [vmem:[#allocation100_spill] sm:$0xff]  ;;  %v16115_v4 = vld [vmem:[#allocation63_spill] sm:$0xff]  ;;  %v16122_v31 = vld [vmem:[#allocation101_spill] sm:$0xff] }
 0x367   : > { %v9705_v21 = vadd.f32 %v9700_v5, %v9676_v32  ;;  %v15061_v14 = vstv %s15001_s13  ;;  %v15068_v25 = vmul.f32 %v15031_v56, %v14836_v48  ;;  %v15072_v32 = vmul.f32 %v15034_v0, %v16108_v2  ;;  %v16111_v48 = vld [vmem:[#allocation29_spill] sm:$0xff] }
 0x368   : > { %16107 = vst [vmem:[#allocation30_spill] sm:$0xff] %v15061_v14  ;;  %v15064_v37 = vadd.f32 %v14952_v9, %v9965_v28  ;;  %v15076_v5 = vadd.f32 %v16110_v63, %v16109_v38  ;;  %v9552_v57 = vld [vmem:[#allocation3 + $0x70] sm:$0x1f]  ;;  %v10152_v41 = vadd.f32 %v10147_v23, %v10123_v17  ;;  %v9921_v20 = vadd.f32 %v9916_v8, %v9892_v26  ;;  %v16116_v8 = vld [vmem:[#allocation48_spill] sm:$0xff] }
 0x369   : > { %v9734_v46 = vadd.f32 %v9729_v3, %v9705_v21  ;;  %v9581_v7 = vld [vmem:[#allocation3 + $0x71] sm:$0x1f]  ;;  %v15080_v9 = vmul.f32 %v15050_v24, %v14849_v61  ;;  %v9558_v3 = vmul.f32 %v16111_v48, %v9552_v57  ;;  %v15088_v38 = vmul.f32 %v15061_v14, %v14855_v16 }
 0x36a   : > { %v16112_v28 = vld [vmem:[#allocation47_spill] sm:$0xff]  ;;  %v9587_v17 = vmul.f32 %v16116_v8, %v9581_v7  ;;  %v9599_v61 = vmul.f32 %v14049_v34, %v9581_v7 }
 0x36b   : > { %v15082_v21 = vadd.f32 %v9758_v18, %v9734_v46  ;;  %v9570_v56 = vmul.f32 %v16112_v28, %v9552_v57  ;;  %v9610_v2 = vld [vmem:[#allocation3 + $0x72] sm:$0x1f]  ;;  %16113 = vst [vmem:[#allocation23_spill] sm:$0xff] %v15088_v38  ;;  %v16117_v18 = vld [vmem:[#allocation16_spill] sm:$0xff]  ;;  %v16118_v46 = vld [vmem:[#allocation17_spill] sm:$0xff]  ;;  %v9563_v48 = vadd.f32 %v9558_v3, %v14898_v39  ;;  %v15119_v39 = vmul.f32 %v16058_v53, %v16122_v31 }
 0x36c   : > { %v9754_v0 = vld [vmem:[#allocation3 + $0x70] sm:$0x1f]  ;;  %v15098_v26 = vmul.f32 %v16049_v33, %v16117_v18  ;;  %v15102_v57 = vmul.f32 %v16054_v55, %v16118_v46  ;;  %v9616_v34 = vmul.f32 %v16010_v43, %v9610_v2  ;;  %v9950_v18 = vadd.f32 %v9945_v6, %v9921_v20 }
 0x36d   : > { %v16114_v63 = vld [vmem:[#allocation15_spill] sm:$0xff]  ;;  %v9575_v16 = vadd.f32 %v9570_v56, %v14984_v50  ;;  %v9772_v14 = vmul.f32 %v15872_v22, %v9754_v0  ;;  %v9592_v56 = vadd.f32 %v9587_v17, %v9563_v48  ;;  %v9628_v3 = vmul.f32 %v14066_v27, %v9610_v2 }
 0x36e   : > { %v15092_v23 = vmul.f32 %v16115_v4, %v16114_v63  ;;  %v9639_v28 = vld [vmem:[#allocation3 + $0x73] sm:$0x1f]  ;;  %v9760_v63 = vmul.f32 %v16103_v13, %v9754_v0 }
 0x36f   : > { %v15108_v8 = vld [vmem:[#allocation3 + $0x70] sm:$0x1f]  ;;  %v9604_v50 = vadd.f32 %v9599_v61, %v9575_v16  ;;  %v9645_v20 = vmul.f32 %v16042_v58, %v9639_v28  ;;  %v9621_v48 = vadd.f32 %v9616_v34, %v9592_v56 }
 0x370   : > { %16119 = vst [vmem:[#allocation40_spill] sm:$0xff] %v15108_v8  ;;  %v15111_v7 = vld [vmem:[#allocation3 + $0x71] sm:$0x1f]  ;;  %v15123_v22 = vadd.f32 %v9760_v63, %v14920_v15  ;;  %v16129_v15 = vld [vmem:[#allocation106_spill] sm:$0xff]  ;;  %v9777_v63 = vadd.f32 %v9772_v14, %v15003_v49 }
 0x371   : > { %16120 = vst [vmem:[#allocation78_spill] sm:$0xff] %v15111_v7  ;;  %v16121_v24 = vld [vmem:[#allocation19_spill] sm:$0xff]  ;;  %v15143_v2 = vmul.f32 %v16061_v12, %v16129_v15  ;;  %v9633_v16 = vadd.f32 %v9628_v3, %v9604_v50  ;;  %v15162_v14 = vadd.f32 %v9645_v20, %v9621_v48  ;;  %v16133_v50 = vld [vmem:[#allocation73_spill] sm:$0xff] }
 0x372   : > { %v15115_v46 = vmul.f32 %v16056_v62, %v16121_v24  ;;  %16123 = vst [vmem:[#allocation36_spill] sm:$0xff] %v15123_v22  ;;  %v15125_v0 = vld [vmem:[#allocation3 + $0x72] sm:$0x1f]  ;;  %v9657_v24 = vmul.f32 %v14072_v52, %v9639_v28  ;;  %v9801_v52 = vmul.f32 %v14205_v1, %v15111_v7  ;;  %v16132_v1 = vld [vmem:[#allocation50_spill] sm:$0xff] }
 0x373   : > { %16124 = vst [vmem:[#allocation62_spill] sm:$0xff] %v15125_v0  ;;  %v15127_v43 = vld [vmem:[#allocation3 + $0x71] sm:$0x1f]  ;;  %v15156_v15 = vld [vmem:[#allocation3 + $0x76] sm:$0x1f]  ;;  %16131 = vst [vmem:[#allocation100_spill] sm:$0xff] %v15162_v14 }
 0x374   : > { %v15129_v6 = vld [vmem:[#allocation3 + $0x70] sm:$0x1f]  ;;  %v15148_v28 = vld [vmem:[#allocation3 + $0x75] sm:$0x1f] }
 0x375   : > { %v16125_v31 = vld [vmem:[#allocation71_spill] sm:$0xff]  ;;  %v9974_v34 = vmul.f32 %v16026_v40, %v15129_v6 }
 0x376   : > { %v10176_v53 = vmul.f32 %v16125_v31, %v15108_v8  ;;  %v15135_v17 = vld [vmem:[#allocation3 + $0x72] sm:$0x1f]  ;;  %v9830_v31 = vmul.f32 %v14222_v29, %v15125_v0  ;;  %v16130_v8 = vld [vmem:[#allocation72_spill] sm:$0xff]  ;;  %v16134_v29 = vld [vmem:[#allocation74_spill] sm:$0xff] }
 0x377   : > { %16126 = vst [vmem:[#allocation97_spill] sm:$0xff] %v15135_v17  ;;  %v15137_v61 = vld [vmem:[#allocation3 + $0x73] sm:$0x1f]  ;;  %v10205_v38 = vmul.f32 %v16130_v8, %v15127_v43  ;;  %v10234_v56 = vmul.f32 %v16132_v1, %v15135_v17  ;;  %v9979_v48 = vadd.f32 %v9974_v34, %v9950_v18  ;;  %v9806_v1 = vadd.f32 %v9801_v52, %v9777_v63  ;;  %v16141_v63 = vld [vmem:[#allocation52_spill] sm:$0xff] }
 0x378   : > { %16127 = vst [vmem:[#allocation115_spill] sm:$0xff] %v15137_v61  ;;  %v15139_v27 = vld [vmem:[#allocation3 + $0x74] sm:$0x1f]  ;;  %v10181_v62 = vadd.f32 %v10176_v53, %v10152_v41  ;;  %v10263_v3 = vmul.f32 %v16133_v50, %v15137_v61  ;;  %v9662_v50 = vadd.f32 %v9657_v24, %v9633_v16 }
 0x379   : > { %16128 = vst [vmem:[#allocation116_spill] sm:$0xff] %v15139_v27  ;;  %v15150_v22 = vld [vmem:[#allocation3 + $0x71] sm:$0x1f]  ;;  %v10292_v53 = vmul.f32 %v16134_v29, %v15139_v27  ;;  %v10350_v27 = vmul.f32 %v15992_v44, %v15156_v15  ;;  %v9835_v16 = vadd.f32 %v9830_v31, %v9806_v1  ;;  %v16143_v31 = vld [vmem:[#allocation28_spill] sm:$0xff] }
 0x37a   : > { %v15160_v49 = vld [vmem:[#allocation3 + $0x72] sm:$0x1f]  ;;  %v10210_v40 = vadd.f32 %v10205_v38, %v10181_v62  ;;  %v10003_v14 = vmul.f32 %v16028_v60, %v15150_v22 }
 0x37b   : > { %v15170_v41 = vld [vmem:[#allocation3 + $0x73] sm:$0x1f]  ;;  %v10032_v29 = vmul.f32 %v15933_v42, %v15160_v49 }
 0x37c   : > { %16135 = vst [vmem:[#allocation11_spill] sm:$0xff] %v15170_v41  ;;  %v15172_v0 = vld [vmem:[#allocation3 + $0x74] sm:$0x1f]  ;;  %v10239_v62 = vadd.f32 %v10234_v56, %v10210_v40  ;;  %v10008_v38 = vadd.f32 %v10003_v14, %v9979_v48  ;;  %v10061_v18 = vmul.f32 %v15935_v30, %v15170_v41 }
 0x37d   : > { %16136 = vst [vmem:[#allocation29_spill] sm:$0xff] %v15172_v0  ;;  %v15174_v7 = vld [vmem:[#allocation3 + $0x73] sm:$0x1f]  ;;  %v10090_v60 = vmul.f32 %v16084_v51, %v15172_v0  ;;  %v9792_v0 = vadd.f32 %v15092_v23, %v15082_v21  ;;  %v16146_v21 = vld [vmem:[#allocation58_spill] sm:$0xff] }
 0x37e   : > { %16137 = vst [vmem:[#allocation47_spill] sm:$0xff] %v15174_v7  ;;  %v16138_v8 = vld [vmem:[#allocation7_spill] sm:$0xff]  ;;  %v9859_v42 = vmul.f32 %v16088_v10, %v15174_v7  ;;  %v10268_v14 = vadd.f32 %v10263_v3, %v10239_v62  ;;  %v10037_v56 = vadd.f32 %v10032_v29, %v10008_v38  ;;  %v16144_v7 = vld [vmem:[#allocation54_spill] sm:$0xff] }
 0x37f   : > { %v10321_v20 = vmul.f32 %v16138_v8, %v15148_v28  ;;  %v15180_v17 = vld [vmem:[#allocation3 + $0x75] sm:$0x1f] }
 0x380   : > { %16139 = vst [vmem:[#allocation15_spill] sm:$0xff] %v15180_v17  ;;  %v15182_v61 = vld [vmem:[#allocation3 + $0x74] sm:$0x1f]  ;;  %v10119_v24 = vmul.f32 %v16086_v11, %v15180_v17  ;;  %v9864_v17 = vadd.f32 %v9859_v42, %v9835_v16  ;;  %v10297_v3 = vadd.f32 %v10292_v53, %v10268_v14  ;;  %v10066_v29 = vadd.f32 %v10061_v18, %v10037_v56  ;;  %v16149_v56 = vld [vmem:[#allocation70_spill] sm:$0xff] }
 0x381   : > { %16140 = vst [vmem:[#allocation63_spill] sm:$0xff] %v15182_v61  ;;  %v15192_v34 = vld [vmem:[#allocation3 + $0x74] sm:$0x1f]  ;;  %v9686_v52 = vmul.f32 %v16141_v63, %v15182_v61  ;;  %v16145_v61 = vld [vmem:[#allocation34_spill] sm:$0xff] }
 0x382   : > { %v15194_v8 = vld [vmem:[#allocation3 + $0x75] sm:$0x1f]  ;;  %v9888_v1 = vmul.f32 %v16143_v31, %v15192_v34 }
 0x383   : > { %v15202_v30 = vld [vmem:[#allocation3 + $0x75] sm:$0x1f]  ;;  %v9691_v10 = vadd.f32 %v9686_v52, %v9662_v50  ;;  %v9715_v63 = vmul.f32 %v16144_v7, %v15194_v8  ;;  %v16147_v50 = vld [vmem:[#allocation57_spill] sm:$0xff]  ;;  %v10326_v52 = vadd.f32 %v10321_v20, %v10297_v3  ;;  %v10095_v7 = vadd.f32 %v10090_v60, %v10066_v29 }
 0x384   : > { %v15204_v40 = vld [vmem:[#allocation3 + $0x76] sm:$0x1f]  ;;  %v9917_v23 = vmul.f32 %v16146_v21, %v15202_v30  ;;  %v16152_v60 = vld [vmem:[#allocation105_spill] sm:$0xff] }
 0x385   : > { %v16142_v48 = vld [vmem:[#allocation55_spill] sm:$0xff]  ;;  %v9720_v16 = vadd.f32 %v9715_v63, %v9691_v10  ;;  %v9744_v42 = vmul.f32 %v16147_v50, %v15204_v40  ;;  %v16148_v53 = vld [vmem:[#allocation76_spill] sm:$0xff] }
 0x386   : > { %v10023_v44 = vadd.f32 %v16142_v48, %v15064_v37  ;;  %v15214_v62 = vld [vmem:[#allocation3 + $0x76] sm:$0x1f]  ;;  %v9821_v37 = vadd.f32 %v15098_v26, %v9792_v0  ;;  %v9893_v48 = vadd.f32 %v9888_v1, %v9864_v17  ;;  %v10124_v1 = vadd.f32 %v10119_v24, %v10095_v7 }
 0x387   : > { %v15216_v38 = vld [vmem:[#allocation3 + $0x76] sm:$0x1f]  ;;  %v10148_v31 = vmul.f32 %v16149_v56, %v15214_v62  ;;  %v9749_v17 = vadd.f32 %v9744_v42, %v9720_v16 }
 0x388   : > { %v10052_v41 = vadd.f32 %v16145_v61, %v10023_v44  ;;  %v9850_v14 = vadd.f32 %v15102_v57, %v9821_v37  ;;  %v9922_v44 = vadd.f32 %v9917_v23, %v9893_v48  ;;  %v16150_v26 = vld [vmem:[#allocation59_spill] sm:$0xff]  ;;  %v10355_v61 = vadd.f32 %v10350_v27, %v10326_v52  ;;  %v16151_v10 = vld [vmem:[#allocation92_spill] sm:$0xff] }
 0x389   : > { %v9946_v0 = vmul.f32 %v16150_v26, %v15216_v38  ;;  %v9778_v3 = vadd.f32 %v16152_v60, %v9749_v17  ;;  %v16154_v29 = vld [vmem:[#allocation39_spill] sm:$0xff]  ;;  %v10153_v48 = vadd.f32 %v10148_v31, %v10124_v1  ;;  %v16155_v24 = vld [vmem:[#allocation24_spill] sm:$0xff]  ;;  %v16164_v17 = vld [vmem:[#allocation89_spill] sm:$0xff] }
 0x38a   : > { %v10081_v18 = vadd.f32 %v16148_v53, %v10052_v41  ;;  %v9879_v21 = vadd.f32 %v15115_v46, %v9850_v14  ;;  %v16153_v41 = vld [vmem:[#allocation98_spill] sm:$0xff]  ;;  %v9643_v37 = vmul.f32 %v16042_v58, %v16154_v29  ;;  %10366 = vrot.lane.b32.xlu1 %v10355_v61, %s12369_s28  ;;  %v16156_v16 = vld [vmem:[#allocation32_spill] sm:$0xff]  ;;  %v16158_v52 = vld [vmem:[#allocation107_spill] sm:$0xff] }
 0x38b   : > { %v9951_v20 = vadd.f32 %v9946_v0, %v9922_v44  ;;  %v9619_v57 = vadd.f32 %v16153_v41, %v15076_v5  ;;  %v9961_v50 = vmul.f32 %v16156_v16, %v16155_v24  ;;  %v16157_v46 = vld [vmem:[#allocation88_spill] sm:$0xff]  ;;  %v9807_v7 = vadd.f32 %v16158_v52, %v9778_v3  ;;  %v16160_v5 = vld [vmem:[#allocation51_spill] sm:$0xff]  ;;  %v16161_v44 = vld [vmem:[#allocation81_spill] sm:$0xff] }
 0x38c   : > { %v10110_v63 = vadd.f32 %v16151_v10, %v10081_v18  ;;  %v9908_v27 = vadd.f32 %v15119_v39, %v9879_v21  ;;  %v16159_v18 = vld [vmem:[#allocation99_spill] sm:$0xff]  ;;  %v10182_v58 = vadd.f32 %v16161_v44, %v10153_v48  ;;  %v16165_v1 = vld [vmem:[#allocation108_spill] sm:$0xff]  ;;  %v16166_v21 = vld [vmem:[#allocation41_spill] sm:$0xff] }
 0x38d   : > { %v9980_v42 = vadd.f32 %v16157_v46, %v9951_v20  ;;  %v9648_v53 = vadd.f32 %v9643_v37, %v9619_v57  ;;  %v9672_v14 = vmul.f32 %v16160_v5, %v16159_v18  ;;  %v16163_v0 = vld [vmem:[#allocation79_spill] sm:$0xff]  ;;  %v9836_v10 = vadd.f32 %v16165_v1, %v9807_v7  ;;  %v16167_v60 = vld [vmem:[#allocation82_spill] sm:$0xff]  ;;  %v16168_v29 = vld [vmem:[#allocation109_spill] sm:$0xff] }
 0x38e   : > { %v10139_v23 = vadd.f32 %v15043_v19, %v10110_v63  ;;  %v9937_v31 = vadd.f32 %v15143_v2, %v9908_v27  ;;  %v16162_v19 = vld [vmem:[#allocation44_spill] sm:$0xff]  ;;  %v9701_v20 = vmul.f32 %v16045_v54, %v16166_v21  ;;  %v10211_v3 = vadd.f32 %v16167_v60, %v10182_v58  ;;  %v16169_v2 = vld [vmem:[#allocation66_spill] sm:$0xff]  ;;  %v16173_v18 = vld [vmem:[#allocation25_spill] sm:$0xff] }
 0x38f   : > { %v9990_v39 = vmul.f32 %v16163_v0, %v16162_v19  ;;  %v10009_v61 = vadd.f32 %v16164_v17, %v9980_v42  ;;  %v9677_v63 = vadd.f32 %v9672_v14, %v9648_v53  ;;  %v16170_v48 = vld [vmem:[#allocation60_spill] sm:$0xff]  ;;  %v16172_v42 = vld [vmem:[#allocation83_spill] sm:$0xff]  ;;  %v16178_v19 = vld [vmem:[#allocation77_spill] sm:$0xff] }
 0x390   : > { %v10168_v26 = vadd.f32 %v15047_v35, %v10139_v23  ;;  %v9966_v57 = vadd.f32 %v9961_v50, %v9937_v31  ;;  %v9730_v35 = vmul.f32 %v16050_v59, %v16168_v29  ;;  %v9865_v23 = vadd.f32 %v16170_v48, %v9836_v10  ;;  %v16171_v24 = vld [vmem:[#allocation12_spill] sm:$0xff]  ;;  %v16175_v50 = vld [vmem:[#allocation67_spill] sm:$0xff]  ;;  %v16177_v31 = vld [vmem:[#allocation53_spill] sm:$0xff] }
 0x391   : > { %v10038_v37 = vadd.f32 %v16169_v2, %v10009_v61  ;;  %v9706_v27 = vadd.f32 %v9701_v20, %v9677_v63  ;;  %v9759_v46 = vmul.f32 %v16103_v13, %v16171_v24  ;;  %v10240_v52 = vadd.f32 %v16172_v42, %v10211_v3  ;;  %v16174_v14 = vld [vmem:[#allocation80_spill] sm:$0xff]  ;;  %v16181_v60 = vld [vmem:[#allocation35_spill] sm:$0xff]  ;;  %v16184_v2 = vld [vmem:[#allocation49_spill] sm:$0xff] }
 0x392   : > { %v10197_v41 = vadd.f32 %v15054_v45, %v10168_v26  ;;  %v9995_v53 = vadd.f32 %v9990_v39, %v9966_v57  ;;  %v10019_v45 = vmul.f32 %v16174_v14, %v16173_v18  ;;  %v16176_v58 = vld [vmem:[#allocation112_spill] sm:$0xff]  ;;  %v10048_v17 = vmul.f32 %v16178_v19, %v16177_v31  ;;  %v16182_v39 = vld [vmem:[#allocation90_spill] sm:$0xff]  ;;  %v16185_v48 = vld [vmem:[#allocation85_spill] sm:$0xff] }
 0x393   : > { %v10067_v44 = vadd.f32 %v16175_v50, %v10038_v37  ;;  %v9894_v26 = vadd.f32 %v16176_v58, %v9865_v23  ;;  %v9735_v61 = vadd.f32 %v9730_v35, %v9706_v27  ;;  %v16179_v1 = vld [vmem:[#allocation84_spill] sm:$0xff]  ;;  %v9788_v37 = vmul.f32 %v16115_v4, %v16184_v2  ;;  %v16187_v42 = vld [vmem:[#allocation9_spill] sm:$0xff] }
 0x394   : > { %v10226_v7 = vadd.f32 %v15058_v47, %v10197_v41  ;;  %v10269_v10 = vadd.f32 %v16179_v1, %v10240_v52  ;;  %v10024_v21 = vadd.f32 %v10019_v45, %v9995_v53  ;;  %v16180_v20 = vld [vmem:[#allocation64_spill] sm:$0xff]  ;;  %v16183_v41 = vld [vmem:[#allocation113_spill] sm:$0xff]  ;;  %v16188_v52 = vld [vmem:[#allocation91_spill] sm:$0xff] }
 0x395   : > { %v10077_v47 = vmul.f32 %v16181_v60, %v16180_v20  ;;  %v10096_v3 = vadd.f32 %v16182_v39, %v10067_v44  ;;  %v9923_v57 = vadd.f32 %v16183_v41, %v9894_v26  ;;  %v9764_v29 = vadd.f32 %v9759_v46, %v9735_v61  ;;  %v16186_v24 = vld [vmem:[#allocation56_spill] sm:$0xff]  ;;  %v16189_v53 = vld [vmem:[#allocation114_spill] sm:$0xff]  ;;  %v16190_v50 = vld [vmem:[#allocation13_spill] sm:$0xff] }
 0x396   : > { %v10255_v63 = vadd.f32 %v15068_v25, %v10226_v7  ;;  %v10298_v23 = vadd.f32 %v16185_v48, %v10269_v10  ;;  %v10053_v27 = vadd.f32 %v10048_v17, %v10024_v21  ;;  %v10106_v25 = vmul.f32 %v16187_v42, %v16186_v24  ;;  %v16191_v46 = vld [vmem:[#allocation86_spill] sm:$0xff]  ;;  %v16192_v61 = vld [vmem:[#allocation75_spill] sm:$0xff]  ;;  %v16193_v17 = vld [vmem:[#allocation93_spill] sm:$0xff] }
 0x397   : > { %v10125_v7 = vadd.f32 %v16188_v52, %v10096_v3  ;;  %v9952_v18 = vadd.f32 %v16189_v53, %v9923_v57  ;;  %v9793_v45 = vadd.f32 %v9788_v37, %v9764_v29  ;;  %v9817_v44 = vmul.f32 %v16049_v33, %v16190_v50  ;;  %v16194_v10 = vld [vmem:[#allocation22_spill] sm:$0xff]  ;;  %v15293_v21 = vld [vmem:[#allocation3 + $0x94] sm:$0x1f]  ;;  %v16198_v41 = vld [vmem:[#allocation33_spill] sm:$0xff] }
 0x398   : > { %v10284_v35 = vadd.f32 %v15072_v32, %v10255_v63  ;;  %v10327_v58 = vadd.f32 %v16191_v46, %v10298_v23  ;;  %v10082_v31 = vadd.f32 %v10077_v47, %v10053_v27  ;;  %v10135_v32 = vmul.f32 %v15016_v36, %v16192_v61  ;;  %16195 = vst [vmem:[#allocation48_spill] sm:$0xff] %v15293_v21  ;;  %v15295_v20 = vld [vmem:[#allocation3 + $0x95] sm:$0x1f]  ;;  %v16202_v23 = vld [vmem:[#allocation38_spill] sm:$0xff]  ;;  %v15309_v53 = vld [vmem:[#allocation3 + $0xa0] sm:$0x1f] }
 0x399   : > { %v10154_v1 = vadd.f32 %v16193_v17, %v10125_v7  ;;  %v9981_v63 = vadd.f32 %v16194_v10, %v9952_v18  ;;  %16196 = vst [vmem:[#allocation16_spill] sm:$0xff] %v15295_v20  ;;  %v15297_v39 = vld [vmem:[#allocation3 + $0x96] sm:$0x1f]  ;;  %v9822_v3 = vadd.f32 %v9817_v44, %v9793_v45  ;;  %v9846_v57 = vmul.f32 %v16054_v55, %v16198_v41  ;;  %v16203_v27 = vld [vmem:[#allocation94_spill] sm:$0xff]  ;;  %v16206_v45 = vld [vmem:[#allocation45_spill] sm:$0xff] }
 0x39a   : > { %v10313_v26 = vadd.f32 %v15080_v9, %v10284_v35  ;;  %16197 = vst [vmem:[#allocation17_spill] sm:$0xff] %v15297_v39  ;;  %v16199_v29 = vld [vmem:[#allocation87_spill] sm:$0xff]  ;;  %v10111_v37 = vadd.f32 %v10106_v25, %v10082_v31  ;;  %v16201_v48 = vld [vmem:[#allocation40_spill] sm:$0xff]  ;;  %16205 = vst [vmem:[#allocation19_spill] sm:$0xff] %v15309_v53  ;;  %v10092_v46 = vmul.f32 %v16084_v51, %v15293_v21 }
 0x39b   : > { %v10356_v9 = vadd.f32 %v16199_v29, %v10327_v58  ;;  %v16200_v47 = vld [vmem:[#allocation23_spill] sm:$0xff]  ;;  %v10164_v35 = vmul.f32 %v16202_v23, %v16201_v48  ;;  %v10183_v24 = vadd.f32 %v16203_v27, %v10154_v1  ;;  %v9851_v18 = vadd.f32 %v9846_v57, %v9822_v3  ;;  %v16209_v17 = vld [vmem:[#allocation61_spill] sm:$0xff]  ;;  %v16212_v41 = vld [vmem:[#allocation14_spill] sm:$0xff] }
 0x39c   : > { %v15303_v2 = vadd.f32 %v16200_v47, %v10313_v26  ;;  %v16204_v52 = vld [vmem:[#allocation43_spill] sm:$0xff]  ;;  %v10121_v25 = vmul.f32 %v16086_v11, %v15295_v20  ;;  %v10150_v58 = vmul.f32 %v16149_v56, %v15297_v39  ;;  %v10140_v26 = vadd.f32 %v10135_v32, %v10111_v37  ;;  %v15322_v10 = vld [vmem:[#allocation3 + $0xa1] sm:$0x1f]  ;;  %v16213_v57 = vld [vmem:[#allocation10_spill] sm:$0xff] }
 0x39d   : > { %v10010_v7 = vadd.f32 %v16204_v52, %v9981_v63  ;;  %v16207_v50 = vld [vmem:[#allocation31_spill] sm:$0xff]  ;;  %10368 = vrot.lane.b32.xlu1 %v10356_v9, %s12369_s28  ;;  %16210 = vst [vmem:[#allocation101_spill] sm:$0xff] %v15322_v10  ;;  %v15324_v63 = vld [vmem:[#allocation3 + $0xa2] sm:$0x1f]  ;;  %v9904_v29 = vmul.f32 %v16213_v57, %v16212_v41  ;;  %v16216_v56 = vld [vmem:[#allocation18_spill] sm:$0xff] }
 0x39e   : > { %v9875_v44 = vmul.f32 %v16207_v50, %v16206_v45  ;;  %v16208_v31 = vld [vmem:[#allocation95_spill] sm:$0xff]  ;;  %16211 = vst [vmem:[#allocation106_spill] sm:$0xff] %v15324_v63  ;;  %v15330_v11 = vld [vmem:[#allocation3 + $0xa3] sm:$0x1f]  ;;  %v10193_v32 = vmul.f32 %v16216_v56, %v15127_v43  ;;  %v10169_v47 = vadd.f32 %v10164_v35, %v10140_v26  ;;  %v16218_v27 = vld [vmem:[#allocation96_spill] sm:$0xff] }
 0x39f   : > { %v10212_v61 = vadd.f32 %v16208_v31, %v10183_v24  ;;  %v10039_v1 = vadd.f32 %v16209_v17, %v10010_v7  ;;  %v16214_v51 = vld [vmem:[#allocation71_spill] sm:$0xff]  ;;  %16215 = vst [vmem:[#allocation52_spill] sm:$0xff] %v15330_v11  ;;  %v16217_v37 = vld [vmem:[#allocation37_spill] sm:$0xff]  ;;  %v16221_v31 = vld [vmem:[#allocation72_spill] sm:$0xff] }
 0x3a0   : > { %v9880_v3 = vadd.f32 %v9875_v44, %v9851_v18  ;;  %v10179_v9 = vmul.f32 %v16214_v51, %v15309_v53  ;;  %v9933_v48 = vmul.f32 %v16061_v12, %v16217_v37  ;;  %v16219_v52 = vld [vmem:[#allocation65_spill] sm:$0xff]  ;;  %v9962_v44 = vmul.f32 %v16156_v16, %v15129_v6  ;;  %v16222_v41 = vld [vmem:[#allocation50_spill] sm:$0xff]  ;;  %v16230_v20 = vld [vmem:[#allocation68_spill] sm:$0xff] }
 0x3a1   : > { %v10241_v24 = vadd.f32 %v16218_v27, %v10212_v61  ;;  %v10068_v7 = vadd.f32 %v16219_v52, %v10039_v1  ;;  %v15338_v18 = vld [vmem:[#allocation3 + $0xa4] sm:$0x1f]  ;;  %v10208_v17 = vmul.f32 %v16221_v31, %v15322_v10  ;;  %v10237_v43 = vmul.f32 %v16222_v41, %v15324_v63  ;;  %v16229_v10 = vld [vmem:[#allocation115_spill] sm:$0xff] }
 0x3a2   : > { %16220 = vst [vmem:[#allocation55_spill] sm:$0xff] %v15338_v18  ;;  %v9909_v45 = vadd.f32 %v9904_v29, %v9880_v3  ;;  %v16223_v35 = vld [vmem:[#allocation97_spill] sm:$0xff]  ;;  %v10198_v37 = vadd.f32 %v10193_v32, %v10169_v47  ;;  %v16225_v53 = vld [vmem:[#allocation102_spill] sm:$0xff]  ;;  %v10251_v41 = vmul.f32 %v16230_v20, %v16229_v10  ;;  %v16231_v21 = vld [vmem:[#allocation103_spill] sm:$0xff] }
 0x3a3   : > { %v16224_v26 = vld [vmem:[#allocation21_spill] sm:$0xff]  ;;  %v10270_v61 = vadd.f32 %v16225_v53, %v10241_v24  ;;  %v10097_v27 = vadd.f32 %v10092_v46, %v10068_v7  ;;  %v16227_v29 = vld [vmem:[#allocation78_spill] sm:$0xff]  ;;  %v9991_v53 = vmul.f32 %v16163_v0, %v15150_v22  ;;  %v16233_v24 = vld [vmem:[#allocation116_spill] sm:$0xff] }
 0x3a4   : > { %v10222_v51 = vmul.f32 %v16224_v26, %v16223_v35  ;;  %v16226_v1 = vld [vmem:[#allocation73_spill] sm:$0xff]  ;;  %v9938_v3 = vadd.f32 %v9933_v48, %v9909_v45  ;;  %v9789_v6 = vmul.f32 %v16115_v4, %v16227_v29  ;;  %v16228_v39 = vld [vmem:[#allocation74_spill] sm:$0xff] }
 0x3a5   : > { %v10266_v52 = vmul.f32 %v16226_v1, %v15330_v11  ;;  %v10295_v31 = vmul.f32 %v16228_v39, %v15338_v18  ;;  %v10299_v35 = vadd.f32 %v16231_v21, %v10270_v61  ;;  %v10126_v32 = vadd.f32 %v10121_v25, %v10097_v27  ;;  %v16232_v47 = vld [vmem:[#allocation62_spill] sm:$0xff]  ;;  %v16234_v7 = vld [vmem:[#allocation69_spill] sm:$0xff]  ;;  %v16238_v61 = vld [vmem:[#allocation11_spill] sm:$0xff] }
 0x3a6   : > { %v10227_v63 = vadd.f32 %v10222_v51, %v10198_v37  ;;  %v9967_v46 = vadd.f32 %v9962_v44, %v9938_v3  ;;  %v9818_v48 = vmul.f32 %v16049_v33, %v16232_v47  ;;  %v10280_v45 = vmul.f32 %v16234_v7, %v16233_v24  ;;  %v16235_v1 = vld [vmem:[#allocation26_spill] sm:$0xff]  ;;  %v16239_v3 = vld [vmem:[#allocation36_spill] sm:$0xff] }
 0x3a7   : > { %v10309_v39 = vmul.f32 %v16235_v1, %v15148_v28  ;;  %v16236_v18 = vld [vmem:[#allocation46_spill] sm:$0xff]  ;;  %v10155_v51 = vadd.f32 %v10150_v58, %v10126_v32  ;;  %v10020_v21 = vmul.f32 %v16174_v14, %v15160_v49  ;;  %v10049_v27 = vmul.f32 %v16178_v19, %v16238_v61  ;;  %v16240_v24 = vld [vmem:[#allocation104_spill] sm:$0xff]  ;;  %v16243_v32 = vld [vmem:[#allocation47_spill] sm:$0xff] }
 0x3a8   : > { %v10256_v29 = vadd.f32 %v10251_v41, %v10227_v63  ;;  %v10328_v10 = vadd.f32 %v16236_v18, %v10299_v35  ;;  %v9996_v25 = vadd.f32 %v9991_v53, %v9967_v46  ;;  %v16237_v22 = vld [vmem:[#allocation30_spill] sm:$0xff]  ;;  %v9794_v47 = vadd.f32 %v9789_v6, %v16239_v3  ;;  %v16241_v41 = vld [vmem:[#allocation63_spill] sm:$0xff]  ;;  %v16242_v35 = vld [vmem:[#allocation29_spill] sm:$0xff] }
 0x3a9   : > { %v10338_v44 = vmul.f32 %v16237_v22, %v15156_v15  ;;  %v10184_v28 = vadd.f32 %v10179_v9, %v10155_v51  ;;  %v9674_v58 = vmul.f32 %v16160_v5, %v16241_v41  ;;  %v10078_v49 = vmul.f32 %v16181_v60, %v16242_v35  ;;  %v16246_v61 = vld [vmem:[#allocation7_spill] sm:$0xff]  ;;  %v15397_v3 = vld [vmem:[#allocation3 + $0xa6] sm:$0x1f] }
 0x3aa   : > { %v10285_v37 = vadd.f32 %v10280_v45, %v10256_v29  ;;  %v10357_v11 = vadd.f32 %v16240_v24, %v10328_v10  ;;  %v10025_v63 = vadd.f32 %v10020_v21, %v9996_v25  ;;  %v9847_v15 = vmul.f32 %v16054_v55, %v16243_v32  ;;  %v15382_v45 = vld [vmem:[#allocation3 + $0xa5] sm:$0x1f]  ;;  %v16244_v29 = vld [vmem:[#allocation100_spill] sm:$0xff] }
 0x3ab   : > { %v9823_v53 = vadd.f32 %v9818_v48, %v9794_v47  ;;  %v10213_v46 = vadd.f32 %v10208_v17, %v10184_v28  ;;  %v9679_v9 = vadd.f32 %v9674_v58, %v16244_v29  ;;  %v9703_v10 = vmul.f32 %v16045_v54, %v15194_v8 }
 0x3ac   : > { %v10314_v18 = vadd.f32 %v10309_v39, %v10285_v37  ;;  %10370 = vrot.lane.b32.xlu1 %v10357_v11, %s12369_s28  ;;  %v10054_v6 = vadd.f32 %v10049_v27, %v10025_v63  ;;  %v16245_v39 = vld [vmem:[#allocation15_spill] sm:$0xff]  ;;  %v9876_v21 = vmul.f32 %v16207_v50, %v15192_v34  ;;  %v9732_v37 = vmul.f32 %v16050_v59, %v15204_v40  ;;  %v16247_v40 = vld [vmem:[#allocation8_spill] sm:$0xff] }
 0x3ad   : > { %v10107_v51 = vmul.f32 %v16187_v42, %v16245_v39  ;;  %v9852_v48 = vadd.f32 %v9847_v15, %v9823_v53  ;;  %v10242_v25 = vadd.f32 %v10237_v43, %v10213_v46  ;;  %v9708_v17 = vadd.f32 %v9703_v10, %v9679_v9  ;;  %v12312_v15 = vld [vmem:[#allocation3 + $0x81] sm:$0x1f]  ;;  %v16248_v9 = vld [vmem:[#allocation110_spill] sm:$0xff] }
 0x3ae   : > { %v15387_v5 = vadd.f32 %v10338_v44, %v10314_v18  ;;  %v10083_v11 = vadd.f32 %v10078_v49, %v10054_v6  ;;  %v10324_v27 = vmul.f32 %v16246_v61, %v15382_v45  ;;  %v9905_v54 = vmul.f32 %v16213_v57, %v15202_v30  ;;  %v12311_v30 = vld [vmem:[#allocation3 + $0x80] sm:$0x1f] }
 0x3af   : > { %v9881_v8 = vadd.f32 %v9876_v21, %v9852_v48  ;;  %v10271_v44 = vadd.f32 %v10266_v52, %v10242_v25  ;;  %v10136_v34 = vmul.f32 %v15016_v36, %v15214_v62  ;;  %v9737_v43 = vadd.f32 %v9732_v37, %v9708_v17  ;;  %v12313_v46 = vld [vmem:[#allocation3 + $0x82] sm:$0x1f] }
 0x3b0   : > { %v10112_v47 = vadd.f32 %v10107_v51, %v10083_v11  ;;  %v9934_v24 = vmul.f32 %v16061_v12, %v15216_v38  ;;  %v10353_v63 = vmul.f32 %v16247_v40, %v15397_v3  ;;  %v9761_v52 = vmul.f32 %v12311_v30, %v16103_v13  ;;  %v12314_v39 = vld [vmem:[#allocation3 + $0x80] sm:$0x1f]  ;;  %v12320_v30 = vld [vmem:[#allocation3 + $0x91] sm:$0x1f] }
 0x3b1   : > { %v9910_v28 = vadd.f32 %v9905_v54, %v9881_v8  ;;  %v10300_v59 = vadd.f32 %v10295_v31, %v10271_v44  ;;  %v9790_v38 = vmul.f32 %v12312_v15, %v16115_v4  ;;  %v9819_v6 = vmul.f32 %v12313_v46, %v16049_v33  ;;  %v12315_v25 = vld [vmem:[#allocation3 + $0x81] sm:$0x1f]  ;;  %v16250_v33 = vld [vmem:[#allocation27_spill] sm:$0xff]  ;;  %v16251_v44 = vld [vmem:[#allocation20_spill] sm:$0xff] }
 0x3b2   : > { %v10141_v41 = vadd.f32 %v10136_v34, %v10112_v47  ;;  %v9766_v32 = vadd.f32 %v9761_v52, %v9737_v43  ;;  %v9848_v10 = vmul.f32 %v16054_v55, %v16248_v9  ;;  %v9963_v13 = vmul.f32 %v12314_v39, %v16156_v16  ;;  %v12316_v55 = vld [vmem:[#allocation3 + $0x82] sm:$0x1f] }
 0x3b3   : > { %v9939_v58 = vadd.f32 %v9934_v24, %v9910_v28  ;;  %v10329_v18 = vadd.f32 %v10324_v27, %v10300_v59  ;;  %v9992_v11 = vmul.f32 %v12315_v25, %v16163_v0  ;;  %v9906_v61 = vmul.f32 %v16213_v57, %v16250_v33  ;;  %v16252_v28 = vld [vmem:[#allocation111_spill] sm:$0xff]  ;;  %v12318_v40 = vld [vmem:[#allocation3 + $0x80] sm:$0x1f] }
 0x3b4   : > { %v9795_v53 = vadd.f32 %v9790_v38, %v9766_v32  ;;  %v10021_v27 = vmul.f32 %v12316_v55, %v16174_v14  ;;  %v9935_v34 = vmul.f32 %v16061_v12, %v16251_v44  ;;  %v9964_v59 = vmul.f32 %v16156_v16, %v16252_v28  ;;  %v12321_v52 = vld [vmem:[#allocation3 + $0x81] sm:$0x1f]  ;;  %v12328_v25 = vld [vmem:[#allocation3 + $0x90] sm:$0x1f] }
 0x3b5   : > { %v10358_v35 = vadd.f32 %v10353_v63, %v10329_v18  ;;  %v9968_v17 = vadd.f32 %v9963_v13, %v9939_v58  ;;  %v10165_v12 = vmul.f32 %v12318_v40, %v16202_v23  ;;  %v12319_v63 = vld [vmem:[#allocation3 + $0x84] sm:$0x1f]  ;;  %v9993_v16 = vmul.f32 %v12320_v30, %v16163_v0  ;;  %v12334_v30 = vld [vmem:[#allocation3 + $0x93] sm:$0x1f] }
 0x3b6   : > { %v9824_v29 = vadd.f32 %v9819_v6, %v9795_v53  ;;  %v10079_v58 = vmul.f32 %v12319_v63, %v16181_v60  ;;  %v12322_v32 = vld [vmem:[#allocation3 + $0x85] sm:$0x1f]  ;;  %v12323_v53 = vld [vmem:[#allocation3 + $0x92] sm:$0x1f] }
 0x3b7   : > { %10372 = vrot.lane.b32.xlu0 %v10358_v35, %s12369_s28  ;;  %v9997_v54 = vadd.f32 %v9992_v11, %v9968_v17  ;;  %v10108_v15 = vmul.f32 %v12322_v32, %v16187_v42  ;;  %v10022_v46 = vmul.f32 %v12323_v53, %v16174_v14  ;;  %v12324_v6 = vld [vmem:[#allocation3 + $0x82] sm:$0x1f]  ;;  %v10166_v14 = vmul.f32 %v12328_v25, %v16202_v23 }
 0x3b8   : > { %v9853_v51 = vadd.f32 %v9848_v10, %v9824_v29  ;;  %v10223_v29 = vmul.f32 %v12324_v6, %v16224_v26  ;;  %v12325_v10 = vld [vmem:[#allocation3 + $0x86] sm:$0x1f] }
 0x3b9   : > { %v10026_v43 = vadd.f32 %v10021_v27, %v9997_v54  ;;  %v10137_v39 = vmul.f32 %v12325_v10, %v15016_v36  ;;  %v12329_v27 = vld [vmem:[#allocation3 + $0x84] sm:$0x1f] }
 0x3ba   : > { %v10281_v54 = vmul.f32 %v12329_v27, %v16234_v7 }
 0x3c0   : > { %v10365_v62 = vpop.permute.xlu0 %10364 }
 0x3c1   : > { %v10379_v49 = vadd.f32 %v10365_v62, %v15303_v2  ;;  %v16249_v2 = vld [vmem:[#allocation42_spill] sm:$0xff]  ;;  %v10194_v62 = vmul.f32 %v12321_v52, %v16216_v56 }
 0x3c2   : > { %v9877_v21 = vmul.f32 %v16207_v50, %v16249_v2  ;;  %v12317_v50 = vld [vmem:[#allocation3 + $0x83] sm:$0x1f] }
 0x3c3   : > { %v10828_v31 = vmul.f32 -1.442695, %v10379_v49  ;;  %v10050_v47 = vmul.f32 %v12317_v50, %v16178_v19  ;;  %v10170_v49 = vadd.f32 %v10165_v12, %v10141_v41  ;;  %v12327_v2 = vld [vmem:[#allocation3 + $0x83] sm:$0x1f] }
 0x3c4   : > { %v9882_v37 = vadd.f32 %v9877_v21, %v9853_v51  ;;  %v12326_v51 = vld [vmem:[#allocation3 + $0x93] sm:$0x1f]  ;;  %v10252_v21 = vmul.f32 %v12327_v2, %v16230_v20  ;;  %v16255_v12 = vld [vmem:[#allocation17_spill] sm:$0xff] }
 0x3c5   : > { %12291 = vpow2.f32 %v10828_v31  ;;  %v10055_v18 = vadd.f32 %v10050_v47, %v10026_v43  ;;  %v10199_v9 = vadd.f32 %v10194_v62, %v10170_v49  ;;  %v10051_v41 = vmul.f32 %v12326_v51, %v16178_v19  ;;  %v16254_v47 = vld [vmem:[#allocation16_spill] sm:$0xff]  ;;  %v16256_v62 = vld [vmem:[#allocation19_spill] sm:$0xff] }
 0x3c6   : > { %v9911_v8 = vadd.f32 %v9906_v61, %v9882_v37  ;;  %v16253_v37 = vld [vmem:[#allocation48_spill] sm:$0xff]  ;;  %v10109_v43 = vmul.f32 %v16187_v42, %v16254_v47  ;;  %v10138_v63 = vmul.f32 %v15016_v36, %v16255_v12  ;;  %v10253_v42 = vmul.f32 %v12334_v30, %v16230_v20 }
 0x3c7   : > { %v10084_v38 = vadd.f32 %v10079_v58, %v10055_v18  ;;  %v10080_v33 = vmul.f32 %v16181_v60, %v16253_v37  ;;  %v12333_v58 = vld [vmem:[#allocation3 + $0x86] sm:$0x1f]  ;;  %v10167_v49 = vmul.f32 %v16202_v23, %v16256_v62 }
 0x3c8   : > { %v9940_v24 = vadd.f32 %v9935_v34, %v9911_v8  ;;  %v12330_v8 = vld [vmem:[#allocation3 + $0x91] sm:$0x1f]  ;;  %v10339_v18 = vmul.f32 %v12333_v58, %v16237_v22 }
 0x3c9   : > { %v10113_v0 = vadd.f32 %v10108_v15, %v10084_v38  ;;  %v10195_v44 = vmul.f32 %v12330_v8, %v16216_v56  ;;  %v12335_v38 = vld [vmem:[#allocation3 + $0x94] sm:$0x1f] }
 0x3ca   : > { %v9969_v35 = vadd.f32 %v9964_v59, %v9940_v24  ;;  %v12331_v24 = vld [vmem:[#allocation3 + $0x85] sm:$0x1f]  ;;  %v12332_v59 = vld [vmem:[#allocation3 + $0x92] sm:$0x1f] }
 0x3cb   : > { %v10142_v11 = vadd.f32 %v10137_v39, %v10113_v0  ;;  %v10310_v28 = vmul.f32 %v12331_v24, %v16235_v1  ;;  %v12336_v0 = vld [vmem:[#allocation3 + $0x95] sm:$0x1f] }
 0x3cc   : > { %v9998_v31 = vadd.f32 %v9993_v16, %v9969_v35 }
 0x3cd   : > { %v10171_v34 = vadd.f32 %v10166_v14, %v10142_v11  ;;  %v16259_v14 = vld [vmem:[#allocation52_spill] sm:$0xff] }
 0x3ce   : > { %v10027_v13 = vadd.f32 %v10022_v46, %v9998_v31  ;;  %v10282_v31 = vmul.f32 %v12335_v38, %v16234_v7 }
 0x3cf   : > { %v12292_v48 = vpop.eup %12291 }
 0x3d0   : > { %v10399_v4 = vadd.f32 1.0, %v12292_v48  ;;  %v10228_v48 = vadd.f32 %v10223_v29, %v10199_v9  ;;  %v10056_v17 = vadd.f32 %v10051_v41, %v10027_v13  ;;  %v16257_v29 = vld [vmem:[#allocation101_spill] sm:$0xff]  ;;  %v10311_v13 = vmul.f32 %v12336_v0, %v16235_v1  ;;  %v16258_v41 = vld [vmem:[#allocation106_spill] sm:$0xff] }
 0x3d1   : > { %v10196_v9 = vmul.f32 %v16216_v56, %v16257_v29  ;;  %v10225_v2 = vmul.f32 %v16224_v26, %v16258_v41  ;;  %v10254_v56 = vmul.f32 %v16230_v20, %v16259_v14 }
 0x3d2   : > { %12293 = vrcp.f32 %v10399_v4  ;;  %v10257_v19 = vadd.f32 %v10252_v21, %v10228_v48  ;;  %v10085_v50 = vadd.f32 %v10080_v33, %v10056_v17  ;;  %v12337_v21 = vld [vmem:[#allocation3 + $0x96] sm:$0x1f] }
 0x3d3   : > { %v10340_v48 = vmul.f32 %v12337_v21, %v16237_v22  ;;  %v16260_v33 = vld [vmem:[#allocation55_spill] sm:$0xff] }
 0x3d4   : > { %v10286_v60 = vadd.f32 %v10281_v54, %v10257_v19  ;;  %v10114_v40 = vadd.f32 %v10109_v43, %v10085_v50 }
 0x3d6   : > { %v10315_v35 = vadd.f32 %v10310_v28, %v10286_v60  ;;  %v10143_v52 = vadd.f32 %v10138_v63, %v10114_v40 }
 0x3d8   : > { %v10344_v15 = vadd.f32 %v10339_v18, %v10315_v35  ;;  %v10172_v6 = vadd.f32 %v10167_v49, %v10143_v52 }
 0x3da   : > { %v10201_v51 = vadd.f32 %v10196_v9, %v10172_v6 }
 0x3dc   : > { %v12294_v57 = vpop.eup %12293  ;;  %v10230_v25 = vadd.f32 %v10225_v2, %v10201_v51 }
 0x3dd   : > { %10415 = vst.msk [vmem:[%s15430_s17] sm:$0x1f] %vm10414_vm10, %v12294_v57  ;;  %v10200_v57 = vadd.f32 %v10195_v44, %v10171_v34  ;;  %v10312_v44 = vmul.f32 %v16235_v1, %v15382_v45  ;;  %v10341_v34 = vmul.f32 %v16237_v22, %v15397_v3 }
 0x3de   : > { %v10259_v37 = vadd.f32 %v10254_v56, %v10230_v25 }
 0x3fc   : > { %v10367_v4 = vpop.permute.xlu1 %10366 }
 0x3fd   : > { %v10380_v61 = vadd.f32 %v10367_v4, %v15387_v5  ;;  %v10224_v5 = vmul.f32 %v12332_v59, %v16224_v26 }
 0x3ff   : > { %v10829_v55 = vmul.f32 -1.442695, %v10380_v61  ;;  %v10229_v16 = vadd.f32 %v10224_v5, %v10200_v57  ;;  %v10283_v61 = vmul.f32 %v16234_v7, %v16260_v33 }
 0x401   : > { %12295 = vpow2.f32 %v10829_v55  ;;  %v10258_v36 = vadd.f32 %v10253_v42, %v10229_v16  ;;  %v10288_v8 = vadd.f32 %v10283_v61, %v10259_v37 }
 0x403   : > { %v10287_v23 = vadd.f32 %v10282_v31, %v10258_v36  ;;  %v10317_v20 = vadd.f32 %v10312_v44, %v10288_v8 }
 0x405   : > { %v10316_v4 = vadd.f32 %v10311_v13, %v10287_v23  ;;  %v10346_v7 = vadd.f32 %v10341_v34, %v10317_v20 }
 0x407   : > { %v10345_v17 = vadd.f32 %v10340_v48, %v10316_v4 }
 0x40b   : > { %v12296_v32 = vpop.eup %12295 }
 0x40c   : > { %v10400_v53 = vadd.f32 1.0, %v12296_v32 }
 0x40e   : > { %12297 = vrcp.f32 %v10400_v53 }
 0x40f   : > { %v10369_v46 = vpop.permute.xlu1 %10368 }
 0x410   : > { %v10381_v10 = vadd.f32 %v10369_v46, %v10344_v15 }
 0x412   : > { %v10830_v39 = vmul.f32 -1.442695, %v10381_v10 }
 0x414   : > { %12299 = vpow2.f32 %v10830_v39 }
 0x418   : > { %v12298_v11 = vpop.eup %12297 }
 0x419   : > { %10416 = vst.msk [vmem:[%s15430_s17 + $0x8] sm:$0x1f] %vm10414_vm10, %v12298_v11 }
 0x41e   : > { %v10371_v55 = vpop.permute.xlu1 %10370  ;;  %v12300_v26 = vpop.eup %12299 }
 0x41f   : > { %v10382_v27 = vadd.f32 %v10371_v55, %v10345_v17  ;;  %v10401_v54 = vadd.f32 1.0, %v12300_v26 }
 0x421   : > { %v10831_v19 = vmul.f32 -1.442695, %v10382_v27  ;;  %12301 = vrcp.f32 %v10401_v54 }
 0x423   : > { %12303 = vpow2.f32 %v10831_v19 }
 0x429   : > { %v10373_v50 = vpop.permute.xlu0 %10372 }
 0x42a   : > { %v10383_v47 = vadd.f32 %v10373_v50, %v10346_v7 }
 0x42b   : > { %v12302_v43 = vpop.eup %12301 }
 0x42c   : > { %v10832_v24 = vmul.f32 -1.442695, %v10383_v47  ;;  %10417 = vst.msk [vmem:[%s15430_s17 + $0x10] sm:$0x1f] %vm10414_vm10, %v12302_v43 }
 0x42d   : > { %v12304_v28 = vpop.eup %12303 }
 0x42e   : > { %v10402_v60 = vadd.f32 1.0, %v12304_v28  ;;  %12305 = vpow2.f32 %v10832_v24 }
 0x430   : > { %12307 = vrcp.f32 %v10402_v60 }
 0x438   : > { %v12306_v1 = vpop.eup %12305 }
 0x439   : > { %v10403_v45 = vadd.f32 1.0, %v12306_v1 }
 0x43a   : > { %v12308_v59 = vpop.eup %12307 }
 0x43b   : > { %10418 = vst.msk [vmem:[%s15430_s17 + $0x18] sm:$0x1f] %vm10414_vm10, %v12308_v59  ;;  %12309 = vrcp.f32 %v10403_v45 }
 0x445   : > { %v12310_v5 = vpop.eup %12309 }
 0x446   : > { %10419 = vst.msk [vmem:[%s15430_s17 + $0x20] sm:$0x1f] %vm10414_vm10, %v12310_v5 }
 0x447 PF: > { %s17_s21 = sadd.s32 1, %s12363_s21  }
 0x448   : > { %p14_p1 = scmp.ge.s32.totalorder %s17_s21, 4  }
 0x44a   :  { %16 = sbr.rel (!%p14_p1) target bundleno = 1 (0x1), region = 121 }
 0x451   :  { %10441 = vsyncpa [#allocation5], 1 }
 0x452   :  { %10443 = vsyncpa [#allocation5 + $0x1], 1 }

</bundles_post_ra>
